<compile_context>
chip_gen: v7x
topology: tpu7x:2x2x1
jax: 0.10.0
libtpu: 0.0.40
codegen_flags: <defaults>
</compile_context>

<pallas_src>
import jax
import jax.numpy as jnp
from jax import lax
from jax.experimental import pallas as pl
from jax.experimental.pallas import tpu as pltpu


# --------------------------------------------------------------------------- fused kernel

def _make_kernel(dimp, midp, H, W, pad):
    HW = H * W

    # fused per-channel bias/shift row offsets (order must match _prep_operands)
    o_dw1 = 0
    o_f12 = o_dw1 + dimp          # f1 bias then f2 bias, contiguous (2*midp rows)
    o_c1 = o_f12 + 2 * midp
    o_h = o_c1 + midp
    o_v = o_h + midp
    o_c2 = o_v + midp
    o_g = o_c2 + midp
    o_dw2 = o_g + dimp

    def kernel(x_ref, dw12_ref, f12_ref, c12_ref, hv_ref, g_ref, b_ref, o_ref, pad_ref):
        # Halo invariant: dw_flat only ever WRITES columns [pad, pad+HW); the halo stripes
        # are re-zeroed every grid step (cheap: 2 * (midp, pad) stores) so this stays
        # correct even when the parallel batch axis is split across TensorCores.
        pad_ref[:, 0:pad] = jnp.zeros((midp, pad), jnp.float32)
        pad_ref[:, pad + HW:2 * pad + HW] = jnp.zeros((midp, pad), jnp.float32)

        # Column-validity masks for every horizontal tap offset, computed once and reused
        # by all depthwise convs (7x7 uses |dj|<=3, 1x11 uses |dj|<=5).
        col = lax.broadcasted_iota(jnp.int32, (1, HW), 1) % W
        masks = {dj: ((col + dj >= 0) & (col + dj < W)).astype(jnp.float32)
                 for dj in range(-5, 6) if dj != 0}

        def dw_flat(x, w, shift, kh, kw):
            """Depthwise (kh,kw) conv, stride 1, zero padding, channels-major (C, HW).

            x     : (C, HW) value.
            w     : (C, kh*kw) tap weights (value), or None for an all-ones box filter.
            shift : (C, 1) per-channel bias/shift (value), or None.
            """
            C = x.shape[0]
            ph, pw = (kh - 1) // 2, (kw - 1) // 2
            pad_ref[0:C, pad:pad + HW] = x                 # interior only; halo stays zero
            accs = [None] * kw
            for i in range(kh):
                di = i - ph
                base = pad + di * W - pw
                # one widened load per vertical tap; horizontal taps = in-register slices
                row = pad_ref[0:C, base:base + HW + (kw - 1)]
                for j in range(kw):
                    tap = row[:, j:j + HW] if kw > 1 else row
                    if w is not None:
                        k = i * kw + j
                        tap = tap * w[:, k:k + 1]          # (C,1) lane-broadcast
                    accs[j] = tap if accs[j] is None else accs[j] + tap
            out = None
            for j in range(kw):
                dj = j - pw
                cs = accs[j]
                if dj != 0:
                    cs = cs * masks[dj]                    # zero taps that crossed a row edge
                out = cs if out is None else out + cs
            if shift is not None:
                out = out + shift
            return out

        x0 = x_ref[0]                                                       # (dimp, HW)

        # dwconv: depthwise 7x7 (BN scale pre-folded into taps) + shift, no act
        x = dw_flat(x0, dw12_ref[0:dimp, :], b_ref[o_dw1:o_dw1 + dimp], 7, 7)

        # f1 / f2: fused block-diagonal 1x1 convs (single MXU dot) + ReLU6 gate
        y12 = (jnp.dot(f12_ref[...], x, preferred_element_type=jnp.float32)
               + b_ref[o_f12:o_f12 + 2 * midp])
        y = jnp.clip(y12[0:midp], 0.0, 6.0) * y12[midp:2 * midp]            # (midp, HW)

        # --- CAA attention on y ---
        # AvgPool2d(7,1,3), count_include_pad=True: separable box sums; 1/49 folded into c1.
        a = dw_flat(y, None, None, 1, 7)
        a = dw_flat(a, None, None, 7, 1)
        # conv1: 1x1 (BN scale & 1/49 folded) + shift + SiLU
        a = (jnp.dot(c12_ref[0:midp, :], a, preferred_element_type=jnp.float32)
             + b_ref[o_c1:o_c1 + midp])
        a = a * jax.nn.sigmoid(a)
        # h_conv (1x11 depthwise + bias), v_conv (11x1 depthwise + bias)
        a = dw_flat(a, hv_ref[0:midp, :], b_ref[o_h:o_h + midp], 1, 11)
        a = dw_flat(a, hv_ref[midp:2 * midp, :], b_ref[o_v:o_v + midp], 11, 1)
        # conv2: 1x1 (BN scale folded) + shift + SiLU (ultralytics Conv default), Sigmoid gate
        a = (jnp.dot(c12_ref[midp:2 * midp, :], a, preferred_element_type=jnp.float32)
             + b_ref[o_c2:o_c2 + midp])
        a = a * jax.nn.sigmoid(a)
        z = jax.nn.sigmoid(a) * y

        # g: block-diagonal 1x1 (BN scale folded) + shift, no act
        z = (jnp.dot(g_ref[...], z, preferred_element_type=jnp.float32)
             + b_ref[o_g:o_g + dimp])

        # dwconv2: depthwise 7x7 + bias, then residual (drop_path=0 -> Identity)
        z = dw_flat(z, dw12_ref[dimp:2 * dimp, :], b_ref[o_dw2:o_dw2 + dimp], 7, 7)
        o_ref[0] = x0 + z

    return kernel


# --------------------------------------------------------------------------- host-side prep

def _pick_bt(B, dim):
    """Smallest Bt dividing B with Bt*dim a multiple of 8 (fills f32 sublanes)."""
    for bt in range(1, B + 1):
        if B % bt == 0 and (bt * dim) % 8 == 0:
            return bt
    best = 1
    for bt in range(1, B + 1):
        if B % bt == 0 and bt * dim <= 8:
            best = bt
    return best


def _prep_operands(p, dim, mid, Bt):
    """Fold BN scales & 1/49 into weights, tile per-channel tensors by Bt, block-diagonalize
    the 1x1 convs, and fuse everything into 6 operands (host-side, free)."""

    def tile_c(w):                 # per-channel (C, k) -> (Bt*C, k)
        return jnp.tile(w, (Bt, 1)) if Bt > 1 else w

    def bdiag(w):                  # (o, i) -> (Bt*o, Bt*i) block-diagonal
        if Bt == 1:
            return w
        o, i = w.shape
        out = jnp.zeros((Bt * o, Bt * i), w.dtype)
        for b in range(Bt):
            out = out.at[b * o:(b + 1) * o, b * i:(b + 1) * i].set(w)
        return out

    dw1_w = p["dw1_w"] * p["dw1_scale"]                    # fold BN scale into 7x7 taps
    c1_w = p["c1_w"] * p["c1_scale"] * (1.0 / 49.0)        # fold BN scale + avgpool 1/49
    c2_w = p["c2_w"] * p["c2_scale"]
    g_w = p["g_w"] * p["g_scale"]

    f1_w, f2_w = p["f12_w"][:mid], p["f12_w"][mid:]
    f1_b, f2_b = p["f12_b"][:mid], p["f12_b"][mid:]

    dw12 = jnp.concatenate([tile_c(dw1_w), tile_c(p["dw2_w"])], axis=0)    # (2*dimp, 49)
    f12 = jnp.concatenate([bdiag(f1_w), bdiag(f2_w)], axis=0)              # (2*midp, dimp)
    c12 = jnp.concatenate([bdiag(c1_w), bdiag(c2_w)], axis=0)              # (2*midp, midp)
    hv = jnp.concatenate([tile_c(p["h_w"]), tile_c(p["v_w"])], axis=0)     # (2*midp, 11)
    g = bdiag(g_w)                                                         # (dimp, midp)
    bias = jnp.concatenate([                                               # (3*dimp+6*midp, 1)
        tile_c(p["dw1_shift"]),
        tile_c(f1_b), tile_c(f2_b),
        tile_c(p["c1_shift"]),
        tile_c(p["h_b"]), tile_c(p["v_b"]),
        tile_c(p["c2_shift"]),
        tile_c(p["g_shift"]),
        tile_c(p["dw2_b"]),
    ], axis=0)
    return [dw12, f12, c12, hv, g, bias]


# --------------------------------------------------------------------------- wrapper

def bottleneck_caa_v2(x_nchw, params, dim, mlp_ratio):
    mid = mlp_ratio * dim
    B, C, H, W = x_nchw.shape
    assert C == dim and mid >= dim
    HW = H * W

    Bt = _pick_bt(B, dim)          # batches packed into the sublane (channel) axis
    G = B // Bt
    dimp, midp = Bt * dim, Bt * mid

    # halo big enough for the widest flattened shift (11x1 dw: 5 rows = 5*W lanes; 7x7 dw:
    # 3*W+3), rounded up to a lane-tile multiple so the interior write stays aligned.
    pad = ((max(5 * W, 3 * W + 3) + 127) // 128) * 128
    assert pad >= 5 * W and pad >= 3 * W + 3, "halo must cover every flattened tap offset"

    x_flat = x_nchw.astype(jnp.float32).reshape(G, dimp, HW)   # free reshape of NCHW
    weights = _prep_operands(params, dim, mid, Bt)

    kern = _make_kernel(dimp, midp, H, W, pad)

    # VMEM limit from the actual footprint (scratch + double-buffered operands + live
    # activations), instead of a blanket 32 MiB; sized to stay inside v7x's 64 MiB.
    def padded_bytes(shape):
        r = shape[-2] if len(shape) >= 2 else 1
        return ((r + 7) // 8) * 8 * ((shape[-1] + 127) // 128) * 128 * 4

    fp = ((midp + 7) // 8) * 8 * (2 * pad + HW) * 4            # pad_ref scratch
    fp += 2 * 2 * padded_bytes((dimp, HW))                     # x + out, double-buffered
    fp += 2 * sum(padded_bytes(w.shape) for w in weights)      # operands, double-buffered
    fp += 12 * padded_bytes((2 * midp, HW))                    # live intermediates (generous)
    vmem_limit = int(min(64 * 1024 * 1024, max(4 * 1024 * 1024, 2 * fp)))

    grid_spec = pltpu.PrefetchScalarGridSpec(
        num_scalar_prefetch=0,
        grid=(G,),
        in_specs=[pl.BlockSpec((1, dimp, HW), lambda b: (b, 0, 0))]
                 + [pl.BlockSpec(w.shape, lambda b: (0, 0)) for w in weights],
        out_specs=pl.BlockSpec((1, dimp, HW), lambda b: (b, 0, 0)),
        scratch_shapes=[pltpu.VMEM((midp, 2 * pad + HW), jnp.float32)],
    )
    out = pl.pallas_call(
        kern,
        out_shape=jax.ShapeDtypeStruct((G, dimp, HW), jnp.float32),
        grid_spec=grid_spec,
        compiler_params=pltpu.CompilerParams(
            dimension_semantics=("parallel",),    # batch-group axis can shard across TCs
            vmem_limit_bytes=vmem_limit,
        ),
    )(x_flat, *weights)
    return out.reshape(B, dim, H, W)


# --------------------------------------------------------------------------- pure-JAX reference

def _dw_conv_ref(x, w_flat, kh, kw):
    C = x.shape[1]
    w = w_flat.reshape(C, 1, kh, kw)
    return lax.conv_general_dilated(
        x, w, window_strides=(1, 1),
        padding=[((kh - 1) // 2,) * 2, ((kw - 1) // 2,) * 2],
        dimension_numbers=("NCHW", "OIHW", "NCHW"),
        feature_group_count=C)


def _pw_ref(x, w):  # 1x1 conv, w: (Cout, Cin)
    return jnp.einsum("oc,bchw->bohw", w, x)


def reference_forward(x, p, dim, mlp_ratio):
    mid = mlp_ratio * dim

    def aff(name, c):
        return (p[name + "_scale"].reshape(1, c, 1, 1),
                p[name + "_shift"].reshape(1, c, 1, 1))

    x0 = x.astype(jnp.float32)
    s, t = aff("dw1", dim)
    h = _dw_conv_ref(x0, p["dw1_w"], 7, 7) * s + t

    f1_w, f2_w = p["f12_w"][:mid], p["f12_w"][mid:]
    f1_b = p["f12_b"][:mid].reshape(1, mid, 1, 1)
    f2_b = p["f12_b"][mid:].reshape(1, mid, 1, 1)
    y1 = _pw_ref(h, f1_w) + f1_b
    y2 = _pw_ref(h, f2_w) + f2_b
    y = jnp.clip(y1, 0.0, 6.0) * y2

    # CAA
    a = lax.reduce_window(y, 0.0, lax.add, (1, 1, 7, 7), (1, 1, 1, 1),
                          [(0, 0), (0, 0), (3, 3), (3, 3)]) / 49.0
    s, t = aff("c1", mid)
    a = _pw_ref(a, p["c1_w"]) * s + t
    a = a * jax.nn.sigmoid(a)
    a = _dw_conv_ref(a, p["h_w"], 1, 11) + p["h_b"].reshape(1, mid, 1, 1)
    a = _dw_conv_ref(a, p["v_w"], 11, 1) + p["v_b"].reshape(1, mid, 1, 1)
    s, t = aff("c2", mid)
    a = _pw_ref(a, p["c2_w"]) * s + t
    a = a * jax.nn.sigmoid(a)
    z = jax.nn.sigmoid(a) * y

    s, t = aff("g", dim)
    z = _pw_ref(z, p["g_w"]) * s + t
    z = _dw_conv_ref(z, p["dw2_w"], 7, 7) + p["dw2_b"].reshape(1, dim, 1, 1)
    return x0 + z


# --------------------------------------------------------------------------- params

def init_params(key, dim, mlp_ratio):
    mid = mlp_ratio * dim
    keys = iter(jax.random.split(key, 64))

    def rn(shape, scale=0.2):
        return scale * jax.random.normal(next(keys), shape, jnp.float32)

    def bn_fold(c):
        # BatchNorm2d (eval) folded into per-channel scale / shift (channels-major (C,1)).
        gamma = 1.0 + 0.1 * jax.random.normal(next(keys), (c,), jnp.float32)
        beta = 0.1 * jax.random.normal(next(keys), (c,), jnp.float32)
        mean = 0.1 * jax.random.normal(next(keys), (c,), jnp.float32)
        var = 1.0 + 0.1 * jnp.abs(jax.random.normal(next(keys), (c,), jnp.float32))
        eps = 1e-3  # ultralytics Conv uses BatchNorm2d(eps=1e-3)
        scale = gamma / jnp.sqrt(var + eps)
        shift = beta - mean * scale
        return scale.reshape(c, 1), shift.reshape(c, 1)

    p = {}
    p["dw1_w"] = rn((dim, 49))                               # dwconv depthwise 7x7
    p["dw1_scale"], p["dw1_shift"] = bn_fold(dim)
    f1_w, f1_b = rn((mid, dim)), rn((mid, 1))
    f2_w, f2_b = rn((mid, dim)), rn((mid, 1))
    p["f12_w"] = jnp.concatenate([f1_w, f2_w], axis=0)       # fused (2*mid, dim)
    p["f12_b"] = jnp.concatenate([f1_b, f2_b], axis=0)       # fused (2*mid, 1)
    p["c1_w"] = rn((mid, mid))                               # CAA.conv1 1x1
    p["c1_scale"], p["c1_shift"] = bn_fold(mid)
    p["h_w"], p["h_b"] = rn((mid, 11)), rn((mid, 1))         # CAA.h_conv (1x11 dw)
    p["v_w"], p["v_b"] = rn((mid, 11)), rn((mid, 1))         # CAA.v_conv (11x1 dw)
    p["c2_w"] = rn((mid, mid))                               # CAA.conv2 1x1
    p["c2_scale"], p["c2_shift"] = bn_fold(mid)
    p["g_w"] = rn((dim, mid))                                # g 1x1
    p["g_scale"], p["g_shift"] = bn_fold(dim)
    p["dw2_w"], p["dw2_b"] = rn((dim, 49)), rn((dim, 1))     # dwconv2 7x7 + bias
    return p


# --------------------------------------------------------------------------- main

if __name__ == "__main__":
    dim, mlp_ratio = 4, 3
    B, H, W = 2, 16, 16

    root = jax.random.PRNGKey(0)
    k_x, k_p = jax.random.split(root)
    x = jax.random.normal(k_x, (B, dim, H, W), jnp.float32)   # NCHW, like PyTorch
    params = init_params(k_p, dim, mlp_ratio)

    out = bottleneck_caa_v2(x, params, dim, mlp_ratio)
    out = jax.block_until_ready(out)

    ref = reference_forward(x, params, dim, mlp_ratio)
    err = float(jnp.max(jnp.abs(out - ref)))
    tol = 1e-3 * max(1.0, float(jnp.max(jnp.abs(ref))))
    if not err < tol:
        raise AssertionError(
            f"Pallas output mismatch vs JAX reference: max abs err = {err} (tol={tol})")

    # TODO(synk): DropPath with drop_path > 0 (stochastic depth) not implemented; module default is Identity.
    print("KERNEL_OK")
</pallas_src>

<mosaic_0001>
module attributes {stable_mosaic.version = 11 : i64} {
  func.func @kernel(%arg0: i32, %arg1: memref<1x8x256xf32, #tpu.memory_space<vmem>>, %arg2: memref<16x49xf32, #tpu.memory_space<vmem>>, %arg3: memref<48x8xf32, #tpu.memory_space<vmem>>, %arg4: memref<48x24xf32, #tpu.memory_space<vmem>>, %arg5: memref<48x11xf32, #tpu.memory_space<vmem>>, %arg6: memref<8x24xf32, #tpu.memory_space<vmem>>, %arg7: memref<168x1xf32, #tpu.memory_space<vmem>>, %arg8: memref<1x8x256xf32, #tpu.memory_space<vmem>>, %arg9: memref<24x512xf32, #tpu.memory_space<vmem>>) attributes {dimension_semantics = [#tpu.dimension_semantics<parallel>], iteration_bounds = array<i64: 1>, scalar_prefetch = 0 : i64, scratch_operands = 1 : i64, tpu.core_type = #tpu.core_type<tc>, window_params = [{transform_indices = @transform_0, window_bounds = array<i64: 1, 8, 256>}, {pipeline_mode = #tpu.pipeline_mode<synchronous>, transform_indices = @transform_1, window_bounds = array<i64: 16, 49>}, {pipeline_mode = #tpu.pipeline_mode<synchronous>, transform_indices = @transform_2, window_bounds = array<i64: 48, 8>}, {pipeline_mode = #tpu.pipeline_mode<synchronous>, transform_indices = @transform_3, window_bounds = array<i64: 48, 24>}, {pipeline_mode = #tpu.pipeline_mode<synchronous>, transform_indices = @transform_4, window_bounds = array<i64: 48, 11>}, {pipeline_mode = #tpu.pipeline_mode<synchronous>, transform_indices = @transform_5, window_bounds = array<i64: 8, 24>}, {pipeline_mode = #tpu.pipeline_mode<synchronous>, transform_indices = @transform_6, window_bounds = array<i64: 168, 1>}, {transform_indices = @transform_7, window_bounds = array<i64: 1, 8, 256>}]} {
    %cst = arith.constant 0.000000e+00 : f32
    %0 = vector.broadcast %cst : f32 to vector<24x128xf32>
    %c0 = arith.constant 0 : index
    %c0_0 = arith.constant 0 : index
    %1 = vector.load %arg9[%c0, %c0_0] : memref<24x512xf32, #tpu.memory_space<vmem>>, vector<24x128xf32>
    tpu.vector_store %arg9[%c0, %c0_0], %0 {strides = array<i32>} : memref<24x512xf32, #tpu.memory_space<vmem>>, vector<24x128xf32>,
    %cst_1 = arith.constant 0.000000e+00 : f32
    %2 = vector.broadcast %cst_1 : f32 to vector<24x128xf32>
    %c0_2 = arith.constant 0 : index
    %c384 = arith.constant 384 : index
    %3 = vector.load %arg9[%c0_2, %c384] : memref<24x512xf32, #tpu.memory_space<vmem>>, vector<24x128xf32>
    tpu.vector_store %arg9[%c0_2, %c384], %2 {strides = array<i32>} : memref<24x512xf32, #tpu.memory_space<vmem>>, vector<24x128xf32>,
    %4 = tpu.iota {dimensions = array<i32: 1>} : vector<1x256xi32>
    %c16_i32 = arith.constant 16 : i32
    %c0_i32 = arith.constant 0 : i32
    %5 = arith.cmpi eq, %c16_i32, %c0_i32 : i32
    %c1_i32 = arith.constant 1 : i32
    %6 = arith.select %5, %c1_i32, %c16_i32 : i32
    %7 = vector.broadcast %6 : i32 to vector<1x256xi32>
    %8 = arith.remsi %4, %7 : vector<1x256xi32>
    %c0_i32_3 = arith.constant 0 : i32
    %9 = vector.broadcast %c0_i32_3 : i32 to vector<1x256xi32>
    %10 = arith.cmpi ne, %8, %9 : vector<1x256xi32>
    %c0_i32_4 = arith.constant 0 : i32
    %11 = vector.broadcast %c0_i32_4 : i32 to vector<1x256xi32>
    %12 = arith.cmpi slt, %8, %11 : vector<1x256xi32>
    %c0_i32_5 = arith.constant 0 : i32
    %13 = arith.cmpi slt, %6, %c0_i32_5 : i32
    %14 = vector.broadcast %13 : i1 to vector<1x256xi1>
    %15 = vector.broadcast %14 : vector<1x256xi1> to vector<1x256xi1>
    %16 = arith.xori %12, %15 : vector<1x256xi1>
    %17 = arith.andi %16, %10 : vector<1x256xi1>
    %18 = vector.broadcast %6 : i32 to vector<1x256xi32>
    %19 = arith.addi %8, %18 : vector<1x256xi32>
    %20 = arith.select %17, %19, %8 : vector<1x256xi1>, vector<1x256xi32>
    %c-5_i32 = arith.constant -5 : i32
    %21 = vector.broadcast %c-5_i32 : i32 to vector<1x256xi32>
    %22 = arith.addi %20, %21 : vector<1x256xi32>
    %c0_i32_6 = arith.constant 0 : i32
    %23 = vector.broadcast %c0_i32_6 : i32 to vector<1x256xi32>
    %24 = arith.cmpi sge, %22, %23 : vector<1x256xi32>
    %c-5_i32_7 = arith.constant -5 : i32
    %25 = vector.broadcast %c-5_i32_7 : i32 to vector<1x256xi32>
    %26 = arith.addi %20, %25 : vector<1x256xi32>
    %c16_i32_8 = arith.constant 16 : i32
    %27 = vector.broadcast %c16_i32_8 : i32 to vector<1x256xi32>
    %28 = arith.cmpi slt, %26, %27 : vector<1x256xi32>
    %29 = arith.andi %24, %28 : vector<1x256xi1>
    %30 = arith.extui %29 : vector<1x256xi1> to vector<1x256xi32>
    %31 = arith.sitofp %30 : vector<1x256xi32> to vector<1x256xf32>
    %c-4_i32 = arith.constant -4 : i32
    %32 = vector.broadcast %c-4_i32 : i32 to vector<1x256xi32>
    %33 = arith.addi %20, %32 : vector<1x256xi32>
    %c0_i32_9 = arith.constant 0 : i32
    %34 = vector.broadcast %c0_i32_9 : i32 to vector<1x256xi32>
    %35 = arith.cmpi sge, %33, %34 : vector<1x256xi32>
    %c-4_i32_10 = arith.constant -4 : i32
    %36 = vector.broadcast %c-4_i32_10 : i32 to vector<1x256xi32>
    %37 = arith.addi %20, %36 : vector<1x256xi32>
    %c16_i32_11 = arith.constant 16 : i32
    %38 = vector.broadcast %c16_i32_11 : i32 to vector<1x256xi32>
    %39 = arith.cmpi slt, %37, %38 : vector<1x256xi32>
    %40 = arith.andi %35, %39 : vector<1x256xi1>
    %41 = arith.extui %40 : vector<1x256xi1> to vector<1x256xi32>
    %42 = arith.sitofp %41 : vector<1x256xi32> to vector<1x256xf32>
    %c-3_i32 = arith.constant -3 : i32
    %43 = vector.broadcast %c-3_i32 : i32 to vector<1x256xi32>
    %44 = arith.addi %20, %43 : vector<1x256xi32>
    %c0_i32_12 = arith.constant 0 : i32
    %45 = vector.broadcast %c0_i32_12 : i32 to vector<1x256xi32>
    %46 = arith.cmpi sge, %44, %45 : vector<1x256xi32>
    %c-3_i32_13 = arith.constant -3 : i32
    %47 = vector.broadcast %c-3_i32_13 : i32 to vector<1x256xi32>
    %48 = arith.addi %20, %47 : vector<1x256xi32>
    %c16_i32_14 = arith.constant 16 : i32
    %49 = vector.broadcast %c16_i32_14 : i32 to vector<1x256xi32>
    %50 = arith.cmpi slt, %48, %49 : vector<1x256xi32>
    %51 = arith.andi %46, %50 : vector<1x256xi1>
    %52 = arith.extui %51 : vector<1x256xi1> to vector<1x256xi32>
    %53 = arith.sitofp %52 : vector<1x256xi32> to vector<1x256xf32>
    %c-2_i32 = arith.constant -2 : i32
    %54 = vector.broadcast %c-2_i32 : i32 to vector<1x256xi32>
    %55 = arith.addi %20, %54 : vector<1x256xi32>
    %c0_i32_15 = arith.constant 0 : i32
    %56 = vector.broadcast %c0_i32_15 : i32 to vector<1x256xi32>
    %57 = arith.cmpi sge, %55, %56 : vector<1x256xi32>
    %c-2_i32_16 = arith.constant -2 : i32
    %58 = vector.broadcast %c-2_i32_16 : i32 to vector<1x256xi32>
    %59 = arith.addi %20, %58 : vector<1x256xi32>
    %c16_i32_17 = arith.constant 16 : i32
    %60 = vector.broadcast %c16_i32_17 : i32 to vector<1x256xi32>
    %61 = arith.cmpi slt, %59, %60 : vector<1x256xi32>
    %62 = arith.andi %57, %61 : vector<1x256xi1>
    %63 = arith.extui %62 : vector<1x256xi1> to vector<1x256xi32>
    %64 = arith.sitofp %63 : vector<1x256xi32> to vector<1x256xf32>
    %c-1_i32 = arith.constant -1 : i32
    %65 = vector.broadcast %c-1_i32 : i32 to vector<1x256xi32>
    %66 = arith.addi %20, %65 : vector<1x256xi32>
    %c0_i32_18 = arith.constant 0 : i32
    %67 = vector.broadcast %c0_i32_18 : i32 to vector<1x256xi32>
    %68 = arith.cmpi sge, %66, %67 : vector<1x256xi32>
    %c-1_i32_19 = arith.constant -1 : i32
    %69 = vector.broadcast %c-1_i32_19 : i32 to vector<1x256xi32>
    %70 = arith.addi %20, %69 : vector<1x256xi32>
    %c16_i32_20 = arith.constant 16 : i32
    %71 = vector.broadcast %c16_i32_20 : i32 to vector<1x256xi32>
    %72 = arith.cmpi slt, %70, %71 : vector<1x256xi32>
    %73 = arith.andi %68, %72 : vector<1x256xi1>
    %74 = arith.extui %73 : vector<1x256xi1> to vector<1x256xi32>
    %75 = arith.sitofp %74 : vector<1x256xi32> to vector<1x256xf32>
    %c1_i32_21 = arith.constant 1 : i32
    %76 = vector.broadcast %c1_i32_21 : i32 to vector<1x256xi32>
    %77 = arith.addi %20, %76 : vector<1x256xi32>
    %c0_i32_22 = arith.constant 0 : i32
    %78 = vector.broadcast %c0_i32_22 : i32 to vector<1x256xi32>
    %79 = arith.cmpi sge, %77, %78 : vector<1x256xi32>
    %c1_i32_23 = arith.constant 1 : i32
    %80 = vector.broadcast %c1_i32_23 : i32 to vector<1x256xi32>
    %81 = arith.addi %20, %80 : vector<1x256xi32>
    %c16_i32_24 = arith.constant 16 : i32
    %82 = vector.broadcast %c16_i32_24 : i32 to vector<1x256xi32>
    %83 = arith.cmpi slt, %81, %82 : vector<1x256xi32>
    %84 = arith.andi %79, %83 : vector<1x256xi1>
    %85 = arith.extui %84 : vector<1x256xi1> to vector<1x256xi32>
    %86 = arith.sitofp %85 : vector<1x256xi32> to vector<1x256xf32>
    %c2_i32 = arith.constant 2 : i32
    %87 = vector.broadcast %c2_i32 : i32 to vector<1x256xi32>
    %88 = arith.addi %20, %87 : vector<1x256xi32>
    %c0_i32_25 = arith.constant 0 : i32
    %89 = vector.broadcast %c0_i32_25 : i32 to vector<1x256xi32>
    %90 = arith.cmpi sge, %88, %89 : vector<1x256xi32>
    %c2_i32_26 = arith.constant 2 : i32
    %91 = vector.broadcast %c2_i32_26 : i32 to vector<1x256xi32>
    %92 = arith.addi %20, %91 : vector<1x256xi32>
    %c16_i32_27 = arith.constant 16 : i32
    %93 = vector.broadcast %c16_i32_27 : i32 to vector<1x256xi32>
    %94 = arith.cmpi slt, %92, %93 : vector<1x256xi32>
    %95 = arith.andi %90, %94 : vector<1x256xi1>
    %96 = arith.extui %95 : vector<1x256xi1> to vector<1x256xi32>
    %97 = arith.sitofp %96 : vector<1x256xi32> to vector<1x256xf32>
    %c3_i32 = arith.constant 3 : i32
    %98 = vector.broadcast %c3_i32 : i32 to vector<1x256xi32>
    %99 = arith.addi %20, %98 : vector<1x256xi32>
    %c0_i32_28 = arith.constant 0 : i32
    %100 = vector.broadcast %c0_i32_28 : i32 to vector<1x256xi32>
    %101 = arith.cmpi sge, %99, %100 : vector<1x256xi32>
    %c3_i32_29 = arith.constant 3 : i32
    %102 = vector.broadcast %c3_i32_29 : i32 to vector<1x256xi32>
    %103 = arith.addi %20, %102 : vector<1x256xi32>
    %c16_i32_30 = arith.constant 16 : i32
    %104 = vector.broadcast %c16_i32_30 : i32 to vector<1x256xi32>
    %105 = arith.cmpi slt, %103, %104 : vector<1x256xi32>
    %106 = arith.andi %101, %105 : vector<1x256xi1>
    %107 = arith.extui %106 : vector<1x256xi1> to vector<1x256xi32>
    %108 = arith.sitofp %107 : vector<1x256xi32> to vector<1x256xf32>
    %c4_i32 = arith.constant 4 : i32
    %109 = vector.broadcast %c4_i32 : i32 to vector<1x256xi32>
    %110 = arith.addi %20, %109 : vector<1x256xi32>
    %c0_i32_31 = arith.constant 0 : i32
    %111 = vector.broadcast %c0_i32_31 : i32 to vector<1x256xi32>
    %112 = arith.cmpi sge, %110, %111 : vector<1x256xi32>
    %c4_i32_32 = arith.constant 4 : i32
    %113 = vector.broadcast %c4_i32_32 : i32 to vector<1x256xi32>
    %114 = arith.addi %20, %113 : vector<1x256xi32>
    %c16_i32_33 = arith.constant 16 : i32
    %115 = vector.broadcast %c16_i32_33 : i32 to vector<1x256xi32>
    %116 = arith.cmpi slt, %114, %115 : vector<1x256xi32>
    %117 = arith.andi %112, %116 : vector<1x256xi1>
    %118 = arith.extui %117 : vector<1x256xi1> to vector<1x256xi32>
    %119 = arith.sitofp %118 : vector<1x256xi32> to vector<1x256xf32>
    %c5_i32 = arith.constant 5 : i32
    %120 = vector.broadcast %c5_i32 : i32 to vector<1x256xi32>
    %121 = arith.addi %20, %120 : vector<1x256xi32>
    %c0_i32_34 = arith.constant 0 : i32
    %122 = vector.broadcast %c0_i32_34 : i32 to vector<1x256xi32>
    %123 = arith.cmpi sge, %121, %122 : vector<1x256xi32>
    %c5_i32_35 = arith.constant 5 : i32
    %124 = vector.broadcast %c5_i32_35 : i32 to vector<1x256xi32>
    %125 = arith.addi %20, %124 : vector<1x256xi32>
    %c16_i32_36 = arith.constant 16 : i32
    %126 = vector.broadcast %c16_i32_36 : i32 to vector<1x256xi32>
    %127 = arith.cmpi slt, %125, %126 : vector<1x256xi32>
    %128 = arith.andi %123, %127 : vector<1x256xi1>
    %129 = arith.extui %128 : vector<1x256xi1> to vector<1x256xi32>
    %130 = arith.sitofp %129 : vector<1x256xi32> to vector<1x256xf32>
    %c0_37 = arith.constant 0 : index
    %c0_38 = arith.constant 0 : index
    %c0_39 = arith.constant 0 : index
    %131 = vector.load %arg1[%c0_37, %c0_38, %c0_39] : memref<1x8x256xf32, #tpu.memory_space<vmem>>, vector<1x8x256xf32>
    %132 = vector.shape_cast %131 : vector<1x8x256xf32> to vector<8x256xf32>
    %c0_40 = arith.constant 0 : index
    %c0_41 = arith.constant 0 : index
    %133 = vector.load %arg2[%c0_40, %c0_41] : memref<16x49xf32, #tpu.memory_space<vmem>>, vector<8x49xf32>
    %c0_42 = arith.constant 0 : index
    %c0_43 = arith.constant 0 : index
    %134 = vector.load %arg7[%c0_42, %c0_43] : memref<168x1xf32, #tpu.memory_space<vmem>>, vector<8x1xf32>
    %c0_44 = arith.constant 0 : index
    %c128 = arith.constant 128 : index
    %135 = vector.load %arg9[%c0_44, %c128] : memref<24x512xf32, #tpu.memory_space<vmem>>, vector<8x256xf32>
    tpu.vector_store %arg9[%c0_44, %c128], %132 {strides = array<i32>} : memref<24x512xf32, #tpu.memory_space<vmem>>, vector<8x256xf32>,
    %c0_45 = arith.constant 0 : index
    %c77 = arith.constant 77 : index
    %136 = vector.load %arg9[%c0_45, %c77] : memref<24x512xf32, #tpu.memory_space<vmem>>, vector<8x262xf32>
    %137 = vector.extract_strided_slice %136 {offsets = [0, 0], sizes = [8, 256], strides = [1, 1]} : vector<8x262xf32> to vector<8x256xf32>
    %138 = vector.extract_strided_slice %133 {offsets = [0, 0], sizes = [8, 1], strides = [1, 1]} : vector<8x49xf32> to vector<8x1xf32>
    %139 = vector.broadcast %138 : vector<8x1xf32> to vector<8x256xf32>
    %140 = arith.mulf %137, %139 : vector<8x256xf32>
    %141 = vector.extract_strided_slice %136 {offsets = [0, 1], sizes = [8, 256], strides = [1, 1]} : vector<8x262xf32> to vector<8x256xf32>
    %142 = vector.extract_strided_slice %133 {offsets = [0, 1], sizes = [8, 1], strides = [1, 1]} : vector<8x49xf32> to vector<8x1xf32>
    %143 = vector.broadcast %142 : vector<8x1xf32> to vector<8x256xf32>
    %144 = arith.mulf %141, %143 : vector<8x256xf32>
    %145 = vector.extract_strided_slice %136 {offsets = [0, 2], sizes = [8, 256], strides = [1, 1]} : vector<8x262xf32> to vector<8x256xf32>
    %146 = vector.extract_strided_slice %133 {offsets = [0, 2], sizes = [8, 1], strides = [1, 1]} : vector<8x49xf32> to vector<8x1xf32>
    %147 = vector.broadcast %146 : vector<8x1xf32> to vector<8x256xf32>
    %148 = arith.mulf %145, %147 : vector<8x256xf32>
    %149 = vector.extract_strided_slice %136 {offsets = [0, 3], sizes = [8, 256], strides = [1, 1]} : vector<8x262xf32> to vector<8x256xf32>
    %150 = vector.extract_strided_slice %133 {offsets = [0, 3], sizes = [8, 1], strides = [1, 1]} : vector<8x49xf32> to vector<8x1xf32>
    %151 = vector.broadcast %150 : vector<8x1xf32> to vector<8x256xf32>
    %152 = arith.mulf %149, %151 : vector<8x256xf32>
    %153 = vector.extract_strided_slice %136 {offsets = [0, 4], sizes = [8, 256], strides = [1, 1]} : vector<8x262xf32> to vector<8x256xf32>
    %154 = vector.extract_strided_slice %133 {offsets = [0, 4], sizes = [8, 1], strides = [1, 1]} : vector<8x49xf32> to vector<8x1xf32>
    %155 = vector.broadcast %154 : vector<8x1xf32> to vector<8x256xf32>
    %156 = arith.mulf %153, %155 : vector<8x256xf32>
    %157 = vector.extract_strided_slice %136 {offsets = [0, 5], sizes = [8, 256], strides = [1, 1]} : vector<8x262xf32> to vector<8x256xf32>
    %158 = vector.extract_strided_slice %133 {offsets = [0, 5], sizes = [8, 1], strides = [1, 1]} : vector<8x49xf32> to vector<8x1xf32>
    %159 = vector.broadcast %158 : vector<8x1xf32> to vector<8x256xf32>
    %160 = arith.mulf %157, %159 : vector<8x256xf32>
    %161 = vector.extract_strided_slice %136 {offsets = [0, 6], sizes = [8, 256], strides = [1, 1]} : vector<8x262xf32> to vector<8x256xf32>
    %162 = vector.extract_strided_slice %133 {offsets = [0, 6], sizes = [8, 1], strides = [1, 1]} : vector<8x49xf32> to vector<8x1xf32>
    %163 = vector.broadcast %162 : vector<8x1xf32> to vector<8x256xf32>
    %164 = arith.mulf %161, %163 : vector<8x256xf32>
    %c0_46 = arith.constant 0 : index
    %c93 = arith.constant 93 : index
    %165 = vector.load %arg9[%c0_46, %c93] : memref<24x512xf32, #tpu.memory_space<vmem>>, vector<8x262xf32>
    %166 = vector.extract_strided_slice %165 {offsets = [0, 0], sizes = [8, 256], strides = [1, 1]} : vector<8x262xf32> to vector<8x256xf32>
    %167 = vector.extract_strided_slice %133 {offsets = [0, 7], sizes = [8, 1], strides = [1, 1]} : vector<8x49xf32> to vector<8x1xf32>
    %168 = vector.broadcast %167 : vector<8x1xf32> to vector<8x256xf32>
    %169 = arith.mulf %166, %168 : vector<8x256xf32>
    %170 = arith.addf %140, %169 : vector<8x256xf32>
    %171 = vector.extract_strided_slice %165 {offsets = [0, 1], sizes = [8, 256], strides = [1, 1]} : vector<8x262xf32> to vector<8x256xf32>
    %172 = vector.extract_strided_slice %133 {offsets = [0, 8], sizes = [8, 1], strides = [1, 1]} : vector<8x49xf32> to vector<8x1xf32>
    %173 = vector.broadcast %172 : vector<8x1xf32> to vector<8x256xf32>
    %174 = arith.mulf %171, %173 : vector<8x256xf32>
    %175 = arith.addf %144, %174 : vector<8x256xf32>
    %176 = vector.extract_strided_slice %165 {offsets = [0, 2], sizes = [8, 256], strides = [1, 1]} : vector<8x262xf32> to vector<8x256xf32>
    %177 = vector.extract_strided_slice %133 {offsets = [0, 9], sizes = [8, 1], strides = [1, 1]} : vector<8x49xf32> to vector<8x1xf32>
    %178 = vector.broadcast %177 : vector<8x1xf32> to vector<8x256xf32>
    %179 = arith.mulf %176, %178 : vector<8x256xf32>
    %180 = arith.addf %148, %179 : vector<8x256xf32>
    %181 = vector.extract_strided_slice %165 {offsets = [0, 3], sizes = [8, 256], strides = [1, 1]} : vector<8x262xf32> to vector<8x256xf32>
    %182 = vector.extract_strided_slice %133 {offsets = [0, 10], sizes = [8, 1], strides = [1, 1]} : vector<8x49xf32> to vector<8x1xf32>
    %183 = vector.broadcast %182 : vector<8x1xf32> to vector<8x256xf32>
    %184 = arith.mulf %181, %183 : vector<8x256xf32>
    %185 = arith.addf %152, %184 : vector<8x256xf32>
    %186 = vector.extract_strided_slice %165 {offsets = [0, 4], sizes = [8, 256], strides = [1, 1]} : vector<8x262xf32> to vector<8x256xf32>
    %187 = vector.extract_strided_slice %133 {offsets = [0, 11], sizes = [8, 1], strides = [1, 1]} : vector<8x49xf32> to vector<8x1xf32>
    %188 = vector.broadcast %187 : vector<8x1xf32> to vector<8x256xf32>
    %189 = arith.mulf %186, %188 : vector<8x256xf32>
    %190 = arith.addf %156, %189 : vector<8x256xf32>
    %191 = vector.extract_strided_slice %165 {offsets = [0, 5], sizes = [8, 256], strides = [1, 1]} : vector<8x262xf32> to vector<8x256xf32>
    %192 = vector.extract_strided_slice %133 {offsets = [0, 12], sizes = [8, 1], strides = [1, 1]} : vector<8x49xf32> to vector<8x1xf32>
    %193 = vector.broadcast %192 : vector<8x1xf32> to vector<8x256xf32>
    %194 = arith.mulf %191, %193 : vector<8x256xf32>
    %195 = arith.addf %160, %194 : vector<8x256xf32>
    %196 = vector.extract_strided_slice %165 {offsets = [0, 6], sizes = [8, 256], strides = [1, 1]} : vector<8x262xf32> to vector<8x256xf32>
    %197 = vector.extract_strided_slice %133 {offsets = [0, 13], sizes = [8, 1], strides = [1, 1]} : vector<8x49xf32> to vector<8x1xf32>
    %198 = vector.broadcast %197 : vector<8x1xf32> to vector<8x256xf32>
    %199 = arith.mulf %196, %198 : vector<8x256xf32>
    %200 = arith.addf %164, %199 : vector<8x256xf32>
    %c0_47 = arith.constant 0 : index
    %c109 = arith.constant 109 : index
    %201 = vector.load %arg9[%c0_47, %c109] : memref<24x512xf32, #tpu.memory_space<vmem>>, vector<8x262xf32>
    %202 = vector.extract_strided_slice %201 {offsets = [0, 0], sizes = [8, 256], strides = [1, 1]} : vector<8x262xf32> to vector<8x256xf32>
    %203 = vector.extract_strided_slice %133 {offsets = [0, 14], sizes = [8, 1], strides = [1, 1]} : vector<8x49xf32> to vector<8x1xf32>
    %204 = vector.broadcast %203 : vector<8x1xf32> to vector<8x256xf32>
    %205 = arith.mulf %202, %204 : vector<8x256xf32>
    %206 = arith.addf %170, %205 : vector<8x256xf32>
    %207 = vector.extract_strided_slice %201 {offsets = [0, 1], sizes = [8, 256], strides = [1, 1]} : vector<8x262xf32> to vector<8x256xf32>
    %208 = vector.extract_strided_slice %133 {offsets = [0, 15], sizes = [8, 1], strides = [1, 1]} : vector<8x49xf32> to vector<8x1xf32>
    %209 = vector.broadcast %208 : vector<8x1xf32> to vector<8x256xf32>
    %210 = arith.mulf %207, %209 : vector<8x256xf32>
    %211 = arith.addf %175, %210 : vector<8x256xf32>
    %212 = vector.extract_strided_slice %201 {offsets = [0, 2], sizes = [8, 256], strides = [1, 1]} : vector<8x262xf32> to vector<8x256xf32>
    %213 = vector.extract_strided_slice %133 {offsets = [0, 16], sizes = [8, 1], strides = [1, 1]} : vector<8x49xf32> to vector<8x1xf32>
    %214 = vector.broadcast %213 : vector<8x1xf32> to vector<8x256xf32>
    %215 = arith.mulf %212, %214 : vector<8x256xf32>
    %216 = arith.addf %180, %215 : vector<8x256xf32>
    %217 = vector.extract_strided_slice %201 {offsets = [0, 3], sizes = [8, 256], strides = [1, 1]} : vector<8x262xf32> to vector<8x256xf32>
    %218 = vector.extract_strided_slice %133 {offsets = [0, 17], sizes = [8, 1], strides = [1, 1]} : vector<8x49xf32> to vector<8x1xf32>
    %219 = vector.broadcast %218 : vector<8x1xf32> to vector<8x256xf32>
    %220 = arith.mulf %217, %219 : vector<8x256xf32>
    %221 = arith.addf %185, %220 : vector<8x256xf32>
    %222 = vector.extract_strided_slice %201 {offsets = [0, 4], sizes = [8, 256], strides = [1, 1]} : vector<8x262xf32> to vector<8x256xf32>
    %223 = vector.extract_strided_slice %133 {offsets = [0, 18], sizes = [8, 1], strides = [1, 1]} : vector<8x49xf32> to vector<8x1xf32>
    %224 = vector.broadcast %223 : vector<8x1xf32> to vector<8x256xf32>
    %225 = arith.mulf %222, %224 : vector<8x256xf32>
    %226 = arith.addf %190, %225 : vector<8x256xf32>
    %227 = vector.extract_strided_slice %201 {offsets = [0, 5], sizes = [8, 256], strides = [1, 1]} : vector<8x262xf32> to vector<8x256xf32>
    %228 = vector.extract_strided_slice %133 {offsets = [0, 19], sizes = [8, 1], strides = [1, 1]} : vector<8x49xf32> to vector<8x1xf32>
    %229 = vector.broadcast %228 : vector<8x1xf32> to vector<8x256xf32>
    %230 = arith.mulf %227, %229 : vector<8x256xf32>
    %231 = arith.addf %195, %230 : vector<8x256xf32>
    %232 = vector.extract_strided_slice %201 {offsets = [0, 6], sizes = [8, 256], strides = [1, 1]} : vector<8x262xf32> to vector<8x256xf32>
    %233 = vector.extract_strided_slice %133 {offsets = [0, 20], sizes = [8, 1], strides = [1, 1]} : vector<8x49xf32> to vector<8x1xf32>
    %234 = vector.broadcast %233 : vector<8x1xf32> to vector<8x256xf32>
    %235 = arith.mulf %232, %234 : vector<8x256xf32>
    %236 = arith.addf %200, %235 : vector<8x256xf32>
    %c0_48 = arith.constant 0 : index
    %c125 = arith.constant 125 : index
    %237 = vector.load %arg9[%c0_48, %c125] : memref<24x512xf32, #tpu.memory_space<vmem>>, vector<8x262xf32>
    %238 = vector.extract_strided_slice %237 {offsets = [0, 0], sizes = [8, 256], strides = [1, 1]} : vector<8x262xf32> to vector<8x256xf32>
    %239 = vector.extract_strided_slice %133 {offsets = [0, 21], sizes = [8, 1], strides = [1, 1]} : vector<8x49xf32> to vector<8x1xf32>
    %240 = vector.broadcast %239 : vector<8x1xf32> to vector<8x256xf32>
    %241 = arith.mulf %238, %240 : vector<8x256xf32>
    %242 = arith.addf %206, %241 : vector<8x256xf32>
    %243 = vector.extract_strided_slice %237 {offsets = [0, 1], sizes = [8, 256], strides = [1, 1]} : vector<8x262xf32> to vector<8x256xf32>
    %244 = vector.extract_strided_slice %133 {offsets = [0, 22], sizes = [8, 1], strides = [1, 1]} : vector<8x49xf32> to vector<8x1xf32>
    %245 = vector.broadcast %244 : vector<8x1xf32> to vector<8x256xf32>
    %246 = arith.mulf %243, %245 : vector<8x256xf32>
    %247 = arith.addf %211, %246 : vector<8x256xf32>
    %248 = vector.extract_strided_slice %237 {offsets = [0, 2], sizes = [8, 256], strides = [1, 1]} : vector<8x262xf32> to vector<8x256xf32>
    %249 = vector.extract_strided_slice %133 {offsets = [0, 23], sizes = [8, 1], strides = [1, 1]} : vector<8x49xf32> to vector<8x1xf32>
    %250 = vector.broadcast %249 : vector<8x1xf32> to vector<8x256xf32>
    %251 = arith.mulf %248, %250 : vector<8x256xf32>
    %252 = arith.addf %216, %251 : vector<8x256xf32>
    %253 = vector.extract_strided_slice %237 {offsets = [0, 3], sizes = [8, 256], strides = [1, 1]} : vector<8x262xf32> to vector<8x256xf32>
    %254 = vector.extract_strided_slice %133 {offsets = [0, 24], sizes = [8, 1], strides = [1, 1]} : vector<8x49xf32> to vector<8x1xf32>
    %255 = vector.broadcast %254 : vector<8x1xf32> to vector<8x256xf32>
    %256 = arith.mulf %253, %255 : vector<8x256xf32>
    %257 = arith.addf %221, %256 : vector<8x256xf32>
    %258 = vector.extract_strided_slice %237 {offsets = [0, 4], sizes = [8, 256], strides = [1, 1]} : vector<8x262xf32> to vector<8x256xf32>
    %259 = vector.extract_strided_slice %133 {offsets = [0, 25], sizes = [8, 1], strides = [1, 1]} : vector<8x49xf32> to vector<8x1xf32>
    %260 = vector.broadcast %259 : vector<8x1xf32> to vector<8x256xf32>
    %261 = arith.mulf %258, %260 : vector<8x256xf32>
    %262 = arith.addf %226, %261 : vector<8x256xf32>
    %263 = vector.extract_strided_slice %237 {offsets = [0, 5], sizes = [8, 256], strides = [1, 1]} : vector<8x262xf32> to vector<8x256xf32>
    %264 = vector.extract_strided_slice %133 {offsets = [0, 26], sizes = [8, 1], strides = [1, 1]} : vector<8x49xf32> to vector<8x1xf32>
    %265 = vector.broadcast %264 : vector<8x1xf32> to vector<8x256xf32>
    %266 = arith.mulf %263, %265 : vector<8x256xf32>
    %267 = arith.addf %231, %266 : vector<8x256xf32>
    %268 = vector.extract_strided_slice %237 {offsets = [0, 6], sizes = [8, 256], strides = [1, 1]} : vector<8x262xf32> to vector<8x256xf32>
    %269 = vector.extract_strided_slice %133 {offsets = [0, 27], sizes = [8, 1], strides = [1, 1]} : vector<8x49xf32> to vector<8x1xf32>
    %270 = vector.broadcast %269 : vector<8x1xf32> to vector<8x256xf32>
    %271 = arith.mulf %268, %270 : vector<8x256xf32>
    %272 = arith.addf %236, %271 : vector<8x256xf32>
    %c0_49 = arith.constant 0 : index
    %c141 = arith.constant 141 : index
    %273 = vector.load %arg9[%c0_49, %c141] : memref<24x512xf32, #tpu.memory_space<vmem>>, vector<8x262xf32>
    %274 = vector.extract_strided_slice %273 {offsets = [0, 0], sizes = [8, 256], strides = [1, 1]} : vector<8x262xf32> to vector<8x256xf32>
    %275 = vector.extract_strided_slice %133 {offsets = [0, 28], sizes = [8, 1], strides = [1, 1]} : vector<8x49xf32> to vector<8x1xf32>
    %276 = vector.broadcast %275 : vector<8x1xf32> to vector<8x256xf32>
    %277 = arith.mulf %274, %276 : vector<8x256xf32>
    %278 = arith.addf %242, %277 : vector<8x256xf32>
    %279 = vector.extract_strided_slice %273 {offsets = [0, 1], sizes = [8, 256], strides = [1, 1]} : vector<8x262xf32> to vector<8x256xf32>
    %280 = vector.extract_strided_slice %133 {offsets = [0, 29], sizes = [8, 1], strides = [1, 1]} : vector<8x49xf32> to vector<8x1xf32>
    %281 = vector.broadcast %280 : vector<8x1xf32> to vector<8x256xf32>
    %282 = arith.mulf %279, %281 : vector<8x256xf32>
    %283 = arith.addf %247, %282 : vector<8x256xf32>
    %284 = vector.extract_strided_slice %273 {offsets = [0, 2], sizes = [8, 256], strides = [1, 1]} : vector<8x262xf32> to vector<8x256xf32>
    %285 = vector.extract_strided_slice %133 {offsets = [0, 30], sizes = [8, 1], strides = [1, 1]} : vector<8x49xf32> to vector<8x1xf32>
    %286 = vector.broadcast %285 : vector<8x1xf32> to vector<8x256xf32>
    %287 = arith.mulf %284, %286 : vector<8x256xf32>
    %288 = arith.addf %252, %287 : vector<8x256xf32>
    %289 = vector.extract_strided_slice %273 {offsets = [0, 3], sizes = [8, 256], strides = [1, 1]} : vector<8x262xf32> to vector<8x256xf32>
    %290 = vector.extract_strided_slice %133 {offsets = [0, 31], sizes = [8, 1], strides = [1, 1]} : vector<8x49xf32> to vector<8x1xf32>
    %291 = vector.broadcast %290 : vector<8x1xf32> to vector<8x256xf32>
    %292 = arith.mulf %289, %291 : vector<8x256xf32>
    %293 = arith.addf %257, %292 : vector<8x256xf32>
    %294 = vector.extract_strided_slice %273 {offsets = [0, 4], sizes = [8, 256], strides = [1, 1]} : vector<8x262xf32> to vector<8x256xf32>
    %295 = vector.extract_strided_slice %133 {offsets = [0, 32], sizes = [8, 1], strides = [1, 1]} : vector<8x49xf32> to vector<8x1xf32>
    %296 = vector.broadcast %295 : vector<8x1xf32> to vector<8x256xf32>
    %297 = arith.mulf %294, %296 : vector<8x256xf32>
    %298 = arith.addf %262, %297 : vector<8x256xf32>
    %299 = vector.extract_strided_slice %273 {offsets = [0, 5], sizes = [8, 256], strides = [1, 1]} : vector<8x262xf32> to vector<8x256xf32>
    %300 = vector.extract_strided_slice %133 {offsets = [0, 33], sizes = [8, 1], strides = [1, 1]} : vector<8x49xf32> to vector<8x1xf32>
    %301 = vector.broadcast %300 : vector<8x1xf32> to vector<8x256xf32>
    %302 = arith.mulf %299, %301 : vector<8x256xf32>
    %303 = arith.addf %267, %302 : vector<8x256xf32>
    %304 = vector.extract_strided_slice %273 {offsets = [0, 6], sizes = [8, 256], strides = [1, 1]} : vector<8x262xf32> to vector<8x256xf32>
    %305 = vector.extract_strided_slice %133 {offsets = [0, 34], sizes = [8, 1], strides = [1, 1]} : vector<8x49xf32> to vector<8x1xf32>
    %306 = vector.broadcast %305 : vector<8x1xf32> to vector<8x256xf32>
    %307 = arith.mulf %304, %306 : vector<8x256xf32>
    %308 = arith.addf %272, %307 : vector<8x256xf32>
    %c0_50 = arith.constant 0 : index
    %c157 = arith.constant 157 : index
    %309 = vector.load %arg9[%c0_50, %c157] : memref<24x512xf32, #tpu.memory_space<vmem>>, vector<8x262xf32>
    %310 = vector.extract_strided_slice %309 {offsets = [0, 0], sizes = [8, 256], strides = [1, 1]} : vector<8x262xf32> to vector<8x256xf32>
    %311 = vector.extract_strided_slice %133 {offsets = [0, 35], sizes = [8, 1], strides = [1, 1]} : vector<8x49xf32> to vector<8x1xf32>
    %312 = vector.broadcast %311 : vector<8x1xf32> to vector<8x256xf32>
    %313 = arith.mulf %310, %312 : vector<8x256xf32>
    %314 = arith.addf %278, %313 : vector<8x256xf32>
    %315 = vector.extract_strided_slice %309 {offsets = [0, 1], sizes = [8, 256], strides = [1, 1]} : vector<8x262xf32> to vector<8x256xf32>
    %316 = vector.extract_strided_slice %133 {offsets = [0, 36], sizes = [8, 1], strides = [1, 1]} : vector<8x49xf32> to vector<8x1xf32>
    %317 = vector.broadcast %316 : vector<8x1xf32> to vector<8x256xf32>
    %318 = arith.mulf %315, %317 : vector<8x256xf32>
    %319 = arith.addf %283, %318 : vector<8x256xf32>
    %320 = vector.extract_strided_slice %309 {offsets = [0, 2], sizes = [8, 256], strides = [1, 1]} : vector<8x262xf32> to vector<8x256xf32>
    %321 = vector.extract_strided_slice %133 {offsets = [0, 37], sizes = [8, 1], strides = [1, 1]} : vector<8x49xf32> to vector<8x1xf32>
    %322 = vector.broadcast %321 : vector<8x1xf32> to vector<8x256xf32>
    %323 = arith.mulf %320, %322 : vector<8x256xf32>
    %324 = arith.addf %288, %323 : vector<8x256xf32>
    %325 = vector.extract_strided_slice %309 {offsets = [0, 3], sizes = [8, 256], strides = [1, 1]} : vector<8x262xf32> to vector<8x256xf32>
    %326 = vector.extract_strided_slice %133 {offsets = [0, 38], sizes = [8, 1], strides = [1, 1]} : vector<8x49xf32> to vector<8x1xf32>
    %327 = vector.broadcast %326 : vector<8x1xf32> to vector<8x256xf32>
    %328 = arith.mulf %325, %327 : vector<8x256xf32>
    %329 = arith.addf %293, %328 : vector<8x256xf32>
    %330 = vector.extract_strided_slice %309 {offsets = [0, 4], sizes = [8, 256], strides = [1, 1]} : vector<8x262xf32> to vector<8x256xf32>
    %331 = vector.extract_strided_slice %133 {offsets = [0, 39], sizes = [8, 1], strides = [1, 1]} : vector<8x49xf32> to vector<8x1xf32>
    %332 = vector.broadcast %331 : vector<8x1xf32> to vector<8x256xf32>
    %333 = arith.mulf %330, %332 : vector<8x256xf32>
    %334 = arith.addf %298, %333 : vector<8x256xf32>
    %335 = vector.extract_strided_slice %309 {offsets = [0, 5], sizes = [8, 256], strides = [1, 1]} : vector<8x262xf32> to vector<8x256xf32>
    %336 = vector.extract_strided_slice %133 {offsets = [0, 40], sizes = [8, 1], strides = [1, 1]} : vector<8x49xf32> to vector<8x1xf32>
    %337 = vector.broadcast %336 : vector<8x1xf32> to vector<8x256xf32>
    %338 = arith.mulf %335, %337 : vector<8x256xf32>
    %339 = arith.addf %303, %338 : vector<8x256xf32>
    %340 = vector.extract_strided_slice %309 {offsets = [0, 6], sizes = [8, 256], strides = [1, 1]} : vector<8x262xf32> to vector<8x256xf32>
    %341 = vector.extract_strided_slice %133 {offsets = [0, 41], sizes = [8, 1], strides = [1, 1]} : vector<8x49xf32> to vector<8x1xf32>
    %342 = vector.broadcast %341 : vector<8x1xf32> to vector<8x256xf32>
    %343 = arith.mulf %340, %342 : vector<8x256xf32>
    %344 = arith.addf %308, %343 : vector<8x256xf32>
    %c0_51 = arith.constant 0 : index
    %c173 = arith.constant 173 : index
    %345 = vector.load %arg9[%c0_51, %c173] : memref<24x512xf32, #tpu.memory_space<vmem>>, vector<8x262xf32>
    %346 = vector.extract_strided_slice %345 {offsets = [0, 0], sizes = [8, 256], strides = [1, 1]} : vector<8x262xf32> to vector<8x256xf32>
    %347 = vector.extract_strided_slice %133 {offsets = [0, 42], sizes = [8, 1], strides = [1, 1]} : vector<8x49xf32> to vector<8x1xf32>
    %348 = vector.broadcast %347 : vector<8x1xf32> to vector<8x256xf32>
    %349 = arith.mulf %346, %348 : vector<8x256xf32>
    %350 = arith.addf %314, %349 : vector<8x256xf32>
    %351 = vector.extract_strided_slice %345 {offsets = [0, 1], sizes = [8, 256], strides = [1, 1]} : vector<8x262xf32> to vector<8x256xf32>
    %352 = vector.extract_strided_slice %133 {offsets = [0, 43], sizes = [8, 1], strides = [1, 1]} : vector<8x49xf32> to vector<8x1xf32>
    %353 = vector.broadcast %352 : vector<8x1xf32> to vector<8x256xf32>
    %354 = arith.mulf %351, %353 : vector<8x256xf32>
    %355 = arith.addf %319, %354 : vector<8x256xf32>
    %356 = vector.extract_strided_slice %345 {offsets = [0, 2], sizes = [8, 256], strides = [1, 1]} : vector<8x262xf32> to vector<8x256xf32>
    %357 = vector.extract_strided_slice %133 {offsets = [0, 44], sizes = [8, 1], strides = [1, 1]} : vector<8x49xf32> to vector<8x1xf32>
    %358 = vector.broadcast %357 : vector<8x1xf32> to vector<8x256xf32>
    %359 = arith.mulf %356, %358 : vector<8x256xf32>
    %360 = arith.addf %324, %359 : vector<8x256xf32>
    %361 = vector.extract_strided_slice %345 {offsets = [0, 3], sizes = [8, 256], strides = [1, 1]} : vector<8x262xf32> to vector<8x256xf32>
    %362 = vector.extract_strided_slice %133 {offsets = [0, 45], sizes = [8, 1], strides = [1, 1]} : vector<8x49xf32> to vector<8x1xf32>
    %363 = vector.broadcast %362 : vector<8x1xf32> to vector<8x256xf32>
    %364 = arith.mulf %361, %363 : vector<8x256xf32>
    %365 = arith.addf %329, %364 : vector<8x256xf32>
    %366 = vector.extract_strided_slice %345 {offsets = [0, 4], sizes = [8, 256], strides = [1, 1]} : vector<8x262xf32> to vector<8x256xf32>
    %367 = vector.extract_strided_slice %133 {offsets = [0, 46], sizes = [8, 1], strides = [1, 1]} : vector<8x49xf32> to vector<8x1xf32>
    %368 = vector.broadcast %367 : vector<8x1xf32> to vector<8x256xf32>
    %369 = arith.mulf %366, %368 : vector<8x256xf32>
    %370 = arith.addf %334, %369 : vector<8x256xf32>
    %371 = vector.extract_strided_slice %345 {offsets = [0, 5], sizes = [8, 256], strides = [1, 1]} : vector<8x262xf32> to vector<8x256xf32>
    %372 = vector.extract_strided_slice %133 {offsets = [0, 47], sizes = [8, 1], strides = [1, 1]} : vector<8x49xf32> to vector<8x1xf32>
    %373 = vector.broadcast %372 : vector<8x1xf32> to vector<8x256xf32>
    %374 = arith.mulf %371, %373 : vector<8x256xf32>
    %375 = arith.addf %339, %374 : vector<8x256xf32>
    %376 = vector.extract_strided_slice %345 {offsets = [0, 6], sizes = [8, 256], strides = [1, 1]} : vector<8x262xf32> to vector<8x256xf32>
    %377 = vector.extract_strided_slice %133 {offsets = [0, 48], sizes = [8, 1], strides = [1, 1]} : vector<8x49xf32> to vector<8x1xf32>
    %378 = vector.broadcast %377 : vector<8x1xf32> to vector<8x256xf32>
    %379 = arith.mulf %376, %378 : vector<8x256xf32>
    %380 = arith.addf %344, %379 : vector<8x256xf32>
    %381 = vector.broadcast %53 : vector<1x256xf32> to vector<8x256xf32>
    %382 = arith.mulf %350, %381 : vector<8x256xf32>
    %383 = vector.broadcast %64 : vector<1x256xf32> to vector<8x256xf32>
    %384 = arith.mulf %355, %383 : vector<8x256xf32>
    %385 = arith.addf %382, %384 : vector<8x256xf32>
    %386 = vector.broadcast %75 : vector<1x256xf32> to vector<8x256xf32>
    %387 = arith.mulf %360, %386 : vector<8x256xf32>
    %388 = arith.addf %385, %387 : vector<8x256xf32>
    %389 = arith.addf %388, %365 : vector<8x256xf32>
    %390 = vector.broadcast %86 : vector<1x256xf32> to vector<8x256xf32>
    %391 = arith.mulf %370, %390 : vector<8x256xf32>
    %392 = arith.addf %389, %391 : vector<8x256xf32>
    %393 = vector.broadcast %97 : vector<1x256xf32> to vector<8x256xf32>
    %394 = arith.mulf %375, %393 : vector<8x256xf32>
    %395 = arith.addf %392, %394 : vector<8x256xf32>
    %396 = vector.broadcast %108 : vector<1x256xf32> to vector<8x256xf32>
    %397 = arith.mulf %380, %396 : vector<8x256xf32>
    %398 = arith.addf %395, %397 : vector<8x256xf32>
    %399 = vector.broadcast %134 : vector<8x1xf32> to vector<8x256xf32>
    %400 = arith.addf %398, %399 : vector<8x256xf32>
    %c0_52 = arith.constant 0 : index
    %c0_53 = arith.constant 0 : index
    %401 = vector.load %arg3[%c0_52, %c0_53] : memref<48x8xf32, #tpu.memory_space<vmem>>, vector<48x8xf32>
    %cst_54 = arith.constant dense<0.000000e+00> : vector<48x256xf32>
    %402 = tpu.matmul %401, %400, %cst_54 {dimension_numbers = #tpu.dot_dimension_numbers<[1], [0], [0], [1], [0, 0, 1, 1], [], []>} : vector<48x8xf32>, vector<8x256xf32>, vector<48x256xf32> -> vector<48x256xf32>
    %c8 = arith.constant 8 : index
    %c0_55 = arith.constant 0 : index
    %403 = vector.load %arg7[%c8, %c0_55] : memref<168x1xf32, #tpu.memory_space<vmem>>, vector<48x1xf32>
    %404 = vector.broadcast %403 : vector<48x1xf32> to vector<48x256xf32>
    %405 = arith.addf %402, %404 : vector<48x256xf32>
    %406 = vector.extract_strided_slice %405 {offsets = [0, 0], sizes = [24, 256], strides = [1, 1]} : vector<48x256xf32> to vector<24x256xf32>
    %cst_56 = arith.constant 0.000000e+00 : f32
    %cst_57 = arith.constant 6.000000e+00 : f32
    %407 = vector.broadcast %cst_56 : f32 to vector<24x256xf32>
    %408 = arith.maximumf %407, %406 : vector<24x256xf32>
    %409 = vector.broadcast %cst_57 : f32 to vector<24x256xf32>
    %410 = arith.minimumf %409, %408 : vector<24x256xf32>
    %411 = vector.extract_strided_slice %405 {offsets = [24, 0], sizes = [24, 256], strides = [1, 1]} : vector<48x256xf32> to vector<24x256xf32>
    %412 = arith.mulf %410, %411 : vector<24x256xf32>
    %c0_58 = arith.constant 0 : index
    %c128_59 = arith.constant 128 : index
    %413 = vector.load %arg9[%c0_58, %c128_59] : memref<24x512xf32, #tpu.memory_space<vmem>>, vector<24x256xf32>
    tpu.vector_store %arg9[%c0_58, %c128_59], %412 {strides = array<i32>} : memref<24x512xf32, #tpu.memory_space<vmem>>, vector<24x256xf32>,
    %c0_60 = arith.constant 0 : index
    %c125_61 = arith.constant 125 : index
    %414 = vector.load %arg9[%c0_60, %c125_61] : memref<24x512xf32, #tpu.memory_space<vmem>>, vector<24x262xf32>
    %415 = vector.extract_strided_slice %414 {offsets = [0, 0], sizes = [24, 256], strides = [1, 1]} : vector<24x262xf32> to vector<24x256xf32>
    %416 = vector.extract_strided_slice %414 {offsets = [0, 1], sizes = [24, 256], strides = [1, 1]} : vector<24x262xf32> to vector<24x256xf32>
    %417 = vector.extract_strided_slice %414 {offsets = [0, 2], sizes = [24, 256], strides = [1, 1]} : vector<24x262xf32> to vector<24x256xf32>
    %418 = vector.extract_strided_slice %414 {offsets = [0, 3], sizes = [24, 256], strides = [1, 1]} : vector<24x262xf32> to vector<24x256xf32>
    %419 = vector.extract_strided_slice %414 {offsets = [0, 4], sizes = [24, 256], strides = [1, 1]} : vector<24x262xf32> to vector<24x256xf32>
    %420 = vector.extract_strided_slice %414 {offsets = [0, 5], sizes = [24, 256], strides = [1, 1]} : vector<24x262xf32> to vector<24x256xf32>
    %421 = vector.extract_strided_slice %414 {offsets = [0, 6], sizes = [24, 256], strides = [1, 1]} : vector<24x262xf32> to vector<24x256xf32>
    %422 = vector.broadcast %53 : vector<1x256xf32> to vector<24x256xf32>
    %423 = arith.mulf %415, %422 : vector<24x256xf32>
    %424 = vector.broadcast %64 : vector<1x256xf32> to vector<24x256xf32>
    %425 = arith.mulf %416, %424 : vector<24x256xf32>
    %426 = arith.addf %423, %425 : vector<24x256xf32>
    %427 = vector.broadcast %75 : vector<1x256xf32> to vector<24x256xf32>
    %428 = arith.mulf %417, %427 : vector<24x256xf32>
    %429 = arith.addf %426, %428 : vector<24x256xf32>
    %430 = arith.addf %429, %418 : vector<24x256xf32>
    %431 = vector.broadcast %86 : vector<1x256xf32> to vector<24x256xf32>
    %432 = arith.mulf %419, %431 : vector<24x256xf32>
    %433 = arith.addf %430, %432 : vector<24x256xf32>
    %434 = vector.broadcast %97 : vector<1x256xf32> to vector<24x256xf32>
    %435 = arith.mulf %420, %434 : vector<24x256xf32>
    %436 = arith.addf %433, %435 : vector<24x256xf32>
    %437 = vector.broadcast %108 : vector<1x256xf32> to vector<24x256xf32>
    %438 = arith.mulf %421, %437 : vector<24x256xf32>
    %439 = arith.addf %436, %438 : vector<24x256xf32>
    %c0_62 = arith.constant 0 : index
    %c128_63 = arith.constant 128 : index
    %440 = vector.load %arg9[%c0_62, %c128_63] : memref<24x512xf32, #tpu.memory_space<vmem>>, vector<24x256xf32>
    tpu.vector_store %arg9[%c0_62, %c128_63], %439 {strides = array<i32>} : memref<24x512xf32, #tpu.memory_space<vmem>>, vector<24x256xf32>,
    %c0_64 = arith.constant 0 : index
    %c80 = arith.constant 80 : index
    %441 = vector.load %arg9[%c0_64, %c80] : memref<24x512xf32, #tpu.memory_space<vmem>>, vector<24x256xf32>
    %c0_65 = arith.constant 0 : index
    %c96 = arith.constant 96 : index
    %442 = vector.load %arg9[%c0_65, %c96] : memref<24x512xf32, #tpu.memory_space<vmem>>, vector<24x256xf32>
    %443 = arith.addf %441, %442 : vector<24x256xf32>
    %c0_66 = arith.constant 0 : index
    %c112 = arith.constant 112 : index
    %444 = vector.load %arg9[%c0_66, %c112] : memref<24x512xf32, #tpu.memory_space<vmem>>, vector<24x256xf32>
    %445 = arith.addf %443, %444 : vector<24x256xf32>
    %c0_67 = arith.constant 0 : index
    %c128_68 = arith.constant 128 : index
    %446 = vector.load %arg9[%c0_67, %c128_68] : memref<24x512xf32, #tpu.memory_space<vmem>>, vector<24x256xf32>
    %447 = arith.addf %445, %446 : vector<24x256xf32>
    %c0_69 = arith.constant 0 : index
    %c144 = arith.constant 144 : index
    %448 = vector.load %arg9[%c0_69, %c144] : memref<24x512xf32, #tpu.memory_space<vmem>>, vector<24x256xf32>
    %449 = arith.addf %447, %448 : vector<24x256xf32>
    %c0_70 = arith.constant 0 : index
    %c160 = arith.constant 160 : index
    %450 = vector.load %arg9[%c0_70, %c160] : memref<24x512xf32, #tpu.memory_space<vmem>>, vector<24x256xf32>
    %451 = arith.addf %449, %450 : vector<24x256xf32>
    %c0_71 = arith.constant 0 : index
    %c176 = arith.constant 176 : index
    %452 = vector.load %arg9[%c0_71, %c176] : memref<24x512xf32, #tpu.memory_space<vmem>>, vector<24x256xf32>
    %453 = arith.addf %451, %452 : vector<24x256xf32>
    %c0_72 = arith.constant 0 : index
    %c0_73 = arith.constant 0 : index
    %454 = vector.load %arg4[%c0_72, %c0_73] : memref<48x24xf32, #tpu.memory_space<vmem>>, vector<24x24xf32>
    %cst_74 = arith.constant dense<0.000000e+00> : vector<24x256xf32>
    %455 = tpu.matmul %454, %453, %cst_74 {dimension_numbers = #tpu.dot_dimension_numbers<[1], [0], [0], [1], [0, 0, 1, 1], [], []>} : vector<24x24xf32>, vector<24x256xf32>, vector<24x256xf32> -> vector<24x256xf32>
    %c56 = arith.constant 56 : index
    %c0_75 = arith.constant 0 : index
    %456 = vector.load %arg7[%c56, %c0_75] : memref<168x1xf32, #tpu.memory_space<vmem>>, vector<24x1xf32>
    %457 = vector.broadcast %456 : vector<24x1xf32> to vector<24x256xf32>
    %458 = arith.addf %455, %457 : vector<24x256xf32>
    %459 = arith.negf %458 : vector<24x256xf32>
    %460 = math.exp %459 : vector<24x256xf32>
    %cst_76 = arith.constant 1.000000e+00 : f32
    %461 = vector.broadcast %cst_76 : f32 to vector<24x256xf32>
    %462 = arith.addf %461, %460 : vector<24x256xf32>
    %463 = arith.divf %461, %462 : vector<24x256xf32>
    %464 = arith.mulf %458, %463 : vector<24x256xf32>
    %c0_77 = arith.constant 0 : index
    %c0_78 = arith.constant 0 : index
    %465 = vector.load %arg5[%c0_77, %c0_78] : memref<48x11xf32, #tpu.memory_space<vmem>>, vector<24x11xf32>
    %c80_79 = arith.constant 80 : index
    %c0_80 = arith.constant 0 : index
    %466 = vector.load %arg7[%c80_79, %c0_80] : memref<168x1xf32, #tpu.memory_space<vmem>>, vector<24x1xf32>
    %c0_81 = arith.constant 0 : index
    %c128_82 = arith.constant 128 : index
    %467 = vector.load %arg9[%c0_81, %c128_82] : memref<24x512xf32, #tpu.memory_space<vmem>>, vector<24x256xf32>
    tpu.vector_store %arg9[%c0_81, %c128_82], %464 {strides = array<i32>} : memref<24x512xf32, #tpu.memory_space<vmem>>, vector<24x256xf32>,
    %c0_83 = arith.constant 0 : index
    %c123 = arith.constant 123 : index
    %468 = vector.load %arg9[%c0_83, %c123] : memref<24x512xf32, #tpu.memory_space<vmem>>, vector<24x266xf32>
    %469 = vector.extract_strided_slice %468 {offsets = [0, 0], sizes = [24, 256], strides = [1, 1]} : vector<24x266xf32> to vector<24x256xf32>
    %470 = vector.extract_strided_slice %465 {offsets = [0, 0], sizes = [24, 1], strides = [1, 1]} : vector<24x11xf32> to vector<24x1xf32>
    %471 = vector.broadcast %470 : vector<24x1xf32> to vector<24x256xf32>
    %472 = arith.mulf %469, %471 : vector<24x256xf32>
    %473 = vector.extract_strided_slice %468 {offsets = [0, 1], sizes = [24, 256], strides = [1, 1]} : vector<24x266xf32> to vector<24x256xf32>
    %474 = vector.extract_strided_slice %465 {offsets = [0, 1], sizes = [24, 1], strides = [1, 1]} : vector<24x11xf32> to vector<24x1xf32>
    %475 = vector.broadcast %474 : vector<24x1xf32> to vector<24x256xf32>
    %476 = arith.mulf %473, %475 : vector<24x256xf32>
    %477 = vector.extract_strided_slice %468 {offsets = [0, 2], sizes = [24, 256], strides = [1, 1]} : vector<24x266xf32> to vector<24x256xf32>
    %478 = vector.extract_strided_slice %465 {offsets = [0, 2], sizes = [24, 1], strides = [1, 1]} : vector<24x11xf32> to vector<24x1xf32>
    %479 = vector.broadcast %478 : vector<24x1xf32> to vector<24x256xf32>
    %480 = arith.mulf %477, %479 : vector<24x256xf32>
    %481 = vector.extract_strided_slice %468 {offsets = [0, 3], sizes = [24, 256], strides = [1, 1]} : vector<24x266xf32> to vector<24x256xf32>
    %482 = vector.extract_strided_slice %465 {offsets = [0, 3], sizes = [24, 1], strides = [1, 1]} : vector<24x11xf32> to vector<24x1xf32>
    %483 = vector.broadcast %482 : vector<24x1xf32> to vector<24x256xf32>
    %484 = arith.mulf %481, %483 : vector<24x256xf32>
    %485 = vector.extract_strided_slice %468 {offsets = [0, 4], sizes = [24, 256], strides = [1, 1]} : vector<24x266xf32> to vector<24x256xf32>
    %486 = vector.extract_strided_slice %465 {offsets = [0, 4], sizes = [24, 1], strides = [1, 1]} : vector<24x11xf32> to vector<24x1xf32>
    %487 = vector.broadcast %486 : vector<24x1xf32> to vector<24x256xf32>
    %488 = arith.mulf %485, %487 : vector<24x256xf32>
    %489 = vector.extract_strided_slice %468 {offsets = [0, 5], sizes = [24, 256], strides = [1, 1]} : vector<24x266xf32> to vector<24x256xf32>
    %490 = vector.extract_strided_slice %465 {offsets = [0, 5], sizes = [24, 1], strides = [1, 1]} : vector<24x11xf32> to vector<24x1xf32>
    %491 = vector.broadcast %490 : vector<24x1xf32> to vector<24x256xf32>
    %492 = arith.mulf %489, %491 : vector<24x256xf32>
    %493 = vector.extract_strided_slice %468 {offsets = [0, 6], sizes = [24, 256], strides = [1, 1]} : vector<24x266xf32> to vector<24x256xf32>
    %494 = vector.extract_strided_slice %465 {offsets = [0, 6], sizes = [24, 1], strides = [1, 1]} : vector<24x11xf32> to vector<24x1xf32>
    %495 = vector.broadcast %494 : vector<24x1xf32> to vector<24x256xf32>
    %496 = arith.mulf %493, %495 : vector<24x256xf32>
    %497 = vector.extract_strided_slice %468 {offsets = [0, 7], sizes = [24, 256], strides = [1, 1]} : vector<24x266xf32> to vector<24x256xf32>
    %498 = vector.extract_strided_slice %465 {offsets = [0, 7], sizes = [24, 1], strides = [1, 1]} : vector<24x11xf32> to vector<24x1xf32>
    %499 = vector.broadcast %498 : vector<24x1xf32> to vector<24x256xf32>
    %500 = arith.mulf %497, %499 : vector<24x256xf32>
    %501 = vector.extract_strided_slice %468 {offsets = [0, 8], sizes = [24, 256], strides = [1, 1]} : vector<24x266xf32> to vector<24x256xf32>
    %502 = vector.extract_strided_slice %465 {offsets = [0, 8], sizes = [24, 1], strides = [1, 1]} : vector<24x11xf32> to vector<24x1xf32>
    %503 = vector.broadcast %502 : vector<24x1xf32> to vector<24x256xf32>
    %504 = arith.mulf %501, %503 : vector<24x256xf32>
    %505 = vector.extract_strided_slice %468 {offsets = [0, 9], sizes = [24, 256], strides = [1, 1]} : vector<24x266xf32> to vector<24x256xf32>
    %506 = vector.extract_strided_slice %465 {offsets = [0, 9], sizes = [24, 1], strides = [1, 1]} : vector<24x11xf32> to vector<24x1xf32>
    %507 = vector.broadcast %506 : vector<24x1xf32> to vector<24x256xf32>
    %508 = arith.mulf %505, %507 : vector<24x256xf32>
    %509 = vector.extract_strided_slice %468 {offsets = [0, 10], sizes = [24, 256], strides = [1, 1]} : vector<24x266xf32> to vector<24x256xf32>
    %510 = vector.extract_strided_slice %465 {offsets = [0, 10], sizes = [24, 1], strides = [1, 1]} : vector<24x11xf32> to vector<24x1xf32>
    %511 = vector.broadcast %510 : vector<24x1xf32> to vector<24x256xf32>
    %512 = arith.mulf %509, %511 : vector<24x256xf32>
    %513 = vector.broadcast %31 : vector<1x256xf32> to vector<24x256xf32>
    %514 = arith.mulf %472, %513 : vector<24x256xf32>
    %515 = vector.broadcast %42 : vector<1x256xf32> to vector<24x256xf32>
    %516 = arith.mulf %476, %515 : vector<24x256xf32>
    %517 = arith.addf %514, %516 : vector<24x256xf32>
    %518 = vector.broadcast %53 : vector<1x256xf32> to vector<24x256xf32>
    %519 = arith.mulf %480, %518 : vector<24x256xf32>
    %520 = arith.addf %517, %519 : vector<24x256xf32>
    %521 = vector.broadcast %64 : vector<1x256xf32> to vector<24x256xf32>
    %522 = arith.mulf %484, %521 : vector<24x256xf32>
    %523 = arith.addf %520, %522 : vector<24x256xf32>
    %524 = vector.broadcast %75 : vector<1x256xf32> to vector<24x256xf32>
    %525 = arith.mulf %488, %524 : vector<24x256xf32>
    %526 = arith.addf %523, %525 : vector<24x256xf32>
    %527 = arith.addf %526, %492 : vector<24x256xf32>
    %528 = vector.broadcast %86 : vector<1x256xf32> to vector<24x256xf32>
    %529 = arith.mulf %496, %528 : vector<24x256xf32>
    %530 = arith.addf %527, %529 : vector<24x256xf32>
    %531 = vector.broadcast %97 : vector<1x256xf32> to vector<24x256xf32>
    %532 = arith.mulf %500, %531 : vector<24x256xf32>
    %533 = arith.addf %530, %532 : vector<24x256xf32>
    %534 = vector.broadcast %108 : vector<1x256xf32> to vector<24x256xf32>
    %535 = arith.mulf %504, %534 : vector<24x256xf32>
    %536 = arith.addf %533, %535 : vector<24x256xf32>
    %537 = vector.broadcast %119 : vector<1x256xf32> to vector<24x256xf32>
    %538 = arith.mulf %508, %537 : vector<24x256xf32>
    %539 = arith.addf %536, %538 : vector<24x256xf32>
    %540 = vector.broadcast %130 : vector<1x256xf32> to vector<24x256xf32>
    %541 = arith.mulf %512, %540 : vector<24x256xf32>
    %542 = arith.addf %539, %541 : vector<24x256xf32>
    %543 = vector.broadcast %466 : vector<24x1xf32> to vector<24x256xf32>
    %544 = arith.addf %542, %543 : vector<24x256xf32>
    %c24 = arith.constant 24 : index
    %c0_84 = arith.constant 0 : index
    %545 = vector.load %arg5[%c24, %c0_84] : memref<48x11xf32, #tpu.memory_space<vmem>>, vector<24x11xf32>
    %c104 = arith.constant 104 : index
    %c0_85 = arith.constant 0 : index
    %546 = vector.load %arg7[%c104, %c0_85] : memref<168x1xf32, #tpu.memory_space<vmem>>, vector<24x1xf32>
    %c0_86 = arith.constant 0 : index
    %c128_87 = arith.constant 128 : index
    %547 = vector.load %arg9[%c0_86, %c128_87] : memref<24x512xf32, #tpu.memory_space<vmem>>, vector<24x256xf32>
    tpu.vector_store %arg9[%c0_86, %c128_87], %544 {strides = array<i32>} : memref<24x512xf32, #tpu.memory_space<vmem>>, vector<24x256xf32>,
    %c0_88 = arith.constant 0 : index
    %c48 = arith.constant 48 : index
    %548 = vector.load %arg9[%c0_88, %c48] : memref<24x512xf32, #tpu.memory_space<vmem>>, vector<24x256xf32>
    %549 = vector.extract_strided_slice %545 {offsets = [0, 0], sizes = [24, 1], strides = [1, 1]} : vector<24x11xf32> to vector<24x1xf32>
    %550 = vector.broadcast %549 : vector<24x1xf32> to vector<24x256xf32>
    %551 = arith.mulf %548, %550 : vector<24x256xf32>
    %c0_89 = arith.constant 0 : index
    %c64 = arith.constant 64 : index
    %552 = vector.load %arg9[%c0_89, %c64] : memref<24x512xf32, #tpu.memory_space<vmem>>, vector<24x256xf32>
    %553 = vector.extract_strided_slice %545 {offsets = [0, 1], sizes = [24, 1], strides = [1, 1]} : vector<24x11xf32> to vector<24x1xf32>
    %554 = vector.broadcast %553 : vector<24x1xf32> to vector<24x256xf32>
    %555 = arith.mulf %552, %554 : vector<24x256xf32>
    %556 = arith.addf %551, %555 : vector<24x256xf32>
    %c0_90 = arith.constant 0 : index
    %c80_91 = arith.constant 80 : index
    %557 = vector.load %arg9[%c0_90, %c80_91] : memref<24x512xf32, #tpu.memory_space<vmem>>, vector<24x256xf32>
    %558 = vector.extract_strided_slice %545 {offsets = [0, 2], sizes = [24, 1], strides = [1, 1]} : vector<24x11xf32> to vector<24x1xf32>
    %559 = vector.broadcast %558 : vector<24x1xf32> to vector<24x256xf32>
    %560 = arith.mulf %557, %559 : vector<24x256xf32>
    %561 = arith.addf %556, %560 : vector<24x256xf32>
    %c0_92 = arith.constant 0 : index
    %c96_93 = arith.constant 96 : index
    %562 = vector.load %arg9[%c0_92, %c96_93] : memref<24x512xf32, #tpu.memory_space<vmem>>, vector<24x256xf32>
    %563 = vector.extract_strided_slice %545 {offsets = [0, 3], sizes = [24, 1], strides = [1, 1]} : vector<24x11xf32> to vector<24x1xf32>
    %564 = vector.broadcast %563 : vector<24x1xf32> to vector<24x256xf32>
    %565 = arith.mulf %562, %564 : vector<24x256xf32>
    %566 = arith.addf %561, %565 : vector<24x256xf32>
    %c0_94 = arith.constant 0 : index
    %c112_95 = arith.constant 112 : index
    %567 = vector.load %arg9[%c0_94, %c112_95] : memref<24x512xf32, #tpu.memory_space<vmem>>, vector<24x256xf32>
    %568 = vector.extract_strided_slice %545 {offsets = [0, 4], sizes = [24, 1], strides = [1, 1]} : vector<24x11xf32> to vector<24x1xf32>
    %569 = vector.broadcast %568 : vector<24x1xf32> to vector<24x256xf32>
    %570 = arith.mulf %567, %569 : vector<24x256xf32>
    %571 = arith.addf %566, %570 : vector<24x256xf32>
    %c0_96 = arith.constant 0 : index
    %c128_97 = arith.constant 128 : index
    %572 = vector.load %arg9[%c0_96, %c128_97] : memref<24x512xf32, #tpu.memory_space<vmem>>, vector<24x256xf32>
    %573 = vector.extract_strided_slice %545 {offsets = [0, 5], sizes = [24, 1], strides = [1, 1]} : vector<24x11xf32> to vector<24x1xf32>
    %574 = vector.broadcast %573 : vector<24x1xf32> to vector<24x256xf32>
    %575 = arith.mulf %572, %574 : vector<24x256xf32>
    %576 = arith.addf %571, %575 : vector<24x256xf32>
    %c0_98 = arith.constant 0 : index
    %c144_99 = arith.constant 144 : index
    %577 = vector.load %arg9[%c0_98, %c144_99] : memref<24x512xf32, #tpu.memory_space<vmem>>, vector<24x256xf32>
    %578 = vector.extract_strided_slice %545 {offsets = [0, 6], sizes = [24, 1], strides = [1, 1]} : vector<24x11xf32> to vector<24x1xf32>
    %579 = vector.broadcast %578 : vector<24x1xf32> to vector<24x256xf32>
    %580 = arith.mulf %577, %579 : vector<24x256xf32>
    %581 = arith.addf %576, %580 : vector<24x256xf32>
    %c0_100 = arith.constant 0 : index
    %c160_101 = arith.constant 160 : index
    %582 = vector.load %arg9[%c0_100, %c160_101] : memref<24x512xf32, #tpu.memory_space<vmem>>, vector<24x256xf32>
    %583 = vector.extract_strided_slice %545 {offsets = [0, 7], sizes = [24, 1], strides = [1, 1]} : vector<24x11xf32> to vector<24x1xf32>
    %584 = vector.broadcast %583 : vector<24x1xf32> to vector<24x256xf32>
    %585 = arith.mulf %582, %584 : vector<24x256xf32>
    %586 = arith.addf %581, %585 : vector<24x256xf32>
    %c0_102 = arith.constant 0 : index
    %c176_103 = arith.constant 176 : index
    %587 = vector.load %arg9[%c0_102, %c176_103] : memref<24x512xf32, #tpu.memory_space<vmem>>, vector<24x256xf32>
    %588 = vector.extract_strided_slice %545 {offsets = [0, 8], sizes = [24, 1], strides = [1, 1]} : vector<24x11xf32> to vector<24x1xf32>
    %589 = vector.broadcast %588 : vector<24x1xf32> to vector<24x256xf32>
    %590 = arith.mulf %587, %589 : vector<24x256xf32>
    %591 = arith.addf %586, %590 : vector<24x256xf32>
    %c0_104 = arith.constant 0 : index
    %c192 = arith.constant 192 : index
    %592 = vector.load %arg9[%c0_104, %c192] : memref<24x512xf32, #tpu.memory_space<vmem>>, vector<24x256xf32>
    %593 = vector.extract_strided_slice %545 {offsets = [0, 9], sizes = [24, 1], strides = [1, 1]} : vector<24x11xf32> to vector<24x1xf32>
    %594 = vector.broadcast %593 : vector<24x1xf32> to vector<24x256xf32>
    %595 = arith.mulf %592, %594 : vector<24x256xf32>
    %596 = arith.addf %591, %595 : vector<24x256xf32>
    %c0_105 = arith.constant 0 : index
    %c208 = arith.constant 208 : index
    %597 = vector.load %arg9[%c0_105, %c208] : memref<24x512xf32, #tpu.memory_space<vmem>>, vector<24x256xf32>
    %598 = vector.extract_strided_slice %545 {offsets = [0, 10], sizes = [24, 1], strides = [1, 1]} : vector<24x11xf32> to vector<24x1xf32>
    %599 = vector.broadcast %598 : vector<24x1xf32> to vector<24x256xf32>
    %600 = arith.mulf %597, %599 : vector<24x256xf32>
    %601 = arith.addf %596, %600 : vector<24x256xf32>
    %602 = vector.broadcast %546 : vector<24x1xf32> to vector<24x256xf32>
    %603 = arith.addf %601, %602 : vector<24x256xf32>
    %c24_106 = arith.constant 24 : index
    %c0_107 = arith.constant 0 : index
    %604 = vector.load %arg4[%c24_106, %c0_107] : memref<48x24xf32, #tpu.memory_space<vmem>>, vector<24x24xf32>
    %cst_108 = arith.constant dense<0.000000e+00> : vector<24x256xf32>
    %605 = tpu.matmul %604, %603, %cst_108 {dimension_numbers = #tpu.dot_dimension_numbers<[1], [0], [0], [1], [0, 0, 1, 1], [], []>} : vector<24x24xf32>, vector<24x256xf32>, vector<24x256xf32> -> vector<24x256xf32>
    %c128_109 = arith.constant 128 : index
    %c0_110 = arith.constant 0 : index
    %606 = vector.load %arg7[%c128_109, %c0_110] : memref<168x1xf32, #tpu.memory_space<vmem>>, vector<24x1xf32>
    %607 = vector.broadcast %606 : vector<24x1xf32> to vector<24x256xf32>
    %608 = arith.addf %605, %607 : vector<24x256xf32>
    %609 = arith.negf %608 : vector<24x256xf32>
    %610 = math.exp %609 : vector<24x256xf32>
    %cst_111 = arith.constant 1.000000e+00 : f32
    %611 = vector.broadcast %cst_111 : f32 to vector<24x256xf32>
    %612 = arith.addf %611, %610 : vector<24x256xf32>
    %613 = arith.divf %611, %612 : vector<24x256xf32>
    %614 = arith.mulf %608, %613 : vector<24x256xf32>
    %615 = arith.negf %614 : vector<24x256xf32>
    %616 = math.exp %615 : vector<24x256xf32>
    %cst_112 = arith.constant 1.000000e+00 : f32
    %617 = vector.broadcast %cst_112 : f32 to vector<24x256xf32>
    %618 = arith.addf %617, %616 : vector<24x256xf32>
    %619 = arith.divf %617, %618 : vector<24x256xf32>
    %620 = arith.mulf %619, %412 : vector<24x256xf32>
    %c0_113 = arith.constant 0 : index
    %c0_114 = arith.constant 0 : index
    %621 = vector.load %arg6[%c0_113, %c0_114] : memref<8x24xf32, #tpu.memory_space<vmem>>, vector<8x24xf32>
    %cst_115 = arith.constant dense<0.000000e+00> : vector<8x256xf32>
    %622 = tpu.matmul %621, %620, %cst_115 {dimension_numbers = #tpu.dot_dimension_numbers<[1], [0], [0], [1], [0, 0, 1, 1], [], []>} : vector<8x24xf32>, vector<24x256xf32>, vector<8x256xf32> -> vector<8x256xf32>
    %c152 = arith.constant 152 : index
    %c0_116 = arith.constant 0 : index
    %623 = vector.load %arg7[%c152, %c0_116] : memref<168x1xf32, #tpu.memory_space<vmem>>, vector<8x1xf32>
    %624 = vector.broadcast %623 : vector<8x1xf32> to vector<8x256xf32>
    %625 = arith.addf %622, %624 : vector<8x256xf32>
    %c8_117 = arith.constant 8 : index
    %c0_118 = arith.constant 0 : index
    %626 = vector.load %arg2[%c8_117, %c0_118] : memref<16x49xf32, #tpu.memory_space<vmem>>, vector<8x49xf32>
    %c160_119 = arith.constant 160 : index
    %c0_120 = arith.constant 0 : index
    %627 = vector.load %arg7[%c160_119, %c0_120] : memref<168x1xf32, #tpu.memory_space<vmem>>, vector<8x1xf32>
    %c0_121 = arith.constant 0 : index
    %c128_122 = arith.constant 128 : index
    %628 = vector.load %arg9[%c0_121, %c128_122] : memref<24x512xf32, #tpu.memory_space<vmem>>, vector<8x256xf32>
    tpu.vector_store %arg9[%c0_121, %c128_122], %625 {strides = array<i32>} : memref<24x512xf32, #tpu.memory_space<vmem>>, vector<8x256xf32>,
    %c0_123 = arith.constant 0 : index
    %c77_124 = arith.constant 77 : index
    %629 = vector.load %arg9[%c0_123, %c77_124] : memref<24x512xf32, #tpu.memory_space<vmem>>, vector<8x262xf32>
    %630 = vector.extract_strided_slice %629 {offsets = [0, 0], sizes = [8, 256], strides = [1, 1]} : vector<8x262xf32> to vector<8x256xf32>
    %631 = vector.extract_strided_slice %626 {offsets = [0, 0], sizes = [8, 1], strides = [1, 1]} : vector<8x49xf32> to vector<8x1xf32>
    %632 = vector.broadcast %631 : vector<8x1xf32> to vector<8x256xf32>
    %633 = arith.mulf %630, %632 : vector<8x256xf32>
    %634 = vector.extract_strided_slice %629 {offsets = [0, 1], sizes = [8, 256], strides = [1, 1]} : vector<8x262xf32> to vector<8x256xf32>
    %635 = vector.extract_strided_slice %626 {offsets = [0, 1], sizes = [8, 1], strides = [1, 1]} : vector<8x49xf32> to vector<8x1xf32>
    %636 = vector.broadcast %635 : vector<8x1xf32> to vector<8x256xf32>
    %637 = arith.mulf %634, %636 : vector<8x256xf32>
    %638 = vector.extract_strided_slice %629 {offsets = [0, 2], sizes = [8, 256], strides = [1, 1]} : vector<8x262xf32> to vector<8x256xf32>
    %639 = vector.extract_strided_slice %626 {offsets = [0, 2], sizes = [8, 1], strides = [1, 1]} : vector<8x49xf32> to vector<8x1xf32>
    %640 = vector.broadcast %639 : vector<8x1xf32> to vector<8x256xf32>
    %641 = arith.mulf %638, %640 : vector<8x256xf32>
    %642 = vector.extract_strided_slice %629 {offsets = [0, 3], sizes = [8, 256], strides = [1, 1]} : vector<8x262xf32> to vector<8x256xf32>
    %643 = vector.extract_strided_slice %626 {offsets = [0, 3], sizes = [8, 1], strides = [1, 1]} : vector<8x49xf32> to vector<8x1xf32>
    %644 = vector.broadcast %643 : vector<8x1xf32> to vector<8x256xf32>
    %645 = arith.mulf %642, %644 : vector<8x256xf32>
    %646 = vector.extract_strided_slice %629 {offsets = [0, 4], sizes = [8, 256], strides = [1, 1]} : vector<8x262xf32> to vector<8x256xf32>
    %647 = vector.extract_strided_slice %626 {offsets = [0, 4], sizes = [8, 1], strides = [1, 1]} : vector<8x49xf32> to vector<8x1xf32>
    %648 = vector.broadcast %647 : vector<8x1xf32> to vector<8x256xf32>
    %649 = arith.mulf %646, %648 : vector<8x256xf32>
    %650 = vector.extract_strided_slice %629 {offsets = [0, 5], sizes = [8, 256], strides = [1, 1]} : vector<8x262xf32> to vector<8x256xf32>
    %651 = vector.extract_strided_slice %626 {offsets = [0, 5], sizes = [8, 1], strides = [1, 1]} : vector<8x49xf32> to vector<8x1xf32>
    %652 = vector.broadcast %651 : vector<8x1xf32> to vector<8x256xf32>
    %653 = arith.mulf %650, %652 : vector<8x256xf32>
    %654 = vector.extract_strided_slice %629 {offsets = [0, 6], sizes = [8, 256], strides = [1, 1]} : vector<8x262xf32> to vector<8x256xf32>
    %655 = vector.extract_strided_slice %626 {offsets = [0, 6], sizes = [8, 1], strides = [1, 1]} : vector<8x49xf32> to vector<8x1xf32>
    %656 = vector.broadcast %655 : vector<8x1xf32> to vector<8x256xf32>
    %657 = arith.mulf %654, %656 : vector<8x256xf32>
    %c0_125 = arith.constant 0 : index
    %c93_126 = arith.constant 93 : index
    %658 = vector.load %arg9[%c0_125, %c93_126] : memref<24x512xf32, #tpu.memory_space<vmem>>, vector<8x262xf32>
    %659 = vector.extract_strided_slice %658 {offsets = [0, 0], sizes = [8, 256], strides = [1, 1]} : vector<8x262xf32> to vector<8x256xf32>
    %660 = vector.extract_strided_slice %626 {offsets = [0, 7], sizes = [8, 1], strides = [1, 1]} : vector<8x49xf32> to vector<8x1xf32>
    %661 = vector.broadcast %660 : vector<8x1xf32> to vector<8x256xf32>
    %662 = arith.mulf %659, %661 : vector<8x256xf32>
    %663 = arith.addf %633, %662 : vector<8x256xf32>
    %664 = vector.extract_strided_slice %658 {offsets = [0, 1], sizes = [8, 256], strides = [1, 1]} : vector<8x262xf32> to vector<8x256xf32>
    %665 = vector.extract_strided_slice %626 {offsets = [0, 8], sizes = [8, 1], strides = [1, 1]} : vector<8x49xf32> to vector<8x1xf32>
    %666 = vector.broadcast %665 : vector<8x1xf32> to vector<8x256xf32>
    %667 = arith.mulf %664, %666 : vector<8x256xf32>
    %668 = arith.addf %637, %667 : vector<8x256xf32>
    %669 = vector.extract_strided_slice %658 {offsets = [0, 2], sizes = [8, 256], strides = [1, 1]} : vector<8x262xf32> to vector<8x256xf32>
    %670 = vector.extract_strided_slice %626 {offsets = [0, 9], sizes = [8, 1], strides = [1, 1]} : vector<8x49xf32> to vector<8x1xf32>
    %671 = vector.broadcast %670 : vector<8x1xf32> to vector<8x256xf32>
    %672 = arith.mulf %669, %671 : vector<8x256xf32>
    %673 = arith.addf %641, %672 : vector<8x256xf32>
    %674 = vector.extract_strided_slice %658 {offsets = [0, 3], sizes = [8, 256], strides = [1, 1]} : vector<8x262xf32> to vector<8x256xf32>
    %675 = vector.extract_strided_slice %626 {offsets = [0, 10], sizes = [8, 1], strides = [1, 1]} : vector<8x49xf32> to vector<8x1xf32>
    %676 = vector.broadcast %675 : vector<8x1xf32> to vector<8x256xf32>
    %677 = arith.mulf %674, %676 : vector<8x256xf32>
    %678 = arith.addf %645, %677 : vector<8x256xf32>
    %679 = vector.extract_strided_slice %658 {offsets = [0, 4], sizes = [8, 256], strides = [1, 1]} : vector<8x262xf32> to vector<8x256xf32>
    %680 = vector.extract_strided_slice %626 {offsets = [0, 11], sizes = [8, 1], strides = [1, 1]} : vector<8x49xf32> to vector<8x1xf32>
    %681 = vector.broadcast %680 : vector<8x1xf32> to vector<8x256xf32>
    %682 = arith.mulf %679, %681 : vector<8x256xf32>
    %683 = arith.addf %649, %682 : vector<8x256xf32>
    %684 = vector.extract_strided_slice %658 {offsets = [0, 5], sizes = [8, 256], strides = [1, 1]} : vector<8x262xf32> to vector<8x256xf32>
    %685 = vector.extract_strided_slice %626 {offsets = [0, 12], sizes = [8, 1], strides = [1, 1]} : vector<8x49xf32> to vector<8x1xf32>
    %686 = vector.broadcast %685 : vector<8x1xf32> to vector<8x256xf32>
    %687 = arith.mulf %684, %686 : vector<8x256xf32>
    %688 = arith.addf %653, %687 : vector<8x256xf32>
    %689 = vector.extract_strided_slice %658 {offsets = [0, 6], sizes = [8, 256], strides = [1, 1]} : vector<8x262xf32> to vector<8x256xf32>
    %690 = vector.extract_strided_slice %626 {offsets = [0, 13], sizes = [8, 1], strides = [1, 1]} : vector<8x49xf32> to vector<8x1xf32>
    %691 = vector.broadcast %690 : vector<8x1xf32> to vector<8x256xf32>
    %692 = arith.mulf %689, %691 : vector<8x256xf32>
    %693 = arith.addf %657, %692 : vector<8x256xf32>
    %c0_127 = arith.constant 0 : index
    %c109_128 = arith.constant 109 : index
    %694 = vector.load %arg9[%c0_127, %c109_128] : memref<24x512xf32, #tpu.memory_space<vmem>>, vector<8x262xf32>
    %695 = vector.extract_strided_slice %694 {offsets = [0, 0], sizes = [8, 256], strides = [1, 1]} : vector<8x262xf32> to vector<8x256xf32>
    %696 = vector.extract_strided_slice %626 {offsets = [0, 14], sizes = [8, 1], strides = [1, 1]} : vector<8x49xf32> to vector<8x1xf32>
    %697 = vector.broadcast %696 : vector<8x1xf32> to vector<8x256xf32>
    %698 = arith.mulf %695, %697 : vector<8x256xf32>
    %699 = arith.addf %663, %698 : vector<8x256xf32>
    %700 = vector.extract_strided_slice %694 {offsets = [0, 1], sizes = [8, 256], strides = [1, 1]} : vector<8x262xf32> to vector<8x256xf32>
    %701 = vector.extract_strided_slice %626 {offsets = [0, 15], sizes = [8, 1], strides = [1, 1]} : vector<8x49xf32> to vector<8x1xf32>
    %702 = vector.broadcast %701 : vector<8x1xf32> to vector<8x256xf32>
    %703 = arith.mulf %700, %702 : vector<8x256xf32>
    %704 = arith.addf %668, %703 : vector<8x256xf32>
    %705 = vector.extract_strided_slice %694 {offsets = [0, 2], sizes = [8, 256], strides = [1, 1]} : vector<8x262xf32> to vector<8x256xf32>
    %706 = vector.extract_strided_slice %626 {offsets = [0, 16], sizes = [8, 1], strides = [1, 1]} : vector<8x49xf32> to vector<8x1xf32>
    %707 = vector.broadcast %706 : vector<8x1xf32> to vector<8x256xf32>
    %708 = arith.mulf %705, %707 : vector<8x256xf32>
    %709 = arith.addf %673, %708 : vector<8x256xf32>
    %710 = vector.extract_strided_slice %694 {offsets = [0, 3], sizes = [8, 256], strides = [1, 1]} : vector<8x262xf32> to vector<8x256xf32>
    %711 = vector.extract_strided_slice %626 {offsets = [0, 17], sizes = [8, 1], strides = [1, 1]} : vector<8x49xf32> to vector<8x1xf32>
    %712 = vector.broadcast %711 : vector<8x1xf32> to vector<8x256xf32>
    %713 = arith.mulf %710, %712 : vector<8x256xf32>
    %714 = arith.addf %678, %713 : vector<8x256xf32>
    %715 = vector.extract_strided_slice %694 {offsets = [0, 4], sizes = [8, 256], strides = [1, 1]} : vector<8x262xf32> to vector<8x256xf32>
    %716 = vector.extract_strided_slice %626 {offsets = [0, 18], sizes = [8, 1], strides = [1, 1]} : vector<8x49xf32> to vector<8x1xf32>
    %717 = vector.broadcast %716 : vector<8x1xf32> to vector<8x256xf32>
    %718 = arith.mulf %715, %717 : vector<8x256xf32>
    %719 = arith.addf %683, %718 : vector<8x256xf32>
    %720 = vector.extract_strided_slice %694 {offsets = [0, 5], sizes = [8, 256], strides = [1, 1]} : vector<8x262xf32> to vector<8x256xf32>
    %721 = vector.extract_strided_slice %626 {offsets = [0, 19], sizes = [8, 1], strides = [1, 1]} : vector<8x49xf32> to vector<8x1xf32>
    %722 = vector.broadcast %721 : vector<8x1xf32> to vector<8x256xf32>
    %723 = arith.mulf %720, %722 : vector<8x256xf32>
    %724 = arith.addf %688, %723 : vector<8x256xf32>
    %725 = vector.extract_strided_slice %694 {offsets = [0, 6], sizes = [8, 256], strides = [1, 1]} : vector<8x262xf32> to vector<8x256xf32>
    %726 = vector.extract_strided_slice %626 {offsets = [0, 20], sizes = [8, 1], strides = [1, 1]} : vector<8x49xf32> to vector<8x1xf32>
    %727 = vector.broadcast %726 : vector<8x1xf32> to vector<8x256xf32>
    %728 = arith.mulf %725, %727 : vector<8x256xf32>
    %729 = arith.addf %693, %728 : vector<8x256xf32>
    %c0_129 = arith.constant 0 : index
    %c125_130 = arith.constant 125 : index
    %730 = vector.load %arg9[%c0_129, %c125_130] : memref<24x512xf32, #tpu.memory_space<vmem>>, vector<8x262xf32>
    %731 = vector.extract_strided_slice %730 {offsets = [0, 0], sizes = [8, 256], strides = [1, 1]} : vector<8x262xf32> to vector<8x256xf32>
    %732 = vector.extract_strided_slice %626 {offsets = [0, 21], sizes = [8, 1], strides = [1, 1]} : vector<8x49xf32> to vector<8x1xf32>
    %733 = vector.broadcast %732 : vector<8x1xf32> to vector<8x256xf32>
    %734 = arith.mulf %731, %733 : vector<8x256xf32>
    %735 = arith.addf %699, %734 : vector<8x256xf32>
    %736 = vector.extract_strided_slice %730 {offsets = [0, 1], sizes = [8, 256], strides = [1, 1]} : vector<8x262xf32> to vector<8x256xf32>
    %737 = vector.extract_strided_slice %626 {offsets = [0, 22], sizes = [8, 1], strides = [1, 1]} : vector<8x49xf32> to vector<8x1xf32>
    %738 = vector.broadcast %737 : vector<8x1xf32> to vector<8x256xf32>
    %739 = arith.mulf %736, %738 : vector<8x256xf32>
    %740 = arith.addf %704, %739 : vector<8x256xf32>
    %741 = vector.extract_strided_slice %730 {offsets = [0, 2], sizes = [8, 256], strides = [1, 1]} : vector<8x262xf32> to vector<8x256xf32>
    %742 = vector.extract_strided_slice %626 {offsets = [0, 23], sizes = [8, 1], strides = [1, 1]} : vector<8x49xf32> to vector<8x1xf32>
    %743 = vector.broadcast %742 : vector<8x1xf32> to vector<8x256xf32>
    %744 = arith.mulf %741, %743 : vector<8x256xf32>
    %745 = arith.addf %709, %744 : vector<8x256xf32>
    %746 = vector.extract_strided_slice %730 {offsets = [0, 3], sizes = [8, 256], strides = [1, 1]} : vector<8x262xf32> to vector<8x256xf32>
    %747 = vector.extract_strided_slice %626 {offsets = [0, 24], sizes = [8, 1], strides = [1, 1]} : vector<8x49xf32> to vector<8x1xf32>
    %748 = vector.broadcast %747 : vector<8x1xf32> to vector<8x256xf32>
    %749 = arith.mulf %746, %748 : vector<8x256xf32>
    %750 = arith.addf %714, %749 : vector<8x256xf32>
    %751 = vector.extract_strided_slice %730 {offsets = [0, 4], sizes = [8, 256], strides = [1, 1]} : vector<8x262xf32> to vector<8x256xf32>
    %752 = vector.extract_strided_slice %626 {offsets = [0, 25], sizes = [8, 1], strides = [1, 1]} : vector<8x49xf32> to vector<8x1xf32>
    %753 = vector.broadcast %752 : vector<8x1xf32> to vector<8x256xf32>
    %754 = arith.mulf %751, %753 : vector<8x256xf32>
    %755 = arith.addf %719, %754 : vector<8x256xf32>
    %756 = vector.extract_strided_slice %730 {offsets = [0, 5], sizes = [8, 256], strides = [1, 1]} : vector<8x262xf32> to vector<8x256xf32>
    %757 = vector.extract_strided_slice %626 {offsets = [0, 26], sizes = [8, 1], strides = [1, 1]} : vector<8x49xf32> to vector<8x1xf32>
    %758 = vector.broadcast %757 : vector<8x1xf32> to vector<8x256xf32>
    %759 = arith.mulf %756, %758 : vector<8x256xf32>
    %760 = arith.addf %724, %759 : vector<8x256xf32>
    %761 = vector.extract_strided_slice %730 {offsets = [0, 6], sizes = [8, 256], strides = [1, 1]} : vector<8x262xf32> to vector<8x256xf32>
    %762 = vector.extract_strided_slice %626 {offsets = [0, 27], sizes = [8, 1], strides = [1, 1]} : vector<8x49xf32> to vector<8x1xf32>
    %763 = vector.broadcast %762 : vector<8x1xf32> to vector<8x256xf32>
    %764 = arith.mulf %761, %763 : vector<8x256xf32>
    %765 = arith.addf %729, %764 : vector<8x256xf32>
    %c0_131 = arith.constant 0 : index
    %c141_132 = arith.constant 141 : index
    %766 = vector.load %arg9[%c0_131, %c141_132] : memref<24x512xf32, #tpu.memory_space<vmem>>, vector<8x262xf32>
    %767 = vector.extract_strided_slice %766 {offsets = [0, 0], sizes = [8, 256], strides = [1, 1]} : vector<8x262xf32> to vector<8x256xf32>
    %768 = vector.extract_strided_slice %626 {offsets = [0, 28], sizes = [8, 1], strides = [1, 1]} : vector<8x49xf32> to vector<8x1xf32>
    %769 = vector.broadcast %768 : vector<8x1xf32> to vector<8x256xf32>
    %770 = arith.mulf %767, %769 : vector<8x256xf32>
    %771 = arith.addf %735, %770 : vector<8x256xf32>
    %772 = vector.extract_strided_slice %766 {offsets = [0, 1], sizes = [8, 256], strides = [1, 1]} : vector<8x262xf32> to vector<8x256xf32>
    %773 = vector.extract_strided_slice %626 {offsets = [0, 29], sizes = [8, 1], strides = [1, 1]} : vector<8x49xf32> to vector<8x1xf32>
    %774 = vector.broadcast %773 : vector<8x1xf32> to vector<8x256xf32>
    %775 = arith.mulf %772, %774 : vector<8x256xf32>
    %776 = arith.addf %740, %775 : vector<8x256xf32>
    %777 = vector.extract_strided_slice %766 {offsets = [0, 2], sizes = [8, 256], strides = [1, 1]} : vector<8x262xf32> to vector<8x256xf32>
    %778 = vector.extract_strided_slice %626 {offsets = [0, 30], sizes = [8, 1], strides = [1, 1]} : vector<8x49xf32> to vector<8x1xf32>
    %779 = vector.broadcast %778 : vector<8x1xf32> to vector<8x256xf32>
    %780 = arith.mulf %777, %779 : vector<8x256xf32>
    %781 = arith.addf %745, %780 : vector<8x256xf32>
    %782 = vector.extract_strided_slice %766 {offsets = [0, 3], sizes = [8, 256], strides = [1, 1]} : vector<8x262xf32> to vector<8x256xf32>
    %783 = vector.extract_strided_slice %626 {offsets = [0, 31], sizes = [8, 1], strides = [1, 1]} : vector<8x49xf32> to vector<8x1xf32>
    %784 = vector.broadcast %783 : vector<8x1xf32> to vector<8x256xf32>
    %785 = arith.mulf %782, %784 : vector<8x256xf32>
    %786 = arith.addf %750, %785 : vector<8x256xf32>
    %787 = vector.extract_strided_slice %766 {offsets = [0, 4], sizes = [8, 256], strides = [1, 1]} : vector<8x262xf32> to vector<8x256xf32>
    %788 = vector.extract_strided_slice %626 {offsets = [0, 32], sizes = [8, 1], strides = [1, 1]} : vector<8x49xf32> to vector<8x1xf32>
    %789 = vector.broadcast %788 : vector<8x1xf32> to vector<8x256xf32>
    %790 = arith.mulf %787, %789 : vector<8x256xf32>
    %791 = arith.addf %755, %790 : vector<8x256xf32>
    %792 = vector.extract_strided_slice %766 {offsets = [0, 5], sizes = [8, 256], strides = [1, 1]} : vector<8x262xf32> to vector<8x256xf32>
    %793 = vector.extract_strided_slice %626 {offsets = [0, 33], sizes = [8, 1], strides = [1, 1]} : vector<8x49xf32> to vector<8x1xf32>
    %794 = vector.broadcast %793 : vector<8x1xf32> to vector<8x256xf32>
    %795 = arith.mulf %792, %794 : vector<8x256xf32>
    %796 = arith.addf %760, %795 : vector<8x256xf32>
    %797 = vector.extract_strided_slice %766 {offsets = [0, 6], sizes = [8, 256], strides = [1, 1]} : vector<8x262xf32> to vector<8x256xf32>
    %798 = vector.extract_strided_slice %626 {offsets = [0, 34], sizes = [8, 1], strides = [1, 1]} : vector<8x49xf32> to vector<8x1xf32>
    %799 = vector.broadcast %798 : vector<8x1xf32> to vector<8x256xf32>
    %800 = arith.mulf %797, %799 : vector<8x256xf32>
    %801 = arith.addf %765, %800 : vector<8x256xf32>
    %c0_133 = arith.constant 0 : index
    %c157_134 = arith.constant 157 : index
    %802 = vector.load %arg9[%c0_133, %c157_134] : memref<24x512xf32, #tpu.memory_space<vmem>>, vector<8x262xf32>
    %803 = vector.extract_strided_slice %802 {offsets = [0, 0], sizes = [8, 256], strides = [1, 1]} : vector<8x262xf32> to vector<8x256xf32>
    %804 = vector.extract_strided_slice %626 {offsets = [0, 35], sizes = [8, 1], strides = [1, 1]} : vector<8x49xf32> to vector<8x1xf32>
    %805 = vector.broadcast %804 : vector<8x1xf32> to vector<8x256xf32>
    %806 = arith.mulf %803, %805 : vector<8x256xf32>
    %807 = arith.addf %771, %806 : vector<8x256xf32>
    %808 = vector.extract_strided_slice %802 {offsets = [0, 1], sizes = [8, 256], strides = [1, 1]} : vector<8x262xf32> to vector<8x256xf32>
    %809 = vector.extract_strided_slice %626 {offsets = [0, 36], sizes = [8, 1], strides = [1, 1]} : vector<8x49xf32> to vector<8x1xf32>
    %810 = vector.broadcast %809 : vector<8x1xf32> to vector<8x256xf32>
    %811 = arith.mulf %808, %810 : vector<8x256xf32>
    %812 = arith.addf %776, %811 : vector<8x256xf32>
    %813 = vector.extract_strided_slice %802 {offsets = [0, 2], sizes = [8, 256], strides = [1, 1]} : vector<8x262xf32> to vector<8x256xf32>
    %814 = vector.extract_strided_slice %626 {offsets = [0, 37], sizes = [8, 1], strides = [1, 1]} : vector<8x49xf32> to vector<8x1xf32>
    %815 = vector.broadcast %814 : vector<8x1xf32> to vector<8x256xf32>
    %816 = arith.mulf %813, %815 : vector<8x256xf32>
    %817 = arith.addf %781, %816 : vector<8x256xf32>
    %818 = vector.extract_strided_slice %802 {offsets = [0, 3], sizes = [8, 256], strides = [1, 1]} : vector<8x262xf32> to vector<8x256xf32>
    %819 = vector.extract_strided_slice %626 {offsets = [0, 38], sizes = [8, 1], strides = [1, 1]} : vector<8x49xf32> to vector<8x1xf32>
    %820 = vector.broadcast %819 : vector<8x1xf32> to vector<8x256xf32>
    %821 = arith.mulf %818, %820 : vector<8x256xf32>
    %822 = arith.addf %786, %821 : vector<8x256xf32>
    %823 = vector.extract_strided_slice %802 {offsets = [0, 4], sizes = [8, 256], strides = [1, 1]} : vector<8x262xf32> to vector<8x256xf32>
    %824 = vector.extract_strided_slice %626 {offsets = [0, 39], sizes = [8, 1], strides = [1, 1]} : vector<8x49xf32> to vector<8x1xf32>
    %825 = vector.broadcast %824 : vector<8x1xf32> to vector<8x256xf32>
    %826 = arith.mulf %823, %825 : vector<8x256xf32>
    %827 = arith.addf %791, %826 : vector<8x256xf32>
    %828 = vector.extract_strided_slice %802 {offsets = [0, 5], sizes = [8, 256], strides = [1, 1]} : vector<8x262xf32> to vector<8x256xf32>
    %829 = vector.extract_strided_slice %626 {offsets = [0, 40], sizes = [8, 1], strides = [1, 1]} : vector<8x49xf32> to vector<8x1xf32>
    %830 = vector.broadcast %829 : vector<8x1xf32> to vector<8x256xf32>
    %831 = arith.mulf %828, %830 : vector<8x256xf32>
    %832 = arith.addf %796, %831 : vector<8x256xf32>
    %833 = vector.extract_strided_slice %802 {offsets = [0, 6], sizes = [8, 256], strides = [1, 1]} : vector<8x262xf32> to vector<8x256xf32>
    %834 = vector.extract_strided_slice %626 {offsets = [0, 41], sizes = [8, 1], strides = [1, 1]} : vector<8x49xf32> to vector<8x1xf32>
    %835 = vector.broadcast %834 : vector<8x1xf32> to vector<8x256xf32>
    %836 = arith.mulf %833, %835 : vector<8x256xf32>
    %837 = arith.addf %801, %836 : vector<8x256xf32>
    %c0_135 = arith.constant 0 : index
    %c173_136 = arith.constant 173 : index
    %838 = vector.load %arg9[%c0_135, %c173_136] : memref<24x512xf32, #tpu.memory_space<vmem>>, vector<8x262xf32>
    %839 = vector.extract_strided_slice %838 {offsets = [0, 0], sizes = [8, 256], strides = [1, 1]} : vector<8x262xf32> to vector<8x256xf32>
    %840 = vector.extract_strided_slice %626 {offsets = [0, 42], sizes = [8, 1], strides = [1, 1]} : vector<8x49xf32> to vector<8x1xf32>
    %841 = vector.broadcast %840 : vector<8x1xf32> to vector<8x256xf32>
    %842 = arith.mulf %839, %841 : vector<8x256xf32>
    %843 = arith.addf %807, %842 : vector<8x256xf32>
    %844 = vector.extract_strided_slice %838 {offsets = [0, 1], sizes = [8, 256], strides = [1, 1]} : vector<8x262xf32> to vector<8x256xf32>
    %845 = vector.extract_strided_slice %626 {offsets = [0, 43], sizes = [8, 1], strides = [1, 1]} : vector<8x49xf32> to vector<8x1xf32>
    %846 = vector.broadcast %845 : vector<8x1xf32> to vector<8x256xf32>
    %847 = arith.mulf %844, %846 : vector<8x256xf32>
    %848 = arith.addf %812, %847 : vector<8x256xf32>
    %849 = vector.extract_strided_slice %838 {offsets = [0, 2], sizes = [8, 256], strides = [1, 1]} : vector<8x262xf32> to vector<8x256xf32>
    %850 = vector.extract_strided_slice %626 {offsets = [0, 44], sizes = [8, 1], strides = [1, 1]} : vector<8x49xf32> to vector<8x1xf32>
    %851 = vector.broadcast %850 : vector<8x1xf32> to vector<8x256xf32>
    %852 = arith.mulf %849, %851 : vector<8x256xf32>
    %853 = arith.addf %817, %852 : vector<8x256xf32>
    %854 = vector.extract_strided_slice %838 {offsets = [0, 3], sizes = [8, 256], strides = [1, 1]} : vector<8x262xf32> to vector<8x256xf32>
    %855 = vector.extract_strided_slice %626 {offsets = [0, 45], sizes = [8, 1], strides = [1, 1]} : vector<8x49xf32> to vector<8x1xf32>
    %856 = vector.broadcast %855 : vector<8x1xf32> to vector<8x256xf32>
    %857 = arith.mulf %854, %856 : vector<8x256xf32>
    %858 = arith.addf %822, %857 : vector<8x256xf32>
    %859 = vector.extract_strided_slice %838 {offsets = [0, 4], sizes = [8, 256], strides = [1, 1]} : vector<8x262xf32> to vector<8x256xf32>
    %860 = vector.extract_strided_slice %626 {offsets = [0, 46], sizes = [8, 1], strides = [1, 1]} : vector<8x49xf32> to vector<8x1xf32>
    %861 = vector.broadcast %860 : vector<8x1xf32> to vector<8x256xf32>
    %862 = arith.mulf %859, %861 : vector<8x256xf32>
    %863 = arith.addf %827, %862 : vector<8x256xf32>
    %864 = vector.extract_strided_slice %838 {offsets = [0, 5], sizes = [8, 256], strides = [1, 1]} : vector<8x262xf32> to vector<8x256xf32>
    %865 = vector.extract_strided_slice %626 {offsets = [0, 47], sizes = [8, 1], strides = [1, 1]} : vector<8x49xf32> to vector<8x1xf32>
    %866 = vector.broadcast %865 : vector<8x1xf32> to vector<8x256xf32>
    %867 = arith.mulf %864, %866 : vector<8x256xf32>
    %868 = arith.addf %832, %867 : vector<8x256xf32>
    %869 = vector.extract_strided_slice %838 {offsets = [0, 6], sizes = [8, 256], strides = [1, 1]} : vector<8x262xf32> to vector<8x256xf32>
    %870 = vector.extract_strided_slice %626 {offsets = [0, 48], sizes = [8, 1], strides = [1, 1]} : vector<8x49xf32> to vector<8x1xf32>
    %871 = vector.broadcast %870 : vector<8x1xf32> to vector<8x256xf32>
    %872 = arith.mulf %869, %871 : vector<8x256xf32>
    %873 = arith.addf %837, %872 : vector<8x256xf32>
    %874 = vector.broadcast %53 : vector<1x256xf32> to vector<8x256xf32>
    %875 = arith.mulf %843, %874 : vector<8x256xf32>
    %876 = vector.broadcast %64 : vector<1x256xf32> to vector<8x256xf32>
    %877 = arith.mulf %848, %876 : vector<8x256xf32>
    %878 = arith.addf %875, %877 : vector<8x256xf32>
    %879 = vector.broadcast %75 : vector<1x256xf32> to vector<8x256xf32>
    %880 = arith.mulf %853, %879 : vector<8x256xf32>
    %881 = arith.addf %878, %880 : vector<8x256xf32>
    %882 = arith.addf %881, %858 : vector<8x256xf32>
    %883 = vector.broadcast %86 : vector<1x256xf32> to vector<8x256xf32>
    %884 = arith.mulf %863, %883 : vector<8x256xf32>
    %885 = arith.addf %882, %884 : vector<8x256xf32>
    %886 = vector.broadcast %97 : vector<1x256xf32> to vector<8x256xf32>
    %887 = arith.mulf %868, %886 : vector<8x256xf32>
    %888 = arith.addf %885, %887 : vector<8x256xf32>
    %889 = vector.broadcast %108 : vector<1x256xf32> to vector<8x256xf32>
    %890 = arith.mulf %873, %889 : vector<8x256xf32>
    %891 = arith.addf %888, %890 : vector<8x256xf32>
    %892 = vector.broadcast %627 : vector<8x1xf32> to vector<8x256xf32>
    %893 = arith.addf %891, %892 : vector<8x256xf32>
    %894 = arith.addf %132, %893 : vector<8x256xf32>
    %c0_137 = arith.constant 0 : index
    %c0_138 = arith.constant 0 : index
    %c0_139 = arith.constant 0 : index
    %895 = vector.load %arg8[%c0_137, %c0_138, %c0_139] : memref<1x8x256xf32, #tpu.memory_space<vmem>>, vector<1x8x256xf32>
    %896 = vector.shape_cast %895 : vector<1x8x256xf32> to vector<8x256xf32>
    %897 = vector.shape_cast %894 : vector<8x256xf32> to vector<1x8x256xf32>
    tpu.vector_store %arg8[%c0_137, %c0_138, %c0_139], %897 {strides = array<i32>} : memref<1x8x256xf32, #tpu.memory_space<vmem>>, vector<1x8x256xf32>,
    return
  }
  func.func @transform_0(%arg0: i32) -> (i32, i32, i32) {
    %c0_i32 = arith.constant 0 : i32
    %c0_i32_0 = arith.constant 0 : i32
    %c0_i32_1 = arith.constant 0 : i32
    return %arg0, %c0_i32, %c0_i32_0 : i32, i32, i32
  }
  func.func @transform_1(%arg0: i32) -> (i32, i32) {
    %c0_i32 = arith.constant 0 : i32
    %c0_i32_0 = arith.constant 0 : i32
    %c0_i32_1 = arith.constant 0 : i32
    return %c0_i32, %c0_i32_0 : i32, i32
  }
  func.func @transform_2(%arg0: i32) -> (i32, i32) {
    %c0_i32 = arith.constant 0 : i32
    %c0_i32_0 = arith.constant 0 : i32
    %c0_i32_1 = arith.constant 0 : i32
    return %c0_i32, %c0_i32_0 : i32, i32
  }
  func.func @transform_3(%arg0: i32) -> (i32, i32) {
    %c0_i32 = arith.constant 0 : i32
    %c0_i32_0 = arith.constant 0 : i32
    %c0_i32_1 = arith.constant 0 : i32
    return %c0_i32, %c0_i32_0 : i32, i32
  }
  func.func @transform_4(%arg0: i32) -> (i32, i32) {
    %c0_i32 = arith.constant 0 : i32
    %c0_i32_0 = arith.constant 0 : i32
    %c0_i32_1 = arith.constant 0 : i32
    return %c0_i32, %c0_i32_0 : i32, i32
  }
  func.func @transform_5(%arg0: i32) -> (i32, i32) {
    %c0_i32 = arith.constant 0 : i32
    %c0_i32_0 = arith.constant 0 : i32
    %c0_i32_1 = arith.constant 0 : i32
    return %c0_i32, %c0_i32_0 : i32, i32
  }
  func.func @transform_6(%arg0: i32) -> (i32, i32) {
    %c0_i32 = arith.constant 0 : i32
    %c0_i32_0 = arith.constant 0 : i32
    %c0_i32_1 = arith.constant 0 : i32
    return %c0_i32, %c0_i32_0 : i32, i32
  }
  func.func @transform_7(%arg0: i32) -> (i32, i32, i32) {
    %c0_i32 = arith.constant 0 : i32
    %c0_i32_0 = arith.constant 0 : i32
    %c0_i32_1 = arith.constant 0 : i32
    return %arg0, %c0_i32, %c0_i32_0 : i32, i32, i32
  }
}

</mosaic_0001>

<bundles_post_ra>
// kernel: tpu_custom_call.1
= control target key start
LH: loop header
LB: loop body
LE: loop exit
PB: predicated region body
PF: predicated region fallthrough
CT: control target
= control target key end

     0   :  { %v10817_v1 = vmov 15   ;;  %v10829_v2 = vmov 8   ;;  %s10777_s0 = inlined_call_operand.vmem [shape: f32[1,8,256], index: 0, kind: input, shape index: {}]   ;;  %s10778_s1 = inlined_call_operand.vmem [shape: f32[16,49], index: 1, kind: input, shape index: {}]   ;;  %s10779_s2 = inlined_call_operand.vmem [shape: f32[48,8], index: 2, kind: input, shape index: {}]   ;;  %s10780_s3 = inlined_call_operand.vmem [shape: f32[48,24], index: 3, kind: input, shape index: {}]   ;;  %s10781_s4 = inlined_call_operand.vmem [shape: f32[48,11], index: 4, kind: input, shape index: {}]   ;;  %s10782_s5 = inlined_call_operand.vmem [shape: f32[8,24], index: 5, kind: input, shape index: {}]   ;;  %s10783_s6 = inlined_call_operand.vmem [shape: f32[168,1], index: 6, kind: input, shape index: {}]   ;;  %s10784_s7 = inlined_call_operand.hbm [shape: f32[1,8,256], index: 7, kind: output, shape index: {}]  }
   0x1   :  { %v6466_v0 = vld [vmem:[%s10778_s1] sm:$0xff]  ;;  %5961 = vset.pattern.permute.xlu1 %v10817_v1  ;;  %5959 = vset.pattern.permute.xlu0 %v10829_v2 }
   0x2   :  { %434 = vperm.xlu1 %5961, %v6466_v0   ;;  %265 = vperm.xlu0 %5959, %v6466_v0  }
   0x3   :  { %12 = vsyncpa [#allocation4], 0  ;;  %v10816_v3 = vmov 16   ;;  %v10827_v4 = vmov 9   ;;  %v10810_v5 = vmov 22   ;;  %v10825_v6 = vmov 10  }
   0x4   :  { %v10821_v7 = vmov 11   ;;  %v10792_v8 = vmov 29   ;;  %v10809_v9 = vmov 23   ;;  %v10814_v10 = vmov 18   ;;  %v6564_v50 = vld [vmem:[%s10777_s0] sm:$0xff]  ;;  %s6389_s28 = smov 112  }
   0x5   :  { %v10820_v11 = vmov 12   ;;  %v10819_v12 = vmov 13   ;;  %v10815_v13 = vmov 17   ;;  %v10822_v14 = vmov 25   ;;  %s6391_s29 = smov 96   ;;  %v6593_v62 = vld [vmem:[%s10777_s0 + $0x8] sm:$0xff] }
   0x6   :  { %5962 = vset.pattern.permute.xlu1 %v10816_v3  ;;  %5960 = vset.pattern.permute.xlu0 %v10827_v4  ;;  %v10806_v15 = vmov 30   ;;  %v10812_v16 = vmov 20   ;;  %v10805_v17 = vmov 36   ;;  %v10790_v18 = vmov 32   ;;  %s6394_s9 = smov 80   ;;  %s10966_s10 = smov 64  }
   0x7   :  { %458 = vperm.xlu1 %5962, %v6466_v0   ;;  %289 = vperm.xlu0 %5960, %v6466_v0   ;;  %v10813_v19 = vmov 19   ;;  %v10789_v20 = vmov 33   ;;  %v10808_v21 = vmov 24   ;;  %v10788_v22 = vmov 34   ;;  %s10964_s11 = smov 48   ;;  %s6397_s12 = smov 32  }
   0x8   :  { %v10791_v23 = vmov 37   ;;  %v10787_v24 = vmov 46   ;;  %v10804_v25 = vmov 43   ;;  %v10786_v26 = vmov 48   ;;  %s6399_s13 = smov 78   ;;  %s6400_s14 = smov 79  }
   0x9   :  { %v10807_v27 = vmov 26   ;;  %v10843_v28 = vmov 2   ;;  %v10803_v29 = vmov 31   ;;  %v10839_v30 = vmov 3   ;;  %s6401_s15 = smov 83   ;;  %s6402_s16 = smov 81  }
   0xa   :  { %v10802_v31 = vmov 44   ;;  %v10835_v32 = vmov 5   ;;  %v10801_v33 = vmov 27   ;;  %v10793_v34 = vmov 35   ;;  %s6403_s17 = smov 82   ;;  %s6404_s20 = smov 77  }
   0xb   :  { %5963 = vset.pattern.permute.xlu1 %v10810_v5  ;;  %5964 = vset.pattern.permute.xlu0 %v10825_v6  ;;  %v10800_v35 = vmov 38   ;;  %v10785_v36 = vmov 42   ;;  %v10799_v37 = vmov 39   ;;  %v10798_v38 = vmov 40   ;;  %s6405_s21 = smov 127   ;;  %s6406_s22 = smov 126  }
   0xc   :  { %607 = vperm.xlu1 %5963, %v6466_v0   ;;  %313 = vperm.xlu0 %5964, %v6466_v0   ;;  %v10797_v39 = vmov 45   ;;  %v10796_v40 = vmov 41   ;;  %v10795_v41 = vmov 47   ;;  %v10841_v42 = vmov 1   ;;  %s6407_s27 = smov 125   ;;  %s6408_s30 = smov 124  }
   0xd   :  { %v10831_v43 = vmov 7   ;;  %v10818_v44 = vmov 14   ;;  %v10811_v47 = vmov 21   ;;  %v10837_v52 = vmov 4   ;;  %s6412_s19 = smov 1   ;;  %s6414_s23 = smov 3  }
   0xe   :  { %v10794_v55 = vmov 28   ;;  %v10833_v57 = vmov 6   ;;  %v10845_v60 = vmov 0.0   ;;  %vm10924_vm12 = vcmask 523264   ;;  %s6415_s24 = smov 4   ;;  %s6416_s25 = smov 5  }
   0xf   :  { %1591 = vmatprep.mubr.f32.mxu0 %v10845_v60  ;;  %2521 = vmatprep.mubr.f32.mxu1 %v10845_v60  ;;  %vm930_vm13 = vcmask 392192   ;;  %vm10923_vm14 = vcmask 261120   ;;  %vm255_vm15 = vcmask 916480   ;;  %s6419_s26 = smov 119  }
  0x10   :  { %5965 = vset.pattern.permute.xlu1 %v10821_v7  ;;  %5967 = vset.pattern.permute.xlu0 %v10792_v8 }
  0x11   :  { %337 = vperm.xlu1 %5965, %v6466_v0   ;;  %771 = vperm.xlu0 %5967, %v6466_v0  }
  0x15   :  { %5966 = vset.pattern.permute.xlu1 %v10809_v9  ;;  %5970 = vset.pattern.permute.xlu0 %v10814_v10 }
  0x16   :  { %631 = vperm.xlu1 %5966, %v6466_v0   ;;  %506 = vperm.xlu0 %5970, %v6466_v0  }
  0x1a   :  { %5968 = vset.pattern.permute.xlu1 %v10820_v11  ;;  %5973 = vset.pattern.permute.xlu0 %v10819_v12 }
  0x1b   :  { %361 = vperm.xlu1 %5968, %v6466_v0   ;;  %385 = vperm.xlu0 %5973, %v6466_v0  }
  0x1f   :  { %5969 = vset.pattern.permute.xlu1 %v10815_v13  ;;  %5976 = vset.pattern.permute.xlu0 %v10822_v14 }
  0x20   :  { %482 = vperm.xlu1 %5969, %v6466_v0   ;;  %674 = vperm.xlu0 %5976, %v6466_v0  }
  0x24   :  { %5971 = vset.pattern.permute.xlu1 %v10806_v15  ;;  %5979 = vset.pattern.permute.xlu0 %v10812_v16 }
  0x25   :  { %795 = vperm.xlu1 %5971, %v6466_v0   ;;  %554 = vperm.xlu0 %5979, %v6466_v0  }
  0x29   :  { %5972 = vset.pattern.permute.xlu1 %v10805_v17  ;;  %5982 = vset.pattern.permute.xlu0 %v10790_v18 }
  0x2a   :  { %940 = vperm.xlu1 %5972, %v6466_v0   ;;  %843 = vperm.xlu0 %5982, %v6466_v0  }
  0x2e   :  { %5974 = vset.pattern.permute.xlu1 %v10813_v19  ;;  %5985 = vset.pattern.permute.xlu0 %v10789_v20 }
  0x2f   :  { %530 = vperm.xlu1 %5974, %v6466_v0   ;;  %867 = vperm.xlu0 %5985, %v6466_v0  }
  0x33   :  { %5975 = vset.pattern.permute.xlu1 %v10808_v21  ;;  %5988 = vset.pattern.permute.xlu0 %v10788_v22 }
  0x34   :  { %655 = vperm.xlu1 %5975, %v6466_v0   ;;  %891 = vperm.xlu0 %5988, %v6466_v0  }
  0x38   :  { %5977 = vset.pattern.permute.xlu1 %v10791_v23  ;;  %5991 = vset.pattern.permute.xlu0 %v10787_v24 }
  0x39   :  { %964 = vperm.xlu1 %5977, %v6466_v0   ;;  %1181 = vperm.xlu0 %5991, %v6466_v0  }
  0x3d   :  { %5978 = vset.pattern.permute.xlu1 %v10804_v25  ;;  %5994 = vset.pattern.permute.xlu0 %v10786_v26 }
  0x3e   :  { %1109 = vperm.xlu1 %5978, %v6466_v0   ;;  %1229 = vperm.xlu0 %5994, %v6466_v0  }
  0x42   :  { %5980 = vset.pattern.permute.xlu1 %v10807_v27  ;;  %5997 = vset.pattern.permute.xlu0 %v10843_v28 }
  0x43   :  { %698 = vperm.xlu1 %5980, %v6466_v0   ;;  %205 = vperm.xlu0 %5997, %v6466_v0  }
  0x47   :  { %5981 = vset.pattern.permute.xlu1 %v10803_v29  ;;  %6000 = vset.pattern.permute.xlu0 %v10839_v30 }
  0x48   :  { %819 = vperm.xlu1 %5981, %v6466_v0   ;;  %212 = vperm.xlu0 %6000, %v6466_v0  }
  0x4c   :  { %5983 = vset.pattern.permute.xlu1 %v10802_v31  ;;  %6003 = vset.pattern.permute.xlu0 %v10835_v32  ;;  %v33_v31 = vlaneseq }
  0x4d   :  { %1133 = vperm.xlu1 %5983, %v6466_v0   ;;  %226 = vperm.xlu0 %6003, %v6466_v0  }
  0x4e   :  { %v34_v25 = vand.u32 127, %v33_v31 }
  0x50   :  { %v35_v17 = vadd.s32 128, %v34_v25  ;;  %v6804_v27 = vand.u32 15, %v34_v25 }
  0x51   :  { %5984 = vset.pattern.permute.xlu1 %v10801_v33  ;;  %6004 = vset.pattern.permute.xlu0 %v10793_v34 }
  0x52   :  { %722 = vperm.xlu1 %5984, %v6466_v0   ;;  %915 = vperm.xlu0 %6004, %v6466_v0   ;;  %10997 = vst [vmem:[#allocation6_spill] sm:$0xff] %v6804_v27  ;;  %v6806_v21 = vand.u32 15, %v35_v17 }
  0x54   :  { %10998 = vst [vmem:[#allocation7_spill] sm:$0xff] %v6806_v21 }
  0x56   :  { %5986 = vset.pattern.permute.xlu1 %v10800_v35  ;;  %6006 = vset.pattern.permute.xlu0 %v10785_v36 }
  0x57   :  { %988 = vperm.xlu1 %5986, %v6466_v0  }
  0x5b   :  { %5987 = vset.pattern.permute.xlu1 %v10799_v37 }
  0x5c   :  { %1012 = vperm.xlu1 %5987, %v6466_v0  }
  0x60   :  { %5989 = vset.pattern.permute.xlu1 %v10798_v38 }
  0x61   :  { %1036 = vperm.xlu1 %5989, %v6466_v0  }
  0x65   :  { %5990 = vset.pattern.permute.xlu1 %v10797_v39 }
  0x66   :  { %1157 = vperm.xlu1 %5990, %v6466_v0  }
  0x6a   :  { %5992 = vset.pattern.permute.xlu1 %v10796_v40 }
  0x6b   :  { %1060 = vperm.xlu1 %5992, %v6466_v0  }
  0x6f   :  { %5993 = vset.pattern.permute.xlu1 %v10795_v41 }
  0x70   :  { %1205 = vperm.xlu1 %5993, %v6466_v0  }
  0x74   :  { %5995 = vset.pattern.permute.xlu1 %v10841_v42 }
  0x75   :  { %198 = vperm.xlu1 %5995, %v6466_v0  }
  0x79   :  { %5996 = vset.pattern.permute.xlu1 %v10831_v43 }
  0x7a   :  { %240 = vperm.xlu1 %5996, %v6466_v0  }
  0x7e   :  { %5998 = vset.pattern.permute.xlu1 %v10818_v44  ;;  %v109_v44 = vadd.s32 4294967295, %v6806_v21 }
  0x7f   :  { %409 = vperm.xlu1 %5998, %v6466_v0  }
  0x80   :  { %vm111_vm3 = vcmp.ge.s32.totalorder %v109_v44, 0 }
  0x81   :  { %v6555_v45 = vpop.permute.xlu1 %434  ;;  %v266_v46 = vpop.permute.xlu0 %265 }
  0x82   :  { %v438_v54 = vmul.f32 %v6555_v45, %v6564_v50  ;;  %v269_v59 = vmul.f32 %v266_v46, %v6564_v50  ;;  %v268_v36 = vmul.f32 0.0, %v266_v46 }
  0x83   :  { %5999 = vset.pattern.permute.xlu1 %v10811_v47 }
  0x84   :  { %582 = vperm.xlu1 %5999, %v6466_v0  }
  0x86   :  { %v6559_v48 = vpop.permute.xlu1 %458  ;;  %v290_v49 = vpop.permute.xlu0 %289 }
  0x87   :  { %v293_v51 = vmul.f32 %v290_v49, %v6564_v50  ;;  %v462_v58 = vmul.f32 %v6559_v48, %v6564_v50  ;;  %v292_v22 = vmul.f32 0.0, %v290_v49 }
  0x88   :  { %6001 = vset.pattern.permute.xlu1 %v10837_v52 }
  0x89   :  { %219 = vperm.xlu1 %6001, %v6466_v0   ;;  %300 = vrot.lane.b32.xlu0 %v293_v51, %s6389_s28 }
  0x8b   :  { %v6570_v53 = vpop.permute.xlu1 %607 }
  0x8c   :  { %v611_v63 = vmul.f32 %v6570_v53, %v6564_v50 }
  0x8d   :  { %6002 = vset.pattern.permute.xlu1 %v10794_v55  ;;  %445 = vrot.lane.b32.xlu0 %v438_v54, %s6391_s29  ;;  %v6602_v54 = vpop.permute.xlu0 %313 }
  0x8e   :  { %746 = vperm.xlu1 %6002, %v6466_v0  }
  0x90   :  { %v6577_v56 = vpop.permute.xlu1 %337 }
  0x91   :  { %1084 = vperm.xlu0 %6006, %v6466_v0  }
  0x92   :  { %6005 = vset.pattern.permute.xlu1 %v10833_v57 }
  0x93   :  { %233 = vperm.xlu1 %6005, %v6466_v0   ;;  %v270_v0 = vmul.f32 %v266_v46, %v6593_v62  ;;  %v439_v46 = vmul.f32 %v6555_v45, %v6593_v62 }
  0x95   :  { %v6587_v61 = vpop.permute.xlu1 %631  ;;  %469 = vrot.lane.b32.xlu0 %v462_v58, %s6391_s29  ;;  %v461_v58 = vmul.f32 0.0, %v6559_v48 }
  0x97   :  { %276 = vrot.lane.b32.xlu1 %v269_v59, %s6389_s28  ;;  %v317_v59 = vmul.f32 %v6602_v54, %v6564_v50 }
  0x99   :  { %618 = vrot.lane.b32.xlu0 %v611_v63, %s6394_s9  ;;  %v294_v63 = vmul.f32 %v290_v49, %v6593_v62  ;;  %v463_v49 = vmul.f32 %v6559_v48, %v6593_v62  ;;  %v610_v48 = vmul.f32 0.0, %v6570_v53 }
  0x9a   :  { %v6600_v51 = vpop.permute.xlu1 %361 }
  0x9b   :  { %278 = vrot.lane.b32.xlu1 %v270_v0, %s6389_s28  ;;  %v341_v0 = vmul.f32 %v6577_v56, %v6564_v50 }
  0x9d   :  { %467 = vrot.lane.b32.xlu0 %v461_v58, %s6391_s29  ;;  %v772_v58 = vpop.permute.xlu0 %771 }
  0x9e   :  { %v776_v20 = vmul.f32 0.0, %v772_v58 }
  0x9f   :  { %v6609_v26 = vpop.permute.xlu1 %482  ;;  %274 = vrot.lane.b32.xlu1 %v268_v36, %s6389_s28  ;;  %v635_v36 = vmul.f32 %v6587_v61, %v6564_v50 }
  0xa0   :  { %v485_v35 = vmul.f32 0.0, %v6609_v26 }
  0xa1   :  { %324 = vrot.lane.b32.xlu0 %v317_v59, %s6389_s28 }
  0xa3   :  { %302 = vrot.lane.b32.xlu1 %v294_v63, %s6389_s28  ;;  %v774_v63 = vmul.f32 %v772_v58, %v6564_v50 }
  0xa4   :  { %v6617_v24 = vpop.permute.xlu1 %795 }
  0xa5   :  { %348 = vrot.lane.b32.xlu0 %v341_v0, %s6389_s28  ;;  %v437_v0 = vmul.f32 0.0, %v6555_v45  ;;  %v612_v45 = vmul.f32 %v6570_v53, %v6593_v62  ;;  %v342_v53 = vmul.f32 %v6577_v56, %v6593_v62  ;;  %v799_v39 = vmul.f32 %v6617_v24, %v6593_v62 }
  0xa7   :  { %447 = vrot.lane.b32.xlu1 %v439_v46, %s6391_s29 }
  0xa9   :  { %v6625_v59 = vpop.permute.xlu1 %940  ;;  %642 = vrot.lane.b32.xlu0 %v635_v36, %s6394_s9  ;;  %v365_v36 = vmul.f32 %v6600_v51, %v6564_v50 }
  0xab   :  { %298 = vrot.lane.b32.xlu1 %v292_v22, %s6389_s28  ;;  %v340_v22 = vmul.f32 0.0, %v6577_v56  ;;  %v800_v56 = vmul.f32 0.0, %v6617_v24 }
  0xad   :  { %780 = vrot.lane.b32.xlu0 %v774_v63, %s10966_s10  ;;  %v507_v63 = vpop.permute.xlu0 %506 }
  0xae   :  { %v6632_v18 = vpop.permute.xlu1 %530  ;;  %v509_v41 = vmul.f32 0.0, %v507_v63 }
  0xaf   :  { %443 = vrot.lane.b32.xlu1 %v437_v0, %s6391_s29  ;;  %v486_v0 = vmul.f32 %v6609_v26, %v6564_v50 }
  0xb1   :  { %784 = vrot.lane.b32.xlu0 %v776_v20, %s10966_s10  ;;  %v6661_v23 = vpop.permute.xlu0 %385 }
  0xb3   :  { %v6638_v46 = vpop.permute.xlu1 %655  ;;  %471 = vrot.lane.b32.xlu1 %v463_v49, %s6391_s29  ;;  %v318_v49 = vmul.f32 %v6602_v54, %v6593_v62 }
  0xb5   :  { %346 = vrot.lane.b32.xlu0 %v340_v22, %s6389_s28  ;;  %v6672_v8 = vpop.permute.xlu0 %674 }
  0xb6   :  { %v677_v29 = vmul.f32 %v6672_v8, %v6564_v50 }
  0xb7   :  { %620 = vrot.lane.b32.xlu1 %v612_v45, %s6394_s9  ;;  %v510_v45 = vmul.f32 %v507_v63, %v6564_v50 }
  0xb8   :  { %v6648_v20 = vpop.permute.xlu1 %964 }
  0xb9   :  { %372 = vrot.lane.b32.xlu0 %v365_v36, %s6389_s28 }
  0xbb   :  { %616 = vrot.lane.b32.xlu1 %v610_v48, %s6394_s9  ;;  %v798_v48 = vmul.f32 %v6617_v24, %v6564_v50  ;;  %v967_v24 = vmul.f32 %v6648_v20, %v6564_v50 }
  0xbd   :  { %v6657_v22 = vpop.permute.xlu1 %1109  ;;  %493 = vrot.lane.b32.xlu0 %v486_v0, %s6391_s29  ;;  %v636_v0 = vmul.f32 %v6587_v61, %v6593_v62 }
  0xbe   :  { %v1112_v17 = vmul.f32 %v6657_v22, %v6564_v50 }
  0xbf   :  { %326 = vrot.lane.b32.xlu1 %v318_v49, %s6389_s28 }
  0xc1   :  { %517 = vrot.lane.b32.xlu0 %v510_v45, %s6391_s29  ;;  %v775_v45 = vmul.f32 %v772_v58, %v6593_v62  ;;  %v364_v58 = vmul.f32 0.0, %v6600_v51 }
  0xc2   :  { %v6667_v36 = vpop.permute.xlu1 %698 }
  0xc3   :  { %350 = vrot.lane.b32.xlu1 %v342_v53, %s6389_s28  ;;  %v6683_v53 = vpop.permute.xlu0 %554 }
  0xc4   :  { %v559_v19 = vmul.f32 %v6683_v53, %v6593_v62  ;;  %v557_v6 = vmul.f32 0.0, %v6683_v53 }
  0xc5   :  { %804 = vrot.lane.b32.xlu0 %v798_v48, %s10966_s10  ;;  %v944_v48 = vmul.f32 %v6625_v59, %v6593_v62 }
  0xc7   :  { %v6677_v49 = vpop.permute.xlu1 %819  ;;  %644 = vrot.lane.b32.xlu1 %v636_v0, %s6394_s9  ;;  %v316_v0 = vmul.f32 0.0, %v6602_v54  ;;  %v6694_v55 = vpop.permute.xlu0 %843  ;;  %v366_v54 = vmul.f32 %v6600_v51, %v6593_v62  ;;  %v511_v51 = vmul.f32 %v507_v63, %v6593_v62 }
  0xc8   :  { %v846_v9 = vmul.f32 %v6694_v55, %v6564_v50  ;;  %v822_v13 = vmul.f32 %v6677_v49, %v6564_v50  ;;  %v824_v3 = vmul.f32 0.0, %v6677_v49 }
  0xc9   :  { %808 = vrot.lane.b32.xlu0 %v800_v56, %s10966_s10 }
  0xcb   :  { %782 = vrot.lane.b32.xlu1 %v775_v45, %s10966_s10  ;;  %v634_v45 = vmul.f32 0.0, %v6587_v61  ;;  %v6708_v40 = vpop.permute.xlu0 %867  ;;  %v487_v61 = vmul.f32 %v6609_v26, %v6593_v62 }
  0xcc   :  { %v6688_v34 = vpop.permute.xlu1 %1133  ;;  %v870_v4 = vmul.f32 %v6708_v40, %v6564_v50  ;;  %v872_v2 = vmul.f32 0.0, %v6708_v40 }
  0xcd   :  { %951 = vrot.lane.b32.xlu0 %v944_v48, %s10964_s11  ;;  %v390_v48 = vmul.f32 %v6661_v23, %v6593_v62  ;;  %v1136_v11 = vmul.f32 %v6688_v34, %v6564_v50  ;;  %v1138_v44 = vmul.f32 0.0, %v6688_v34 }
  0xcf   :  { %322 = vrot.lane.b32.xlu1 %v316_v0, %s6389_s28 }
  0xd1   :  { %v6696_v56 = vpop.permute.xlu1 %722  ;;  %370 = vrot.lane.b32.xlu0 %v364_v58, %s6389_s28 }
  0xd3   :  { %640 = vrot.lane.b32.xlu1 %v634_v45, %s6394_s9  ;;  %v6720_v45 = vpop.permute.xlu0 %891 }
  0xd4   :  { %v894_v42 = vmul.f32 %v6720_v45, %v6564_v50  ;;  %v896_v28 = vmul.f32 0.0, %v6720_v45 }
  0xd5   :  { %515 = vrot.lane.b32.xlu0 %v509_v41, %s6391_s29  ;;  %v535_v41 = vmul.f32 %v6632_v18, %v6593_v62 }
  0xd6   :  { %v6706_v0 = vpop.permute.xlu1 %988 }
  0xd7   :  { %374 = vrot.lane.b32.xlu1 %v366_v54, %s6389_s28  ;;  %v659_v54 = vmul.f32 %v6638_v46, %v6593_v62  ;;  %v6733_v63 = vpop.permute.xlu0 %1181  ;;  %v991_v1 = vmul.f32 %v6706_v0, %v6564_v50  ;;  %v992_v57 = vmul.f32 %v6706_v0, %v6593_v62 }
  0xd9   :  { %398 = vrot.lane.b32.xlu0 %v390_v48, %s6389_s28 }
  0xdb   :  { %v6714_v58 = vpop.permute.xlu1 %1012  ;;  %495 = vrot.lane.b32.xlu1 %v487_v61, %s6391_s29  ;;  %v678_v61 = vmul.f32 %v6672_v8, %v6593_v62 }
  0xdc   :  { %v1016_v14 = vmul.f32 %v6714_v58, %v6593_v62  ;;  %v1015_v32 = vmul.f32 %v6714_v58, %v6564_v50  ;;  %v1017_v52 = vmul.f32 0.0, %v6714_v58 }
  0xdd   :  { %543 = vrot.lane.b32.xlu0 %v535_v41, %s6391_s29  ;;  %v943_v41 = vmul.f32 %v6625_v59, %v6564_v50 }
  0xdf   :  { %519 = vrot.lane.b32.xlu1 %v511_v51, %s6391_s29  ;;  %v6744_v51 = vpop.permute.xlu0 %1229 }
  0xe0   :  { %v6726_v48 = vpop.permute.xlu1 %1036 }
  0xe1   :  { %664 = vrot.lane.b32.xlu0 %v659_v54, %s6394_s9  ;;  %v945_v54 = vmul.f32 0.0, %v6625_v59  ;;  %v1113_v59 = vmul.f32 %v6657_v22, %v6593_v62 }
  0xe3   :  { %806 = vrot.lane.b32.xlu1 %v799_v39, %s10966_s10  ;;  %v969_v39 = vmul.f32 0.0, %v6648_v20 }
  0xe5   :  { %v6738_v38 = vpop.permute.xlu1 %1157  ;;  %685 = vrot.lane.b32.xlu0 %v678_v61, %s6394_s9  ;;  %v6754_v61 = vpop.permute.xlu0 %205 }
  0xe6   :  { %v1161_v43 = vmul.f32 %v6738_v38, %v6593_v62 }
  0xe7   :  { %949 = vrot.lane.b32.xlu1 %v943_v41, %s10964_s11  ;;  %v389_v41 = vmul.f32 %v6661_v23, %v6564_v50 }
  0xe9   :  { %973 = vrot.lane.b32.xlu0 %v967_v24, %s10964_s11  ;;  %v388_v24 = vmul.f32 0.0, %v6661_v23  ;;  %v6766_v26 = vpop.permute.xlu0 %212  ;;  %v658_v23 = vmul.f32 %v6638_v46, %v6564_v50  ;;  %v10823_v46 = vmov 0  }
  0xea   :  { %v6748_v37 = vpop.permute.xlu1 %1060  ;;  %6032 = vset.pattern.permute.xlu1 %v10823_v46  ;;  %6038 = vset.pattern.permute.xlu0 %v10823_v46 }
  0xeb   :  { %953 = vrot.lane.b32.xlu1 %v945_v54, %s10964_s11  ;;  %v1064_v30 = vmul.f32 %v6748_v37, %v6593_v62 }
  0xed   :  { %977 = vrot.lane.b32.xlu0 %v969_v39, %s10964_s11  ;;  %v534_v39 = vmul.f32 %v6632_v18, %v6564_v50 }
  0xef   :  { %v6758_v33 = vpop.permute.xlu1 %1205  ;;  %491 = vrot.lane.b32.xlu1 %v485_v35, %s6391_s29  ;;  %v558_v35 = vmul.f32 %v6683_v53, %v6564_v50  ;;  %v1039_v53 = vmul.f32 %v6726_v48, %v6564_v50 }
  0xf0   :  { %v1208_v58 = vmul.f32 %v6758_v33, %v6564_v50 }
  0xf1   :  { %1120 = vrot.lane.b32.xlu0 %v1113_v59, %s6397_s12 }
  0xf3   :  { %396 = vrot.lane.b32.xlu1 %v389_v41, %s6389_s28  ;;  %v6781_v41 = vpop.permute.xlu0 %226 }
  0xf4   :  { %v6768_v54 = vpop.permute.xlu1 %198 }
  0xf5   :  { %394 = vrot.lane.b32.xlu0 %v388_v24, %s6389_s28  ;;  %v701_v24 = vmul.f32 %v6667_v36, %v6564_v50 }
  0xf7   :  { %541 = vrot.lane.b32.xlu1 %v534_v39, %s6391_s29  ;;  %v6795_v15 = vpop.permute.xlu0 %915 }
  0xf9   :  { %v6778_v59 = vpop.permute.xlu1 %240  ;;  %565 = vrot.lane.b32.xlu0 %v558_v35, %s6391_s29  ;;  %v703_v35 = vmul.f32 0.0, %v6667_v36 }
  0xfb   :  { %662 = vrot.lane.b32.xlu1 %v658_v23, %s6394_s9  ;;  %v679_v23 = vmul.f32 0.0, %v6672_v8  ;;  %v6813_v8 = vpop.permute.xlu0 %300 }
  0xfd   :  { %707 = vrot.lane.b32.xlu0 %v701_v24, %s6394_s9  ;;  %v823_v24 = vmul.f32 %v6677_v49, %v6593_v62 }
  0xfe   :  { %v6789_v39 = vpop.permute.xlu1 %409 }
  0xff   :  { %683 = vrot.lane.b32.xlu1 %v677_v29, %s6394_s9  ;;  %v968_v29 = vmul.f32 %v6648_v20, %v6593_v62  ;;  %v848_v20 = vmul.f32 0.0, %v6694_v55 }
 0x101   :  { %711 = vrot.lane.b32.xlu0 %v703_v35, %s6394_s9  ;;  %v96_v35 = vadd.s32 4294967294, %v6804_v27 }
 0x103   :  { %v6799_v31 = vpop.permute.xlu1 %582  ;;  %687 = vrot.lane.b32.xlu1 %v679_v23, %s6394_s9  ;;  %v97_v23 = vadd.s32 4294967294, %v6806_v21  ;;  %vm98_vm0 = vcmp.ge.s32.totalorder %v96_v35, 0  ;;  %v533_v35 = vmul.f32 0.0, %v6632_v18  ;;  %v725_v18 = vmul.f32 %v6696_v56, %v6564_v50 }
 0x104   :  { %v5822_v47 = vsel %vm98_vm0, 1.0, %v10845_v60  ;;  %vm424_vm0 = vcmask 785408  }
 0x105   :  { %830 = vrot.lane.b32.xlu0 %v823_v24, %s10966_s10  ;;  %vm99_vm1 = vcmp.ge.s32.totalorder %v97_v23, 0  ;;  %v6825_v24 = vpop.permute.xlu0 %445 }
 0x106   :  { %v5823_v16 = vsel %vm99_vm1, 1.0, %v10845_v60  ;;  %vm597_vm1 = vcmask 654336  }
 0x107   :  { %975 = vrot.lane.b32.xlu1 %v968_v29, %s10964_s11  ;;  %v1114_v29 = vmul.f32 0.0, %v6657_v22  ;;  %v6840_v22 = vpack.i.bf16 %v5823_v16, %v5822_v47  ;;  %v702_v47 = vmul.f32 %v6667_v36, %v6593_v62  ;;  %v871_v36 = vmul.f32 %v6708_v40, %v6593_v62 }
 0x108   :  { %v6818_v25 = vpop.permute.xlu1 %219  ;;  %v1184_v40 = vmul.f32 %v6733_v63, %v6564_v50 }
 0x109   :  { %10999 = vst [vmem:[#allocation8_spill] sm:$0xff] %v6818_v25  ;;  %852 = vrot.lane.b32.xlu0 %v846_v9, %s10966_s10  ;;  %v1137_v9 = vmul.f32 %v6688_v34, %v6593_v62  ;;  %11000 = vst [vmem:[#allocation9_spill] sm:$0xff] %v6840_v22  ;;  %v895_v34 = vmul.f32 %v6720_v45, %v6593_v62 }
 0x10b   :  { %1118 = vrot.lane.b32.xlu1 %v1112_v17, %s6397_s12 }
 0x10d   :  { %v6828_v5 = vpop.permute.xlu1 %746  ;;  %856 = vrot.lane.b32.xlu0 %v848_v20, %s10966_s10 }
 0x10f   :  { %1122 = vrot.lane.b32.xlu1 %v1114_v29, %s6397_s12 }
 0x110   :  { %v6836_v17 = vpop.permute.xlu0 %1084 }
 0x111   :  { %1144 = vrot.lane.b32.xlu0 %v1137_v9, %s6397_s12 }
 0x112   :  { %v6842_v23 = vpop.permute.xlu1 %233 }
 0x113   :  { %11001 = vst [vmem:[#allocation10_spill] sm:$0xff] %v6842_v23  ;;  %539 = vrot.lane.b32.xlu1 %v533_v35, %s6391_s29  ;;  %v727_v35 = vmul.f32 0.0, %v6696_v56  ;;  %v1234_v23 = vmul.f32 0.0, %v6744_v51 }
 0x114   :  { %v6845_v20 = vpop.permute.xlu0 %469 }
 0x115   :  { %6008 = vrot.lane.b32.xlu0 %v6840_v22, %s6399_s13  ;;  %s6417_s13 = smov 121  }
 0x116   :  { %v6850_v29 = vpop.permute.xlu1 %276 }
 0x117   :  { %567 = vrot.lane.b32.xlu1 %v559_v19, %s6391_s29 }
 0x118   :  { %v6855_v16 = vpop.permute.xlu0 %618 }
 0x119   :  { %731 = vrot.lane.b32.xlu0 %v725_v18, %s6394_s9 }
 0x11a   :  { %v6860_v9 = vpop.permute.xlu1 %278 }
 0x11b   :  { %709 = vrot.lane.b32.xlu1 %v702_v47, %s6394_s9 }
 0x11c   :  { %v6864_v10 = vpop.permute.xlu0 %467 }
 0x11d   :  { %735 = vrot.lane.b32.xlu0 %v727_v35, %s6394_s9  ;;  %v108_v35 = vadd.s32 4294967295, %v6804_v27 }
 0x11e   :  { %v6869_v19 = vpop.permute.xlu1 %274 }
 0x11f   :  { %828 = vrot.lane.b32.xlu1 %v822_v13, %s10966_s10  ;;  %v847_v13 = vmul.f32 %v6694_v55, %v6593_v62  ;;  %vm110_vm2 = vcmp.ge.s32.totalorder %v108_v35, 0 }
 0x120   :  { %v6874_v18 = vpop.permute.xlu0 %324  ;;  %v5824_v55 = vsel %vm110_vm2, 1.0, %v10845_v60  ;;  %vm1272_vm2 = vcmask 637952  }
 0x121   :  { %878 = vrot.lane.b32.xlu0 %v871_v36, %s10966_s10  ;;  %v993_v36 = vmul.f32 0.0, %v6706_v0  ;;  %v1186_v0 = vmul.f32 0.0, %v6733_v63 }
 0x122   :  { %v6878_v47 = vpop.permute.xlu1 %302 }
 0x123   :  { %832 = vrot.lane.b32.xlu1 %v824_v3, %s10966_s10 }
 0x124   :  { %v6885_v12 = vpop.permute.xlu0 %348 }
 0x125   :  { %11002 = vst [vmem:[#allocation11_spill] sm:$0xff] %v6885_v12  ;;  %997 = vrot.lane.b32.xlu0 %v991_v1, %s10964_s11  ;;  %v5825_v1 = vsel %vm111_vm3, 1.0, %v10845_v60  ;;  %v1210_v60 = vmul.f32 0.0, %v6758_v33  ;;  %vm1304_vm3 = vcmask 646144  }
 0x126   :  { %v6890_v49 = vpop.permute.xlu1 %447 }
 0x127   :  { %854 = vrot.lane.b32.xlu1 %v847_v13, %s10966_s10  ;;  %v6910_v13 = vpack.i.bf16 %v5825_v1, %v5824_v55  ;;  %v726_v55 = vmul.f32 %v6696_v56, %v6593_v62  ;;  %v1041_v56 = vmul.f32 0.0, %v6726_v48 }
 0x128   :  { %v6894_v3 = vpop.permute.xlu0 %642 }
 0x129   :  { %1001 = vrot.lane.b32.xlu0 %v993_v36, %s10964_s11  ;;  %11003 = vst [vmem:[#allocation12_spill] sm:$0xff] %v6910_v13 }
 0x12a   :  { %v6899_v7 = vpop.permute.xlu1 %298 }
 0x12b   :  { %1142 = vrot.lane.b32.xlu1 %v1136_v11, %s6397_s12 }
 0x12c   :  { %v6906_v35 = vpop.permute.xlu0 %780 }
 0x12d   :  { %1023 = vrot.lane.b32.xlu0 %v1016_v14, %s10964_s11 }
 0x12e   :  { %v6912_v36 = vpop.permute.xlu1 %443 }
 0x12f   :  { %1146 = vrot.lane.b32.xlu1 %v1138_v44, %s6397_s12 }
 0x130   :  { %v6915_v46 = vpop.permute.xlu0 %784 }
 0x131   :  { %6013 = vrot.lane.b32.xlu0 %v6910_v13, %s6400_s14  ;;  %v145_v13 = vadd.s32 3, %v6806_v21  ;;  %s6409_s14 = smov 123  }
 0x132   :  { %v6919_v11 = vpop.permute.xlu1 %471 }
 0x133   :  { %563 = vrot.lane.b32.xlu1 %v557_v6, %s6391_s29  ;;  %vm149_vm5 = vcmp.lt.s32.totalorder %v145_v13, 16  ;;  %v1162_v13 = vmul.f32 0.0, %v6738_v38 }
 0x134   :  { %v6924_v14 = vpop.permute.xlu0 %346 }
 0x135   :  { %11004 = vst [vmem:[#allocation13_spill] sm:$0xff] %v6924_v14  ;;  %902 = vrot.lane.b32.xlu0 %v895_v34, %s10966_s10 }
 0x136   :  { %v6929_v1 = vpop.permute.xlu1 %620 }
 0x137   :  { %733 = vrot.lane.b32.xlu1 %v726_v55, %s6394_s9 }
 0x138   :  { %v6934_v44 = vpop.permute.xlu0 %372 }
 0x139   :  { %11005 = vst [vmem:[#allocation14_spill] sm:$0xff] %v6934_v44  ;;  %1045 = vrot.lane.b32.xlu0 %v1039_v53, %s10964_s11 }
 0x13a   :  { %v6939_v6 = vpop.permute.xlu1 %616 }
 0x13b   :  { %876 = vrot.lane.b32.xlu1 %v870_v4, %s10966_s10 }
 0x13c   :  { %v6943_v34 = vpop.permute.xlu0 %493 }
 0x13d   :  { %1049 = vrot.lane.b32.xlu0 %v1041_v56, %s10964_s11 }
 0x13e   :  { %v6947_v55 = vpop.permute.xlu1 %326 }
 0x13f   :  { %880 = vrot.lane.b32.xlu1 %v872_v2, %s10966_s10 }
 0x140   :  { %v6952_v53 = vpop.permute.xlu0 %517 }
 0x141   :  { %11006 = vst [vmem:[#allocation15_spill] sm:$0xff] %v6952_v53  ;;  %1168 = vrot.lane.b32.xlu0 %v1161_v43, %s6397_s12  ;;  %v1160_v53 = vmul.f32 %v6738_v38, %v6564_v50  ;;  %v244_v38 = vmul.f32 %v6778_v59, %v6564_v50 }
 0x142   :  { %v6957_v4 = vpop.permute.xlu1 %350 }
 0x143   :  { %11007 = vst [vmem:[#allocation16_spill] sm:$0xff] %v6957_v4  ;;  %999 = vrot.lane.b32.xlu1 %v992_v57, %s10964_s11 }
 0x144   :  { %v6962_v56 = vpop.permute.xlu0 %804 }
 0x145   :  { %1190 = vrot.lane.b32.xlu0 %v1184_v40, %s6397_s12 }
 0x146   :  { %v6967_v2 = vpop.permute.xlu1 %644 }
 0x147   :  { %1021 = vrot.lane.b32.xlu1 %v1015_v32, %s10964_s11 }
 0x148   :  { %v6971_v43 = vpop.permute.xlu0 %808 }
 0x149   :  { %1194 = vrot.lane.b32.xlu0 %v1186_v0, %s6397_s12 }
 0x14a   :  { %v6975_v57 = vpop.permute.xlu1 %782 }
 0x14b   :  { %1025 = vrot.lane.b32.xlu1 %v1017_v52, %s10964_s11 }
 0x14c   :  { %v6980_v40 = vpop.permute.xlu0 %951 }
 0x14d   :  { %1071 = vrot.lane.b32.xlu0 %v1064_v30, %s10964_s11  ;;  %v144_v30 = vadd.s32 3, %v6804_v27 }
 0x14e   :  { %v6985_v32 = vpop.permute.xlu1 %322 }
 0x14f   :  { %900 = vrot.lane.b32.xlu1 %v894_v42, %s10966_s10  ;;  %v1040_v42 = vmul.f32 %v6726_v48, %v6593_v62  ;;  %vm148_vm4 = vcmp.lt.s32.totalorder %v144_v30, 16  ;;  %v11012_v48 = vmov 0.0  }
 0x150   :  { %v6990_v0 = vpop.permute.xlu0 %370 }
 0x151   :  { %11008 = vst [vmem:[#allocation17_spill] sm:$0xff] %v6990_v0  ;;  %1214 = vrot.lane.b32.xlu0 %v1208_v58, %s6397_s12  ;;  %v1232_v58 = vmul.f32 %v6744_v51, %v6564_v50  ;;  %v1185_v0 = vmul.f32 %v6733_v63, %v6593_v62  ;;  %v121_v63 = vadd.s32 1, %v6806_v21 }
 0x152   :  { %v6994_v52 = vpop.permute.xlu1 %640 }
 0x153   :  { %904 = vrot.lane.b32.xlu1 %v896_v28, %s10966_s10  ;;  %vm125_vm7 = vcmp.lt.s32.totalorder %v121_v63, 16 }
 0x154   :  { %v7000_v22 = vpop.permute.xlu0 %515 }
 0x155   :  { %11009 = vst [vmem:[#allocation18_spill] sm:$0xff] %v7000_v22  ;;  %1218 = vrot.lane.b32.xlu0 %v1210_v60, %s6397_s12  ;;  %v5830_v60 = vsel %vm148_vm4, 1.0, %v11012_v48  ;;  %vm1354_vm4 = vcmask 662528  }
 0x156   :  { %v7005_v45 = vpop.permute.xlu1 %374 }
 0x157   :  { %11010 = vst [vmem:[#allocation19_spill] sm:$0xff] %v7005_v45  ;;  %1047 = vrot.lane.b32.xlu1 %v1040_v42, %s10964_s11  ;;  %v5831_v45 = vsel %vm149_vm5, 1.0, %v11012_v48  ;;  %vm1386_vm5 = vcmask 670720  }
 0x158   :  { %v7010_v28 = vpop.permute.xlu0 %398  ;;  %v7025_v30 = vpack.i.bf16 %v5831_v45, %v5830_v60  ;;  %v1063_v45 = vmul.f32 %v6748_v37, %v6564_v50  ;;  %v120_v60 = vadd.s32 1, %v6804_v27 }
 0x159   :  { %11011 = vst [vmem:[#allocation20_spill] sm:$0xff] %v7010_v28  ;;  %1238 = vrot.lane.b32.xlu0 %v1232_v58, %s6397_s12 }
 0x15a   :  { %v7015_v22 = vpop.permute.xlu1 %495  ;;  %11014 = vst [vmem:[#allocation22_spill] sm:$0xff] %v7025_v30  ;;  %vm124_vm6 = vcmp.lt.s32.totalorder %v120_v60, 16  ;;  %v133_v60 = vadd.s32 2, %v6806_v21 }
 0x15b   :  { %1166 = vrot.lane.b32.xlu1 %v1160_v53, %s6397_s12  ;;  %v5826_v44 = vsel %vm124_vm6, 1.0, %v11012_v48  ;;  %vm1418_vm6 = vcmask 678912  }
 0x15c   :  { %v7021_v42 = vpop.permute.xlu0 %543  ;;  %vm137_vm9 = vcmp.lt.s32.totalorder %v133_v60, 16 }
 0x15d   :  { %11013 = vst [vmem:[#allocation21_spill] sm:$0xff] %v7021_v42  ;;  %1242 = vrot.lane.b32.xlu0 %v1234_v23, %s6397_s12 }
 0x15e   :  { %v7027_v28 = vpop.permute.xlu1 %519 }
 0x15f   :  { %11015 = vst [vmem:[#allocation23_spill] sm:$0xff] %v7027_v28  ;;  %1170 = vrot.lane.b32.xlu1 %v1162_v13, %s6397_s12 }
 0x160   :  { %v7030_v58 = vpop.permute.xlu0 %664 }
 0x161   :  { %6028 = vrot.lane.b32.xlu0 %v7025_v30, %s6401_s15  ;;  %v243_v30 = vmul.f32 0.0, %v6778_v59  ;;  %s6410_s15 = smov 122  }
 0x162   :  { %v7035_v53 = vpop.permute.xlu1 %806 }
 0x163   :  { %1192 = vrot.lane.b32.xlu1 %v1185_v0, %s6397_s12  ;;  %v1065_v0 = vmul.f32 0.0, %v6748_v37  ;;  %v1209_v37 = vmul.f32 %v6758_v33, %v6593_v62 }
 0x164   :  { %v7040_v23 = vpop.permute.xlu0 %685 }
 0x165   :  { %11016 = vst [vmem:[#allocation24_spill] sm:$0xff] %v7040_v23  ;;  %251 = vrot.lane.b32.xlu0 %v244_v38, %s6389_s28  ;;  %v414_v38 = vmul.f32 %v6789_v39, %v6593_v62 }
 0x166   :  { %v7047_v13 = vpop.permute.xlu1 %949 }
 0x167   :  { %1069 = vrot.lane.b32.xlu1 %v1063_v45, %s10964_s11  ;;  %v5827_v45 = vsel %vm125_vm7, 1.0, %v11012_v48  ;;  %vm1258_vm7 = vcmask 629760  }
 0x168   :  { %v7051_v42 = vpop.permute.xlu0 %973  ;;  %v7074_v4 = vpack.i.bf16 %v5827_v45, %v5826_v44  ;;  %v5829_v44 = vsel %vm137_vm9, 1.0, %v11012_v48  ;;  %v1233_v45 = vmul.f32 %v6744_v51, %v6593_v62  ;;  %v918_v51 = vmul.f32 %v6795_v15, %v6564_v50 }
 0x169   :  { %249 = vrot.lane.b32.xlu0 %v243_v30, %s6389_s28  ;;  %v132_v30 = vadd.s32 2, %v6804_v27  ;;  %vm1321_vm9 = vcmask 1031168  }
 0x16a   :  { %v7055_v23 = vpop.permute.xlu1 %953  ;;  %11017 = vst [vmem:[#allocation25_spill] sm:$0xff] %v7074_v4 }
 0x16b   :  { %1073 = vrot.lane.b32.xlu1 %v1065_v0, %s10964_s11  ;;  %v586_v0 = vmul.f32 %v6799_v31, %v6564_v50  ;;  %vm136_vm8 = vcmp.lt.s32.totalorder %v132_v30, 16  ;;  %v750_v30 = vmul.f32 %v6828_v5, %v6593_v62 }
 0x16c   :  { %v7060_v28 = vpop.permute.xlu0 %977  ;;  %v5828_v12 = vsel %vm136_vm8, 1.0, %v11012_v48  ;;  %vm1289_vm8 = vcmask 1039360  }
 0x16d   :  { %422 = vrot.lane.b32.xlu0 %v414_v38, %s6391_s29  ;;  %v585_v38 = vmul.f32 0.0, %v6799_v31  ;;  %v7095_v60 = vpack.i.bf16 %v5829_v44, %v5828_v12  ;;  %v920_v44 = vmul.f32 0.0, %v6795_v15 }
 0x16e   :  { %v7069_v63 = vpop.permute.xlu1 %491 }
 0x16f   :  { %1216 = vrot.lane.b32.xlu1 %v1209_v37, %s6397_s12  ;;  %11020 = vst [vmem:[#allocation28_spill] sm:$0xff] %v7095_v60 }
 0x170   :  { %v7076_v25 = vpop.permute.xlu0 %1120 }
 0x171   :  { %593 = vrot.lane.b32.xlu0 %v586_v0, %s6394_s9 }
 0x172   :  { %v7079_v33 = vpop.permute.xlu1 %396 }
 0x173   :  { %11018 = vst [vmem:[#allocation26_spill] sm:$0xff] %v7079_v33  ;;  %6018 = vrot.lane.b32.xlu1 %v7074_v4, %s6402_s16  ;;  %s10961_s16 = smov 51  }
 0x174   :  { %v7083_v14 = vpop.permute.xlu0 %394 }
 0x175   :  { %11019 = vst [vmem:[#allocation27_spill] sm:$0xff] %v7083_v14  ;;  %591 = vrot.lane.b32.xlu0 %v585_v38, %s6394_s9  ;;  %v84_v38 = vadd.s32 4294967293, %v6804_v27  ;;  %v85_v14 = vadd.s32 4294967293, %v6806_v21  ;;  %v245_v21 = vmul.f32 %v6778_v59, %v6593_v62 }
 0x176   :  { %v7090_v37 = vpop.permute.xlu1 %541 }
 0x177   :  { %1240 = vrot.lane.b32.xlu1 %v1233_v45, %s6397_s12  ;;  %v6313_v45 = vld [vmem:[%s10778_s1] sm:$0xff]  ;;  %vm86_vm10 = vcmp.ge.s32.totalorder %v84_v38, 0  ;;  %vm87_vm11 = vcmp.ge.s32.totalorder %v85_v14, 0  ;;  %v413_v14 = vmul.f32 %v6789_v39, %v6564_v50 }
 0x178   :  { %v7097_v0 = vpop.permute.xlu0 %565 }
 0x179   :  { %11021 = vst [vmem:[#allocation29_spill] sm:$0xff] %v7097_v0  ;;  %757 = vrot.lane.b32.xlu0 %v750_v30, %s10966_s10 }
 0x17a   :  { %v7100_v4 = vpop.permute.xlu1 %662 }
 0x17b   :  { %6023 = vrot.lane.b32.xlu1 %v7095_v60, %s6403_s17  ;;  %v5821_v60 = vsel %vm87_vm11, 1.0, %v11012_v48  ;;  %vm1371_vm11 = vcmask 1014784   ;;  %s6418_s17 = smov 120  }
 0x17c   :  { %v7107_v33 = vpop.permute.xlu0 %707 }
 0x17d   :  { %11022 = vst [vmem:[#allocation30_spill] sm:$0xff] %v7107_v33  ;;  %924 = vrot.lane.b32.xlu0 %v918_v51, %s10964_s11  ;;  %v5820_v51 = vsel %vm86_vm10, 1.0, %v11012_v48  ;;  %v1088_v33 = vmul.f32 %v6836_v17, %v6593_v62  ;;  %v412_v48 = vmul.f32 0.0, %v6789_v39  ;;  %vm1339_vm10 = vcmask 1022976  }
 0x17e   :  { %v7110_v12 = vpop.permute.xlu1 %683  ;;  %v7133_v59 = vpack.i.bf16 %v5821_v60, %v5820_v51  ;;  %v587_v51 = vmul.f32 %v6799_v31, %v6593_v62  ;;  %v749_v31 = vmul.f32 %v6828_v5, %v6564_v50 }
 0x17f   :  { %11023 = vst [vmem:[#allocation31_spill] sm:$0xff] %v7110_v12  ;;  %191 = vperm.xlu1 %6032, %v6313_v45  }
 0x180   :  { %v7116_v30 = vpop.permute.xlu0 %711  ;;  %11025 = vst [vmem:[#allocation33_spill] sm:$0xff] %v7133_v59 }
 0x181   :  { %11024 = vst [vmem:[#allocation32_spill] sm:$0xff] %v7116_v30  ;;  %928 = vrot.lane.b32.xlu0 %v920_v44, %s10964_s11 }
 0x182   :  { %v7121_v27 = vpop.permute.xlu1 %687 }
 0x183   :  { %253 = vrot.lane.b32.xlu1 %v245_v21, %s6389_s28  ;;  %v203_v21 = vmul.f32 %v6768_v54, %v6593_v62 }
 0x184   :  { %v7128_v38 = vpop.permute.xlu0 %830 }
 0x185   :  { %1095 = vrot.lane.b32.xlu0 %v1088_v33, %s6397_s12  ;;  %v287_v33 = vadd.f32 %v6860_v9, %v203_v21 }
 0x186   :  { %v7135_v44 = vpop.permute.xlu1 %975 }
 0x187   :  { %420 = vrot.lane.b32.xlu1 %v413_v14, %s6391_s29  ;;  %v456_v39 = vadd.f32 %v6890_v49, %v287_v33  ;;  %v787_v14 = vsel %vm10924_vm12, %v6975_v57, %v6915_v46 }
 0x188   :  { %v7138_v45 = vpop.permute.xlu0 %852 }
 0x189   :  { %11026 = vst [vmem:[#allocation34_spill] sm:$0xff] %v7138_v45  ;;  %6034 = vrot.lane.b32.xlu0 %v7133_v59, %s6404_s20  ;;  %v629_v59 = vadd.f32 %v6929_v1, %v456_v39  ;;  %s6413_s20 = smov 2  }
 0x18a   :  { %v7144_v30 = vpop.permute.xlu1 %1118 }
 0x18b   :  { %418 = vrot.lane.b32.xlu1 %v412_v48, %s6391_s29  ;;  %v956_v48 = vsel %vm930_vm13, %v6980_v40, %v7055_v23  ;;  %v793_v33 = vadd.f32 %v787_v14, %v629_v59  ;;  %v281_v59 = vsel %vm255_vm15, %v6850_v29, %v6860_v9 }
 0x18c   :  { %v7148_v60 = vpop.permute.xlu0 %856 }
 0x18d   :  { %11027 = vst [vmem:[#allocation35_spill] sm:$0xff] %v7148_v60  ;;  %v962_v39 = vadd.f32 %v956_v48, %v793_v33  ;;  %v751_v60 = vmul.f32 0.0, %v6828_v5  ;;  %v280_v5 = vsel %vm255_vm15, %v6869_v19, %v6850_v29  ;;  %v919_v33 = vmul.f32 %v6795_v15, %v6593_v62 }
 0x18e   :  { %v1123_v0 = vpop.permute.xlu1 %1122  ;;  %v623_v29 = vsel %vm597_vm1, %v6855_v16, %v6929_v1  ;;  %v622_v15 = vsel %vm597_vm1, %v6939_v6, %v6855_v16 }
 0x18f   :  { %595 = vrot.lane.b32.xlu1 %v587_v51, %s6394_s9  ;;  %v1125_v46 = vsel %vm10923_vm14, %v7076_v25, %v1123_v0  ;;  %v202_v0 = vmul.f32 %v6768_v54, %v6564_v50 }
 0x190   :  { %v7161_v21 = vpop.permute.xlu0 %1144  ;;  %v1131_v23 = vadd.f32 %v1125_v46, %v962_v39  ;;  %v201_v39 = vmul.f32 0.0, %v6768_v54  ;;  %v786_v54 = vsel %vm10924_vm12, %v6906_v35, %v6975_v57  ;;  %v1124_v57 = vsel %vm10923_vm14, %v7144_v30, %v7076_v25 }
 0x191   :  { %v286_v46 = vadd.f32 %v281_v59, %v202_v0  ;;  %v955_v0 = vsel %vm930_vm13, %v7047_v13, %v6980_v40  ;;  %v210_v40 = vmul.f32 %v6754_v61, %v6593_v62  ;;  %v209_v25 = vmul.f32 %v6754_v61, %v6564_v50 }
 0x192   :  { %v7167_v45 = vpop.permute.xlu1 %539  ;;  %v305_v62 = vsel %vm255_vm15, %v6813_v8, %v6878_v47 }
 0x193   :  { %755 = vrot.lane.b32.xlu1 %v749_v31, %s10966_s10  ;;  %v450_v31 = vsel %vm424_vm0, %v6825_v24, %v6890_v49  ;;  %v285_v49 = vadd.f32 %v280_v5, %v201_v39 }
 0x194   :  { %v6009_v51 = vpop.permute.xlu0 %6008 }
 0x195   :  { %v7171_v12 = vunpack.i.h.bf16 %v6009_v51 }
 0x196   :  { %v7176_v14 = vpop.permute.xlu1 %567 }
 0x197   :  { %11028 = vst [vmem:[#allocation36_spill] sm:$0xff] %v7171_v12  ;;  %759 = vrot.lane.b32.xlu1 %v751_v60, %s10966_s10  ;;  %v1279_v48 = vmul.f32 %v7171_v12, %v1131_v23  ;;  %v449_v60 = vsel %vm424_vm0, %v6912_v36, %v6825_v24  ;;  %v455_v23 = vadd.f32 %v450_v31, %v286_v46 }
 0x198   :  { %v7188_v9 = vpop.permute.xlu0 %731  ;;  %v1087_v24 = vmul.f32 %v6836_v17, %v6564_v50  ;;  %v454_v36 = vadd.f32 %v449_v60, %v285_v49  ;;  %v474_v50 = vsel %vm424_vm0, %v6845_v20, %v6919_v11 }
 0x199   :  { %1287 = vrot.lane.b32.xlu0 %v1279_v48, %s6405_s21  ;;  %v628_v1 = vadd.f32 %v623_v29, %v455_v23  ;;  %v7216_v48 = vunpack.i.l.bf16 %v6009_v51 }
 0x19a   :  { %v7200_v19 = vpop.permute.xlu1 %709  ;;  %v627_v16 = vadd.f32 %v622_v15, %v454_v36  ;;  %v311_v15 = vadd.f32 %v6878_v47, %v210_v40  ;;  %v811_v47 = vsel %vm10924_vm12, %v7035_v53, %v6971_v43  ;;  %v980_v43 = vsel %vm930_vm13, %v7135_v44, %v7060_v28 }
 0x19b   :  { %926 = vrot.lane.b32.xlu1 %v919_v33, %s10964_s11  ;;  %11029 = vst [vmem:[#allocation37_spill] sm:$0xff] %v7216_v48  ;;  %v792_v6 = vadd.f32 %v786_v54, %v628_v1  ;;  %v1089_v33 = vmul.f32 0.0, %v6836_v17  ;;  %v7231_v51 = vsel %vm1272_vm2, %v7216_v48, %v7171_v12  ;;  %v304_v17 = vsel %vm255_vm15, %v6899_v7, %v6813_v8 }
 0x19c   :  { %v7209_v59 = vpop.permute.xlu0 %735  ;;  %11030 = vst [vmem:[#allocation38_spill] sm:$0xff] %v7231_v51  ;;  %v791_v60 = vadd.f32 %v6906_v35, %v627_v16  ;;  %v208_v54 = vmul.f32 0.0, %v6754_v61  ;;  %v310_v1 = vadd.f32 %v305_v62, %v209_v25  ;;  %v480_v8 = vadd.f32 %v6919_v11, %v311_v15 }
 0x19d   :  { %v961_v46 = vadd.f32 %v955_v0, %v792_v6  ;;  %v647_v61 = vsel %vm597_vm1, %v6894_v3, %v6967_v2  ;;  %v473_v11 = vsel %vm424_vm0, %v6864_v10, %v6845_v20  ;;  %v979_v10 = vsel %vm930_vm13, %v7051_v42, %v7135_v44 }
 0x19e   :  { %v7218_v5 = vpop.permute.xlu1 %828  ;;  %v960_v23 = vadd.f32 %v7047_v13, %v791_v60  ;;  %v309_v7 = vadd.f32 %v304_v17, %v208_v54  ;;  %v479_v16 = vadd.f32 %v474_v50, %v310_v1  ;;  %vm1403_vm2 = vcmask 1006592  }
 0x19f   :  { %1093 = vrot.lane.b32.xlu1 %v1087_v24, %s6397_s12  ;;  %v1130_v29 = vadd.f32 %v1124_v57, %v961_v46  ;;  %v646_v57 = vsel %vm597_vm1, %v6994_v52, %v6894_v3 }
 0x1a0   :  { %v7224_v31 = vpop.permute.xlu0 %878  ;;  %v1129_v36 = vadd.f32 %v7144_v30, %v960_v23  ;;  %v653_v30 = vadd.f32 %v6967_v2, %v480_v8  ;;  %v652_v2 = vadd.f32 %v647_v61, %v479_v16  ;;  %v478_v46 = vadd.f32 %v473_v11, %v309_v7 }
 0x1a1   :  { %v1278_v35 = vmul.f32 %v7231_v51, %v1130_v29  ;;  %v11047_v51 = vld [vmem:[#allocation26_spill] sm:$0xff] }
 0x1a2   :  { %v7233_v39 = vpop.permute.xlu1 %832  ;;  %v1277_v0 = vmul.f32 %v7216_v48, %v1129_v36  ;;  %v817_v40 = vadd.f32 %v811_v47, %v653_v30  ;;  %v651_v20 = vadd.f32 %v646_v57, %v478_v46  ;;  %v7335_v46 = vld [vmem:[%s10777_s0] sm:$0xff] }
 0x1a3   :  { %1097 = vrot.lane.b32.xlu1 %v1089_v33, %s6397_s12  ;;  %v810_v33 = vsel %vm10924_vm12, %v6962_v56, %v7035_v53 }
 0x1a4   :  { %v7239_v49 = vpop.permute.xlu0 %997  ;;  %v816_v3 = vadd.f32 %v810_v33, %v652_v2  ;;  %v986_v52 = vadd.f32 %v980_v43, %v817_v40  ;;  %v815_v44 = vadd.f32 %v6962_v56, %v651_v20  ;;  %v329_v43 = vsel %vm255_vm15, %v6874_v18, %v6947_v55 }
 0x1a5   :  { %v216_v40 = vmul.f32 %v7335_v46, %v6766_v26 }
 0x1a6   :  { %v7251_v24 = vpop.permute.xlu1 %854  ;;  %v985_v25 = vadd.f32 %v979_v10, %v816_v3  ;;  %v498_v10 = vsel %vm424_vm0, %v6943_v34, %v7015_v22 }
 0x1a7   :  { %1285 = vrot.lane.b32.xlu1 %v1278_v35, %s6405_s21  ;;  %v334_v20 = vadd.f32 %v329_v43, %v216_v40 }
 0x1a8   :  { %v7259_v13 = vpop.permute.xlu0 %1001 }
 0x1aa   :  { %v1143_v6 = vpop.permute.xlu1 %1142 }
 0x1ab   :  { %1283 = vrot.lane.b32.xlu1 %v1277_v0, %s6405_s21  ;;  %v1148_v53 = vsel %vm10923_vm14, %v1143_v6, %v7161_v21 }
 0x1ac   :  { %v7282_v60 = vpop.permute.xlu0 %1023  ;;  %v1154_v15 = vadd.f32 %v1148_v53, %v985_v25  ;;  %v7353_v53 = vld [vmem:[%s10777_s0 + $0x8] sm:$0xff]  ;;  %v215_v25 = vmul.f32 0.0, %v6766_v26 }
 0x1ae   :  { %v1147_v29 = vpop.permute.xlu1 %1146 }
 0x1af   :  { %v1149_v28 = vsel %vm10923_vm14, %v7161_v21, %v1147_v29  ;;  %v984_v21 = vadd.f32 %v7051_v42, %v815_v44  ;;  %v666_v29 = vsel %vm597_vm1, %v7100_v4, %v7030_v58 }
 0x1b0   :  { %v1155_v62 = vadd.f32 %v1149_v28, %v986_v52  ;;  %v6014_v17 = vpop.permute.xlu0 %6013  ;;  %v328_v52 = vsel %vm255_vm15, %v6985_v32, %v6874_v18  ;;  %v217_v28 = vmul.f32 %v7353_v53, %v6766_v26  ;;  %v834_v18 = vsel %vm10924_vm12, %v7218_v5, %v7128_v38 }
 0x1b1   :  { %v7291_v23 = vunpack.i.h.bf16 %v6014_v17  ;;  %v7293_v35 = vunpack.i.l.bf16 %v6014_v17  ;;  %v1153_v7 = vadd.f32 %v1143_v6, %v984_v21  ;;  %v497_v17 = vsel %vm424_vm0, %v7069_v63, %v6943_v34 }
 0x1b2   :  { %v7296_v54 = vpop.permute.xlu1 %563  ;;  %v335_v44 = vadd.f32 %v6947_v55, %v217_v28  ;;  %v835_v34 = vsel %vm10924_vm12, %v7128_v38, %v7233_v39 }
 0x1b3   :  { %11031 = vst [vmem:[#allocation39_spill] sm:$0xff] %v7291_v23  ;;  %11032 = vst [vmem:[#allocation40_spill] sm:$0xff] %v7293_v35  ;;  %v7300_v50 = vsel %vm1304_vm3, %v7293_v35, %v7291_v23  ;;  %v1311_v36 = vmul.f32 %v7291_v23, %v1155_v62  ;;  %v1309_v61 = vmul.f32 %v7293_v35, %v1153_v7  ;;  %vm1435_vm3 = vcmask 998400  }
 0x1b4   :  { %11033 = vst [vmem:[#allocation41_spill] sm:$0xff] %v7300_v50  ;;  %v1310_v1 = vmul.f32 %v7300_v50, %v1154_v15  ;;  %v7309_v56 = vpop.permute.xlu0 %902  ;;  %v503_v62 = vadd.f32 %v498_v10, %v334_v20  ;;  %v333_v15 = vadd.f32 %v328_v52, %v215_v25 }
 0x1b5   :  { %1319 = vrot.lane.b32.xlu1 %v1311_v36, %s6406_s22 }
 0x1b6   :  { %v7306_v8 = vpop.permute.xlu1 %733  ;;  %1317 = vrot.lane.b32.xlu0 %v1310_v1, %s6406_s22  ;;  %v671_v36 = vadd.f32 %v666_v29, %v503_v62  ;;  %v504_v1 = vadd.f32 %v7015_v22, %v335_v44  ;;  %v502_v7 = vadd.f32 %v497_v17, %v333_v15  ;;  %v11035_v17 = vld [vmem:[#allocation13_spill] sm:$0xff]  ;;  %v229_v44 = vmul.f32 0.0, %v6781_v41  ;;  %v11036_v15 = vld [vmem:[#allocation8_spill] sm:$0xff] }
 0x1b8   :  { %v7315_v0 = vpop.permute.xlu0 %1045  ;;  %v672_v63 = vadd.f32 %v7030_v58, %v504_v1  ;;  %v670_v43 = vadd.f32 %v7100_v4, %v502_v7  ;;  %v11037_v1 = vld [vmem:[#allocation16_spill] sm:$0xff] }
 0x1ba   :  { %v7312_v47 = vpop.permute.xlu1 %876  ;;  %1315 = vrot.lane.b32.xlu0 %v1309_v61, %s6406_s22  ;;  %v840_v61 = vadd.f32 %v834_v18, %v671_v36  ;;  %v839_v22 = vadd.f32 %v7218_v5, %v670_v43  ;;  %v841_v29 = vadd.f32 %v835_v34, %v672_v63  ;;  %v230_v5 = vmul.f32 %v7335_v46, %v6781_v41  ;;  %v11039_v34 = vld [vmem:[#allocation17_spill] sm:$0xff] }
 0x1bb   :  { %v222_v36 = vmul.f32 0.0, %v11036_v15  ;;  %v223_v43 = vmul.f32 %v7335_v46, %v11036_v15 }
 0x1bc   :  { %v7319_v30 = vpop.permute.xlu0 %1049  ;;  %v1008_v25 = vadd.f32 %v7239_v49, %v839_v22  ;;  %v11043_v22 = vld [vmem:[#allocation19_spill] sm:$0xff] }
 0x1be   :  { %v7317_v42 = vpop.permute.xlu1 %880 }
 0x1c0   :  { %v1169_v11 = vpop.permute.xlu0 %1168 }
 0x1c2   :  { %v1000_v16 = vpop.permute.xlu1 %999 }
 0x1c3   :  { %v1003_v26 = vsel %vm930_vm13, %v7239_v49, %v1000_v16  ;;  %v1004_v10 = vsel %vm930_vm13, %v1000_v16, %v7259_v13  ;;  %v11034_v49 = vld [vmem:[#allocation11_spill] sm:$0xff] }
 0x1c4   :  { %v7330_v2 = vpop.permute.xlu0 %1190  ;;  %v1009_v55 = vadd.f32 %v1003_v26, %v840_v61  ;;  %v1010_v38 = vadd.f32 %v1004_v10, %v841_v29  ;;  %v352_v18 = vsel %vm255_vm15, %v11035_v17, %v11034_v49  ;;  %v224_v26 = vmul.f32 %v7353_v53, %v11036_v15  ;;  %v11038_v61 = vld [vmem:[#allocation14_spill] sm:$0xff]  ;;  %v11044_v15 = vld [vmem:[#allocation23_spill] sm:$0xff] }
 0x1c5   :  { %v353_v7 = vsel %vm255_vm15, %v11034_v49, %v11037_v1  ;;  %v376_v63 = vsel %vm255_vm15, %v11039_v34, %v11038_v61  ;;  %v11042_v10 = vld [vmem:[#allocation18_spill] sm:$0xff]  ;;  %v377_v29 = vsel %vm255_vm15, %v11038_v61, %v11043_v22 }
 0x1c6   :  { %v7321_v6 = vpop.permute.xlu1 %1021  ;;  %v381_v49 = vadd.f32 %v376_v63, %v229_v44  ;;  %v11049_v63 = vld [vmem:[#allocation24_spill] sm:$0xff] }
 0x1c8   :  { %v7364_v32 = vpop.permute.xlu0 %1194 }
 0x1ca   :  { %v7323_v57 = vpop.permute.xlu1 %1025 }
 0x1cc   :  { %v7379_v20 = vpop.permute.xlu0 %1071 }
 0x1ce   :  { %v7325_v33 = vpop.permute.xlu1 %900 }
 0x1d0   :  { %v7386_v13 = vpop.permute.xlu0 %1214 }
 0x1d2   :  { %v7342_v3 = vpop.permute.xlu1 %904 }
 0x1d6   :  { %v7367_v21 = vpop.permute.xlu1 %1047 }
 0x1da   :  { %v1167_v40 = vpop.permute.xlu1 %1166 }
 0x1db   :  { %v1172_v52 = vsel %vm10923_vm14, %v1167_v40, %v1169_v11  ;;  %v1177_v58 = vadd.f32 %v1167_v40, %v1008_v25  ;;  %v357_v25 = vadd.f32 %v352_v18, %v222_v36  ;;  %v11045_v18 = vld [vmem:[#allocation20_spill] sm:$0xff] }
 0x1dc   :  { %v1178_v28 = vadd.f32 %v1172_v52, %v1009_v55  ;;  %v11040_v55 = vld [vmem:[#allocation10_spill] sm:$0xff]  ;;  %v401_v44 = vsel %vm255_vm15, %v11047_v51, %v11045_v18 }
 0x1dd   :  { %v237_v40 = vmul.f32 %v7335_v46, %v11040_v55 }
 0x1de   :  { %v1171_v39 = vpop.permute.xlu1 %1170  ;;  %1335 = vrot.lane.b32.xlu1 %v1178_v28, %s6407_s27 }
 0x1df   :  { %v1173_v4 = vsel %vm10923_vm14, %v1169_v11, %v1171_v39  ;;  %v231_v11 = vmul.f32 %v7353_v53, %v6781_v41  ;;  %v11041_v41 = vld [vmem:[#allocation15_spill] sm:$0xff]  ;;  %v238_v39 = vmul.f32 %v7353_v53, %v11040_v55 }
 0x1e0   :  { %v1179_v62 = vadd.f32 %v1173_v4, %v1010_v38  ;;  %v521_v52 = vsel %vm424_vm0, %v11042_v10, %v11041_v41  ;;  %v359_v38 = vadd.f32 %v11037_v1, %v224_v26  ;;  %v236_v4 = vmul.f32 0.0, %v11040_v55  ;;  %v11046_v1 = vld [vmem:[#allocation21_spill] sm:$0xff] }
 0x1e1   :  { %v383_v17 = vadd.f32 %v11043_v22, %v231_v11  ;;  %v522_v61 = vsel %vm424_vm0, %v11041_v41, %v11044_v15  ;;  %v526_v34 = vadd.f32 %v521_v52, %v357_v25  ;;  %v382_v10 = vadd.f32 %v377_v29, %v230_v5  ;;  %v11048_v11 = vld [vmem:[#allocation27_spill] sm:$0xff] }
 0x1e2   :  { %v7388_v16 = vpop.permute.xlu1 %1192  ;;  %1333 = vrot.lane.b32.xlu1 %v1177_v58, %s6407_s27  ;;  %1337 = vrot.lane.b32.xlu0 %v1179_v62, %s6407_s27  ;;  %v7425_v58 = vpop.permute.xlu0 %1218  ;;  %v358_v62 = vadd.f32 %v353_v7, %v223_v43  ;;  %v407_v36 = vadd.f32 %v11045_v18, %v238_v39  ;;  %v545_v26 = vsel %vm424_vm0, %v7167_v45, %v7090_v37  ;;  %v11050_v22 = vld [vmem:[#allocation31_spill] sm:$0xff] }
 0x1e3   :  { %v552_v55 = vadd.f32 %v11046_v1, %v383_v17  ;;  %v400_v7 = vsel %vm255_vm15, %v11048_v11, %v11047_v51  ;;  %v690_v5 = vsel %vm597_vm1, %v11049_v63, %v7121_v27  ;;  %v528_v52 = vadd.f32 %v11044_v15, %v359_v38  ;;  %v11051_v39 = vld [vmem:[#allocation35_spill] sm:$0xff]  ;;  %v11052_v38 = vld [vmem:[#allocation34_spill] sm:$0xff] }
 0x1e4   :  { %v527_v41 = vadd.f32 %v522_v61, %v358_v62  ;;  %v546_v45 = vsel %vm424_vm0, %v7090_v37, %v11046_v1  ;;  %v689_v29 = vsel %vm597_vm1, %v11050_v22, %v11049_v63  ;;  %v694_v25 = vadd.f32 %v11050_v22, %v526_v34 }
 0x1e5   :  { %v550_v51 = vadd.f32 %v545_v26, %v381_v49  ;;  %v859_v27 = vsel %vm10924_vm12, %v7251_v24, %v11051_v39  ;;  %v406_v17 = vadd.f32 %v401_v44, %v237_v40  ;;  %v405_v62 = vadd.f32 %v400_v7, %v236_v4  ;;  %v11053_v26 = vld [vmem:[#allocation29_spill] sm:$0xff]  ;;  %v11054_v44 = vld [vmem:[#allocation30_spill] sm:$0xff] }
 0x1e6   :  { %v7419_v28 = vpop.permute.xlu1 %1069  ;;  %v696_v61 = vadd.f32 %v690_v5, %v528_v52  ;;  %v858_v15 = vsel %vm10924_vm12, %v11052_v38, %v7251_v24  ;;  %v7461_v37 = vpop.permute.xlu0 %1238  ;;  %v551_v18 = vadd.f32 %v546_v45, %v382_v10  ;;  %v695_v1 = vadd.f32 %v689_v29, %v527_v41  ;;  %v11055_v52 = vld [vmem:[#allocation32_spill] sm:$0xff] }
 0x1e7   :  { %v863_v11 = vadd.f32 %v11052_v38, %v694_v25  ;;  %v1028_v49 = vsel %vm930_vm13, %v7282_v60, %v7323_v57  ;;  %v570_v40 = vsel %vm424_vm0, %v11053_v26, %v7176_v14  ;;  %v569_v24 = vsel %vm424_vm0, %v7296_v54, %v11053_v26 }
 0x1e8   :  { %v865_v4 = vadd.f32 %v859_v27, %v696_v61  ;;  %v1027_v10 = vsel %vm930_vm13, %v7321_v6, %v7282_v60  ;;  %v718_v7 = vadd.f32 %v11054_v44, %v550_v51  ;;  %v576_v63 = vadd.f32 %v7176_v14, %v407_v36 }
 0x1e9   :  { %v864_v5 = vadd.f32 %v858_v15, %v695_v1  ;;  %v1197_v57 = vsel %vm10923_vm14, %v7388_v16, %v7364_v32  ;;  %v713_v41 = vsel %vm597_vm1, %v11054_v44, %v7200_v19  ;;  %v714_v54 = vsel %vm597_vm1, %v7200_v19, %v11055_v52 }
 0x1ea   :  { %v7445_v43 = vpop.permute.xlu1 %1073  ;;  %v1034_v45 = vadd.f32 %v1028_v49, %v865_v4  ;;  %v1196_v60 = vsel %vm10923_vm14, %v7330_v2, %v7388_v16  ;;  %v575_v22 = vadd.f32 %v570_v40, %v406_v17  ;;  %v574_v14 = vadd.f32 %v569_v24, %v405_v62  ;;  %v1243_v51 = vpop.permute.xlu0 %1242 }
 0x1eb   :  { %v737_v36 = vsel %vm597_vm1, %v7188_v9, %v7306_v8  ;;  %v1033_v32 = vadd.f32 %v1027_v10, %v864_v5  ;;  %v1032_v25 = vadd.f32 %v7321_v6, %v863_v11  ;;  %v719_v61 = vadd.f32 %v713_v41, %v551_v18 }
 0x1ec   :  { %v1203_v39 = vadd.f32 %v1197_v57, %v1034_v45  ;;  %v720_v38 = vadd.f32 %v714_v54, %v552_v55  ;;  %v883_v16 = vsel %vm10924_vm12, %v7224_v31, %v7317_v42  ;;  %v738_v62 = vsel %vm597_vm1, %v7306_v8, %v7209_v59 }
 0x1ed   :  { %v1202_v17 = vadd.f32 %v1196_v60, %v1033_v32  ;;  %v882_v6 = vsel %vm10924_vm12, %v7312_v47, %v7224_v31  ;;  %v742_v18 = vadd.f32 %v7188_v9, %v574_v14  ;;  %v743_v42 = vadd.f32 %v737_v36, %v575_v22 }
 0x1ee   :  { %v1217_v34 = vpop.permute.xlu1 %1216  ;;  %v1052_v1 = vsel %vm930_vm13, %v7367_v21, %v7319_v30  ;;  %v889_v8 = vadd.f32 %v883_v16, %v720_v38  ;;  %v1201_v31 = vadd.f32 %v7330_v2, %v1032_v25  ;;  %v906_v49 = vsel %vm10924_vm12, %v7325_v33, %v7309_v56  ;;  %v6029_v24 = vpop.permute.xlu0 %6028 }
 0x1ef   :  { %v1051_v26 = vsel %vm930_vm13, %v7315_v0, %v7367_v21  ;;  %v744_v9 = vadd.f32 %v738_v62, %v576_v63  ;;  %v887_v30 = vadd.f32 %v7312_v47, %v718_v7  ;;  %v888_v40 = vadd.f32 %v882_v6, %v719_v61  ;;  %v183_v47 = vld [vmem:[%s10783_s6] sm:$0xff] }
 0x1f0   :  { %v1221_v4 = vsel %vm10923_vm14, %v1217_v34, %v7425_v58  ;;  %v1058_v2 = vadd.f32 %v1052_v1, %v889_v8  ;;  %v1075_v10 = vsel %vm930_vm13, %v7419_v28, %v7379_v20  ;;  %v1220_v21 = vsel %vm10923_vm14, %v7386_v13, %v1217_v34 }
 0x1f1   :  { %v912_v7 = vadd.f32 %v906_v49, %v743_v42  ;;  %v907_v58 = vsel %vm10924_vm12, %v7309_v56, %v7342_v3  ;;  %v1057_v63 = vadd.f32 %v1051_v26, %v888_v40  ;;  %v7542_v5 = vunpack.i.h.bf16 %v6029_v24 }
 0x1f2   :  { %v6019_v29 = vpop.permute.xlu1 %6018  ;;  %v1227_v41 = vadd.f32 %v1221_v4, %v1058_v2  ;;  %v911_v45 = vadd.f32 %v7325_v33, %v742_v18  ;;  %v1056_v60 = vadd.f32 %v7315_v0, %v887_v30  ;;  %v7553_v3 = vunpack.i.l.bf16 %v6029_v24  ;;  %v252_v18 = vpop.permute.xlu0 %251 }
 0x1f3   :  { %v7494_v27 = vunpack.i.h.bf16 %v6019_v29  ;;  %v7496_v19 = vunpack.i.l.bf16 %v6019_v29  ;;  %11059 = vst [vmem:[#allocation16_spill] sm:$0xff] %v7542_v5  ;;  %v1081_v22 = vadd.f32 %v1075_v10, %v912_v7  ;;  %v1226_v56 = vadd.f32 %v1220_v21, %v1057_v63 }
 0x1f4   :  { %11062 = vst [vmem:[#allocation10_spill] sm:$0xff] %v7553_v3  ;;  %v1076_v14 = vsel %vm930_vm13, %v7379_v20, %v7445_v43  ;;  %v913_v29 = vadd.f32 %v907_v58, %v744_v9  ;;  %v1080_v33 = vadd.f32 %v7419_v28, %v911_v45  ;;  %v7570_v61 = vsel %vm1418_vm6, %v7553_v3, %v7542_v5 }
 0x1f5   :  { %11056 = vst [vmem:[#allocation11_spill] sm:$0xff] %v7494_v27  ;;  %11057 = vst [vmem:[#allocation13_spill] sm:$0xff] %v7496_v19  ;;  %v7510_v15 = vsel %vm1354_vm4, %v7496_v19, %v7494_v27  ;;  %v1361_v55 = vmul.f32 %v7494_v27, %v1203_v39  ;;  %v1359_v44 = vmul.f32 %v7496_v19, %v1201_v31  ;;  %vm10922_vm4 = vcmask 416768  }
 0x1f6   :  { %11058 = vst [vmem:[#allocation8_spill] sm:$0xff] %v7510_v15  ;;  %v1241_v11 = vpop.permute.xlu1 %1240  ;;  %v1360_v59 = vmul.f32 %v7510_v15, %v1202_v17  ;;  %11064 = vst [vmem:[#allocation18_spill] sm:$0xff] %v7570_v61  ;;  %v1225_v20 = vadd.f32 %v7386_v13, %v1056_v60  ;;  %v1082_v43 = vadd.f32 %v1076_v14, %v913_v29  ;;  %v250_v1 = vpop.permute.xlu0 %249  ;;  %vm1929_vm6 = vcmask 15360  }
 0x1f7   :  { %1369 = vrot.lane.b32.xlu1 %v1361_v55, %s6408_s30  ;;  %v1244_v52 = vsel %vm10923_vm14, %v7461_v37, %v1241_v11  ;;  %v1245_v39 = vsel %vm10923_vm14, %v1241_v11, %v1243_v51  ;;  %v1249_v28 = vadd.f32 %v7461_v37, %v1080_v33  ;;  %v256_v60 = vsel %vm255_vm15, %v250_v1, %v252_v18 }
 0x1f8   :  { %1367 = vrot.lane.b32.xlu0 %v1360_v59, %s6408_s30  ;;  %v1250_v0 = vadd.f32 %v1244_v52, %v1081_v22  ;;  %v1251_v38 = vadd.f32 %v1245_v39, %v1082_v43 }
 0x1f9   :  { %v1423_v17 = vmul.f32 %v7553_v3, %v1249_v28 }
 0x1fa   :  { %v6024_v57 = vpop.permute.xlu1 %6023  ;;  %v1424_v16 = vmul.f32 %v7570_v61, %v1250_v0  ;;  %v1425_v13 = vmul.f32 %v7542_v5, %v1251_v38  ;;  %v423_v59 = vpop.permute.xlu0 %422 }
 0x1fb   :  { %v7546_v34 = vunpack.i.h.bf16 %v6024_v57  ;;  %v7548_v54 = vunpack.i.l.bf16 %v6024_v57  ;;  %1365 = vrot.lane.b32.xlu1 %v1359_v44, %s6408_s30 }
 0x1fc   :  { %1446 = vperm.xlu0 %6038, %v183_v47  }
 0x1fd   :  { %11060 = vst [vmem:[#allocation14_spill] sm:$0xff] %v7546_v34  ;;  %11061 = vst [vmem:[#allocation17_spill] sm:$0xff] %v7548_v54  ;;  %v7561_v36 = vsel %vm1386_vm5, %v7548_v54, %v7546_v34  ;;  %v1393_v32 = vmul.f32 %v7546_v34, %v1227_v41  ;;  %v1391_v51 = vmul.f32 %v7548_v54, %v1225_v20  ;;  %vm1508_vm5 = vcmask 64512  }
 0x1fe   :  { %11063 = vst [vmem:[#allocation15_spill] sm:$0xff] %v7561_v36  ;;  %v1392_v25 = vmul.f32 %v7561_v36, %v1226_v56  ;;  %v192_v62 = vpop.permute.xlu1 %191  ;;  %v594_v31 = vpop.permute.xlu0 %593 }
 0x1ff   :  { %v196_v58 = vmul.f32 %v7353_v53, %v192_v62  ;;  %v194_v57 = vmul.f32 0.0, %v192_v62  ;;  %v195_v45 = vmul.f32 %v7335_v46, %v192_v62 }
 0x200   :  { %1399 = vrot.lane.b32.xlu1 %v1392_v25, %s6409_s14  ;;  %1401 = vrot.lane.b32.xlu0 %v1393_v32, %s6409_s14 }
 0x201   :  { %v261_v32 = vadd.f32 %v256_v60, %v194_v57 }
 0x202   :  { %v254_v37 = vpop.permute.xlu1 %253  ;;  %v592_v26 = vpop.permute.xlu0 %591 }
 0x203   :  { %v263_v63 = vadd.f32 %v254_v37, %v196_v58  ;;  %v257_v22 = vsel %vm255_vm15, %v252_v18, %v254_v37 }
 0x204   :  { %1397 = vrot.lane.b32.xlu1 %v1391_v51, %s6409_s14  ;;  %1431 = vrot.lane.b32.xlu0 %v1424_v16, %s6410_s15  ;;  %v262_v39 = vadd.f32 %v257_v22, %v195_v45  ;;  %v598_v51 = vsel %vm597_vm1, %v592_v26, %v594_v31 }
 0x205   :  { %v432_v14 = vadd.f32 %v423_v59, %v263_v63 }
 0x206   :  { %v421_v6 = vpop.permute.xlu1 %420  ;;  %v758_v30 = vpop.permute.xlu0 %757 }
 0x207   :  { %v426_v53 = vsel %vm424_vm0, %v421_v6, %v423_v59 }
 0x208   :  { %1433 = vrot.lane.b32.xlu1 %v1425_v13, %s6410_s15  ;;  %1429 = vrot.lane.b32.xlu0 %v1423_v17, %s6410_s15  ;;  %v431_v38 = vadd.f32 %v426_v53, %v262_v39 }
 0x20a   :  { %v419_v55 = vpop.permute.xlu1 %418  ;;  %v925_v4 = vpop.permute.xlu0 %924 }
 0x20b   :  { %v425_v56 = vsel %vm424_vm0, %v419_v55, %v421_v6 }
 0x20c   :  { %v430_v20 = vadd.f32 %v425_v56, %v261_v32 }
 0x20e   :  { %v596_v42 = vpop.permute.xlu1 %595  ;;  %v929_v24 = vpop.permute.xlu0 %928  ;;  %v603_v62 = vadd.f32 %v598_v51, %v430_v20 }
 0x20f   :  { %v605_v25 = vadd.f32 %v596_v42, %v432_v14  ;;  %v599_v46 = vsel %vm597_vm1, %v594_v31, %v596_v42 }
 0x210   :  { %v604_v37 = vadd.f32 %v599_v46, %v431_v38 }
 0x212   :  { %v756_v11 = vpop.permute.xlu1 %755  ;;  %v1096_v21 = vpop.permute.xlu0 %1095 }
 0x213   :  { %v762_v13 = vsel %vm10924_vm12, %v756_v11, %v758_v30  ;;  %v767_v59 = vadd.f32 %v756_v11, %v603_v62 }
 0x216   :  { %v760_v8 = vpop.permute.xlu1 %759  ;;  %v6035_v47 = vpop.permute.xlu0 %6034 }
 0x217   :  { %v763_v29 = vsel %vm10924_vm12, %v758_v30, %v760_v8  ;;  %v768_v8 = vadd.f32 %v762_v13, %v604_v37  ;;  %v7603_v42 = vunpack.i.l.bf16 %v6035_v47  ;;  %v936_v30 = vadd.f32 %v925_v4, %v767_v59 }
 0x218   :  { %v769_v28 = vadd.f32 %v763_v29, %v605_v25 }
 0x219   :  { %11066 = vst [vmem:[#allocation23_spill] sm:$0xff] %v7603_v42 }
 0x21a   :  { %v927_v49 = vpop.permute.xlu1 %926  ;;  %v1288_v41 = vpop.permute.xlu0 %1287 }
 0x21b   :  { %v932_v43 = vsel %vm930_vm13, %v927_v49, %v929_v24  ;;  %v931_v18 = vsel %vm930_vm13, %v925_v4, %v927_v49  ;;  %v7601_v24 = vunpack.i.h.bf16 %v6035_v47 }
 0x21c   :  { %v938_v17 = vadd.f32 %v932_v43, %v769_v28  ;;  %v937_v58 = vadd.f32 %v931_v18, %v768_v8 }
 0x21d   :  { %11065 = vst [vmem:[#allocation19_spill] sm:$0xff] %v7601_v24  ;;  %v7609_v49 = vsel %vm1258_vm7, %v7603_v42, %v7601_v24  ;;  %vm1860_vm7 = vcmask 7168  }
 0x21e   :  { %v1094_v9 = vpop.permute.xlu1 %1093  ;;  %11067 = vst [vmem:[#allocation20_spill] sm:$0xff] %v7609_v49 }
 0x21f   :  { %v1105_v11 = vadd.f32 %v1094_v9, %v936_v30  ;;  %v1461_v30 = vld [vmem:[%s10783_s6 + $0x20] sm:$0xff] }
 0x221   :  { %v1263_v32 = vmul.f32 %v7603_v42, %v1105_v11  ;;  %v1462_v11 = vld [vmem:[%s10783_s6 + $0x28] sm:$0xff] }
 0x222   :  { %v1098_v40 = vpop.permute.xlu1 %1097 }
 0x223   :  { %v1101_v16 = vsel %vm10923_vm14, %v1096_v21, %v1098_v40  ;;  %v1100_v40 = vsel %vm10923_vm14, %v1094_v9, %v1096_v21 }
 0x224   :  { %v1107_v1 = vadd.f32 %v1101_v16, %v938_v17  ;;  %v1106_v63 = vadd.f32 %v1100_v40, %v937_v58 }
 0x226   :  { %v1286_v2 = vpop.permute.xlu1 %1285  ;;  %v1265_v26 = vmul.f32 %v7601_v24, %v1107_v1  ;;  %v1264_v21 = vmul.f32 %v7609_v49, %v1106_v63  ;;  %v1459_v63 = vld [vmem:[%s10783_s6 + $0x10] sm:$0xff] }
 0x227   :  { %v1291_v47 = vsel %vm1289_vm8, %v1286_v2, %v1288_v41 }
 0x228   :  { %v1318_v33 = vpop.permute.xlu0 %1317  ;;  %v1297_v60 = vadd.f32 %v1288_v41, %v1265_v26  ;;  %v1296_v14 = vadd.f32 %v1291_v47, %v1264_v21  ;;  %v11068_v47 = vmov 2   ;;  %v11070_v21 = vld [vmem:[#allocation12_spill] sm:$0xff] }
 0x22a   :  { %v1284_v10 = vpop.permute.xlu1 %1283 }
 0x22b   :  { %v1290_v22 = vsel %vm1289_vm8, %v1284_v10, %v1286_v2 }
 0x22c   :  { %v1316_v55 = vpop.permute.xlu0 %1315  ;;  %v1295_v41 = vadd.f32 %v1290_v22, %v1263_v32  ;;  %v11071_v22 = vld [vmem:[#allocation25_spill] sm:$0xff] }
 0x22d   :  { %v1322_v20 = vsel %vm1321_vm9, %v1316_v55, %v1318_v33 }
 0x22e   :  { %v1320_v44 = vpop.permute.xlu1 %1319  ;;  %v1327_v16 = vadd.f32 %v1322_v20, %v1295_v41  ;;  %v1453_v20 = vld [vmem:[%s10779_s2 + $0x8] sm:$0xff] }
 0x22f   :  { %v1323_v4 = vsel %vm1321_vm9, %v1318_v33, %v1320_v44  ;;  %v1329_v56 = vadd.f32 %v1320_v44, %v1297_v60  ;;  %v11069_v60 = vld [vmem:[#allocation9_spill] sm:$0xff] }
 0x230   :  { %v1328_v39 = vadd.f32 %v1323_v4, %v1296_v14  ;;  %v11072_v4 = vld [vmem:[#allocation28_spill] sm:$0xff]  ;;  %v11074_v14 = vld [vmem:[#allocation33_spill] sm:$0xff] }
 0x250   :  { %v7584_v7 = vpop.permute.xlu1 %1335 }
 0x254   :  { %v7587_v52 = vpop.permute.xlu1 %1333  ;;  %v1338_v31 = vpop.permute.xlu0 %1337 }
 0x255   :  { %v1341_v9 = vsel %vm1339_vm10, %v7584_v7, %v1338_v31  ;;  %v1347_v25 = vadd.f32 %v1338_v31, %v1329_v56  ;;  %v1340_v46 = vsel %vm1339_vm10, %v7587_v52, %v7584_v7  ;;  %v11073_v56 = vld [vmem:[#allocation22_spill] sm:$0xff] }
 0x256   :  { %v1346_v10 = vadd.f32 %v1341_v9, %v1328_v39  ;;  %v1345_v62 = vadd.f32 %v1340_v46, %v1327_v16  ;;  %v11075_v39 = vmov 0.0   ;;  %v1456_v46 = vld [vmem:[%s10779_s2 + $0x20] sm:$0xff]  ;;  %v1457_v16 = vld [vmem:[%s10779_s2 + $0x28] sm:$0xff] }
 0x269   :  { %v1370_v0 = vpop.permute.xlu1 %1369 }
 0x26a   :  { %v1368_v45 = vpop.permute.xlu0 %1367  ;;  %v1379_v43 = vadd.f32 %v1370_v0, %v1347_v25  ;;  %v1452_v25 = vld [vmem:[%s10779_s2] sm:$0xff] }
 0x26b   :  { %v1373_v2 = vsel %vm1371_vm11, %v1368_v45, %v1370_v0 }
 0x26c   :  { %v1378_v51 = vadd.f32 %v1373_v2, %v1346_v10  ;;  %v1455_v10 = vld [vmem:[%s10779_s2 + $0x18] sm:$0xff] }
 0x26d   :  { %v1366_v6 = vpop.permute.xlu1 %1365 }
 0x26e   :  { %v1372_v17 = vsel %vm1371_vm11, %v1366_v6, %v1368_v45  ;;  %v1458_v6 = vld [vmem:[%s10783_s6 + $0x8] sm:$0xff]  ;;  %v1463_v45 = vld [vmem:[%s10783_s6 + $0x30] sm:$0xff] }
 0x26f   :  { %v1377_v59 = vadd.f32 %v1372_v17, %v1345_v62 }
 0x272   :  { %v1400_v57 = vpop.permute.xlu1 %1399 }
 0x276   :  { %v1398_v29 = vpop.permute.xlu1 %1397 }
 0x277   :  { %v1404_v55 = vsel %vm1403_vm2, %v1398_v29, %v1400_v57 }
 0x278   :  { %v1409_v52 = vadd.f32 %v1404_v55, %v1377_v59 }
 0x27a   :  { %v1434_v13 = vpop.permute.xlu1 %1433 }
 0x27b   :  { %v1447_v53 = vpop.permute.xlu0 %1446 }
 0x27f   :  { %v1402_v44 = vpop.permute.xlu0 %1401 }
 0x280   :  { %v1405_v28 = vsel %vm1403_vm2, %v1400_v57, %v1402_v44  ;;  %v1411_v38 = vadd.f32 %v1402_v44, %v1379_v43  ;;  %v1460_v57 = vld [vmem:[%s10783_s6 + $0x18] sm:$0xff]  ;;  %v1454_v43 = vld [vmem:[%s10779_s2 + $0x10] sm:$0xff]  ;;  %s6420_s2 = smov 118  }
 0x281   :  { %v1410_v37 = vadd.f32 %v1405_v28, %v1378_v51 }
 0x282   :  { %v1443_v33 = vadd.f32 %v1434_v13, %v1411_v38 }
 0x283   :  { %v1432_v0 = vpop.permute.xlu0 %1431 }
 0x284   :  { %v1437_v18 = vsel %vm1435_vm3, %v1432_v0, %v1434_v13  ;;  %v1451_v1 = vadd.f32 %v1447_v53, %v1443_v33 }
 0x285   :  { %v1442_v7 = vadd.f32 %v1437_v18, %v1410_v37 }
 0x286   :  { %1501 = vrot.lane.b32.xlu0 %v1451_v1, %s10961_s16 }
 0x287   :  { %v1450_v8 = vadd.f32 %v1447_v53, %v1442_v7  ;;  %v1430_v40 = vpop.permute.xlu0 %1429 }
 0x288   :  { %v1436_v58 = vsel %vm1435_vm3, %v1430_v40, %v1432_v0 }
 0x289   :  { %v1441_v31 = vadd.f32 %v1436_v58, %v1409_v52  ;;  %1499 = vrot.lane.b32.xlu1 %v1450_v8, %s10961_s16 }
 0x28a   :  { %1466 = vperm.xlu0 %6038, %v1458_v6  }
 0x28b   :  { %v1449_v26 = vadd.f32 %v1447_v53, %v1441_v31 }
 0x28d   :  { %1497 = vrot.lane.b32.xlu1 %v1449_v26, %s10961_s16 }
 0x28e   :  { %1481 = vperm.xlu0 %6038, %v1461_v30  }
 0x291   :  { %1471 = vperm.xlu1 %6032, %v1459_v63  }
 0x292   :  { %1476 = vperm.xlu0 %6038, %v1460_v57  }
 0x295   :  { %1486 = vperm.xlu1 %6032, %v1462_v11  }
 0x296   :  { %6100 = vset.pattern.permute.xlu0 %v11068_v47 }
 0x297   :  { %6040 = vrot.lane.b32.xlu0 %v11069_v60, %s6406_s22 }
 0x299   :  { %1491 = vperm.xlu1 %6032, %v1463_v45  }
 0x29b   :  { %6050 = vrot.lane.b32.xlu0 %v11071_v22, %s6412_s19 }
 0x29d   :  { %6045 = vrot.lane.b32.xlu1 %v11070_v21, %s6405_s21 }
 0x29f   :  { %6060 = vrot.lane.b32.xlu0 %v11073_v56, %s6414_s23 }
 0x2a1   :  { %6055 = vrot.lane.b32.xlu1 %v11072_v4, %s6413_s20 }
 0x2a5   :  { %6065 = vrot.lane.b32.xlu1 %v11074_v14, %s6407_s27 }
 0x2f8   :  { %v1502_v32 = vpop.permute.xlu0 %1501 }
 0x2fb   :  { %v1500_v29 = vpop.permute.xlu1 %1499 }
 0x2fc   :  { %v1505_v53 = vsel %vm10922_vm4, %v1500_v29, %v1502_v32 }
 0x2fd   :  { %1527 = vmatprep.subr.mxu0 %v1505_v53 }
 0x2ff   :  { %v1498_v9 = vpop.permute.xlu1 %1497 }
 0x300   :  { %v1504_v41 = vsel %vm10922_vm4, %v1498_v9, %v1500_v29 }
 0x301   :  { %1528 = vmatpush1.msra.mxu0 %v1504_v41 }
 0x302   :  { %5836 = vmatmul.mubr.msk.f32.vlgmr.msra.gmra.mrb[0].mxu0 %vm1508_vm5, %v1452_v25 }
 0x303   :  { %1597 = vmatprep.mubr.f32.mxu0 %v11075_v39 }
 0x306   :  { %5837 = vmatmul.mubr.msk.f32.gmra.mrb[2].mxu0 %vm1508_vm5, %v1453_v20 }
 0x307   :  { %1603 = vmatprep.mubr.f32.mxu0 %v11075_v39 }
 0x309   :  { %v1467_v2 = vpop.permute.xlu0 %1466 }
 0x30a   :  { %5838 = vmatmul.mubr.msk.f32.gmra.mrb[4].mxu0 %vm1508_vm5, %v1454_v43 }
 0x30b   :  { %1609 = vmatprep.mubr.f32.mxu0 %v11075_v39 }
 0x30d   :  { %v7680_v44 = vpop.permute.xlu0 %1481 }
 0x30e   :  { %5839 = vmatmul.mubr.msk.f32.gmra.mrb[6].mxu0 %vm1508_vm5, %v1455_v10 }
 0x30f   :  { %1615 = vmatprep.mubr.f32.mxu0 %v11075_v39 }
 0x310   :  { %v1472_v28 = vpop.permute.xlu1 %1471 }
 0x311   :  { %v1477_v38 = vpop.permute.xlu0 %1476 }
 0x312   :  { %5840 = vmatmul.mubr.msk.f32.gmra.mrb[8].mxu0 %vm1508_vm5, %v1456_v46 }
 0x313   :  { %1621 = vmatprep.mubr.f32.mxu0 %v11075_v39 }
 0x314   :  { %v7692_v51 = vpop.permute.xlu1 %1486 }
 0x315   :  { %v6041_v13 = vpop.permute.xlu0 %6040 }
 0x316   :  { %5841 = vmatmul.mubr.msk.f32.gmra.mrb[10].mxu0 %vm1508_vm5, %v1457_v16  ;;  %v7695_v17 = vunpack.i.l.bf16 %v6041_v13  ;;  %v7736_v46 = vunpack.i.h.bf16 %v6041_v13  ;;  %vm1998_vm5 = vcmask 23552  }
 0x317   :  { %4586 = vmatprep.mubr.f32.mxu0 %v11075_v39 }
 0x318   :  { %v7698_v33 = vpop.permute.xlu1 %1491  ;;  %v1689_v62 = vmul.f32 0.0, %v7695_v17  ;;  %11076 = vst [vmem:[#allocation21_spill] sm:$0xff] %v7736_v46  ;;  %v7753_v13 = vsel %vm1321_vm9, %v7695_v17, %v7736_v46 }
 0x319   :  { %v7703_v37 = vpop.permute.xlu0 %6050  ;;  %11080 = vst [vmem:[#allocation31_spill] sm:$0xff] %v7753_v13 }
 0x31a   :  { %1707 = vrot.lane.b32.xlu0 %v1689_v62, %s6405_s21  ;;  %1713 = vrot.lane.b32.xlu1 %v1689_v62, %s6405_s21  ;;  %v7708_v18 = vunpack.i.h.bf16 %v7703_v37 }
 0x31c   :  { %v6046_v0 = vpop.permute.xlu1 %6045  ;;  %v1867_v59 = vmul.f32 0.0, %v7708_v18 }
 0x31d   :  { %v7705_v55 = vunpack.i.l.bf16 %v6046_v0  ;;  %v6061_v8 = vpop.permute.xlu0 %6060 }
 0x31e   :  { %v7719_v40 = vunpack.i.h.bf16 %v6061_v8 }
 0x31f   :  { %v1757_v1 = vmul.f32 0.0, %v7705_v55 }
 0x320   :  { %v6056_v7 = vpop.permute.xlu1 %6055  ;;  %v7726_v58 = vmul.f32 0.0, %v7719_v40 }
 0x321   :  { %1775 = vrot.lane.b32.xlu0 %v1757_v1, %s6406_s22  ;;  %1781 = vrot.lane.b32.xlu1 %v1757_v1, %s6406_s22  ;;  %v7715_v52 = vunpack.i.h.bf16 %v6056_v7 }
 0x323   :  { %v1936_v6 = vmul.f32 0.0, %v7715_v52 }
 0x325   :  { %1719 = vrot.lane.b32.xlu0 %v1689_v62, %s6405_s21  ;;  %1887 = vrot.lane.b32.xlu1 %v1867_v59, %s6408_s30 }
 0x329   :  { %1893 = vrot.lane.b32.xlu0 %v1867_v59, %s6408_s30  ;;  %1787 = vrot.lane.b32.xlu1 %v1757_v1, %s6406_s22 }
 0x32d   :  { %1956 = vrot.lane.b32.xlu0 %v1936_v6, %s6409_s14  ;;  %1962 = vrot.lane.b32.xlu1 %v1936_v6, %s6409_s14 }
 0x331   :  { %2025 = vrot.lane.b32.xlu0 %v7726_v58, %s6410_s15  ;;  %2031 = vrot.lane.b32.xlu1 %v7726_v58, %s6410_s15 }
 0x335   :  { %1899 = vrot.lane.b32.xlu0 %v1867_v59, %s6408_s30  ;;  %1968 = vrot.lane.b32.xlu1 %v1936_v6, %s6409_s14 }
 0x3d5   :  { %v1593_v31 = vpop.f32.mrb[0].mxu0 }
 0x3d6   :  { %v1595_v26 = vpop.f32.mrb[1].mxu0  ;;  %v1594_v63 = vadd.f32 %v1593_v31, %v1467_v2 }
 0x3d7   :  { %v1596_v11 = vadd.f32 %v1595_v26, %v1467_v2 }
 0x3d8   :  { %v1628_v60 = vmax.f32 %v1594_v63, 0.0 }
 0x3d9   :  { %v1599_v30 = vpop.f32.mrb[2].mxu0  ;;  %v1629_v4 = vmax.f32 %v1596_v11, 0.0 }
 0x3da   :  { %v1601_v57 = vpop.f32.mrb[3].mxu0  ;;  %v1600_v21 = vadd.f32 %v1599_v30, %v1472_v28  ;;  %v1634_v32 = vmin.f32 %v1628_v60, 6.0 }
 0x3db   :  { %v1602_v56 = vadd.f32 %v1601_v57, %v1472_v28  ;;  %v1635_v41 = vmin.f32 %v1629_v4, 6.0  ;;  %v7742_v28 = vunpack.i.l.bf16 %v6056_v7  ;;  %v7755_v7 = vunpack.i.h.bf16 %v6046_v0 }
 0x3dc   :  { %v1630_v29 = vmax.f32 %v1600_v21, 0.0 }
 0x3dd   :  { %v1605_v45 = vpop.f32.mrb[4].mxu0  ;;  %v1631_v20 = vmax.f32 %v1602_v56, 0.0  ;;  %11079 = vst [vmem:[#allocation24_spill] sm:$0xff] %v7742_v28  ;;  %11081 = vst [vmem:[#allocation35_spill] sm:$0xff] %v7755_v7  ;;  %v7774_v56 = vsel %vm1289_vm8, %v7705_v55, %v7755_v7 }
 0x3de   :  { %v1607_v22 = vpop.f32.mrb[5].mxu0  ;;  %v1606_v53 = vadd.f32 %v1605_v45, %v1477_v38  ;;  %v1636_v1 = vmin.f32 %v1630_v29, 6.0  ;;  %v7765_v45 = vunpack.i.l.bf16 %v6061_v8  ;;  %11085 = vst [vmem:[#allocation32_spill] sm:$0xff] %v7774_v56 }
 0x3df   :  { %v1608_v43 = vadd.f32 %v1607_v22, %v1477_v38  ;;  %v1637_v38 = vmin.f32 %v1631_v20, 6.0 }
 0x3e0   :  { %v1632_v59 = vmax.f32 %v1606_v53, 0.0  ;;  %11084 = vst [vmem:[#allocation30_spill] sm:$0xff] %v7765_v45 }
 0x3e1   :  { %v1611_v14 = vpop.f32.mrb[6].mxu0  ;;  %v1633_v26 = vmax.f32 %v1608_v43, 0.0  ;;  %v7812_v43 = vsel %vm1998_vm5, %v7765_v45, %v7719_v40 }
 0x3e2   :  { %v1612_v9 = vadd.f32 %v1611_v14, %v7680_v44  ;;  %v1613_v25 = vpop.f32.mrb[7].mxu0  ;;  %v1638_v60 = vmin.f32 %v1632_v59, 6.0  ;;  %11091 = vst [vmem:[#allocation33_spill] sm:$0xff] %v7812_v43 }
 0x3e3   :  { %v1614_v10 = vadd.f32 %v1613_v25, %v7680_v44  ;;  %v1639_v0 = vmin.f32 %v1633_v26, 6.0  ;;  %v7797_v25 = vsel %vm1929_vm6, %v7742_v28, %v7715_v52 }
 0x3e4   :  { %v7738_v2 = vmul.f32 %v1634_v32, %v1612_v9  ;;  %11089 = vst [vmem:[#allocation28_spill] sm:$0xff] %v7797_v25 }
 0x3e5   :  { %v7740_v16 = vmul.f32 %v1635_v41, %v1614_v10  ;;  %v1617_v62 = vpop.f32.mrb[8].mxu0 }
 0x3e6   :  { %11077 = vst [vmem:[#allocation26_spill] sm:$0xff] %v7738_v2  ;;  %v1618_v6 = vadd.f32 %v1617_v62, %v7692_v51  ;;  %v1619_v31 = vpop.f32.mrb[9].mxu0  ;;  %1823 = vrot.lane.b32.xlu0 %v7738_v2, %s6407_s27  ;;  %v1934_v63 = vmul.f32 %v7742_v28, %v7738_v2  ;;  %v2003_v8 = vmul.f32 %v7765_v45, %v7738_v2 }
 0x3e7   :  { %11078 = vst [vmem:[#allocation27_spill] sm:$0xff] %v7740_v16  ;;  %v1620_v44 = vadd.f32 %v1619_v31, %v7692_v51  ;;  %1825 = vrot.lane.b32.xlu1 %v7740_v16, %s6407_s27  ;;  %v1690_v51 = vmul.f32 %v7753_v13, %v7738_v2  ;;  %v1758_v29 = vmul.f32 %v7774_v56, %v7738_v2 }
 0x3e8   :  { %v7757_v30 = vmul.f32 %v1636_v1, %v1618_v6  ;;  %v1691_v53 = vmul.f32 %v7736_v46, %v7740_v16  ;;  %v1935_v41 = vmul.f32 %v7797_v25, %v7740_v16  ;;  %v2004_v62 = vmul.f32 %v7812_v43, %v7740_v16 }
 0x3e9   :  { %v7761_v57 = vmul.f32 %v1637_v38, %v1620_v44  ;;  %v1623_v11 = vpop.f32.mrb[10].mxu0 }
 0x3ea   :  { %11082 = vst [vmem:[#allocation34_spill] sm:$0xff] %v7757_v30  ;;  %v1624_v21 = vadd.f32 %v1623_v11, %v7698_v33  ;;  %v1625_v22 = vpop.f32.mrb[11].mxu0  ;;  %1952 = vrot.lane.b32.xlu0 %v1934_v63, %s6409_s14  ;;  %v1693_v1 = vmul.f32 %v7753_v13, %v7757_v30  ;;  %v1937_v59 = vmul.f32 %v7742_v28, %v7757_v30 }
 0x3eb   :  { %11083 = vst [vmem:[#allocation29_spill] sm:$0xff] %v7761_v57  ;;  %v1626_v4 = vadd.f32 %v1625_v22, %v7698_v33  ;;  %1709 = vrot.lane.b32.xlu1 %v1690_v51, %s6405_s21  ;;  %v7786_v33 = vunpack.i.l.bf16 %v7703_v37  ;;  %v1759_v37 = vmul.f32 %v7755_v7, %v7740_v16  ;;  %v1761_v6 = vmul.f32 %v7774_v56, %v7757_v30 }
 0x3ec   :  { %v7776_v14 = vmul.f32 %v1638_v60, %v1624_v21  ;;  %v2006_v31 = vmul.f32 %v7765_v45, %v7757_v30  ;;  %v1694_v26 = vmul.f32 %v7736_v46, %v7761_v57  ;;  %v1938_v44 = vmul.f32 %v7797_v25, %v7761_v57 }
 0x3ed   :  { %v7780_v32 = vmul.f32 %v1639_v0, %v1626_v4  ;;  %11088 = vst [vmem:[#allocation25_spill] sm:$0xff] %v7786_v33  ;;  %v1865_v9 = vmul.f32 %v7786_v33, %v7738_v2  ;;  %v7806_v20 = vsel %vm1860_vm7, %v7786_v33, %v7708_v18  ;;  %v1868_v38 = vmul.f32 %v7786_v33, %v7757_v30 }
 0x3ee   :  { %11086 = vst [vmem:[#allocation9_spill] sm:$0xff] %v7776_v14  ;;  %2021 = vrot.lane.b32.xlu0 %v2003_v8, %s6410_s15  ;;  %11090 = vst [vmem:[#allocation22_spill] sm:$0xff] %v7806_v20  ;;  %v1866_v10 = vmul.f32 %v7806_v20, %v7740_v16  ;;  %v1762_v63 = vmul.f32 %v7755_v7, %v7761_v57  ;;  %v2007_v11 = vmul.f32 %v7812_v43, %v7761_v57 }
 0x3ef   :  { %11087 = vst [vmem:[#allocation12_spill] sm:$0xff] %v7780_v32  ;;  %1777 = vrot.lane.b32.xlu1 %v1758_v29, %s6406_s22  ;;  %v1869_v51 = vmul.f32 %v7806_v20, %v7761_v57  ;;  %v1764_v60 = vmul.f32 %v7774_v56, %v7776_v14  ;;  %v1696_v21 = vmul.f32 %v7753_v13, %v7776_v14 }
 0x3f0   :  { %v1871_v22 = vmul.f32 %v7786_v33, %v7776_v14  ;;  %v1940_v0 = vmul.f32 %v7742_v28, %v7776_v14  ;;  %v1697_v4 = vmul.f32 %v7736_v46, %v7780_v32  ;;  %v1765_v8 = vmul.f32 %v7755_v7, %v7780_v32 }
 0x3f1   :  { %v2009_v29 = vmul.f32 %v7765_v45, %v7776_v14  ;;  %v11100_v46 = vmov 8  }
 0x3f2   :  { %1711 = vrot.lane.b32.xlu0 %v1691_v53, %s6405_s21  ;;  %v1872_v53 = vmul.f32 %v7806_v20, %v7780_v32 }
 0x3f3   :  { %1883 = vrot.lane.b32.xlu1 %v1865_v9, %s6408_s30  ;;  %v1941_v9 = vmul.f32 %v7797_v25, %v7780_v32 }
 0x3f6   :  { %1779 = vrot.lane.b32.xlu0 %v1759_v37, %s6406_s22  ;;  %v6066_v37 = vpop.permute.xlu1 %6065 }
 0x3f7   :  { %1954 = vrot.lane.b32.xlu1 %v1935_v41, %s6409_s14  ;;  %v2010_v41 = vmul.f32 %v7812_v43, %v7780_v32 }
 0x3fa   :  { %1885 = vrot.lane.b32.xlu0 %v1866_v10, %s6408_s30  ;;  %v1708_v10 = vpop.permute.xlu0 %1707 }
 0x3fb   :  { %2023 = vrot.lane.b32.xlu1 %v2004_v62, %s6410_s15  ;;  %v7892_v62 = vpop.permute.xlu1 %1713 }
 0x3fe   :  { %1827 = vrot.lane.b32.xlu0 %v7757_v30, %s6407_s27 }
 0x3ff   :  { %1829 = vrot.lane.b32.xlu1 %v7761_v57, %s6407_s27 }
 0x402   :  { %1715 = vrot.lane.b32.xlu0 %v1693_v1, %s6405_s21  ;;  %v1776_v1 = vpop.permute.xlu0 %1775 }
 0x403   :  { %1958 = vrot.lane.b32.xlu1 %v1937_v59, %s6409_s14  ;;  %v7900_v59 = vpop.permute.xlu1 %1781 }
 0x406   :  { %1783 = vrot.lane.b32.xlu0 %v1761_v6, %s6406_s22 }
 0x407   :  { %2027 = vrot.lane.b32.xlu1 %v2006_v31, %s6410_s15  ;;  %v1888_v6 = vpop.permute.xlu1 %1887 }
 0x40a   :  { %1889 = vrot.lane.b32.xlu0 %v1868_v38, %s6408_s30 }
 0x40b   :  { %1717 = vrot.lane.b32.xlu1 %v1694_v26, %s6405_s21  ;;  %v7914_v38 = vpop.permute.xlu1 %1787 }
 0x40e   :  { %1960 = vrot.lane.b32.xlu0 %v1938_v44, %s6409_s14 }
 0x40f   :  { %1785 = vrot.lane.b32.xlu1 %v1762_v63, %s6406_s22  ;;  %v7916_v44 = vpop.permute.xlu1 %1962 }
 0x412   :  { %2029 = vrot.lane.b32.xlu0 %v2007_v11, %s6410_s15 }
 0x413   :  { %1891 = vrot.lane.b32.xlu1 %v1869_v51, %s6408_s30  ;;  %v7918_v11 = vpop.permute.xlu1 %2031 }
 0x416   :  { %1831 = vrot.lane.b32.xlu0 %v7776_v14, %s6407_s27 }
 0x417   :  { %1833 = vrot.lane.b32.xlu1 %v7780_v32, %s6407_s27 }
 0x41a   :  { %1789 = vrot.lane.b32.xlu0 %v1764_v60, %s6406_s22  ;;  %v7922_v60 = vpop.permute.xlu1 %1968 }
 0x41b   :  { %1721 = vrot.lane.b32.xlu1 %v1696_v21, %s6405_s21 }
 0x41e   :  { %1895 = vrot.lane.b32.xlu0 %v1871_v22, %s6408_s30 }
 0x41f   :  { %1964 = vrot.lane.b32.xlu1 %v1940_v0, %s6409_s14 }
 0x422   :  { %1723 = vrot.lane.b32.xlu0 %v1697_v4, %s6405_s21  ;;  %v7924_v4 = vunpack.i.l.bf16 %v6066_v37 }
 0x423   :  { %1791 = vrot.lane.b32.xlu1 %v1765_v8, %s6406_s22 }
 0x426   :  { %2033 = vrot.lane.b32.xlu0 %v2009_v29, %s6410_s15 }
 0x427   :  { %1897 = vrot.lane.b32.xlu1 %v1872_v53, %s6408_s30  ;;  %v7927_v53 = vunpack.i.h.bf16 %v6066_v37 }
 0x429   :  { %11092 = vst [vmem:[#allocation42_spill] sm:$0xff] %v7927_v53  ;;  %v7937_v34 = vsel %vm1339_vm10, %v7924_v4, %v7927_v53  ;;  %v1674_v37 = vmul.f32 %v7927_v53, %v7740_v16 }
 0x42a   :  { %1966 = vrot.lane.b32.xlu0 %v1941_v9, %s6409_s14  ;;  %v7930_v9 = vmul.f32 0.0, %v7924_v4  ;;  %11093 = vst [vmem:[#allocation43_spill] sm:$0xff] %v7937_v34 }
 0x42b   :  { %6075 = vrot.lane.b32.xlu1 %v11075_v39, %s6391_s29 }
 0x42e   :  { %2037 = vrot.lane.b32.xlu0 %v7726_v58, %s6410_s15  ;;  %v7908_v58 = vpop.permute.xlu0 %1719 }
 0x42f   :  { %2035 = vrot.lane.b32.xlu1 %v2010_v41, %s6410_s15 }
 0x432   :  { %6070 = vrot.lane.b32.xlu0 %v11075_v39, %s6389_s28  ;;  %v7912_v31 = vpop.permute.xlu0 %1893 }
 0x433   :  { %6085 = vrot.lane.b32.xlu1 %v11075_v39, %s10964_s11 }
 0x436   :  { %6080 = vrot.lane.b32.xlu0 %v11075_v39, %s10966_s10  ;;  %v1957_v26 = vpop.permute.xlu0 %1956 }
 0x437   :  { %2180 = vrot.lane.b32.xlu1 %v11075_v39, %s6391_s29 }
 0x43a   :  { %2138 = vrot.lane.b32.xlu0 %v11075_v39, %s6389_s28  ;;  %v2026_v63 = vpop.permute.xlu0 %2025 }
 0x43b   :  { %2277 = vrot.lane.b32.xlu1 %v11075_v39, %s10966_s10 }
 0x43e   :  { %6090 = vrot.lane.b32.xlu0 %v11075_v39, %s6397_s12  ;;  %v7920_v51 = vpop.permute.xlu0 %1899 }
 0x458   :  { %v1824_v21 = vpop.permute.xlu0 %1823 }
 0x459   :  { %v1826_v22 = vpop.permute.xlu1 %1825 }
 0x45a   :  { %v1835_v12 = vsel %vm1339_vm10, %v1824_v21, %v1826_v22 }
 0x45c   :  { %v1953_v0 = vpop.permute.xlu0 %1952 }
 0x45d   :  { %v1710_v8 = vpop.permute.xlu1 %1709 }
 0x45e   :  { %v1725_v29 = vsel %vm1289_vm8, %v1708_v10, %v1710_v8 }
 0x45f   :  { %v1740_v49 = vadd.f32 %v1725_v29, %v7930_v9  ;;  %v1673_v29 = vmul.f32 %v7937_v34, %v7738_v2 }
 0x460   :  { %v2022_v41 = vpop.permute.xlu0 %2021 }
 0x461   :  { %v1778_v42 = vpop.permute.xlu1 %1777 }
 0x462   :  { %v1793_v24 = vsel %vm1321_vm9, %v1776_v1, %v1778_v42 }
 0x463   :  { %v1808_v61 = vadd.f32 %v1793_v24, %v1740_v49 }
 0x464   :  { %v1712_v5 = vpop.permute.xlu0 %1711 }
 0x465   :  { %v1726_v10 = vsel %vm1289_vm8, %v1710_v8, %v1712_v5  ;;  %v1847_v54 = vadd.f32 %v1824_v21, %v1808_v61  ;;  %v1884_v36 = vpop.permute.xlu1 %1883  ;;  %v1742_v15 = vadd.f32 %v1712_v5, %v1674_v37 }
 0x466   :  { %v1741_v1 = vadd.f32 %v1726_v10, %v1673_v29 }
 0x467   :  { %v1916_v27 = vadd.f32 %v1884_v36, %v1847_v54 }
 0x468   :  { %v1780_v24 = vpop.permute.xlu0 %1779 }
 0x469   :  { %v1985_v49 = vadd.f32 %v1953_v0, %v1916_v27  ;;  %v1794_v50 = vsel %vm1321_vm9, %v1778_v42, %v1780_v24  ;;  %v1810_v19 = vadd.f32 %v1780_v24, %v1742_v15  ;;  %v1955_v3 = vpop.permute.xlu1 %1954 }
 0x46a   :  { %v1809_v23 = vadd.f32 %v1794_v50, %v1741_v1  ;;  %v1970_v42 = vsel %vm1403_vm2, %v1953_v0, %v1955_v3  ;;  %v1971_v15 = vsel %vm1403_vm2, %v1955_v3, %v1957_v26  ;;  %v1677_v1 = vmul.f32 %v7927_v53, %v7761_v57 }
 0x46b   :  { %v1849_v35 = vadd.f32 %v1826_v22, %v1810_v19  ;;  %v2054_v48 = vadd.f32 %v2022_v41, %v1985_v49 }
 0x46c   :  { %v1886_v8 = vpop.permute.xlu0 %1885  ;;  %v1848_v61 = vadd.f32 %v1835_v12, %v1809_v23 }
 0x46d   :  { %v1901_v16 = vsel %vm1371_vm11, %v1884_v36, %v1886_v8  ;;  %v1902_v2 = vsel %vm1371_vm11, %v1886_v8, %v1888_v6  ;;  %2072 = vrot.lane.b32.xlu1 %v2054_v48, %s6414_s23  ;;  %v2024_v5 = vpop.permute.xlu1 %2023 }
 0x46e   :  { %v1917_v54 = vadd.f32 %v1901_v16, %v1848_v61  ;;  %v1918_v27 = vadd.f32 %v1902_v2, %v1849_v35  ;;  %v2039_v19 = vsel %vm1435_vm3, %v2022_v41, %v2024_v5  ;;  %v2040_v12 = vsel %vm1435_vm3, %v2024_v5, %v2026_v63 }
 0x470   :  { %v1986_v50 = vadd.f32 %v1970_v42, %v1917_v54  ;;  %v1987_v37 = vadd.f32 %v1971_v15, %v1918_v27  ;;  %v1828_v21 = vpop.permute.xlu0 %1827 }
 0x471   :  { %v1830_v23 = vpop.permute.xlu1 %1829 }
 0x472   :  { %v2055_v36 = vadd.f32 %v2039_v19, %v1986_v50  ;;  %v2056_v22 = vadd.f32 %v2040_v12, %v1987_v37  ;;  %v1836_v50 = vsel %vm1339_vm10, %v1828_v21, %v1830_v23 }
 0x474   :  { %v1716_v6 = vpop.permute.xlu0 %1715  ;;  %2076 = vrot.lane.b32.xlu1 %v2056_v22, %s6414_s23  ;;  %2074 = vrot.lane.b32.xlu0 %v2055_v36, %s6414_s23 }
 0x475   :  { %v1727_v48 = vsel %vm1289_vm8, %v7892_v62, %v1716_v6  ;;  %v1959_v35 = vpop.permute.xlu1 %1958  ;;  %v1676_v62 = vmul.f32 %v7937_v34, %v7757_v30 }
 0x476   :  { %v1743_v3 = vadd.f32 %v1727_v48, %v7930_v9 }
 0x478   :  { %v1784_v2 = vpop.permute.xlu0 %1783 }
 0x479   :  { %v1795_v16 = vsel %vm1321_vm9, %v7900_v59, %v1784_v2  ;;  %v2028_v26 = vpop.permute.xlu1 %2027 }
 0x47a   :  { %v1811_v63 = vadd.f32 %v1795_v16, %v1743_v3 }
 0x47c   :  { %v1850_v0 = vadd.f32 %v1828_v21, %v1811_v63  ;;  %v1890_v41 = vpop.permute.xlu0 %1889 }
 0x47d   :  { %v1718_v10 = vpop.permute.xlu1 %1717 }
 0x47e   :  { %v1919_v29 = vadd.f32 %v1890_v41, %v1850_v0  ;;  %v1728_v24 = vsel %vm1289_vm8, %v1716_v6, %v1718_v10  ;;  %v1745_v8 = vadd.f32 %v1718_v10, %v1677_v1 }
 0x47f   :  { %v1744_v5 = vadd.f32 %v1728_v24, %v1676_v62 }
 0x480   :  { %v1988_v49 = vadd.f32 %v1959_v35, %v1919_v29  ;;  %v1961_v61 = vpop.permute.xlu0 %1960 }
 0x481   :  { %v1786_v54 = vpop.permute.xlu1 %1785  ;;  %v1973_v16 = vsel %vm1403_vm2, %v1961_v61, %v7916_v44 }
 0x482   :  { %v1796_v59 = vsel %vm1321_vm9, %v1784_v2, %v1786_v54  ;;  %v1813_v27 = vadd.f32 %v1786_v54, %v1745_v8  ;;  %v2057_v42 = vadd.f32 %v2028_v26, %v1988_v49  ;;  %v1972_v2 = vsel %vm1403_vm2, %v1959_v35, %v1961_v61 }
 0x483   :  { %v1812_v15 = vadd.f32 %v1796_v59, %v1744_v5  ;;  %v1680_v61 = vmul.f32 %v7927_v53, %v7780_v32  ;;  %v1679_v5 = vmul.f32 %v7937_v34, %v7776_v14  ;;  %v11098_v14 = vmov 6  }
 0x484   :  { %v1852_v37 = vadd.f32 %v1830_v23, %v1813_v27  ;;  %v2030_v19 = vpop.permute.xlu0 %2029  ;;  %2078 = vrot.lane.b32.xlu0 %v2057_v42, %s6414_s23 }
 0x485   :  { %v1851_v12 = vadd.f32 %v1836_v50, %v1812_v15  ;;  %v1892_v36 = vpop.permute.xlu1 %1891  ;;  %v2041_v10 = vsel %vm1435_vm3, %v2028_v26, %v2030_v19  ;;  %v2042_v29 = vsel %vm1435_vm3, %v2030_v19, %v7918_v11 }
 0x486   :  { %v1903_v22 = vsel %vm1371_vm11, %v1890_v41, %v1892_v36  ;;  %v1904_v6 = vsel %vm1371_vm11, %v1892_v36, %v7912_v31 }
 0x487   :  { %v1920_v48 = vadd.f32 %v1903_v22, %v1851_v12  ;;  %v1921_v3 = vadd.f32 %v1904_v6, %v1852_v37 }
 0x488   :  { %v1832_v63 = vpop.permute.xlu0 %1831 }
 0x489   :  { %v1989_v21 = vadd.f32 %v1972_v2, %v1920_v48  ;;  %v1990_v23 = vadd.f32 %v1973_v16, %v1921_v3  ;;  %v1834_v0 = vpop.permute.xlu1 %1833 }
 0x48a   :  { %v1837_v12 = vsel %vm1339_vm10, %v1832_v63, %v1834_v0 }
 0x48b   :  { %v2059_v41 = vadd.f32 %v2042_v29, %v1990_v23  ;;  %v2058_v1 = vadd.f32 %v2041_v10, %v1989_v21 }
 0x48c   :  { %v1790_v24 = vpop.permute.xlu0 %1789 }
 0x48d   :  { %2082 = vrot.lane.b32.xlu0 %v2059_v41, %s6414_s23  ;;  %2080 = vrot.lane.b32.xlu1 %v2058_v1, %s6414_s23  ;;  %v1722_v31 = vpop.permute.xlu1 %1721  ;;  %v1797_v62 = vsel %vm1321_vm9, %v7914_v38, %v1790_v24 }
 0x48e   :  { %v1729_v44 = vsel %vm1289_vm8, %v7908_v58, %v1722_v31 }
 0x48f   :  { %v1746_v35 = vadd.f32 %v1729_v44, %v7930_v9 }
 0x490   :  { %v1896_v26 = vpop.permute.xlu0 %1895 }
 0x491   :  { %v1814_v49 = vadd.f32 %v1797_v62, %v1746_v35  ;;  %v1965_v8 = vpop.permute.xlu1 %1964 }
 0x493   :  { %v1853_v11 = vadd.f32 %v1832_v63, %v1814_v49 }
 0x494   :  { %v1724_v54 = vpop.permute.xlu0 %1723 }
 0x495   :  { %v1922_v59 = vadd.f32 %v1896_v26, %v1853_v11  ;;  %v1730_v27 = vsel %vm1289_vm8, %v1722_v31, %v1724_v54  ;;  %v1748_v58 = vadd.f32 %v1724_v54, %v1680_v61  ;;  %v1792_v42 = vpop.permute.xlu1 %1791 }
 0x496   :  { %v1747_v9 = vadd.f32 %v1730_v27, %v1679_v5  ;;  %v1798_v15 = vsel %vm1321_vm9, %v1790_v24, %v1792_v42 }
 0x497   :  { %v1991_v38 = vadd.f32 %v1965_v8, %v1922_v59  ;;  %v1816_v50 = vadd.f32 %v1792_v42, %v1748_v58 }
 0x498   :  { %v1815_v37 = vadd.f32 %v1798_v15, %v1747_v9  ;;  %v2034_v19 = vpop.permute.xlu0 %2033 }
 0x499   :  { %v1855_v36 = vadd.f32 %v1834_v0, %v1816_v50  ;;  %v2060_v22 = vadd.f32 %v2034_v19, %v1991_v38  ;;  %v1898_v6 = vpop.permute.xlu1 %1897 }
 0x49a   :  { %v1854_v48 = vadd.f32 %v1837_v12, %v1815_v37  ;;  %v1905_v3 = vsel %vm1371_vm11, %v1896_v26, %v1898_v6  ;;  %v1906_v2 = vsel %vm1371_vm11, %v1898_v6, %v7920_v51  ;;  %v2391_v6 = vld [vmem:[%s10783_s6 + $0x40] sm:$0xff] }
 0x49b   :  { %2084 = vrot.lane.b32.xlu1 %v2060_v22, %s6414_s23  ;;  %v1924_v23 = vadd.f32 %v1906_v2, %v1855_v36  ;;  %v8126_v2 = vld [vmem:[%s10781_s4 + $0x8] sm:$0xff] }
 0x49c   :  { %v1967_v16 = vpop.permute.xlu0 %1966  ;;  %v1923_v21 = vadd.f32 %v1905_v3, %v1854_v48  ;;  %v8114_v48 = vld [vmem:[%s10781_s4] sm:$0xff]  ;;  %v8120_v3 = vld [vmem:[%s10781_s4 + $0x10] sm:$0xff] }
 0x49d   :  { %v7995_v10 = vpop.permute.xlu1 %6075  ;;  %v1974_v29 = vsel %vm1403_vm2, %v1965_v8, %v1967_v16  ;;  %v1975_v63 = vsel %vm1403_vm2, %v1967_v16, %v7922_v60  ;;  %v11094_v16 = vmov 1  }
 0x49e   :  { %v1992_v41 = vadd.f32 %v1974_v29, %v1923_v21  ;;  %v1993_v1 = vadd.f32 %v1975_v63, %v1924_v23  ;;  %v11095_v21 = vmov 3   ;;  %v11096_v63 = vmov 4  }
 0x4a0   :  { %v2038_v0 = vpop.permute.xlu0 %2037 }
 0x4a1   :  { %v2036_v24 = vpop.permute.xlu1 %2035 }
 0x4a2   :  { %v2043_v31 = vsel %vm1435_vm3, %v2034_v19, %v2036_v24  ;;  %v2044_v51 = vsel %vm1435_vm3, %v2036_v24, %v2038_v0 }
 0x4a3   :  { %v2061_v44 = vadd.f32 %v2043_v31, %v1992_v41  ;;  %v2062_v35 = vadd.f32 %v2044_v51, %v1993_v1 }
 0x4a4   :  { %v8004_v62 = vpop.permute.xlu0 %6070 }
 0x4a5   :  { %2088 = vrot.lane.b32.xlu1 %v2062_v35, %s6414_s23  ;;  %2086 = vrot.lane.b32.xlu0 %v2061_v44, %s6414_s23  ;;  %v8006_v26 = vpop.permute.xlu1 %6085  ;;  %v11097_v44 = vmov 5   ;;  %v6073_v56 = vunpack.i.h.bf16 %v8004_v62  ;;  %s6421_s23 = smov 16  }
 0x4a8   :  { %v8008_v49 = vpop.permute.xlu0 %6080 }
 0x4a9   :  { %v8010_v60 = vpop.permute.xlu1 %2180  ;;  %v6083_v53 = vunpack.i.h.bf16 %v8008_v49 }
 0x4ac   :  { %v8012_v8 = vpop.permute.xlu0 %2138 }
 0x4ad   :  { %v8014_v11 = vpop.permute.xlu1 %2277 }
 0x4b0   :  { %v8016_v61 = vpop.permute.xlu0 %6090 }
 0x4df   :  { %v2073_v5 = vpop.permute.xlu1 %2072 }
 0x4e6   :  { %v2075_v54 = vpop.permute.xlu0 %2074  ;;  %v2077_v59 = vpop.permute.xlu1 %2076 }
 0x4e7   :  { %v8019_v27 = vsel %vm1998_vm5, %v2073_v5, %v2075_v54  ;;  %v8022_v58 = vsel %vm1998_vm5, %v2075_v54, %v2077_v59 }
 0x4e8   :  { %2128 = vrot.lane.b32.xlu0 %v8019_v27, %s6389_s28  ;;  %2130 = vrot.lane.b32.xlu1 %v8022_v58, %s6389_s28 }
 0x4ec   :  { %2170 = vrot.lane.b32.xlu0 %v8019_v27, %s6391_s29  ;;  %2172 = vrot.lane.b32.xlu1 %v8022_v58, %s6391_s29 }
 0x4f0   :  { %2210 = vrot.lane.b32.xlu0 %v8019_v27, %s6394_s9  ;;  %2212 = vrot.lane.b32.xlu1 %v8022_v58, %s6394_s9 }
 0x4f4   :  { %2261 = vrot.lane.b32.xlu0 %v8019_v27, %s10966_s10  ;;  %2263 = vrot.lane.b32.xlu1 %v8022_v58, %s10966_s10 }
 0x4f6   :  { %v2079_v42 = vpop.permute.xlu0 %2078 }
 0x4f8   :  { %2305 = vrot.lane.b32.xlu0 %v8022_v58, %s10964_s11  ;;  %2303 = vrot.lane.b32.xlu1 %v8019_v27, %s10964_s11 }
 0x4fc   :  { %2345 = vrot.lane.b32.xlu0 %v8019_v27, %s6397_s12  ;;  %2347 = vrot.lane.b32.xlu1 %v8022_v58, %s6397_s12 }
 0x4ff   :  { %v2083_v9 = vpop.permute.xlu0 %2082  ;;  %v2081_v15 = vpop.permute.xlu1 %2080 }
 0x500   :  { %v8049_v38 = vsel %vm1998_vm5, %v2079_v42, %v2081_v15  ;;  %v8052_v50 = vsel %vm1998_vm5, %v2081_v15, %v2083_v9 }
 0x501   :  { %2136 = vrot.lane.b32.xlu1 %v8052_v50, %s6389_s28  ;;  %2134 = vrot.lane.b32.xlu0 %v8049_v38, %s6389_s28 }
 0x505   :  { %2178 = vrot.lane.b32.xlu1 %v8052_v50, %s6391_s29  ;;  %2176 = vrot.lane.b32.xlu0 %v8049_v38, %s6391_s29 }
 0x509   :  { %2216 = vrot.lane.b32.xlu1 %v8052_v50, %s6394_s9  ;;  %2214 = vrot.lane.b32.xlu0 %v8049_v38, %s6394_s9 }
 0x50d   :  { %2267 = vrot.lane.b32.xlu1 %v8049_v38, %s10966_s10  ;;  %2269 = vrot.lane.b32.xlu0 %v8052_v50, %s10966_s10  ;;  %v2085_v37 = vpop.permute.xlu1 %2084 }
 0x511   :  { %2311 = vrot.lane.b32.xlu1 %v8052_v50, %s10964_s11  ;;  %2309 = vrot.lane.b32.xlu0 %v8049_v38, %s10964_s11 }
 0x515   :  { %2351 = vrot.lane.b32.xlu1 %v8049_v38, %s6397_s12  ;;  %2353 = vrot.lane.b32.xlu0 %v8052_v50, %s6397_s12 }
 0x517   :  { %v2087_v19 = vpop.permute.xlu0 %2086  ;;  %v2089_v12 = vpop.permute.xlu1 %2088 }
 0x518   :  { %v8079_v36 = vsel %vm1998_vm5, %v2085_v37, %v2087_v19  ;;  %v8082_v22 = vsel %vm1998_vm5, %v2087_v19, %v2089_v12 }
 0x519   :  { %2140 = vrot.lane.b32.xlu0 %v8079_v36, %s6389_s28  ;;  %2142 = vrot.lane.b32.xlu1 %v8082_v22, %s6389_s28 }
 0x51d   :  { %2184 = vrot.lane.b32.xlu0 %v8082_v22, %s6391_s29  ;;  %2182 = vrot.lane.b32.xlu1 %v8079_v36, %s6391_s29 }
 0x521   :  { %2218 = vrot.lane.b32.xlu0 %v8079_v36, %s6394_s9  ;;  %2220 = vrot.lane.b32.xlu1 %v8082_v22, %s6394_s9 }
 0x525   :  { %2275 = vrot.lane.b32.xlu0 %v8082_v22, %s10966_s10  ;;  %2273 = vrot.lane.b32.xlu1 %v8079_v36, %s10966_s10 }
 0x529   :  { %2315 = vrot.lane.b32.xlu0 %v8079_v36, %s10964_s11  ;;  %2317 = vrot.lane.b32.xlu1 %v8082_v22, %s10964_s11 }
 0x52d   :  { %2357 = vrot.lane.b32.xlu1 %v8079_v36, %s6397_s12 }
 0x531   :  { %2361 = vrot.lane.b32.xlu1 %v11075_v39, %s6397_s12 }
 0x535   :  { %2400 = vperm.xlu1 %6032, %v2391_v6  }
 0x539   :  { %2608 = vperm.xlu1 %6032, %v8114_v48  }
 0x53d   :  { %2618 = vperm.xlu1 %6032, %v8120_v3  }
 0x541   :  { %6099 = vset.pattern.permute.xlu1 %v11094_v16 }
 0x542   :  { %2635 = vperm.xlu1 %6099, %v8126_v2  }
 0x546   :  { %2639 = vperm.xlu1 %6099, %v8120_v3  }
 0x54a   :  { %6101 = vset.pattern.permute.xlu1 %v11068_v47 }
 0x54b   :  { %2656 = vperm.xlu1 %6101, %v8126_v2  }
 0x54f   :  { %2660 = vperm.xlu1 %6101, %v8120_v3  }
 0x553   :  { %6103 = vset.pattern.permute.xlu1 %v11095_v21 }
 0x554   :  { %2677 = vperm.xlu1 %6103, %v8126_v2  }
 0x558   :  { %2681 = vperm.xlu1 %6103, %v8120_v3  }
 0x55a   :  { %v2129_v23 = vpop.permute.xlu0 %2128  ;;  %v8137_v29 = vpop.permute.xlu1 %2130 }
 0x55b   :  { %v2145_v31 = vsel %vm255_vm15, %v2129_v23, %v8137_v29 }
 0x55c   :  { %6105 = vset.pattern.permute.xlu1 %v11096_v63  ;;  %v2160_v35 = vadd.f32 %v2145_v31, %v8019_v27 }
 0x55d   :  { %2698 = vperm.xlu1 %6105, %v8126_v2  }
 0x55e   :  { %v2171_v0 = vpop.permute.xlu0 %2170  ;;  %v8141_v41 = vpop.permute.xlu1 %2172 }
 0x55f   :  { %v2187_v51 = vsel %vm424_vm0, %v2171_v0, %v8141_v41 }
 0x560   :  { %v2202_v42 = vadd.f32 %v2187_v51, %v2160_v35 }
 0x561   :  { %2702 = vperm.xlu1 %6105, %v8120_v3  }
 0x562   :  { %v2211_v1 = vpop.permute.xlu0 %2210  ;;  %v8144_v24 = vpop.permute.xlu1 %2212 }
 0x563   :  { %v2222_v59 = vsel %vm597_vm1, %v2211_v1, %v8144_v24 }
 0x564   :  { %v2235_v15 = vadd.f32 %v2222_v59, %v2202_v42 }
 0x565   :  { %6106 = vset.pattern.permute.xlu1 %v11097_v44  ;;  %v2161_v44 = vadd.f32 %v8137_v29, %v8022_v58 }
 0x566   :  { %v2262_v5 = vpop.permute.xlu0 %2261  ;;  %2719 = vperm.xlu1 %6106, %v8126_v2   ;;  %v8153_v54 = vpop.permute.xlu1 %2263 }
 0x567   :  { %v2279_v9 = vsel %vm10924_vm12, %v2262_v5, %v8153_v54 }
 0x568   :  { %v2295_v12 = vadd.f32 %v2279_v9, %v2235_v15  ;;  %v11099_v15 = vmov 7  }
 0x56a   :  { %v8159_v37 = vpop.permute.xlu0 %2305  ;;  %2723 = vperm.xlu1 %6106, %v8120_v3   ;;  %v2304_v19 = vpop.permute.xlu1 %2303 }
 0x56b   :  { %v2321_v27 = vsel %vm930_vm13, %v2304_v19, %v8159_v37 }
 0x56c   :  { %v2337_v6 = vadd.f32 %v2321_v27, %v2295_v12  ;;  %v6077_v12 = vunpack.i.l.bf16 %v7995_v10 }
 0x56e   :  { %v2346_v31 = vpop.permute.xlu0 %2345  ;;  %6108 = vset.pattern.permute.xlu1 %v11098_v14  ;;  %v8165_v32 = vpop.permute.xlu1 %2347  ;;  %v2186_v30 = vsel %vm424_vm0, %v6077_v12, %v2171_v0  ;;  %v6088_v0 = vunpack.i.h.bf16 %v8006_v26 }
 0x56f   :  { %v2363_v51 = vsel %vm10923_vm14, %v2346_v31, %v8165_v32  ;;  %2737 = vperm.xlu1 %6108, %v8126_v2  }
 0x570   :  { %v2379_v35 = vadd.f32 %v2363_v51, %v2337_v6 }
 0x572   :  { %v6094_v59 = vpack.i.bf16 %v2379_v35, %v11075_v39  ;;  %v6072_v35 = vunpack.i.l.bf16 %v8004_v62 }
 0x573   :  { %v2135_v42 = vpop.permute.xlu0 %2134  ;;  %2741 = vperm.xlu1 %6108, %v8120_v3   ;;  %v2137_v57 = vpop.permute.xlu1 %2136 }
 0x574   :  { %6095 = vrot.lane.b32.xlu0 %v6094_v59, %s10964_s11  ;;  %v2144_v59 = vsel %vm255_vm15, %v6072_v35, %v2129_v23  ;;  %v2164_v20 = vadd.f32 %v2137_v57, %v8052_v50  ;;  %v6078_v23 = vunpack.i.h.bf16 %v7995_v10  ;;  %v2147_v28 = vsel %vm255_vm15, %v2135_v42, %v2137_v57 }
 0x575   :  { %v2201_v43 = vadd.f32 %v2186_v30, %v2144_v59 }
 0x577   :  { %v2177_v9 = vpop.permute.xlu0 %2176  ;;  %6110 = vset.pattern.permute.xlu1 %v11099_v15  ;;  %v2179_v27 = vpop.permute.xlu1 %2178  ;;  %v2234_v30 = vadd.f32 %v2211_v1, %v2201_v43 }
 0x578   :  { %2758 = vperm.xlu1 %6110, %v8126_v2   ;;  %2359 = vrot.lane.b32.xlu0 %v8082_v22, %s6397_s12  ;;  %v2206_v33 = vadd.f32 %v2179_v27, %v2164_v20  ;;  %v2188_v20 = vsel %vm424_vm0, %v6078_v23, %v2177_v9  ;;  %v2189_v10 = vsel %vm424_vm0, %v2177_v9, %v2179_v27  ;;  %v6087_v9 = vunpack.i.l.bf16 %v8006_v26 }
 0x579   :  { %v2294_v13 = vadd.f32 %v2262_v5, %v2234_v30  ;;  %v2163_v5 = vadd.f32 %v2147_v28, %v8049_v38  ;;  %v2203_v38 = vadd.f32 %v8141_v41, %v2161_v44 }
 0x57a   :  { %v2322_v41 = vsel %vm930_vm13, %v8159_v37, %v6087_v9 }
 0x57b   :  { %v2215_v6 = vpop.permute.xlu0 %2214  ;;  %v2217_v51 = vpop.permute.xlu1 %2216  ;;  %v2336_v43 = vadd.f32 %v2304_v19, %v2294_v13  ;;  %v2205_v13 = vadd.f32 %v2189_v10, %v2163_v5 }
 0x57c   :  { %2762 = vperm.xlu1 %6110, %v8120_v3   ;;  %2652 = vperm.xlu0 %6100, %v8114_v48   ;;  %v2239_v35 = vadd.f32 %v2217_v51, %v2206_v33  ;;  %v2146_v33 = vsel %vm255_vm15, %v6073_v56, %v2135_v42  ;;  %v2223_v30 = vsel %vm597_vm1, %v2215_v6, %v2217_v51  ;;  %v6082_v56 = vunpack.i.l.bf16 %v8008_v49 }
 0x57d   :  { %v2204_v57 = vadd.f32 %v2188_v20, %v2146_v33  ;;  %v2238_v42 = vadd.f32 %v2223_v30, %v2205_v13  ;;  %v6092_v51 = vunpack.i.l.bf16 %v8016_v61 }
 0x57e   :  { %v2280_v58 = vsel %vm10924_vm12, %v8153_v54, %v6082_v56 }
 0x57f   :  { %v2270_v25 = vpop.permute.xlu0 %2269  ;;  %v2268_v7 = vpop.permute.xlu1 %2267 }
 0x580   :  { %6102 = vset.pattern.permute.xlu0 %v11095_v21  ;;  %6122 = vset.pattern.permute.xlu1 %v11100_v46  ;;  %v2282_v12 = vsel %vm10924_vm12, %v2270_v25, %v6083_v53  ;;  %v6093_v53 = vunpack.i.h.bf16 %v8016_v61 }
 0x581   :  { %2673 = vperm.xlu0 %6102, %v8114_v48   ;;  %v2299_v34 = vadd.f32 %v2282_v12, %v2239_v35  ;;  %v2378_v12 = vadd.f32 %v2346_v31, %v2336_v43  ;;  %v2237_v31 = vadd.f32 %v2215_v6, %v2204_v57 }
 0x583   :  { %v2310_v50 = vpop.permute.xlu0 %2309  ;;  %v2312_v59 = vpop.permute.xlu1 %2311  ;;  %v2297_v49 = vadd.f32 %v2268_v7, %v2237_v31 }
 0x584   :  { %v2324_v45 = vsel %vm930_vm13, %v2312_v59, %v6088_v0  ;;  %v2323_v29 = vsel %vm930_vm13, %v2310_v50, %v2312_v59 }
 0x585   :  { %6104 = vset.pattern.permute.xlu0 %v11096_v63  ;;  %v2341_v62 = vadd.f32 %v2324_v45, %v2299_v34  ;;  %v2281_v34 = vsel %vm10924_vm12, %v2268_v7, %v2270_v25  ;;  %v2236_v25 = vadd.f32 %v8144_v24, %v2203_v38  ;;  %v2339_v20 = vadd.f32 %v2310_v50, %v2297_v49 }
 0x586   :  { %2694 = vperm.xlu0 %6104, %v8114_v48   ;;  %v2298_v27 = vadd.f32 %v2281_v34, %v2238_v42  ;;  %v2364_v7 = vsel %vm10923_vm14, %v8165_v32, %v6092_v51 }
 0x587   :  { %v2354_v1 = vpop.permute.xlu0 %2353  ;;  %v2352_v0 = vpop.permute.xlu1 %2351  ;;  %v2296_v54 = vadd.f32 %v2280_v58, %v2236_v25 }
 0x588   :  { %v2366_v23 = vsel %vm10923_vm14, %v2354_v1, %v6093_v53  ;;  %v2365_v44 = vsel %vm10923_vm14, %v2352_v0, %v2354_v1  ;;  %v2340_v59 = vadd.f32 %v2323_v29, %v2298_v27  ;;  %v2381_v61 = vadd.f32 %v2352_v0, %v2339_v20 }
 0x589   :  { %v2383_v35 = vadd.f32 %v2366_v23, %v2341_v62  ;;  %v2338_v24 = vadd.f32 %v2322_v41, %v2296_v54 }
 0x58a   :  { %6107 = vset.pattern.permute.xlu0 %v11098_v14  ;;  %v2382_v53 = vadd.f32 %v2365_v44, %v2340_v59 }
 0x58b   :  { %v6111_v45 = vpack.i.bf16 %v2378_v12, %v2383_v35  ;;  %v2141_v19 = vpop.permute.xlu0 %2140  ;;  %2733 = vperm.xlu0 %6107, %v8114_v48   ;;  %v2143_v28 = vpop.permute.xlu1 %2142  ;;  %v2380_v10 = vadd.f32 %v2364_v7, %v2338_v24 }
 0x58c   :  { %v2148_v50 = vsel %vm255_vm15, %v8012_v8, %v2141_v19  ;;  %v2149_v58 = vsel %vm255_vm15, %v2141_v19, %v2143_v28  ;;  %v2167_v27 = vadd.f32 %v2143_v28, %v8082_v22 }
 0x58d   :  { %6112 = vrot.lane.b32.xlu1 %v6111_v45, %s10964_s11  ;;  %v6116_v62 = vpack.i.bf16 %v2382_v53, %v2380_v10  ;;  %v2166_v49 = vadd.f32 %v2149_v58, %v8079_v36 }
 0x58f   :  { %v2185_v6 = vpop.permute.xlu0 %2184  ;;  %6109 = vset.pattern.permute.xlu0 %v11099_v15  ;;  %v2183_v26 = vpop.permute.xlu1 %2182 }
 0x590   :  { %2754 = vperm.xlu0 %6109, %v8114_v48   ;;  %v2190_v37 = vsel %vm424_vm0, %v8010_v60, %v2183_v26  ;;  %v2191_v25 = vsel %vm424_vm0, %v2183_v26, %v2185_v6  ;;  %v2209_v41 = vadd.f32 %v2185_v6, %v2167_v27 }
 0x591   :  { %v2207_v1 = vadd.f32 %v2190_v37, %v2148_v50  ;;  %v2208_v44 = vadd.f32 %v2191_v25, %v2166_v49 }
 0x593   :  { %v2219_v43 = vpop.permute.xlu0 %2218  ;;  %v2221_v33 = vpop.permute.xlu1 %2220 }
 0x594   :  { %2423 = vrot.lane.b32.xlu0 %v2381_v61, %s10964_s11  ;;  %v2240_v0 = vadd.f32 %v2219_v43, %v2207_v1  ;;  %v2224_v51 = vsel %vm597_vm1, %v2219_v43, %v2221_v33  ;;  %v2242_v7 = vadd.f32 %v2221_v33, %v2209_v41 }
 0x595   :  { %6121 = vset.pattern.permute.xlu0 %v11100_v46  ;;  %v2241_v19 = vadd.f32 %v2224_v51, %v2208_v44  ;;  %v11105_v51 = vmov 10  }
 0x597   :  { %v2276_v5 = vpop.permute.xlu0 %2275  ;;  %v2274_v32 = vpop.permute.xlu1 %2273 }
 0x598   :  { %6117 = vrot.lane.b32.xlu0 %v6116_v62, %s10964_s11  ;;  %v2300_v60 = vadd.f32 %v2274_v32, %v2240_v0  ;;  %v2284_v54 = vsel %vm10924_vm12, %v2276_v5, %v8014_v11  ;;  %v2283_v20 = vsel %vm10924_vm12, %v2274_v32, %v2276_v5  ;;  %v11102_v62 = vld [vmem:[#allocation6_spill] sm:$0xff]  ;;  %v11103_v5 = vld [vmem:[#allocation7_spill] sm:$0xff] }
 0x599   :  { %v2302_v22 = vadd.f32 %v2284_v54, %v2242_v7  ;;  %v2301_v28 = vadd.f32 %v2283_v20, %v2241_v19  ;;  %v72_v1 = vadd.s32 4294967292, %v11102_v62  ;;  %v73_v32 = vadd.s32 4294967292, %v11103_v5 }
 0x59a   :  { %v168_v58 = vadd.s32 5, %v11102_v62  ;;  %v169_v25 = vadd.s32 5, %v11103_v5  ;;  %v60_v41 = vadd.s32 4294967291, %v11102_v62  ;;  %v61_v44 = vadd.s32 4294967291, %v11103_v5 }
 0x59b   :  { %v2316_v57 = vpop.permute.xlu0 %2315  ;;  %v2318_v23 = vpop.permute.xlu1 %2317  ;;  %vm74_vm6 = vcmp.ge.s32.totalorder %v72_v1, 0  ;;  %vm75_vm7 = vcmp.ge.s32.totalorder %v73_v32, 0 }
 0x59c   :  { %v2342_v12 = vadd.f32 %v2316_v57, %v2300_v60  ;;  %v2325_v26 = vsel %vm930_vm13, %v2316_v57, %v2318_v23  ;;  %v5818_v57 = vsel %vm74_vm6, 1.0, %v11075_v39  ;;  %vm173_vm4 = vcmp.lt.s32.totalorder %v169_v25, 16 }
 0x59d   :  { %v2343_v53 = vadd.f32 %v2325_v26, %v2301_v28  ;;  %vm63_vm12 = vcmp.ge.s32.totalorder %v61_v44, 0 }
 0x59f   :  { %v2358_v30 = vpop.permute.xlu1 %2357 }
 0x5a0   :  { %v2384_v35 = vadd.f32 %v2358_v30, %v2342_v12  ;;  %v11104_v12 = vmov 9  }
 0x5a2   :  { %2429 = vrot.lane.b32.xlu1 %v2384_v35, %s10964_s11  ;;  %v156_v35 = vadd.s32 4, %v11102_v62 }
 0x5a3   :  { %v2362_v8 = vpop.permute.xlu1 %2361 }
 0x5a4   :  { %vm160_vm5 = vcmp.lt.s32.totalorder %v156_v35, 16 }
 0x5a5   :  { %v5832_v19 = vsel %vm160_vm5, 1.0, %v11075_v39  ;;  %vm3241_vm5 = vcmask 990208  }
 0x5a6   :  { %2779 = vperm.xlu1 %6122, %v8126_v2  }
 0x5b4   :  { %v8233_v13 = vpop.permute.xlu1 %2400 }
 0x5b8   :  { %v8235_v56 = vpop.permute.xlu1 %2608 }
 0x5bc   :  { %v8237_v34 = vpop.permute.xlu1 %2618 }
 0x5bd   :  { %11101 = vst [vmem:[#allocation44_spill] sm:$0xff] %v8237_v34 }
 0x5c1   :  { %v8239_v45 = vpop.permute.xlu1 %2635 }
 0x5c5   :  { %v8241_v38 = vpop.permute.xlu1 %2639 }
 0x5ca   :  { %v8243_v31 = vpop.permute.xlu1 %2656 }
 0x5ce   :  { %v8245_v42 = vpop.permute.xlu1 %2660 }
 0x5d3   :  { %v8247_v9 = vpop.permute.xlu1 %2677 }
 0x5d7   :  { %v8250_v29 = vpop.permute.xlu1 %2681 }
 0x5dc   :  { %v8259_v59 = vpop.permute.xlu1 %2698 }
 0x5e0   :  { %v8266_v11 = vpop.permute.xlu1 %2702 }
 0x5e5   :  { %v8274_v0 = vpop.permute.xlu1 %2719 }
 0x5e6   :  { %v8261_v24 = vpop.permute.xlu0 %6095 }
 0x5e7   :  { %v6097_v36 = vunpack.i.l.bf16 %v8261_v24  ;;  %v6098_v32 = vunpack.i.h.bf16 %v8261_v24 }
 0x5e9   :  { %v2326_v6 = vsel %vm930_vm13, %v2318_v23, %v6097_v36  ;;  %v5819_v23 = vsel %vm75_vm7, 1.0, %v11075_v39  ;;  %v8280_v60 = vpop.permute.xlu1 %2723  ;;  %vm172_vm7 = vcmp.lt.s32.totalorder %v168_v58, 16  ;;  %v5835_v36 = vsel %vm173_vm4, 1.0, %v11075_v39 }
 0x5ea   :  { %v2360_v61 = vpop.permute.xlu0 %2359  ;;  %v2344_v37 = vadd.f32 %v2326_v6, %v2302_v22  ;;  %v5834_v26 = vsel %vm172_vm7, 1.0, %v11075_v39  ;;  %vm3333_vm4 = vcmask 31744   ;;  %vm3374_vm7 = vcmask 973824  }
 0x5eb   :  { %v2367_v43 = vsel %vm10923_vm14, %v2358_v30, %v2360_v61  ;;  %v2368_v10 = vsel %vm10923_vm14, %v2360_v61, %v2362_v8  ;;  %v6125_v30 = vpack.i.bf16 %v5819_v23, %v5818_v57  ;;  %v157_v8 = vadd.s32 4, %v11103_v5 }
 0x5ec   :  { %v2385_v33 = vadd.f32 %v2367_v43, %v2343_v53  ;;  %v2386_v50 = vadd.f32 %v2368_v10, %v2344_v37  ;;  %vm62_vm14 = vcmp.ge.s32.totalorder %v60_v41, 0  ;;  %v6138_v22 = vpack.i.bf16 %v5835_v36, %v5834_v26 }
 0x5ed   :  { %vm161_vm6 = vcmp.lt.s32.totalorder %v157_v8, 16  ;;  %v5816_v6 = vsel %vm62_vm14, 1.0, %v11075_v39  ;;  %v5817_v53 = vsel %vm63_vm12, 1.0, %v11075_v39  ;;  %v11106_v43 = vmov 0  }
 0x5ee   :  { %2433 = vrot.lane.b32.xlu0 %v2386_v50, %s10964_s11  ;;  %2431 = vrot.lane.b32.xlu1 %v2385_v33, %s10964_s11  ;;  %v8290_v49 = vpop.permute.xlu1 %2737  ;;  %v5833_v7 = vsel %vm161_vm6, 1.0, %v11075_v39  ;;  %v6143_v37 = vpack.i.bf16 %v5817_v53, %v5816_v6  ;;  %vm2447_vm12 = vcmask 195584   ;;  %v2388_v6 = vld [vmem:[%s10780_s3 + $0x8] sm:$0xff]  ;;  %vm3405_vm14 = vcmask 39936  }
 0x5ef   :  { %vm3302_vm6 = vcmask 982016  }
 0x5f2   :  { %2775 = vperm.xlu0 %6121, %v8114_v48   ;;  %2783 = vperm.xlu1 %6122, %v8120_v3   ;;  %v8304_v20 = vpop.permute.xlu1 %2741 }
 0x5f6   :  { %6123 = vset.pattern.permute.xlu0 %v11104_v12  ;;  %6124 = vset.pattern.permute.xlu1 %v11104_v12 }
 0x5f7   :  { %2796 = vperm.xlu0 %6123, %v8114_v48   ;;  %2800 = vperm.xlu1 %6124, %v8126_v2   ;;  %v8317_v61 = vpop.permute.xlu1 %2758 }
 0x5fb   :  { %v8292_v27 = vpop.permute.xlu0 %2652  ;;  %2804 = vperm.xlu1 %6124, %v8120_v3   ;;  %6126 = vrot.lane.b32.xlu0 %v6125_v30, %s6408_s30  ;;  %v8324_v10 = vpop.permute.xlu1 %2762 }
 0x5fc   :  { %6131 = vset.pattern.permute.xlu0 %v11105_v51 }
 0x5ff   :  { %6130 = vset.pattern.permute.xlu1 %v11105_v51  ;;  %2821 = vperm.xlu0 %6131, %v8126_v2   ;;  %v6133_v2 = vpack.i.bf16 %v5833_v7, %v5832_v19  ;;  %v6113_v50 = vpop.permute.xlu1 %6112 }
 0x600   :  { %v8301_v54 = vpop.permute.xlu0 %2673  ;;  %2817 = vperm.xlu1 %6130, %v8114_v48   ;;  %v6115_v1 = vunpack.i.h.bf16 %v6113_v50  ;;  %v6114_v57 = vunpack.i.l.bf16 %v6113_v50 }
 0x602   :  { %v2435_v58 = vsel %vm930_vm13, %v6115_v1, %v6098_v32 }
 0x603   :  { %6132 = vset.pattern.permute.xlu0 %v11094_v16 }
 0x604   :  { %2825 = vperm.xlu1 %6130, %v8120_v3   ;;  %2631 = vperm.xlu0 %6132, %v8114_v48  }
 0x605   :  { %v8313_v28 = vpop.permute.xlu0 %2694 }
 0x608   :  { %6134 = vrot.lane.b32.xlu1 %v6133_v2, %s6415_s24  ;;  %6139 = vrot.lane.b32.xlu0 %v6138_v22, %s6416_s25  ;;  %v2387_v22 = vld [vmem:[%s10780_s3] sm:$0xff] }
 0x609   :  { %6148 = vset.pattern.permute.xlu1 %v11106_v43 }
 0x60a   :  { %v8321_v3 = vpop.permute.xlu0 %2733 }
 0x60c   :  { %6144 = vrot.lane.b32.xlu1 %v6143_v37, %s6409_s14 }
 0x60f   :  { %v8326_v33 = vpop.permute.xlu0 %2754 }
 0x613   :  { %v2424_v62 = vpop.permute.xlu0 %2423 }
 0x614   :  { %v2430_v19 = vpop.permute.xlu1 %2429 }
 0x617   :  { %v6118_v5 = vpop.permute.xlu0 %6117 }
 0x618   :  { %v6120_v23 = vunpack.i.h.bf16 %v6118_v5  ;;  %v6119_v30 = vunpack.i.l.bf16 %v6118_v5  ;;  %v2663_v5 = vmul.f32 0.0, %v8292_v27 }
 0x61a   :  { %v2436_v35 = vsel %vm930_vm13, %v6098_v32, %v6119_v30  ;;  %v2438_v8 = vsel %vm930_vm13, %v6120_v23, %v6114_v57  ;;  %v2437_v25 = vsel %vm930_vm13, %v2424_v62, %v6120_v23  ;;  %v2645_v62 = vmul.f32 0.0, %v8239_v45 }
 0x61b   :  { %v5867_v41 = vpack.c.bf16 %v2438_v8, %v2436_v35  ;;  %v5869_v44 = vpack.c.bf16 %v2437_v25, %v2435_v58  ;;  %v2669_v23 = vmul.f32 0.0, %v8245_v42  ;;  %v2926_v30 = vmul.f32 %v7924_v4, %v2663_v5 }
 0x61c   :  { %v2687_v58 = vmul.f32 0.0, %v8247_v9  ;;  %v2684_v5 = vmul.f32 0.0, %v8301_v54 }
 0x61d   :  { %5868 = vmatprep.subr.bf16.mxu1 %v5867_v41  ;;  %v2932_v25 = vmul.f32 %v7924_v4, %v2669_v23  ;;  %v2711_v23 = vmul.f32 0.0, %v8266_v11 }
 0x61e   :  { %5870 = vmatpush1.bf16.msra.mxu1 %v5869_v44 }
 0x625   :  { %v8333_v7 = vpop.permute.xlu1 %2779 }
 0x660   :  { %v2434_v26 = vpop.permute.xlu0 %2433  ;;  %v2432_v24 = vpop.permute.xlu1 %2431 }
 0x661   :  { %v2440_v36 = vsel %vm930_vm13, %v2432_v24, %v2434_v26  ;;  %v2439_v2 = vsel %vm930_vm13, %v2430_v19, %v2432_v24  ;;  %v2648_v19 = vmul.f32 0.0, %v8241_v38  ;;  %v2708_v26 = vmul.f32 0.0, %v8259_v59 }
 0x662   :  { %2461 = vmatprep.subr.mxu1 %v2440_v36  ;;  %v2989_v24 = vmul.f32 %v7695_v17, %v2687_v58  ;;  %v2666_v36 = vmul.f32 0.0, %v8243_v31  ;;  %v2705_v58 = vmul.f32 0.0, %v8313_v28 }
 0x663   :  { %2462 = vmatpush1.msra.mxu1 %v2439_v2 }
 0x664   :  { %5842 = vmatmul.mubr.msk.f32.vlgmr.msra.gmra.mrb[0].mxu1 %vm2447_vm12, %v2387_v22 }
 0x665   :  { %2527 = vmatprep.mubr.f32.mxu1 %v11075_v39 }
 0x668   :  { %5843 = vmatmul.mubr.msk.f32.gmra.mrb[2].mxu1 %vm2447_vm12, %v2388_v6  ;;  %v2746_v6 = vmul.f32 0.0, %v8321_v3 }
 0x669   :  { %2533 = vmatprep.mubr.f32.mxu1 %v11075_v39 }
 0x671   :  { %v8347_v53 = vpop.permute.xlu0 %2775  ;;  %v8371_v44 = vpop.permute.xlu1 %2783 }
 0x676   :  { %v8349_v37 = vpop.permute.xlu0 %2796  ;;  %v8380_v22 = vpop.permute.xlu1 %2800 }
 0x67a   :  { %v8351_v50 = vpop.permute.xlu0 %6126 }
 0x67b   :  { %v8355_v1 = vunpack.i.l.bf16 %v8351_v50 }
 0x67d   :  { %v2869_v32 = vmul.f32 %v8355_v1, %v2645_v62  ;;  %v2872_v2 = vmul.f32 %v8355_v1, %v2648_v19  ;;  %v3049_v62 = vmul.f32 %v7705_v55, %v2708_v26  ;;  %v2690_v19 = vmul.f32 0.0, %v8250_v29 }
 0x67e   :  { %v8359_v57 = vpop.permute.xlu0 %2821  ;;  %v3046_v26 = vmul.f32 %v7705_v55, %v2705_v58  ;;  %v2788_v58 = vmul.f32 0.0, %v8347_v53 }
 0x67f   :  { %2890 = vrot.lane.b32.xlu1 %v2869_v32, %s6405_s21  ;;  %v2929_v32 = vmul.f32 %v7924_v4, %v2666_v36  ;;  %v2770_v4 = vmul.f32 0.0, %v8317_v61  ;;  %v2791_v36 = vmul.f32 0.0, %v8333_v7 }
 0x683   :  { %v8364_v35 = vpop.permute.xlu0 %2631  ;;  %2944 = vrot.lane.b32.xlu1 %v2926_v30, %s6406_s22  ;;  %v8391_v30 = vpop.permute.xlu1 %2804 }
 0x684   :  { %v2642_v8 = vmul.f32 0.0, %v8364_v35 }
 0x686   :  { %v2866_v41 = vmul.f32 %v8355_v1, %v2642_v8  ;;  %v3147_v8 = vmul.f32 %v7708_v18, %v2746_v6  ;;  %v2749_v6 = vmul.f32 0.0, %v8290_v49 }
 0x687   :  { %2956 = vrot.lane.b32.xlu1 %v2932_v25, %s6406_s22  ;;  %v2986_v25 = vmul.f32 %v7695_v17, %v2684_v5  ;;  %v3271_v5 = vmul.f32 %v7719_v40, %v2791_v36 }
 0x688   :  { %2884 = vrot.lane.b32.xlu0 %v2866_v41, %s6405_s21  ;;  %v3052_v41 = vmul.f32 %v7705_v55, %v2711_v23  ;;  %v3150_v23 = vmul.f32 %v7708_v18, %v2749_v6  ;;  %v2809_v6 = vmul.f32 0.0, %v8349_v37 }
 0x68b   :  { %3010 = vrot.lane.b32.xlu1 %v2989_v24, %s6407_s27  ;;  %v8402_v24 = vpop.permute.xlu1 %2817 }
 0x68c   :  { %2896 = vrot.lane.b32.xlu0 %v2872_v2, %s6405_s21  ;;  %v3210_v2 = vmul.f32 %v7715_v52, %v2770_v4  ;;  %v2389_v4 = vld [vmem:[%s10780_s3 + $0x10] sm:$0xff] }
 0x68d   :  { %5844 = vmatmul.mubr.msk.f32.gmra.mrb[4].mxu1 %vm2447_vm12, %v2389_v4 }
 0x68e   :  { %4409 = vmatprep.mubr.f32.mxu1 %v11075_v39 }
 0x68f   :  { %3070 = vrot.lane.b32.xlu1 %v3049_v62, %s6408_s30  ;;  %v2992_v62 = vmul.f32 %v7695_v17, %v2690_v19  ;;  %v8412_v55 = vpop.permute.xlu1 %2825  ;;  %v2586_v17 = vld [vmem:[%s10783_s6 + $0x58] sm:$0xff]  ;;  %v2812_v19 = vmul.f32 0.0, %v8380_v22 }
 0x690   :  { %2950 = vrot.lane.b32.xlu0 %v2929_v32, %s6406_s22  ;;  %v2767_v32 = vmul.f32 0.0, %v8326_v33 }
 0x693   :  { %3167 = vrot.lane.b32.xlu1 %v3147_v8, %s6410_s15  ;;  %v2752_v8 = vmul.f32 0.0, %v8304_v20 }
 0x694   :  { %3004 = vrot.lane.b32.xlu0 %v2986_v25, %s6407_s27  ;;  %v3207_v25 = vmul.f32 %v7715_v52, %v2767_v32 }
 0x697   :  { %3076 = vrot.lane.b32.xlu1 %v3052_v41, %s6408_s30  ;;  %v8428_v41 = vpop.permute.xlu1 %6134 }
 0x698   :  { %3064 = vrot.lane.b32.xlu0 %v3046_v26, %s6408_s30  ;;  %v3153_v26 = vmul.f32 %v7708_v18, %v2752_v8  ;;  %v8436_v36 = vunpack.i.h.bf16 %v8428_v41  ;;  %v2773_v18 = vmul.f32 0.0, %v8324_v10  ;;  %v2794_v8 = vmul.f32 0.0, %v8371_v44 }
 0x69a   :  { %v3343_v32 = vmul.f32 %v8436_v36, %v2812_v19  ;;  %v3213_v4 = vmul.f32 %v7715_v52, %v2773_v18  ;;  %v2815_v19 = vmul.f32 0.0, %v8391_v30  ;;  %v8495_v18 = vld [vmem:[%s10781_s4 + $0x28] sm:$0xff] }
 0x69b   :  { %3233 = vrot.lane.b32.xlu1 %v3210_v2, %s6417_s13  ;;  %v3268_v2 = vmul.f32 %v7719_v40, %v2788_v58 }
 0x69c   :  { %3016 = vrot.lane.b32.xlu0 %v2992_v62, %s6407_s27  ;;  %v8441_v62 = vpop.permute.xlu0 %6139 }
 0x69f   :  { %3294 = vrot.lane.b32.xlu1 %v3271_v5, %s6418_s17  ;;  %v2830_v5 = vmul.f32 0.0, %v8402_v24 }
 0x6a0   :  { %3173 = vrot.lane.b32.xlu0 %v3150_v23, %s6410_s15  ;;  %v3340_v23 = vmul.f32 %v8436_v36, %v2809_v6 }
 0x6a3   :  { %3478 = vperm.xlu1 %6148, %v2586_v17   ;;  %v8450_v17 = vunpack.i.h.bf16 %v8441_v62 }
 0x6a4   :  { %3227 = vrot.lane.b32.xlu0 %v3207_v25, %s6417_s13  ;;  %v2833_v25 = vmul.f32 0.0, %v8359_v57 }
 0x6a5   :  { %v3412_v58 = vmul.f32 %v8450_v17, %v2830_v5  ;;  %v3346_v5 = vmul.f32 %v8436_v36, %v2815_v19 }
 0x6a6   :  { %v3415_v6 = vmul.f32 %v8450_v17, %v2833_v25 }
 0x6a7   :  { %3179 = vrot.lane.b32.xlu1 %v3153_v26, %s6410_s15  ;;  %v3274_v26 = vmul.f32 %v7719_v40, %v2794_v8  ;;  %v8473_v40 = vld [vmem:[%s10781_s4 + $0x18] sm:$0xff] }
 0x6a8   :  { %3288 = vrot.lane.b32.xlu0 %v3268_v2, %s6418_s17  ;;  %6149 = vset.pattern.permute.xlu1 %v11094_v16  ;;  %v2836_v2 = vmul.f32 0.0, %v8412_v55 }
 0x6aa   :  { %v3418_v52 = vmul.f32 %v8450_v17, %v2836_v2 }
 0x6ab   :  { %3366 = vrot.lane.b32.xlu1 %v3343_v32, %s6419_s26  ;;  %v8478_v32 = vld [vmem:[%s10781_s4 + $0x20] sm:$0xff] }
 0x6ac   :  { %3360 = vrot.lane.b32.xlu0 %v3340_v23, %s6419_s26  ;;  %v11107_v23 = vmov 5  }
 0x6af   :  { %3432 = vrot.lane.b32.xlu1 %v3412_v58, %s6420_s2 }
 0x6b0   :  { %3239 = vrot.lane.b32.xlu0 %v3213_v4, %s6417_s13 }
 0x6b3   :  { %3300 = vrot.lane.b32.xlu1 %v3274_v26, %s6418_s17 }
 0x6b4   :  { %3438 = vrot.lane.b32.xlu0 %v3415_v6, %s6420_s2 }
 0x6b7   :  { %3372 = vrot.lane.b32.xlu1 %v3346_v5, %s6419_s26 }
 0x6b8   :  { %3444 = vrot.lane.b32.xlu0 %v3418_v52, %s6420_s2 }
 0x6bb   :  { %3580 = vperm.xlu1 %6149, %v8473_v40  }
 0x6bc   :  { %3584 = vperm.xlu0 %6132, %v8478_v32  }
 0x6bf   :  { %6150 = vset.pattern.permute.xlu1 %v11068_v47 }
 0x6c0   :  { %3652 = vperm.xlu1 %6150, %v8473_v40   ;;  %6151 = vset.pattern.permute.xlu0 %v11095_v21 }
 0x6c1   :  { %3724 = vperm.xlu0 %6151, %v8473_v40  }
 0x6c4   :  { %3656 = vperm.xlu1 %6150, %v8478_v32  }
 0x6c5   :  { %6158 = vset.pattern.permute.xlu0 %v11098_v14 }
 0x6c6   :  { %3934 = vperm.xlu0 %6158, %v8473_v40  }
 0x6c8   :  { %6152 = vset.pattern.permute.xlu1 %v11095_v21 }
 0x6c9   :  { %3728 = vperm.xlu1 %6152, %v8478_v32  }
 0x6ca   :  { %6159 = vset.pattern.permute.xlu0 %v11096_v63 }
 0x6cb   :  { %3796 = vperm.xlu0 %6159, %v8473_v40  }
 0x6cd   :  { %6153 = vset.pattern.permute.xlu1 %v11094_v16 }
 0x6ce   :  { %3588 = vperm.xlu1 %6153, %v8495_v18  }
 0x6cf   :  { %3804 = vperm.xlu0 %6159, %v8495_v18  }
 0x6d2   :  { %6154 = vset.pattern.permute.xlu1 %v11096_v63 }
 0x6d3   :  { %3800 = vperm.xlu1 %6154, %v8478_v32   ;;  %6161 = vset.pattern.permute.xlu0 %v11107_v23 }
 0x6d4   :  { %2715 = vperm.xlu0 %6161, %v8114_v48   ;;  %v8522_v48 = vpop.permute.xlu1 %6144 }
 0x6d7   :  { %6155 = vset.pattern.permute.xlu1 %v11068_v47 }
 0x6d8   :  { %3660 = vperm.xlu1 %6155, %v8495_v18   ;;  %3868 = vperm.xlu0 %6161, %v8473_v40  }
 0x6dc   :  { %6156 = vset.pattern.permute.xlu1 %v11107_v23  ;;  %3876 = vperm.xlu0 %6161, %v8495_v18  }
 0x6dd   :  { %3872 = vperm.xlu1 %6156, %v8478_v32  }
 0x6e0   :  { %6165 = vset.pattern.permute.xlu0 %v11104_v12 }
 0x6e1   :  { %6157 = vset.pattern.permute.xlu1 %v11095_v21  ;;  %4113 = vperm.xlu0 %6165, %v8478_v32  }
 0x6e2   :  { %3732 = vperm.xlu1 %6157, %v8495_v18  }
 0x6e5   :  { %6168 = vset.pattern.permute.xlu0 %v11105_v51 }
 0x6e6   :  { %6160 = vset.pattern.permute.xlu1 %v11098_v14  ;;  %4185 = vperm.xlu0 %6168, %v8478_v32  }
 0x6e7   :  { %3938 = vperm.xlu1 %6160, %v8478_v32  }
 0x6ea   :  { %6172 = vset.pattern.permute.xlu0 %v11100_v46 }
 0x6eb   :  { %6162 = vset.pattern.permute.xlu1 %v11099_v15 }
 0x6ec   :  { %4006 = vperm.xlu1 %6162, %v8473_v40  }
 0x6f0   :  { %4010 = vperm.xlu1 %6162, %v8478_v32  }
 0x6f1   :  { %v8525_v8 = vpop.permute.xlu1 %2890 }
 0x6f2   :  { %11108 = vst [vmem:[#allocation6_spill] sm:$0xff] %v8525_v8 }
 0x6f4   :  { %6163 = vset.pattern.permute.xlu1 %v11098_v14 }
 0x6f5   :  { %v8528_v58 = vpop.permute.xlu1 %2944  ;;  %3942 = vperm.xlu1 %6163, %v8495_v18  }
 0x6f6   :  { %11109 = vst [vmem:[#allocation7_spill] sm:$0xff] %v8528_v58 }
 0x6f9   :  { %6164 = vset.pattern.permute.xlu1 %v11104_v12  ;;  %v8532_v25 = vpop.permute.xlu1 %2956 }
 0x6fa   :  { %11110 = vst [vmem:[#allocation45_spill] sm:$0xff] %v8532_v25  ;;  %v8534_v4 = vpop.permute.xlu0 %2884  ;;  %4109 = vperm.xlu1 %6164, %v8473_v40  }
 0x6fb   :  { %11111 = vst [vmem:[#allocation46_spill] sm:$0xff] %v8534_v4 }
 0x6fd   :  { %v8541_v26 = vpop.permute.xlu1 %3010 }
 0x6fe   :  { %v8537_v19 = vpop.permute.xlu0 %2896  ;;  %6166 = vset.pattern.permute.xlu1 %v11099_v15  ;;  %11113 = vst [vmem:[#allocation48_spill] sm:$0xff] %v8541_v26 }
 0x6ff   :  { %11112 = vst [vmem:[#allocation47_spill] sm:$0xff] %v8537_v19  ;;  %4014 = vperm.xlu1 %6166, %v8495_v18  }
 0x701   :  { %v8547_v6 = vpop.permute.xlu1 %3070 }
 0x702   :  { %v8543_v2 = vpop.permute.xlu0 %2950  ;;  %11115 = vst [vmem:[#allocation50_spill] sm:$0xff] %v8547_v6 }
 0x703   :  { %11114 = vst [vmem:[#allocation49_spill] sm:$0xff] %v8543_v2  ;;  %6167 = vset.pattern.permute.xlu1 %v11105_v51 }
 0x704   :  { %4181 = vperm.xlu1 %6167, %v8473_v40  }
 0x705   :  { %v8555_v39 = vpop.permute.xlu1 %3167 }
 0x706   :  { %v8549_v5 = vpop.permute.xlu0 %3004  ;;  %11118 = vst [vmem:[#allocation53_spill] sm:$0xff] %v8555_v39 }
 0x707   :  { %11116 = vst [vmem:[#allocation51_spill] sm:$0xff] %v8549_v5 }
 0x708   :  { %6169 = vset.pattern.permute.xlu1 %v11104_v12 }
 0x709   :  { %4117 = vperm.xlu1 %6169, %v8495_v18   ;;  %v8561_v14 = vpop.permute.xlu1 %3076 }
 0x70a   :  { %v8553_v52 = vpop.permute.xlu0 %3064  ;;  %11120 = vst [vmem:[#allocation55_spill] sm:$0xff] %v8561_v14 }
 0x70b   :  { %11117 = vst [vmem:[#allocation52_spill] sm:$0xff] %v8553_v52 }
 0x70d   :  { %6170 = vset.pattern.permute.xlu1 %v11105_v51  ;;  %v8568_v12 = vpop.permute.xlu1 %3233 }
 0x70e   :  { %v8558_v15 = vpop.permute.xlu0 %3016  ;;  %4189 = vperm.xlu1 %6170, %v8495_v18   ;;  %11122 = vst [vmem:[#allocation57_spill] sm:$0xff] %v8568_v12 }
 0x70f   :  { %11119 = vst [vmem:[#allocation54_spill] sm:$0xff] %v8558_v15 }
 0x711   :  { %v8573_v51 = vpop.permute.xlu1 %3294 }
 0x712   :  { %6171 = vset.pattern.permute.xlu1 %v11106_v43  ;;  %v8564_v63 = vpop.permute.xlu0 %3173  ;;  %11124 = vst [vmem:[#allocation59_spill] sm:$0xff] %v8573_v51 }
 0x713   :  { %11121 = vst [vmem:[#allocation56_spill] sm:$0xff] %v8564_v63  ;;  %3562 = vperm.xlu1 %6171, %v8478_v32  }
 0x716   :  { %v8570_v21 = vpop.permute.xlu0 %3227 }
 0x717   :  { %3567 = vperm.xlu1 %6171, %v8495_v18   ;;  %11123 = vst [vmem:[#allocation58_spill] sm:$0xff] %v8570_v21 }
 0x71a   :  { %v8575_v23 = vpop.permute.xlu0 %3288 }
 0x71b   :  { %6173 = vset.pattern.permute.xlu1 %v11100_v46  ;;  %11125 = vst [vmem:[#allocation60_spill] sm:$0xff] %v8575_v23 }
 0x71e   :  { %v8579_v47 = vpop.permute.xlu0 %3360 }
 0x71f   :  { %11127 = vst [vmem:[#allocation62_spill] sm:$0xff] %v8579_v47 }
 0x722   :  { %v8577_v16 = vpop.permute.xlu1 %3478  ;;  %v8585_v25 = vpop.permute.xlu0 %3239 }
 0x723   :  { %11126 = vst [vmem:[#allocation61_spill] sm:$0xff] %v8577_v16  ;;  %11130 = vst [vmem:[#allocation65_spill] sm:$0xff] %v8585_v25 }
 0x726   :  { %v8581_v14 = vpop.permute.xlu1 %3179  ;;  %v8589_v12 = vpop.permute.xlu0 %3438 }
 0x727   :  { %11128 = vst [vmem:[#allocation63_spill] sm:$0xff] %v8581_v14  ;;  %11132 = vst [vmem:[#allocation67_spill] sm:$0xff] %v8589_v12 }
 0x72a   :  { %v8583_v15 = vpop.permute.xlu1 %3366  ;;  %v8595_v51 = vpop.permute.xlu0 %3444 }
 0x72b   :  { %11129 = vst [vmem:[#allocation64_spill] sm:$0xff] %v8583_v15  ;;  %11135 = vst [vmem:[#allocation70_spill] sm:$0xff] %v8595_v51 }
 0x72e   :  { %v8587_v19 = vpop.permute.xlu1 %3432 }
 0x72f   :  { %11131 = vst [vmem:[#allocation66_spill] sm:$0xff] %v8587_v19 }
 0x732   :  { %v8591_v63 = vpop.permute.xlu1 %3300 }
 0x733   :  { %11133 = vst [vmem:[#allocation68_spill] sm:$0xff] %v8591_v63 }
 0x736   :  { %v8593_v46 = vpop.permute.xlu1 %3372 }
 0x737   :  { %11134 = vst [vmem:[#allocation69_spill] sm:$0xff] %v8593_v46  ;;  %v8597_v6 = vpop.f32.mrb[0].mxu1 }
 0x738   :  { %v8599_v16 = vpop.f32.mrb[1].mxu1 }
 0x73a   :  { %v8601_v26 = vpop.permute.xlu1 %3580 }
 0x73b   :  { %11136 = vst [vmem:[#allocation71_spill] sm:$0xff] %v8601_v26  ;;  %v3591_v14 = vmul.f32 0.0, %v8601_v26  ;;  %v8604_v15 = vpop.f32.mrb[2].mxu1  ;;  %v8606_v25 = vpop.permute.xlu0 %3584 }
 0x73c   :  { %11137 = vst [vmem:[#allocation72_spill] sm:$0xff] %v8606_v25  ;;  %v3594_v12 = vmul.f32 0.0, %v8606_v25  ;;  %v8609_v2 = vpop.f32.mrb[3].mxu1 }
 0x73d   :  { %3609 = vrot.lane.b32.xlu0 %v3591_v14, %s6389_s28 }
 0x73e   :  { %3615 = vrot.lane.b32.xlu1 %v3594_v12, %s6389_s28 }
 0x73f   :  { %v8613_v51 = vpop.permute.xlu1 %3652 }
 0x740   :  { %11138 = vst [vmem:[#allocation73_spill] sm:$0xff] %v8613_v51  ;;  %v3663_v46 = vmul.f32 0.0, %v8613_v51  ;;  %v8616_v63 = vpop.permute.xlu0 %3724 }
 0x741   :  { %11139 = vst [vmem:[#allocation74_spill] sm:$0xff] %v8616_v63  ;;  %v3735_v26 = vmul.f32 0.0, %v8616_v63 }
 0x742   :  { %3681 = vrot.lane.b32.xlu0 %v3663_v46, %s6391_s29 }
 0x743   :  { %v8620_v8 = vpop.permute.xlu1 %3656 }
 0x744   :  { %11140 = vst [vmem:[#allocation75_spill] sm:$0xff] %v8620_v8  ;;  %v3666_v25 = vmul.f32 0.0, %v8620_v8 }
 0x745   :  { %v8623_v19 = vpop.permute.xlu0 %3934 }
 0x746   :  { %11141 = vst [vmem:[#allocation76_spill] sm:$0xff] %v8623_v19  ;;  %3753 = vrot.lane.b32.xlu0 %v3735_v26, %s6394_s9  ;;  %3687 = vrot.lane.b32.xlu1 %v3666_v25, %s6391_s29 }
 0x748   :  { %v8627_v14 = vpop.permute.xlu1 %3728 }
 0x749   :  { %11142 = vst [vmem:[#allocation77_spill] sm:$0xff] %v8627_v14  ;;  %v3738_v12 = vmul.f32 0.0, %v8627_v14 }
 0x74a   :  { %4079 = vperm.xlu0 %6172, %v8473_v40   ;;  %v8631_v51 = vpop.permute.xlu0 %3796 }
 0x74b   :  { %11143 = vst [vmem:[#allocation78_spill] sm:$0xff] %v8631_v51  ;;  %3759 = vrot.lane.b32.xlu1 %v3738_v12, %s6394_s9  ;;  %v3807_v46 = vmul.f32 0.0, %v8631_v51  ;;  %v3947_v12 = vmul.f32 0.0, %v8623_v19 }
 0x74d   :  { %v8635_v63 = vpop.permute.xlu1 %3588 }
 0x74e   :  { %11144 = vst [vmem:[#allocation79_spill] sm:$0xff] %v8635_v63  ;;  %3825 = vrot.lane.b32.xlu0 %v3807_v46, %s10966_s10  ;;  %v3597_v25 = vmul.f32 0.0, %v8635_v63 }
 0x74f   :  { %4083 = vperm.xlu1 %6173, %v8478_v32  }
 0x752   :  { %v8640_v26 = vpop.permute.xlu1 %3800 }
 0x753   :  { %11145 = vst [vmem:[#allocation80_spill] sm:$0xff] %v8640_v26  ;;  %3621 = vrot.lane.b32.xlu1 %v3597_v25, %s6389_s28  ;;  %v3810_v14 = vmul.f32 0.0, %v8640_v26 }
 0x754   :  { %6175 = vset.pattern.permute.xlu1 %v11106_v43 }
 0x757   :  { %3831 = vrot.lane.b32.xlu1 %v3810_v14, %s10966_s10  ;;  %v8647_v8 = vpop.permute.xlu1 %3660 }
 0x758   :  { %11146 = vst [vmem:[#allocation81_spill] sm:$0xff] %v8647_v8  ;;  %v3669_v46 = vmul.f32 0.0, %v8647_v8 }
 0x75a   :  { %3693 = vrot.lane.b32.xlu0 %v3669_v46, %s6391_s29 }
 0x75b   :  { %3967 = vrot.lane.b32.xlu1 %v3947_v12, %s6397_s12 }
 0x75c   :  { %v8652_v32 = vpop.permute.xlu1 %3872 }
 0x75d   :  { %11147 = vst [vmem:[#allocation82_spill] sm:$0xff] %v8652_v32 }
 0x761   :  { %v8654_v63 = vpop.permute.xlu1 %3732 }
 0x762   :  { %11148 = vst [vmem:[#allocation83_spill] sm:$0xff] %v8654_v63  ;;  %v3741_v25 = vmul.f32 0.0, %v8654_v63  ;;  %v8669_v63 = vpop.permute.xlu0 %3804 }
 0x763   :  { %11152 = vst [vmem:[#allocation87_spill] sm:$0xff] %v8669_v63 }
 0x764   :  { %3765 = vrot.lane.b32.xlu1 %v3741_v25, %s6394_s9  ;;  %v3813_v25 = vmul.f32 0.0, %v8669_v63 }
 0x766   :  { %v8658_v26 = vpop.permute.xlu1 %3938 }
 0x767   :  { %11149 = vst [vmem:[#allocation84_spill] sm:$0xff] %v8658_v26  ;;  %v3950_v14 = vmul.f32 0.0, %v8658_v26 }
 0x769   :  { %3973 = vrot.lane.b32.xlu0 %v3950_v14, %s6397_s12  ;;  %v2390_v14 = vld [vmem:[%s10783_s6 + $0x38] sm:$0xff] }
 0x76b   :  { %v8662_v19 = vpop.permute.xlu1 %4006 }
 0x76c   :  { %11150 = vst [vmem:[#allocation85_spill] sm:$0xff] %v8662_v19  ;;  %v4019_v46 = vmul.f32 0.0, %v8662_v19 }
 0x76e   :  { %4039 = vrot.lane.b32.xlu0 %v4019_v46, %s6421_s23  ;;  %v2392_v46 = vld [vmem:[%s10783_s6 + $0x48] sm:$0xff] }
 0x76f   :  { %v8666_v12 = vpop.permute.xlu1 %4010 }
 0x770   :  { %11151 = vst [vmem:[#allocation86_spill] sm:$0xff] %v8666_v12  ;;  %v4022_v8 = vmul.f32 0.0, %v8666_v12  ;;  %v2535_v12 = vpop.f32.mrb[4].mxu1 }
 0x772   :  { %4087 = vperm.xlu0 %6172, %v8495_v18   ;;  %4045 = vrot.lane.b32.xlu1 %v4022_v8, %s6421_s23  ;;  %v6316_v18 = vld [vmem:[%s10781_s4 + $0x8] sm:$0xff]  ;;  %v8685_v8 = vpop.f32.mrb[5].mxu1 }
 0x774   :  { %v8790_v58 = vpop.permute.xlu1 %3942 }
 0x776   :  { %6174 = vset.pattern.permute.xlu0 %v11106_v43  ;;  %3837 = vrot.lane.b32.xlu1 %v3813_v25, %s10966_s10  ;;  %v2585_v43 = vld [vmem:[%s10783_s6 + $0x50] sm:$0xff]  ;;  %v2587_v25 = vld [vmem:[%s10783_s6 + $0x60] sm:$0xff] }
 0x777   :  { %2395 = vperm.xlu0 %6174, %v2390_v14   ;;  %v2716_v14 = vpop.permute.xlu0 %2715 }
 0x77b   :  { %2405 = vperm.xlu0 %6174, %v2392_v46   ;;  %v8694_v46 = vpop.permute.xlu0 %3868 }
 0x77c   :  { %11153 = vst [vmem:[#allocation88_spill] sm:$0xff] %v8694_v46 }
 0x77f   :  { %2613 = vperm.xlu0 %6174, %v6316_v18   ;;  %v8696_v63 = vpop.permute.xlu0 %3876 }
 0x780   :  { %11154 = vst [vmem:[#allocation89_spill] sm:$0xff] %v8696_v63 }
 0x783   :  { %3473 = vperm.xlu0 %6174, %v2585_v43   ;;  %v8698_v18 = vpop.permute.xlu0 %4113 }
 0x784   :  { %11155 = vst [vmem:[#allocation90_spill] sm:$0xff] %v8698_v18 }
 0x787   :  { %3483 = vperm.xlu0 %6174, %v2587_v25   ;;  %v8700_v26 = vpop.permute.xlu0 %4185 }
 0x788   :  { %11156 = vst [vmem:[#allocation91_spill] sm:$0xff] %v8700_v26 }
 0x78b   :  { %3557 = vperm.xlu0 %6174, %v8473_v40  }
 0x7af   :  { %v8702_v32 = vpop.permute.xlu0 %3609 }
 0x7b0   :  { %11157 = vst [vmem:[#allocation92_spill] sm:$0xff] %v8702_v32 }
 0x7b4   :  { %v8704_v19 = vpop.permute.xlu0 %3681 }
 0x7b5   :  { %11158 = vst [vmem:[#allocation93_spill] sm:$0xff] %v8704_v19 }
 0x7b8   :  { %v8706_v43 = vpop.permute.xlu0 %3753 }
 0x7b9   :  { %11159 = vst [vmem:[#allocation94_spill] sm:$0xff] %v8706_v43 }
 0x7c9   :  { %v8708_v51 = vpop.permute.xlu0 %4079 }
 0x7ca   :  { %11160 = vst [vmem:[#allocation95_spill] sm:$0xff] %v8708_v51 }
 0x7cd   :  { %v8710_v25 = vpop.permute.xlu0 %3825 }
 0x7ce   :  { %11161 = vst [vmem:[#allocation96_spill] sm:$0xff] %v8710_v25 }
 0x7d1   :  { %v8712_v40 = vpop.permute.xlu0 %3693 }
 0x7d2   :  { %11162 = vst [vmem:[#allocation97_spill] sm:$0xff] %v8712_v40 }
 0x7db   :  { %v8714_v47 = vpop.permute.xlu0 %3973 }
 0x7dc   :  { %11163 = vst [vmem:[#allocation98_spill] sm:$0xff] %v8714_v47 }
 0x7e0   :  { %v8716_v46 = vpop.permute.xlu0 %4039 }
 0x7e1   :  { %11164 = vst [vmem:[#allocation99_spill] sm:$0xff] %v8716_v46 }
 0x7f1   :  { %v8718_v63 = vpop.permute.xlu0 %4087 }
 0x7f2   :  { %11165 = vst [vmem:[#allocation100_spill] sm:$0xff] %v8718_v63 }
 0x7f6   :  { %v2396_v23 = vpop.permute.xlu0 %2395 }
 0x7f7   :  { %v2524_v21 = vadd.f32 %v8597_v6, %v2396_v23  ;;  %v2526_v32 = vadd.f32 %v8599_v16, %v2396_v23  ;;  %v8727_v16 = vadd.f32 %v8604_v15, %v8233_v13  ;;  %v8733_v23 = vadd.f32 %v8609_v2, %v8233_v13 }
 0x7f9   :  { %v5845_v19 = vmul.f32 -1.442695, %v2524_v21  ;;  %v5846_v39 = vmul.f32 -1.442695, %v2526_v32  ;;  %v5848_v13 = vmul.f32 -1.442695, %v8733_v23 }
 0x7fa   :  { %v8722_v43 = vpop.permute.xlu0 %2405 }
 0x7fb   :  { %6241 = vpow2.f32 %v5845_v19  ;;  %v2536_v25 = vadd.f32 %v2535_v12, %v8722_v43 }
 0x7fc   :  { %6243 = vpow2.f32 %v5846_v39 }
 0x7fd   :  { %v5849_v40 = vmul.f32 -1.442695, %v2536_v25 }
 0x7ff   :  { %6245 = vpow2.f32 %v5849_v40  ;;  %v11168_v40 = vld [vmem:[#allocation24_spill] sm:$0xff] }
 0x805   :  { %v6242_v51 = vpop.eup %6241 }
 0x806   :  { %v6244_v47 = vpop.eup %6243  ;;  %v2558_v18 = vadd.f32 1.0, %v6242_v51 }
 0x807   :  { %v2559_v46 = vadd.f32 1.0, %v6244_v47  ;;  %v8738_v47 = vunpack.i.h.bf16 %v8351_v50 }
 0x808   :  { %6247 = vrcp.f32 %v2558_v18  ;;  %v5847_v18 = vmul.f32 -1.442695, %v8727_v16 }
 0x809   :  { %6249 = vrcp.f32 %v2559_v46  ;;  %v6246_v63 = vpop.eup %6245  ;;  %v8754_v2 = vsel %vm1371_vm11, %v8355_v1, %v8738_v47 }
 0x80a   :  { %v2562_v51 = vadd.f32 1.0, %v6246_v63  ;;  %v11167_v63 = vld [vmem:[#allocation43_spill] sm:$0xff] }
 0x80c   :  { %6251 = vrcp.f32 %v2562_v51  ;;  %v11169_v51 = vld [vmem:[#allocation31_spill] sm:$0xff] }
 0x80d   :  { %6253 = vpow2.f32 %v5847_v18 }
 0x80e   :  { %6255 = vpow2.f32 %v5848_v13 }
 0x812   :  { %v6248_v6 = vpop.eup %6247 }
 0x813   :  { %v6250_v26 = vpop.eup %6249  ;;  %v8729_v39 = vmul.f32 %v6248_v6, %v2524_v21 }
 0x814   :  { %v8735_v19 = vmul.f32 %v6250_v26, %v2526_v32 }
 0x815   :  { %11166 = vst [vmem:[#allocation101_spill] sm:$0xff] %v8729_v39  ;;  %v2726_v12 = vmul.f32 %v2716_v14, %v8729_v39  ;;  %v2664_v46 = vmul.f32 %v8292_v27, %v8729_v39  ;;  %v2643_v21 = vmul.f32 %v8364_v35, %v8729_v39  ;;  %v2765_v26 = vmul.f32 %v8326_v33, %v8729_v39 }
 0x816   :  { %v2727_v15 = vmul.f32 %v2716_v14, %v8735_v19  ;;  %v2685_v14 = vmul.f32 %v8301_v54, %v8729_v39  ;;  %v2786_v1 = vmul.f32 %v8347_v53, %v8729_v39  ;;  %v2807_v18 = vmul.f32 %v8349_v37, %v8729_v39  ;;  %v6252_v13 = vpop.eup %6251 }
 0x817   :  { %3112 = vrot.lane.b32.xlu0 %v2726_v12, %s6409_s14  ;;  %v2927_v50 = vmul.f32 %v2664_v46, %v11167_v63  ;;  %v2867_v32 = vmul.f32 %v8754_v2, %v2643_v21  ;;  %v3205_v6 = vmul.f32 %v11168_v40, %v2765_v26  ;;  %v2706_v46 = vmul.f32 %v8313_v28, %v8729_v39 }
 0x818   :  { %3114 = vrot.lane.b32.xlu1 %v2727_v15, %s6409_s14  ;;  %v2987_v12 = vmul.f32 %v2685_v14, %v11169_v51  ;;  %v11170_v15 = vld [vmem:[#allocation30_spill] sm:$0xff]  ;;  %v8778_v14 = vunpack.i.l.bf16 %v8428_v41  ;;  %v2644_v52 = vmul.f32 %v8364_v35, %v8735_v19  ;;  %v11172_v41 = vld [vmem:[#allocation25_spill] sm:$0xff] }
 0x819   :  { %v3266_v21 = vmul.f32 %v11170_v15, %v2786_v1 }
 0x81a   :  { %v3338_v1 = vmul.f32 %v8778_v14, %v2807_v18  ;;  %v8800_v18 = vunpack.i.l.bf16 %v8441_v62 }
 0x81b   :  { %2946 = vrot.lane.b32.xlu0 %v2927_v50, %s6406_s22  ;;  %v11171_v50 = vld [vmem:[#allocation32_spill] sm:$0xff] }
 0x81c   :  { %2886 = vrot.lane.b32.xlu1 %v2867_v32, %s6405_s21  ;;  %v3047_v26 = vmul.f32 %v2706_v46, %v11171_v50  ;;  %v2744_v32 = vmul.f32 %v8321_v3, %v8729_v39  ;;  %v8788_v46 = vunpack.i.h.bf16 %v8522_v48 }
 0x81e   :  { %v3145_v4 = vmul.f32 %v11172_v41, %v2744_v32  ;;  %v2686_v32 = vmul.f32 %v8301_v54, %v8735_v19  ;;  %v8820_v54 = vpop.permute.xlu1 %4109 }
 0x81f   :  { %3223 = vrot.lane.b32.xlu0 %v3205_v6, %s6417_s13  ;;  %v6254_v6 = vpop.eup %6253 }
 0x820   :  { %3006 = vrot.lane.b32.xlu1 %v2987_v12, %s6407_s27  ;;  %v8782_v12 = vmul.f32 %v6252_v13, %v2536_v25  ;;  %v6256_v5 = vpop.eup %6255  ;;  %v8797_v25 = vunpack.i.l.bf16 %v8522_v48  ;;  %v2560_v35 = vadd.f32 1.0, %v6254_v6  ;;  %v2665_v48 = vmul.f32 %v8292_v27, %v8735_v19  ;;  %v11175_v6 = vld [vmem:[#allocation42_spill] sm:$0xff] }
 0x821   :  { %v2561_v13 = vadd.f32 1.0, %v6256_v5  ;;  %v11174_v5 = vld [vmem:[#allocation21_spill] sm:$0xff]  ;;  %v2707_v27 = vmul.f32 %v8313_v28, %v8735_v19  ;;  %v2787_v28 = vmul.f32 %v8347_v53, %v8735_v19 }
 0x822   :  { %v8814_v62 = vsel %vm1403_vm2, %v8797_v25, %v8788_v46  ;;  %6257 = vrcp.f32 %v2560_v35 }
 0x823   :  { %3284 = vrot.lane.b32.xlu0 %v3266_v21, %s6418_s17  ;;  %v2828_v21 = vmul.f32 %v8402_v24, %v8729_v39  ;;  %v2628_v39 = vmul.f32 %v8237_v34, %v8782_v12  ;;  %6259 = vrcp.f32 %v2561_v13  ;;  %v2766_v34 = vmul.f32 %v8326_v33, %v8735_v19  ;;  %v8834_v13 = vpop.permute.xlu1 %4014  ;;  %v11178_v33 = vld [vmem:[#allocation22_spill] sm:$0xff] }
 0x824   :  { %3066 = vrot.lane.b32.xlu1 %v3047_v26, %s6408_s30  ;;  %v2868_v26 = vmul.f32 %v8738_v47, %v2644_v52  ;;  %v2988_v52 = vmul.f32 %v11174_v5, %v2686_v32  ;;  %v11177_v32 = vld [vmem:[#allocation28_spill] sm:$0xff] }
 0x827   :  { %3356 = vrot.lane.b32.xlu0 %v3338_v1, %s6419_s26  ;;  %v3410_v1 = vmul.f32 %v8800_v18, %v2828_v21  ;;  %v2928_v21 = vmul.f32 %v11175_v6, %v2665_v48  ;;  %v8848_v53 = vpop.permute.xlu1 %4181 }
 0x828   :  { %3163 = vrot.lane.b32.xlu1 %v3145_v4, %s6410_s15  ;;  %v8818_v4 = vmul.f32 %v8814_v62, %v2628_v39  ;;  %v11176_v39 = vld [vmem:[#allocation35_spill] sm:$0xff] }
 0x829   :  { %v3048_v35 = vmul.f32 %v11176_v39, %v2707_v27 }
 0x82a   :  { %11173 = vst [vmem:[#allocation43_spill] sm:$0xff] %v8818_v4  ;;  %v2808_v4 = vmul.f32 %v8349_v37, %v8735_v19  ;;  %v8862_v37 = vsel %vm3333_vm4, %v8778_v14, %v8436_v36  ;;  %vm3446_vm4 = vcmask 965632  }
 0x82b   :  { %2888 = vrot.lane.b32.xlu0 %v2868_v26, %s6405_s21  ;;  %v2745_v26 = vmul.f32 %v8321_v3, %v8735_v19 }
 0x82c   :  { %3428 = vrot.lane.b32.xlu1 %v3410_v1, %s6420_s2  ;;  %v3206_v1 = vmul.f32 %v2766_v34, %v11177_v32  ;;  %v6258_v27 = vpop.eup %6257 }
 0x82d   :  { %v3146_v48 = vmul.f32 %v2745_v26, %v11178_v33  ;;  %v6260_v34 = vpop.eup %6259 }
 0x82f   :  { %3008 = vrot.lane.b32.xlu0 %v2988_v52, %s6407_s27  ;;  %v2829_v52 = vmul.f32 %v8402_v24, %v8735_v19  ;;  %v8857_v24 = vmul.f32 %v6258_v27, %v8727_v16 }
 0x830   :  { %2948 = vrot.lane.b32.xlu1 %v2928_v21, %s6406_s22  ;;  %v11179_v21 = vld [vmem:[#allocation33_spill] sm:$0xff] }
 0x831   :  { %v3267_v3 = vmul.f32 %v2787_v28, %v11179_v21  ;;  %v3339_v28 = vmul.f32 %v8862_v37, %v2808_v4  ;;  %v2728_v16 = vmul.f32 %v8274_v0, %v8857_v24  ;;  %v2646_v36 = vmul.f32 %v8239_v45, %v8857_v24 }
 0x832   :  { %v2667_v4 = vmul.f32 %v8243_v31, %v8857_v24 }
 0x833   :  { %3068 = vrot.lane.b32.xlu0 %v3048_v35, %s6408_s30  ;;  %v8854_v35 = vsel %vm3405_vm14, %v8800_v18, %v8450_v17  ;;  %v8871_v17 = vadd.f32 %v8685_v8, %v8722_v43  ;;  %v2870_v43 = vmul.f32 %v8754_v2, %v2646_v36 }
 0x834   :  { %3225 = vrot.lane.b32.xlu1 %v3206_v1, %s6417_s13  ;;  %v3411_v26 = vmul.f32 %v8854_v35, %v2829_v52  ;;  %v8865_v1 = vmul.f32 %v6260_v34, %v8733_v23  ;;  %v2688_v52 = vmul.f32 %v8247_v9, %v8857_v24  ;;  %v2930_v27 = vmul.f32 %v2667_v4, %v11167_v63 }
 0x835   :  { %v5850_v8 = vmul.f32 -1.442695, %v8871_v17 }
 0x836   :  { %v2729_v23 = vmul.f32 %v8274_v0, %v8865_v1  ;;  %v2990_v34 = vmul.f32 %v2688_v52, %v11169_v51 }
 0x837   :  { %3165 = vrot.lane.b32.xlu0 %v3146_v48, %s6410_s15  ;;  %v8878_v48 = vpop.permute.xlu1 %4117  ;;  %6261 = vpow2.f32 %v5850_v8 }
 0x838   :  { %3286 = vrot.lane.b32.xlu1 %v3267_v3, %s6418_s17  ;;  %v2768_v3 = vmul.f32 %v8317_v61, %v8857_v24 }
 0x83b   :  { %3430 = vrot.lane.b32.xlu0 %v3411_v26, %s6420_s2  ;;  %v8894_v0 = vpop.permute.xlu1 %4189  ;;  %v2709_v26 = vmul.f32 %v8259_v59, %v8857_v24 }
 0x83c   :  { %3358 = vrot.lane.b32.xlu1 %v3339_v28, %s6419_s26  ;;  %v3208_v28 = vmul.f32 %v11168_v40, %v2768_v3 }
 0x83d   :  { %v3050_v36 = vmul.f32 %v2709_v26, %v11171_v50  ;;  %v2647_v26 = vmul.f32 %v8239_v45, %v8865_v1 }
 0x83f   :  { %3116 = vrot.lane.b32.xlu0 %v2728_v16, %s6409_s14  ;;  %v2789_v16 = vmul.f32 %v8333_v7, %v8857_v24  ;;  %v8908_v4 = vpop.permute.xlu1 %3562 }
 0x840   :  { %3118 = vrot.lane.b32.xlu1 %v2729_v23, %s6409_s14  ;;  %v2747_v23 = vmul.f32 %v8290_v49, %v8857_v24 }
 0x841   :  { %v3269_v8 = vmul.f32 %v11170_v15, %v2789_v16  ;;  %v6262_v3 = vpop.eup %6261 }
 0x842   :  { %v3148_v52 = vmul.f32 %v11172_v41, %v2747_v23  ;;  %v2563_v16 = vadd.f32 1.0, %v6262_v3  ;;  %v2668_v23 = vmul.f32 %v8243_v31, %v8865_v1  ;;  %v2710_v31 = vmul.f32 %v8259_v59, %v8865_v1 }
 0x843   :  { %2892 = vrot.lane.b32.xlu0 %v2870_v43, %s6405_s21  ;;  %v2810_v43 = vmul.f32 %v8380_v22, %v8857_v24 }
 0x844   :  { %2952 = vrot.lane.b32.xlu1 %v2930_v27, %s6406_s22  ;;  %v2831_v27 = vmul.f32 %v8359_v57, %v8857_v24  ;;  %6263 = vrcp.f32 %v2563_v16  ;;  %v2931_v45 = vmul.f32 %v11175_v6, %v2668_v23  ;;  %v2748_v16 = vmul.f32 %v8290_v49, %v8865_v1 }
 0x846   :  { %v3149_v23 = vmul.f32 %v2748_v16, %v11178_v33 }
 0x847   :  { %3012 = vrot.lane.b32.xlu0 %v2990_v34, %s6407_s27  ;;  %v3341_v34 = vmul.f32 %v8778_v14, %v2810_v43  ;;  %v2689_v43 = vmul.f32 %v8247_v9, %v8865_v1 }
 0x848   :  { %3229 = vrot.lane.b32.xlu1 %v3208_v28, %s6417_s13  ;;  %v8922_v28 = vpop.permute.xlu1 %3567 }
 0x84b   :  { %3072 = vrot.lane.b32.xlu0 %v3050_v36, %s6408_s30  ;;  %v3413_v36 = vmul.f32 %v8800_v18, %v2831_v27  ;;  %v2991_v27 = vmul.f32 %v11174_v5, %v2689_v43 }
 0x84c   :  { %3290 = vrot.lane.b32.xlu1 %v3269_v8, %s6418_s17  ;;  %v2871_v8 = vmul.f32 %v8738_v47, %v2647_v26  ;;  %v8936_v3 = vpop.permute.xlu1 %3615 }
 0x84f   :  { %3169 = vrot.lane.b32.xlu0 %v3148_v52, %s6410_s15  ;;  %v2769_v52 = vmul.f32 %v8317_v61, %v8865_v1  ;;  %v3051_v61 = vmul.f32 %v11176_v39, %v2710_v31 }
 0x850   :  { %3362 = vrot.lane.b32.xlu1 %v3341_v34, %s6419_s26  ;;  %v2790_v34 = vmul.f32 %v8333_v7, %v8865_v1  ;;  %v8946_v26 = vpop.permute.xlu1 %3687  ;;  %v2832_v7 = vmul.f32 %v8359_v57, %v8865_v1  ;;  %v2730_v57 = vmul.f32 %v8280_v60, %v8782_v12 }
 0x851   :  { %v3209_v9 = vmul.f32 %v2769_v52, %v11177_v32 }
 0x852   :  { %v3270_v59 = vmul.f32 %v2790_v34, %v11179_v21  ;;  %v3414_v52 = vmul.f32 %v8854_v35, %v2832_v7  ;;  %v2712_v34 = vmul.f32 %v8266_v11, %v8782_v12 }
 0x853   :  { %3434 = vrot.lane.b32.xlu0 %v3413_v36, %s6420_s2  ;;  %v2811_v36 = vmul.f32 %v8380_v22, %v8865_v1 }
 0x854   :  { %2894 = vrot.lane.b32.xlu1 %v2871_v8, %s6405_s21  ;;  %v6264_v8 = vpop.eup %6263  ;;  %v8960_v43 = vpop.permute.xlu1 %3759 }
 0x855   :  { %v3342_v49 = vmul.f32 %v8862_v37, %v2811_v36  ;;  %v2771_v36 = vmul.f32 %v8324_v10, %v8782_v12 }
 0x857   :  { %2954 = vrot.lane.b32.xlu0 %v2931_v45, %s6406_s22  ;;  %v8965_v45 = vmul.f32 %v6264_v8, %v8871_v17  ;;  %v2649_v17 = vmul.f32 %v8241_v38, %v8782_v12  ;;  %v3211_v7 = vmul.f32 %v11168_v40, %v2771_v36  ;;  %v2834_v8 = vmul.f32 %v8412_v55, %v8782_v12  ;;  %v3499_v36 = vld [vmem:[%s10783_s6 + $0x70] sm:$0xff] }
 0x858   :  { %3014 = vrot.lane.b32.xlu1 %v2991_v27, %s6407_s27  ;;  %v8969_v22 = vpop.permute.xlu1 %4083  ;;  %v2670_v27 = vmul.f32 %v8245_v42, %v8782_v12 }
 0x859   :  { %v2731_v31 = vmul.f32 %v8280_v60, %v8965_v45  ;;  %v2873_v16 = vmul.f32 %v8754_v2, %v2649_v17  ;;  %v3053_v60 = vmul.f32 %v2712_v34, %v11171_v50  ;;  %v2751_v34 = vmul.f32 %v8304_v20, %v8965_v45 }
 0x85b   :  { %3231 = vrot.lane.b32.xlu0 %v3209_v9, %s6417_s13  ;;  %v2933_v9 = vmul.f32 %v2670_v27, %v11167_v63 }
 0x85c   :  { %3074 = vrot.lane.b32.xlu1 %v3051_v61, %s6408_s30  ;;  %v8985_v61 = vpop.permute.xlu1 %3621 }
 0x85f   :  { %3292 = vrot.lane.b32.xlu0 %v3270_v59, %s6418_s17  ;;  %v2691_v59 = vmul.f32 %v8250_v29, %v8782_v12 }
 0x860   :  { %3171 = vrot.lane.b32.xlu1 %v3149_v23, %s6410_s15  ;;  %v2750_v23 = vmul.f32 %v8304_v20, %v8782_v12  ;;  %v8999_v2 = vpop.permute.xlu1 %3831 }
 0x861   :  { %v2993_v63 = vmul.f32 %v2691_v59, %v11169_v51  ;;  %v9008_v51 = vpop.permute.xlu0 %2613 }
 0x862   :  { %v3151_v50 = vmul.f32 %v11172_v41, %v2750_v23  ;;  %v2813_v41 = vmul.f32 %v8391_v30, %v8782_v12  ;;  %v3953_v23 = vmul.f32 0.0, %v8790_v58 }
 0x863   :  { %3364 = vrot.lane.b32.xlu0 %v3342_v49, %s6419_s26  ;;  %v2792_v49 = vmul.f32 %v8371_v44, %v8782_v12 }
 0x864   :  { %3436 = vrot.lane.b32.xlu1 %v3414_v52, %s6420_s2  ;;  %v3416_v52 = vmul.f32 %v8800_v18, %v2834_v8  ;;  %v9015_v40 = vpop.permute.xlu1 %3967  ;;  %v2692_v18 = vmul.f32 %v8250_v29, %v8965_v45  ;;  %v2713_v29 = vmul.f32 %v8266_v11, %v8965_v45  ;;  %v2835_v8 = vmul.f32 %v8412_v55, %v8965_v45 }
 0x865   :  { %v3272_v27 = vmul.f32 %v11170_v15, %v2792_v49 }
 0x866   :  { %v2994_v12 = vmul.f32 %v11174_v5, %v2692_v18  ;;  %v2793_v5 = vmul.f32 %v8371_v44, %v8965_v45  ;;  %v3054_v20 = vmul.f32 %v11176_v39, %v2713_v29  ;;  %v4122_v29 = vmul.f32 0.0, %v8820_v54 }
 0x867   :  { %3120 = vrot.lane.b32.xlu0 %v2730_v57, %s6409_s14  ;;  %v2650_v57 = vmul.f32 %v8241_v38, %v8965_v45  ;;  %v3344_v38 = vmul.f32 %v8778_v14, %v2813_v41 }
 0x868   :  { %3122 = vrot.lane.b32.xlu1 %v2731_v31, %s6409_s14  ;;  %v9022_v31 = vpop.permute.xlu0 %3473  ;;  %v9031_v15 = vpop.permute.xlu1 %3765  ;;  %v3273_v59 = vmul.f32 %v2793_v5, %v11179_v21 }
 0x869   :  { %v2874_v17 = vmul.f32 %v8738_v47, %v2650_v57  ;;  %v4025_v57 = vmul.f32 0.0, %v8834_v13 }
 0x86b   :  { %2958 = vrot.lane.b32.xlu0 %v2933_v9, %s6406_s22  ;;  %v2671_v9 = vmul.f32 %v8245_v42, %v8965_v45 }
 0x86c   :  { %2898 = vrot.lane.b32.xlu1 %v2873_v16, %s6405_s21  ;;  %v9040_v14 = vpop.permute.xlu0 %3483  ;;  %v9043_v42 = vpop.permute.xlu1 %4045  ;;  %v3152_v16 = vmul.f32 %v2751_v34, %v11178_v33  ;;  %v4194_v34 = vmul.f32 0.0, %v8848_v53 }
 0x86d   :  { %v2934_v47 = vmul.f32 %v11175_v6, %v2671_v9  ;;  %v2772_v6 = vmul.f32 %v8324_v10, %v8965_v45  ;;  %v3417_v9 = vmul.f32 %v8854_v35, %v2835_v8  ;;  %v11186_v8 = vld [vmem:[#allocation101_spill] sm:$0xff] }
 0x86f   :  { %3078 = vrot.lane.b32.xlu0 %v3053_v60, %s6408_s30  ;;  %v2814_v60 = vmul.f32 %v8391_v30, %v8965_v45  ;;  %v3212_v44 = vmul.f32 %v2772_v6, %v11177_v32  ;;  %v2621_v30 = vmul.f32 0.0, %v8235_v56  ;;  %v3498_v32 = vld [vmem:[%s10783_s6 + $0x68] sm:$0xff] }
 0x870   :  { %3018 = vrot.lane.b32.xlu1 %v2993_v63, %s6407_s27  ;;  %v9054_v11 = vpop.permute.xlu0 %3557  ;;  %v9059_v33 = vpop.permute.xlu1 %3837 }
 0x871   :  { %v3345_v39 = vmul.f32 %v8862_v37, %v2814_v60  ;;  %v2847_v37 = vmul.f32 %v8797_v25, %v2621_v30 }
 0x873   :  { %3235 = vrot.lane.b32.xlu0 %v3211_v7, %s6417_s13 }
 0x874   :  { %3175 = vrot.lane.b32.xlu1 %v3151_v50, %s6410_s15  ;;  %v11180_v50 = vld [vmem:[#allocation46_spill] sm:$0xff] }
 0x877   :  { %3440 = vrot.lane.b32.xlu0 %v3416_v52, %s6420_s2 }
 0x878   :  { %3296 = vrot.lane.b32.xlu1 %v3272_v27, %s6418_s17  ;;  %v11181_v27 = vld [vmem:[#allocation7_spill] sm:$0xff] }
 0x87b   :  { %2900 = vrot.lane.b32.xlu0 %v2874_v17, %s6405_s21 }
 0x87c   :  { %3368 = vrot.lane.b32.xlu1 %v3344_v38, %s6419_s26 }
 0x87f   :  { %3020 = vrot.lane.b32.xlu0 %v2994_v12, %s6407_s27  ;;  %v11182_v12 = vld [vmem:[#allocation51_spill] sm:$0xff] }
 0x880   :  { %2960 = vrot.lane.b32.xlu1 %v2934_v47, %s6406_s22 }
 0x883   :  { %3177 = vrot.lane.b32.xlu0 %v3152_v16, %s6410_s15 }
 0x884   :  { %3080 = vrot.lane.b32.xlu1 %v3054_v20, %s6408_s30  ;;  %v11183_v20 = vld [vmem:[#allocation52_spill] sm:$0xff] }
 0x887   :  { %3298 = vrot.lane.b32.xlu0 %v3273_v59, %s6418_s17  ;;  %v11184_v59 = vld [vmem:[#allocation91_spill] sm:$0xff] }
 0x888   :  { %3237 = vrot.lane.b32.xlu1 %v3212_v44, %s6417_s13  ;;  %v4197_v60 = vmul.f32 0.0, %v11184_v59 }
 0x889   :  { %v9064_v10 = vpop.permute.xlu0 %3112 }
 0x88a   :  { %v9070_v21 = vpop.permute.xlu1 %3114 }
 0x88b   :  { %3370 = vrot.lane.b32.xlu0 %v3345_v39, %s6419_s26  ;;  %v11185_v39 = vld [vmem:[#allocation90_spill] sm:$0xff]  ;;  %s11219_s26 = smov 48  }
 0x88c   :  { %4259 = vperm.xlu1 %6175, %v3499_v36   ;;  %v4125_v36 = vmul.f32 0.0, %v11185_v39 }
 0x88d   :  { %v2947_v63 = vpop.permute.xlu0 %2946 }
 0x88e   :  { %v2887_v7 = vpop.permute.xlu1 %2886  ;;  %v2962_v41 = vsel %vm1321_vm9, %v11181_v27, %v2947_v63 }
 0x88f   :  { %v2902_v49 = vsel %vm1289_vm8, %v11180_v50, %v2887_v7  ;;  %4254 = vperm.xlu0 %6174, %v3498_v32   ;;  %v2622_v50 = vmul.f32 %v8235_v56, %v11186_v8 }
 0x890   :  { %v2917_v52 = vadd.f32 %v2902_v49, %v2847_v37  ;;  %3979 = vrot.lane.b32.xlu1 %v3953_v23, %s6397_s12  ;;  %v2623_v23 = vmul.f32 %v8235_v56, %v8735_v19  ;;  %v4128_v56 = vmul.f32 0.0, %v8878_v48 }
 0x891   :  { %v9087_v17 = vpop.permute.xlu0 %3223  ;;  %v2848_v19 = vmul.f32 %v8814_v62, %v2622_v50 }
 0x892   :  { %v3007_v18 = vpop.permute.xlu1 %3006  ;;  %v2977_v38 = vadd.f32 %v2962_v41, %v2917_v52  ;;  %v3500_v52 = vld [vmem:[%s10783_s6 + $0x78] sm:$0xff]  ;;  %v2849_v41 = vmul.f32 %v8788_v46, %v2623_v23 }
 0x893   :  { %v3022_v55 = vsel %vm1339_vm10, %v11182_v12, %v3007_v18  ;;  %4051 = vrot.lane.b32.xlu0 %v4025_v57, %s6421_s23 }
 0x894   :  { %3442 = vrot.lane.b32.xlu1 %v3417_v9, %s6420_s2  ;;  %v3037_v16 = vadd.f32 %v3022_v55, %v2977_v38 }
 0x895   :  { %v9095_v47 = vpop.permute.xlu0 %3284 }
 0x896   :  { %v3067_v5 = vpop.permute.xlu1 %3066 }
 0x897   :  { %v3082_v6 = vsel %vm1371_vm11, %v11183_v20, %v3067_v5  ;;  %4214 = vrot.lane.b32.xlu0 %v4194_v34, %s6391_s29 }
 0x898   :  { %v3097_v35 = vadd.f32 %v3082_v6, %v3037_v16  ;;  %4142 = vrot.lane.b32.xlu1 %v4122_v29, %s6389_s28 }
 0x899   :  { %v9103_v44 = vpop.permute.xlu0 %3356 }
 0x89a   :  { %v3164_v30 = vpop.permute.xlu1 %3163  ;;  %v3136_v32 = vadd.f32 %v9064_v10, %v3097_v35 }
 0x89b   :  { %4220 = vrot.lane.b32.xlu0 %v4197_v60, %s6391_s29 }
 0x89c   :  { %v3196_v37 = vadd.f32 %v3164_v30, %v3136_v32  ;;  %4148 = vrot.lane.b32.xlu1 %v4125_v36, %s6389_s28 }
 0x89d   :  { %v2889_v49 = vpop.permute.xlu0 %2888 }
 0x89e   :  { %v3257_v57 = vadd.f32 %v9087_v17, %v3196_v37  ;;  %v3429_v27 = vpop.permute.xlu1 %3428  ;;  %v2903_v38 = vsel %vm1289_vm8, %v2887_v7, %v2889_v49  ;;  %v2919_v12 = vadd.f32 %v2889_v49, %v2849_v41 }
 0x89f   :  { %v2918_v34 = vadd.f32 %v2903_v38, %v2848_v19  ;;  %v11187_v19 = vld [vmem:[#allocation53_spill] sm:$0xff] }
 0x8a0   :  { %v3318_v9 = vadd.f32 %v9095_v47, %v3257_v57  ;;  %4264 = vperm.xlu1 %6175, %v3500_v52  }
 0x8a1   :  { %v3009_v55 = vpop.permute.xlu0 %3008 }
 0x8a2   :  { %v3390_v29 = vadd.f32 %v9103_v44, %v3318_v9  ;;  %v2949_v16 = vpop.permute.xlu1 %2948  ;;  %v3023_v7 = vsel %vm1339_vm10, %v3007_v18, %v3009_v55 }
 0x8a3   :  { %v2963_v20 = vsel %vm1321_vm9, %v2947_v63, %v2949_v16  ;;  %v2979_v6 = vadd.f32 %v2949_v16, %v2919_v12  ;;  %v3124_v63 = vsel %vm1403_vm2, %v9064_v10, %v9070_v21 }
 0x8a4   :  { %v3462_v35 = vadd.f32 %v3429_v27, %v3390_v29  ;;  %v2978_v60 = vadd.f32 %v2963_v20, %v2918_v34  ;;  %4154 = vrot.lane.b32.xlu1 %v4128_v56, %s6389_s28  ;;  %v11189_v20 = vld [vmem:[#allocation60_spill] sm:$0xff] }
 0x8a5   :  { %v3069_v36 = vpop.permute.xlu0 %3068  ;;  %v3039_v32 = vadd.f32 %v3009_v55, %v2979_v6  ;;  %v11188_v55 = vld [vmem:[#allocation58_spill] sm:$0xff] }
 0x8a6   :  { %v3486_v23 = vadd.f32 %v9022_v31, %v3462_v35  ;;  %v3038_v37 = vadd.f32 %v3023_v7, %v2978_v60  ;;  %v3083_v8 = vsel %vm1371_vm11, %v3067_v5, %v3069_v36  ;;  %v3226_v50 = vpop.permute.xlu1 %3225 }
 0x8a7   :  { %v3099_v49 = vadd.f32 %v3069_v36, %v3039_v32  ;;  %v3243_v56 = vsel %vm3241_vm5, %v3226_v50, %v11188_v55  ;;  %v3242_v10 = vsel %vm3241_vm5, %v9087_v17, %v3226_v50  ;;  %v11190_v36 = vld [vmem:[#allocation62_spill] sm:$0xff] }
 0x8a8   :  { %v3098_v52 = vadd.f32 %v3083_v8, %v3038_v37  ;;  %3510 = vrot.lane.b32.xlu1 %v3486_v23, %s6416_s25  ;;  %v2624_v23 = vmul.f32 0.0, %v9008_v51  ;;  %v11191_v50 = vld [vmem:[#allocation66_spill] sm:$0xff] }
 0x8a9   :  { %v3138_v57 = vadd.f32 %v9070_v21, %v3099_v49  ;;  %v3166_v18 = vpop.permute.xlu0 %3165 }
 0x8aa   :  { %v3137_v41 = vadd.f32 %v3124_v63, %v3098_v52  ;;  %v3181_v38 = vsel %vm1435_vm3, %v3164_v30, %v3166_v18  ;;  %v3182_v9 = vsel %vm1435_vm3, %v3166_v18, %v11187_v19  ;;  %v3287_v5 = vpop.permute.xlu1 %3286 }
 0x8ab   :  { %v3198_v12 = vadd.f32 %v3182_v9, %v3138_v57  ;;  %v3304_v30 = vsel %vm3302_vm6, %v3287_v5, %v11189_v20  ;;  %v3303_v35 = vsel %vm3302_vm6, %v9095_v47, %v3287_v5  ;;  %v11192_v9 = vld [vmem:[#allocation6_spill] sm:$0xff] }
 0x8ac   :  { %v3197_v34 = vadd.f32 %v3181_v38, %v3137_v41  ;;  %v2850_v38 = vmul.f32 %v8797_v25, %v2624_v23 }
 0x8ad   :  { %v3259_v29 = vadd.f32 %v3243_v56, %v3198_v12  ;;  %v3431_v21 = vpop.permute.xlu0 %3430  ;;  %v11193_v56 = vld [vmem:[#allocation49_spill] sm:$0xff] }
 0x8ae   :  { %v3258_v16 = vadd.f32 %v3242_v10, %v3197_v34  ;;  %v3359_v6 = vpop.permute.xlu1 %3358  ;;  %v3448_v49 = vsel %vm3446_vm4, %v3431_v21, %v11191_v50  ;;  %v3447_v47 = vsel %vm3446_vm4, %v3429_v27, %v3431_v21 }
 0x8af   :  { %v3320_v60 = vadd.f32 %v3304_v30, %v3259_v29  ;;  %v3376_v32 = vsel %vm3374_vm7, %v3359_v6, %v11190_v36  ;;  %v3375_v17 = vsel %vm3374_vm7, %v9103_v44, %v3359_v6  ;;  %v11194_v29 = vld [vmem:[#allocation48_spill] sm:$0xff]  ;;  %v11195_v6 = vld [vmem:[#allocation50_spill] sm:$0xff] }
 0x8b0   :  { %v3319_v7 = vadd.f32 %v3303_v35, %v3258_v16 }
 0x8b1   :  { %v3392_v37 = vadd.f32 %v3376_v32, %v3320_v60  ;;  %v3117_v8 = vpop.permute.xlu0 %3116  ;;  %v2626_v32 = vmul.f32 %v9008_v51, %v8865_v1 }
 0x8b2   :  { %v3391_v52 = vadd.f32 %v3375_v17, %v3319_v7  ;;  %v3119_v63 = vpop.permute.xlu1 %3118  ;;  %v2625_v17 = vmul.f32 %v9008_v51, %v8857_v24 }
 0x8b3   :  { %v3464_v57 = vadd.f32 %v3448_v49, %v3392_v37 }
 0x8b4   :  { %v3463_v18 = vadd.f32 %v3447_v47, %v3391_v52  ;;  %v2852_v47 = vmul.f32 %v8788_v46, %v2626_v32 }
 0x8b5   :  { %v2893_v41 = vpop.permute.xlu0 %2892  ;;  %v3488_v19 = vadd.f32 %v9022_v31, %v3464_v57 }
 0x8b6   :  { %v2904_v5 = vsel %vm1289_vm8, %v11192_v9, %v2893_v41  ;;  %v2953_v44 = vpop.permute.xlu1 %2952  ;;  %v3487_v12 = vadd.f32 %v9022_v31, %v3463_v18  ;;  %v2851_v18 = vmul.f32 %v8814_v62, %v2625_v17 }
 0x8b7   :  { %v2920_v55 = vadd.f32 %v2904_v5, %v2850_v38  ;;  %3514 = vrot.lane.b32.xlu1 %v3488_v19, %s6416_s25  ;;  %v2964_v34 = vsel %vm1321_vm9, %v11193_v56, %v2953_v44 }
 0x8b8   :  { %3512 = vrot.lane.b32.xlu0 %v3487_v12, %s6416_s25 }
 0x8b9   :  { %v2980_v27 = vadd.f32 %v2964_v34, %v2920_v55  ;;  %v3013_v10 = vpop.permute.xlu0 %3012 }
 0x8ba   :  { %v3024_v21 = vsel %vm1339_vm10, %v11194_v29, %v3013_v10  ;;  %v3230_v16 = vpop.permute.xlu1 %3229  ;;  %v11196_v29 = vld [vmem:[#allocation61_spill] sm:$0xff] }
 0x8bb   :  { %v3040_v20 = vadd.f32 %v3024_v21, %v2980_v27 }
 0x8bd   :  { %v3073_v30 = vpop.permute.xlu0 %3072 }
 0x8be   :  { %v3084_v35 = vsel %vm1371_vm11, %v11195_v6, %v3073_v30  ;;  %v3291_v31 = vpop.permute.xlu1 %3290 }
 0x8bf   :  { %v3100_v60 = vadd.f32 %v3084_v35, %v3040_v20 }
 0x8c1   :  { %v3170_v7 = vpop.permute.xlu0 %3169  ;;  %v3139_v36 = vadd.f32 %v3117_v8, %v3100_v60 }
 0x8c2   :  { %v3363_v23 = vpop.permute.xlu1 %3362 }
 0x8c3   :  { %v3199_v37 = vadd.f32 %v3170_v7, %v3139_v36 }
 0x8c5   :  { %v3260_v50 = vadd.f32 %v3230_v16, %v3199_v37  ;;  %v3435_v49 = vpop.permute.xlu0 %3434 }
 0x8c6   :  { %v2895_v52 = vpop.permute.xlu1 %2894 }
 0x8c7   :  { %v3321_v57 = vadd.f32 %v3291_v31, %v3260_v50  ;;  %v2905_v38 = vsel %vm1289_vm8, %v2893_v41, %v2895_v52  ;;  %v2922_v19 = vadd.f32 %v2895_v52, %v2852_v47  ;;  %v11197_v50 = vld [vmem:[#allocation56_spill] sm:$0xff] }
 0x8c8   :  { %v2921_v5 = vadd.f32 %v2905_v38, %v2851_v18 }
 0x8c9   :  { %v3393_v9 = vadd.f32 %v3363_v23, %v3321_v57  ;;  %v2955_v12 = vpop.permute.xlu0 %2954 }
 0x8ca   :  { %v2965_v1 = vsel %vm1321_vm9, %v2953_v44, %v2955_v12  ;;  %v2982_v55 = vadd.f32 %v2955_v12, %v2922_v19  ;;  %v3015_v56 = vpop.permute.xlu1 %3014  ;;  %v3125_v44 = vsel %vm1403_vm2, %v3117_v8, %v3119_v63  ;;  %v11199_v12 = vld [vmem:[#allocation59_spill] sm:$0xff] }
 0x8cb   :  { %v3465_v24 = vadd.f32 %v3435_v49, %v3393_v9  ;;  %v2981_v51 = vadd.f32 %v2965_v1, %v2921_v5  ;;  %v3025_v34 = vsel %vm1339_vm10, %v3013_v10, %v3015_v56 }
 0x8cc   :  { %v3042_v27 = vadd.f32 %v3015_v56, %v2982_v55 }
 0x8cd   :  { %v3489_v21 = vadd.f32 %v11196_v29, %v3465_v24  ;;  %v3041_v20 = vadd.f32 %v3025_v34, %v2981_v51  ;;  %v3232_v6 = vpop.permute.xlu0 %3231  ;;  %v11200_v24 = vld [vmem:[#allocation64_spill] sm:$0xff] }
 0x8ce   :  { %v3075_v62 = vpop.permute.xlu1 %3074  ;;  %v3244_v18 = vsel %vm3241_vm5, %v3230_v16, %v3232_v6 }
 0x8cf   :  { %v3085_v41 = vsel %vm1371_vm11, %v3073_v30, %v3075_v62  ;;  %v3102_v35 = vadd.f32 %v3075_v62, %v3042_v27  ;;  %3516 = vrot.lane.b32.xlu0 %v3489_v21, %s6416_s25  ;;  %v11198_v30 = vld [vmem:[#allocation57_spill] sm:$0xff] }
 0x8d0   :  { %v3101_v60 = vadd.f32 %v3085_v41, %v3041_v20  ;;  %v3245_v38 = vsel %vm3241_vm5, %v3232_v6, %v11198_v30  ;;  %v11201_v6 = vld [vmem:[#allocation67_spill] sm:$0xff]  ;;  %v11205_v30 = vld [vmem:[#allocation54_spill] sm:$0xff] }
 0x8d1   :  { %v3141_v36 = vadd.f32 %v3119_v63, %v3102_v35  ;;  %v3293_v32 = vpop.permute.xlu0 %3292 }
 0x8d2   :  { %v3172_v17 = vpop.permute.xlu1 %3171  ;;  %v3140_v37 = vadd.f32 %v3125_v44, %v3101_v60  ;;  %v3305_v63 = vsel %vm3302_vm6, %v3291_v31, %v3293_v32  ;;  %v3306_v1 = vsel %vm3302_vm6, %v3293_v32, %v11199_v12  ;;  %v11202_v31 = vld [vmem:[#allocation44_spill] sm:$0xff] }
 0x8d3   :  { %v3183_v10 = vsel %vm1435_vm3, %v3170_v7, %v3172_v17  ;;  %v3184_v52 = vsel %vm1435_vm3, %v3172_v17, %v11197_v50  ;;  %v2627_v41 = vmul.f32 0.0, %v11202_v31 }
 0x8d4   :  { %v3200_v47 = vadd.f32 %v3183_v10, %v3140_v37  ;;  %v3201_v57 = vadd.f32 %v3184_v52, %v3141_v36  ;;  %v11203_v37 = vld [vmem:[#allocation47_spill] sm:$0xff] }
 0x8d5   :  { %v3365_v19 = vpop.permute.xlu0 %3364  ;;  %v2853_v17 = vmul.f32 %v8797_v25, %v2627_v41 }
 0x8d6   :  { %v3261_v9 = vadd.f32 %v3244_v18, %v3200_v47  ;;  %v3262_v5 = vadd.f32 %v3245_v38, %v3201_v57  ;;  %v3437_v8 = vpop.permute.xlu1 %3436  ;;  %v3377_v56 = vsel %vm3374_vm7, %v3363_v23, %v3365_v19  ;;  %v3378_v51 = vsel %vm3374_vm7, %v3365_v19, %v11200_v24  ;;  %v11206_v19 = vld [vmem:[#allocation55_spill] sm:$0xff] }
 0x8d7   :  { %v3449_v20 = vsel %vm3446_vm4, %v3435_v49, %v3437_v8  ;;  %v3450_v62 = vsel %vm3446_vm4, %v3437_v8, %v11201_v6  ;;  %v11204_v49 = vld [vmem:[#allocation45_spill] sm:$0xff] }
 0x8d8   :  { %v3322_v7 = vadd.f32 %v3305_v63, %v3261_v9  ;;  %v3323_v55 = vadd.f32 %v3306_v1, %v3262_v5 }
 0x8d9   :  { %v3121_v16 = vpop.permute.xlu0 %3120 }
 0x8da   :  { %v3394_v34 = vadd.f32 %v3377_v56, %v3322_v7  ;;  %v3395_v27 = vadd.f32 %v3378_v51, %v3323_v55  ;;  %v3123_v21 = vpop.permute.xlu1 %3122  ;;  %v2629_v51 = vmul.f32 %v11202_v31, %v8965_v45 }
 0x8dc   :  { %v3466_v35 = vadd.f32 %v3449_v20, %v3394_v34  ;;  %v3467_v60 = vadd.f32 %v3450_v62, %v3395_v27  ;;  %v2855_v41 = vmul.f32 %v8788_v46, %v2629_v51 }
 0x8dd   :  { %v2959_v44 = vpop.permute.xlu0 %2958 }
 0x8de   :  { %v3490_v36 = vadd.f32 %v11196_v29, %v3466_v35  ;;  %v3491_v23 = vadd.f32 %v11196_v29, %v3467_v60  ;;  %v2899_v32 = vpop.permute.xlu1 %2898  ;;  %v2966_v52 = vsel %vm1321_vm9, %v11204_v49, %v2959_v44 }
 0x8df   :  { %v2906_v10 = vsel %vm1289_vm8, %v11203_v37, %v2899_v32 }
 0x8e0   :  { %v2923_v50 = vadd.f32 %v2906_v10, %v2853_v17  ;;  %3518 = vrot.lane.b32.xlu1 %v3490_v36, %s6416_s25  ;;  %3520 = vrot.lane.b32.xlu0 %v3491_v23, %s6416_s25  ;;  %v11207_v36 = vld [vmem:[#allocation43_spill] sm:$0xff] }
 0x8e1   :  { %v3079_v47 = vpop.permute.xlu0 %3078 }
 0x8e2   :  { %v3019_v57 = vpop.permute.xlu1 %3018  ;;  %v2983_v18 = vadd.f32 %v2966_v52, %v2923_v50  ;;  %v3086_v25 = vsel %vm1371_vm11, %v11206_v19, %v3079_v47 }
 0x8e3   :  { %v3026_v29 = vsel %vm1339_vm10, %v11205_v30, %v3019_v57  ;;  %v3126_v30 = vsel %vm1403_vm2, %v3121_v16, %v3123_v21 }
 0x8e4   :  { %v3043_v38 = vadd.f32 %v3026_v29, %v2983_v18 }
 0x8e5   :  { %v3236_v9 = vpop.permute.xlu0 %3235 }
 0x8e6   :  { %v3103_v5 = vadd.f32 %v3086_v25, %v3043_v38  ;;  %v3176_v8 = vpop.permute.xlu1 %3175 }
 0x8e8   :  { %v3142_v63 = vadd.f32 %v3121_v16, %v3103_v5  ;;  %v11208_v5 = vld [vmem:[#allocation63_spill] sm:$0xff] }
 0x8e9   :  { %v3441_v12 = vpop.permute.xlu0 %3440 }
 0x8ea   :  { %v3202_v1 = vadd.f32 %v3176_v8, %v3142_v63  ;;  %v3297_v7 = vpop.permute.xlu1 %3296 }
 0x8ec   :  { %v3263_v55 = vadd.f32 %v3236_v9, %v3202_v1 }
 0x8ed   :  { %v2901_v34 = vpop.permute.xlu0 %2900 }
 0x8ee   :  { %v3324_v56 = vadd.f32 %v3297_v7, %v3263_v55  ;;  %v3369_v24 = vpop.permute.xlu1 %3368  ;;  %v2907_v20 = vsel %vm1289_vm8, %v2899_v32, %v2901_v34  ;;  %v2925_v17 = vadd.f32 %v2901_v34, %v2855_v41 }
 0x8ef   :  { %v2924_v23 = vadd.f32 %v2907_v20, %v11207_v36 }
 0x8f0   :  { %v3396_v27 = vadd.f32 %v3369_v24, %v3324_v56  ;;  %v11209_v56 = vld [vmem:[#allocation65_spill] sm:$0xff] }
 0x8f1   :  { %v3021_v37 = vpop.permute.xlu0 %3020 }
 0x8f2   :  { %v3468_v6 = vadd.f32 %v3441_v12, %v3396_v27  ;;  %v2961_v62 = vpop.permute.xlu1 %2960  ;;  %v3027_v50 = vsel %vm1339_vm10, %v3019_v57, %v3021_v37 }
 0x8f3   :  { %v2967_v35 = vsel %vm1321_vm9, %v2959_v44, %v2961_v62  ;;  %v2985_v45 = vadd.f32 %v2961_v62, %v2925_v17 }
 0x8f4   :  { %v3492_v60 = vadd.f32 %v9040_v14, %v3468_v6  ;;  %v2984_v10 = vadd.f32 %v2967_v35, %v2924_v23  ;;  %v11210_v6 = vld [vmem:[#allocation68_spill] sm:$0xff] }
 0x8f5   :  { %v3045_v49 = vadd.f32 %v3021_v37, %v2985_v45  ;;  %v3178_v44 = vpop.permute.xlu0 %3177 }
 0x8f6   :  { %3522 = vrot.lane.b32.xlu1 %v3492_v60, %s6416_s25  ;;  %v3081_v31 = vpop.permute.xlu1 %3080  ;;  %v3044_v32 = vadd.f32 %v3027_v50, %v2984_v10  ;;  %v3185_v25 = vsel %vm1435_vm3, %v3176_v8, %v3178_v44  ;;  %v3186_v63 = vsel %vm1435_vm3, %v3178_v44, %v11208_v5  ;;  %v11211_v60 = vld [vmem:[#allocation69_spill] sm:$0xff] }
 0x8f7   :  { %v3087_v52 = vsel %vm1371_vm11, %v3079_v47, %v3081_v31  ;;  %v3105_v18 = vadd.f32 %v3081_v31, %v3045_v49 }
 0x8f8   :  { %v3104_v46 = vadd.f32 %v3087_v52, %v3044_v32 }
 0x8f9   :  { %v3144_v38 = vadd.f32 %v3123_v21, %v3105_v18  ;;  %v3299_v1 = vpop.permute.xlu0 %3298 }
 0x8fa   :  { %v3143_v29 = vadd.f32 %v3126_v30, %v3104_v46  ;;  %v3238_v19 = vpop.permute.xlu1 %3237  ;;  %v3307_v21 = vsel %vm3302_vm6, %v3297_v7, %v3299_v1  ;;  %v3308_v8 = vsel %vm3302_vm6, %v3299_v1, %v11210_v6  ;;  %v11212_v7 = vld [vmem:[#allocation70_spill] sm:$0xff] }
 0x8fb   :  { %v3204_v57 = vadd.f32 %v3186_v63, %v3144_v38  ;;  %v3247_v51 = vsel %vm3241_vm5, %v3238_v19, %v11209_v56  ;;  %v3246_v47 = vsel %vm3241_vm5, %v3236_v9, %v3238_v19  ;;  %v11213_v63 = vld [vmem:[#allocation71_spill] sm:$0xff]  ;;  %vm11235_vm5 = vcmask 261120  }
 0x8fc   :  { %v3203_v55 = vadd.f32 %v3185_v25, %v3143_v29  ;;  %vm11236_vm6 = vmmov %vm11235_vm5 }
 0x8fd   :  { %v3265_v27 = vadd.f32 %v3247_v51, %v3204_v57  ;;  %v3371_v16 = vpop.permute.xlu0 %3370  ;;  %v11214_v57 = vld [vmem:[#allocation73_spill] sm:$0xff] }
 0x8fe   :  { %v3264_v34 = vadd.f32 %v3246_v47, %v3203_v55  ;;  %v3380_v36 = vsel %vm3374_vm7, %v3371_v16, %v11211_v60  ;;  %v3379_v23 = vsel %vm3374_vm7, %v3369_v24, %v3371_v16  ;;  %v11215_v47 = vld [vmem:[#allocation74_spill] sm:$0xff]  ;;  %v11220_v60 = vld [vmem:[#allocation76_spill] sm:$0xff]  ;;  %vm4053_vm7 = vcmask 130048  }
 0x8ff   :  { %v3326_v41 = vadd.f32 %v3308_v8, %v3265_v27  ;;  %v11216_v16 = vld [vmem:[#allocation78_spill] sm:$0xff]  ;;  %v11218_v8 = vld [vmem:[#allocation88_spill] sm:$0xff] }
 0x900   :  { %v3325_v62 = vadd.f32 %v3307_v21, %v3264_v34 }
 0x901   :  { %v3398_v17 = vadd.f32 %v3380_v36, %v3326_v41 }
 0x902   :  { %v3397_v9 = vadd.f32 %v3379_v23, %v3325_v62 }
 0x90b   :  { %v9224_v20 = vpop.permute.xlu1 %4259 }
 0x90e   :  { %v9234_v10 = vpop.permute.xlu0 %4254 }
 0x90f   :  { %v9229_v35 = vpop.permute.xlu1 %3979 }
 0x912   :  { %v9245_v24 = vpop.permute.xlu0 %4051 }
 0x913   :  { %v3443_v37 = vpop.permute.xlu1 %3442 }
 0x914   :  { %v3451_v45 = vsel %vm3446_vm4, %v3441_v12, %v3443_v37  ;;  %v3452_v31 = vsel %vm3446_vm4, %v3443_v37, %v11212_v7 }
 0x915   :  { %v3469_v50 = vadd.f32 %v3451_v45, %v3397_v9  ;;  %v3470_v32 = vadd.f32 %v3452_v31, %v3398_v17  ;;  %v11221_v9 = vld [vmem:[#allocation85_spill] sm:$0xff] }
 0x916   :  { %v9251_v44 = vpop.permute.xlu0 %4214 }
 0x917   :  { %v3493_v49 = vadd.f32 %v9040_v14, %v3469_v50  ;;  %v3494_v52 = vadd.f32 %v9040_v14, %v3470_v32  ;;  %v9241_v46 = vpop.permute.xlu1 %4142 }
 0x919   :  { %3526 = vrot.lane.b32.xlu1 %v3494_v52, %s6416_s25  ;;  %3524 = vrot.lane.b32.xlu0 %v3493_v49, %s6416_s25  ;;  %s11217_s25 = smov 64  }
 0x91a   :  { %v9255_v29 = vpop.permute.xlu0 %4220 }
 0x91b   :  { %v9247_v18 = vpop.permute.xlu1 %4148 }
 0x91f   :  { %v9249_v12 = vpop.permute.xlu1 %4264 }
 0x923   :  { %v9253_v30 = vpop.permute.xlu1 %4154 }
 0x927   :  { %v3511_v38 = vpop.permute.xlu1 %3510 }
 0x92a   :  { %v3513_v14 = vpop.permute.xlu0 %3512 }
 0x92b   :  { %v9258_v19 = vsel %vm3405_vm14, %v3511_v38, %v3513_v14  ;;  %v3515_v25 = vpop.permute.xlu1 %3514 }
 0x92c   :  { %v9261_v5 = vsel %vm3405_vm14, %v3513_v14, %v3515_v25  ;;  %v3592_v1 = vmul.f32 %v11213_v63, %v9258_v19  ;;  %v3664_v56 = vmul.f32 %v11214_v57, %v9258_v19  ;;  %v3736_v34 = vmul.f32 %v11215_v47, %v9258_v19  ;;  %v11222_v25 = vld [vmem:[#allocation72_spill] sm:$0xff] }
 0x92d   :  { %v3593_v55 = vmul.f32 %v11213_v63, %v9261_v5  ;;  %v3665_v51 = vmul.f32 %v11214_v57, %v9261_v5  ;;  %v3737_v27 = vmul.f32 %v11215_v47, %v9261_v5  ;;  %v3808_v21 = vmul.f32 %v11216_v16, %v9258_v19  ;;  %v11224_v57 = vld [vmem:[#allocation77_spill] sm:$0xff]  ;;  %v11225_v47 = vld [vmem:[#allocation80_spill] sm:$0xff] }
 0x92e   :  { %3611 = vrot.lane.b32.xlu0 %v3592_v1, %s6389_s28  ;;  %v3809_v6 = vmul.f32 %v11216_v16, %v9261_v5  ;;  %v3879_v62 = vmul.f32 %v11218_v8, %v9258_v19  ;;  %v3880_v41 = vmul.f32 %v11218_v8, %v9261_v5  ;;  %v3946_v36 = vmul.f32 %v11220_v60, %v9261_v5  ;;  %v11226_v16 = vld [vmem:[#allocation82_spill] sm:$0xff]  ;;  %v11227_v8 = vld [vmem:[#allocation84_spill] sm:$0xff] }
 0x92f   :  { %3613 = vrot.lane.b32.xlu1 %v3593_v55, %s6389_s28  ;;  %v3945_v23 = vmul.f32 %v11220_v60, %v9258_v19  ;;  %v4017_v17 = vmul.f32 %v11221_v9, %v9258_v19  ;;  %v4018_v37 = vmul.f32 %v11221_v9, %v9261_v5  ;;  %v4121_v45 = vmul.f32 %v8820_v54, %v9261_v5  ;;  %v11228_v60 = vld [vmem:[#allocation86_spill] sm:$0xff] }
 0x930   :  { %v4193_v7 = vmul.f32 %v8848_v53, %v9261_v5  ;;  %v4120_v31 = vmul.f32 %v8820_v54, %v9258_v19  ;;  %v4192_v50 = vmul.f32 %v8848_v53, %v9258_v19  ;;  %v11223_v53 = vld [vmem:[#allocation75_spill] sm:$0xff] }
 0x932   :  { %3683 = vrot.lane.b32.xlu0 %v3664_v56, %s6391_s29 }
 0x933   :  { %3685 = vrot.lane.b32.xlu1 %v3665_v51, %s6391_s29 }
 0x936   :  { %3755 = vrot.lane.b32.xlu0 %v3736_v34, %s6394_s9 }
 0x937   :  { %3757 = vrot.lane.b32.xlu1 %v3737_v27, %s6394_s9 }
 0x93a   :  { %3827 = vrot.lane.b32.xlu0 %v3808_v21, %s11217_s25 }
 0x93b   :  { %3829 = vrot.lane.b32.xlu1 %v3809_v6, %s11217_s25 }
 0x93e   :  { %3891 = vrot.lane.b32.xlu0 %v3879_v62, %s11219_s26 }
 0x93f   :  { %3893 = vrot.lane.b32.xlu1 %v3880_v41, %s11219_s26 }
 0x941   :  { %v3517_v32 = vpop.permute.xlu0 %3516 }
 0x942   :  { %3965 = vrot.lane.b32.xlu0 %v3946_v36, %s6397_s12 }
 0x943   :  { %3963 = vrot.lane.b32.xlu1 %v3945_v23, %s6397_s12 }
 0x946   :  { %4035 = vrot.lane.b32.xlu0 %v4017_v17, %s6421_s23 }
 0x947   :  { %4037 = vrot.lane.b32.xlu1 %v4018_v37, %s6421_s23 }
 0x94a   :  { %4140 = vrot.lane.b32.xlu0 %v4121_v45, %s6389_s28 }
 0x94b   :  { %4212 = vrot.lane.b32.xlu1 %v4193_v7, %s6391_s29 }
 0x94e   :  { %4138 = vrot.lane.b32.xlu0 %v4120_v31, %s6389_s28 }
 0x94f   :  { %4210 = vrot.lane.b32.xlu1 %v4192_v50, %s6391_s29 }
 0x952   :  { %v3519_v49 = vpop.permute.xlu1 %3518  ;;  %v3521_v52 = vpop.permute.xlu0 %3520 }
 0x953   :  { %v9318_v38 = vsel %vm3405_vm14, %v3517_v32, %v3519_v49  ;;  %v9321_v14 = vsel %vm3405_vm14, %v3519_v49, %v3521_v52  ;;  %v11229_v49 = vld [vmem:[#allocation79_spill] sm:$0xff] }
 0x954   :  { %v3595_v63 = vmul.f32 %v11222_v25, %v9318_v38  ;;  %v3596_v54 = vmul.f32 %v11222_v25, %v9321_v14  ;;  %v3667_v1 = vmul.f32 %v11223_v53, %v9318_v38  ;;  %v3668_v55 = vmul.f32 %v11223_v53, %v9321_v14  ;;  %v11231_v53 = vld [vmem:[#allocation83_spill] sm:$0xff] }
 0x955   :  { %v3739_v56 = vmul.f32 %v11224_v57, %v9318_v38  ;;  %v3740_v51 = vmul.f32 %v11224_v57, %v9321_v14  ;;  %v3811_v34 = vmul.f32 %v11225_v47, %v9318_v38  ;;  %v3812_v27 = vmul.f32 %v11225_v47, %v9321_v14  ;;  %v11232_v57 = vld [vmem:[#allocation87_spill] sm:$0xff]  ;;  %v11233_v47 = vld [vmem:[#allocation89_spill] sm:$0xff] }
 0x956   :  { %3617 = vrot.lane.b32.xlu0 %v3595_v63, %s6389_s28  ;;  %3619 = vrot.lane.b32.xlu1 %v3596_v54, %s6389_s28  ;;  %v3881_v21 = vmul.f32 %v11226_v16, %v9318_v38  ;;  %v3882_v6 = vmul.f32 %v11226_v16, %v9321_v14  ;;  %v3948_v62 = vmul.f32 %v11227_v8, %v9318_v38 }
 0x957   :  { %v3949_v41 = vmul.f32 %v11227_v8, %v9321_v14  ;;  %v4021_v36 = vmul.f32 %v11228_v60, %v9321_v14  ;;  %v4020_v23 = vmul.f32 %v11228_v60, %v9318_v38  ;;  %v4124_v9 = vmul.f32 %v11185_v39, %v9321_v14 }
 0x958   :  { %v4123_v17 = vmul.f32 %v11185_v39, %v9318_v38  ;;  %v4195_v37 = vmul.f32 %v11184_v59, %v9318_v38  ;;  %v4196_v45 = vmul.f32 %v11184_v59, %v9321_v14  ;;  %v11230_v59 = vld [vmem:[#allocation81_spill] sm:$0xff] }
 0x95a   :  { %3689 = vrot.lane.b32.xlu0 %v3667_v1, %s6391_s29  ;;  %3691 = vrot.lane.b32.xlu1 %v3668_v55, %s6391_s29 }
 0x95e   :  { %3761 = vrot.lane.b32.xlu0 %v3739_v56, %s6394_s9  ;;  %3763 = vrot.lane.b32.xlu1 %v3740_v51, %s6394_s9 }
 0x962   :  { %3833 = vrot.lane.b32.xlu0 %v3811_v34, %s11217_s25  ;;  %3835 = vrot.lane.b32.xlu1 %v3812_v27, %s11217_s25 }
 0x966   :  { %3895 = vrot.lane.b32.xlu0 %v3881_v21, %s11219_s26  ;;  %3897 = vrot.lane.b32.xlu1 %v3882_v6, %s11219_s26 }
 0x968   :  { %v3523_v7 = vpop.permute.xlu1 %3522 }
 0x96a   :  { %3969 = vrot.lane.b32.xlu0 %v3948_v62, %s6397_s12  ;;  %3971 = vrot.lane.b32.xlu1 %v3949_v41, %s6397_s12 }
 0x96e   :  { %4043 = vrot.lane.b32.xlu0 %v4021_v36, %s6421_s23  ;;  %4041 = vrot.lane.b32.xlu1 %v4020_v23, %s6421_s23 }
 0x972   :  { %4146 = vrot.lane.b32.xlu0 %v4124_v9, %s6389_s28  ;;  %4144 = vrot.lane.b32.xlu1 %v4123_v17, %s6389_s28 }
 0x976   :  { %4216 = vrot.lane.b32.xlu0 %v4195_v37, %s6391_s29  ;;  %4218 = vrot.lane.b32.xlu1 %v4196_v45, %s6391_s29  ;;  %v3571_v45 = vmul.f32 %v9054_v11, %v9258_v19 }
 0x98b   :  { %v3527_v31 = vpop.permute.xlu1 %3526  ;;  %v3525_v50 = vpop.permute.xlu0 %3524 }
 0x98c   :  { %v9378_v32 = vsel %vm3405_vm14, %v3523_v7, %v3525_v50  ;;  %v9381_v39 = vsel %vm3405_vm14, %v3525_v50, %v3527_v31  ;;  %v3572_v7 = vmul.f32 %v9054_v11, %v9261_v5  ;;  %vm11234_vm14 = vcmask 523264  }
 0x98d   :  { %v3599_v52 = vmul.f32 %v11229_v49, %v9381_v39  ;;  %v3598_v25 = vmul.f32 %v11229_v49, %v9378_v32  ;;  %v3671_v63 = vmul.f32 %v11230_v59, %v9381_v39  ;;  %v3670_v54 = vmul.f32 %v11230_v59, %v9378_v32  ;;  %vm11243_vm4 = vmmov %vm11234_vm14 }
 0x98e   :  { %v3742_v1 = vmul.f32 %v11231_v53, %v9378_v32  ;;  %v3743_v55 = vmul.f32 %v11231_v53, %v9381_v39  ;;  %v3815_v56 = vmul.f32 %v11232_v57, %v9381_v39  ;;  %v3814_v51 = vmul.f32 %v11232_v57, %v9378_v32 }
 0x98f   :  { %3625 = vrot.lane.b32.xlu1 %v3599_v52, %s6389_s28  ;;  %3623 = vrot.lane.b32.xlu0 %v3598_v25, %s6389_s28  ;;  %v3884_v34 = vmul.f32 %v11233_v47, %v9381_v39  ;;  %v3883_v27 = vmul.f32 %v11233_v47, %v9378_v32  ;;  %v3951_v6 = vmul.f32 %v8790_v58, %v9378_v32  ;;  %v4200_v53 = vmul.f32 0.0, %v8894_v0 }
 0x990   :  { %v3952_v8 = vmul.f32 %v8790_v58, %v9381_v39  ;;  %v4024_v60 = vmul.f32 %v8834_v13, %v9381_v39  ;;  %v4023_v36 = vmul.f32 %v8834_v13, %v9378_v32  ;;  %v4199_v9 = vmul.f32 %v8894_v0, %v9381_v39 }
 0x991   :  { %v4127_v17 = vmul.f32 %v8878_v48, %v9381_v39  ;;  %v4198_v50 = vmul.f32 %v8894_v0, %v9378_v32  ;;  %v4126_v49 = vmul.f32 %v8878_v48, %v9378_v32 }
 0x993   :  { %3697 = vrot.lane.b32.xlu1 %v3671_v63, %s6391_s29  ;;  %3695 = vrot.lane.b32.xlu0 %v3670_v54, %s6391_s29 }
 0x997   :  { %3767 = vrot.lane.b32.xlu1 %v3742_v1, %s6394_s9  ;;  %3769 = vrot.lane.b32.xlu0 %v3743_v55, %s6394_s9 }
 0x99b   :  { %3841 = vrot.lane.b32.xlu1 %v3815_v56, %s11217_s25  ;;  %3839 = vrot.lane.b32.xlu0 %v3814_v51, %s11217_s25 }
 0x99f   :  { %3901 = vrot.lane.b32.xlu1 %v3884_v34, %s11219_s26  ;;  %3899 = vrot.lane.b32.xlu0 %v3883_v27, %s11219_s26 }
 0x9a0   :  { %v9413_v16 = vpop.permute.xlu0 %3611 }
 0x9a1   :  { %v3614_v21 = vpop.permute.xlu1 %3613 }
 0x9a2   :  { %v3628_v13 = vsel %vm255_vm15, %v9413_v16, %v3614_v21  ;;  %v3644_v59 = vadd.f32 %v3614_v21, %v3572_v7 }
 0x9a3   :  { %3975 = vrot.lane.b32.xlu1 %v3951_v6, %s6397_s12  ;;  %3977 = vrot.lane.b32.xlu0 %v3952_v8, %s6397_s12  ;;  %v3643_v25 = vadd.f32 %v3628_v13, %v3571_v45  ;;  %v11237_v45 = vld [vmem:[#allocation99_spill] sm:$0xff] }
 0x9a4   :  { %v9421_v62 = vpop.permute.xlu0 %3683 }
 0x9a5   :  { %v3686_v41 = vpop.permute.xlu1 %3685 }
 0x9a6   :  { %v3700_v52 = vsel %vm424_vm0, %v9421_v62, %v3686_v41  ;;  %v3716_v55 = vadd.f32 %v3686_v41, %v3644_v59 }
 0x9a7   :  { %4049 = vrot.lane.b32.xlu1 %v4024_v60, %s6421_s23  ;;  %4047 = vrot.lane.b32.xlu0 %v4023_v36, %s6421_s23  ;;  %v3715_v1 = vadd.f32 %v3700_v52, %v3643_v25 }
 0x9a8   :  { %v9429_v23 = vpop.permute.xlu0 %3755 }
 0x9a9   :  { %v3758_v58 = vpop.permute.xlu1 %3757 }
 0x9aa   :  { %v3772_v63 = vsel %vm597_vm1, %v9429_v23, %v3758_v58  ;;  %v3788_v51 = vadd.f32 %v3758_v58, %v3716_v55 }
 0x9ab   :  { %4224 = vrot.lane.b32.xlu1 %v4199_v9, %s6391_s29  ;;  %4152 = vrot.lane.b32.xlu0 %v4127_v17, %s6389_s28  ;;  %v3787_v56 = vadd.f32 %v3772_v63, %v3715_v1 }
 0x9ac   :  { %v9439_v37 = vpop.permute.xlu0 %3827 }
 0x9ad   :  { %v3830_v31 = vpop.permute.xlu1 %3829 }
 0x9ae   :  { %v3844_v48 = vsel %vm11234_vm14, %v9439_v37, %v3830_v31  ;;  %v3860_v21 = vadd.f32 %v3830_v31, %v3788_v51  ;;  %v11238_v31 = vld [vmem:[#allocation95_spill] sm:$0xff]  ;;  %vm11244_vm14 = vmmov %vm11243_vm4 }
 0x9af   :  { %4222 = vrot.lane.b32.xlu1 %v4198_v50, %s6391_s29  ;;  %4150 = vrot.lane.b32.xlu0 %v4126_v49, %s6389_s28  ;;  %v3859_v27 = vadd.f32 %v3844_v48, %v3787_v56  ;;  %v4092_v50 = vmul.f32 0.0, %v11238_v31  ;;  %v4091_v52 = vmul.f32 %v11238_v31, %v9261_v5 }
 0x9b0   :  { %v9455_v54 = vpop.permute.xlu0 %3891 }
 0x9b1   :  { %v3894_v57 = vpop.permute.xlu1 %3893 }
 0x9b2   :  { %v3903_v47 = vsel %vm930_vm13, %v9455_v54, %v3894_v57  ;;  %v3917_v60 = vadd.f32 %v3894_v57, %v3860_v21 }
 0x9b3   :  { %4226 = vrot.lane.b32.xlu0 %v4200_v53, %s6391_s29  ;;  %v3916_v41 = vadd.f32 %v3903_v47, %v3859_v27 }
 0x9b4   :  { %v3966_v34 = vpop.permute.xlu0 %3965 }
 0x9b5   :  { %v9463_v6 = vpop.permute.xlu1 %3963  ;;  %v3982_v0 = vsel %vm11235_vm5, %v3966_v34, %v9015_v40  ;;  %vm11245_vm5 = vmmov %vm11243_vm4 }
 0x9b6   :  { %v3981_v8 = vsel %vm11236_vm6, %v9463_v6, %v3966_v34  ;;  %v3998_v58 = vadd.f32 %v3982_v0, %v3917_v60 }
 0x9b7   :  { %v3997_v9 = vadd.f32 %v3981_v8, %v3916_v41  ;;  %v11239_v8 = vld [vmem:[#allocation92_spill] sm:$0xff] }
 0x9b8   :  { %v9469_v36 = vpop.permute.xlu0 %4035  ;;  %v3627_v41 = vsel %vm255_vm15, %v11239_v8, %v9413_v16  ;;  %v3573_v16 = vmul.f32 0.0, %v8908_v4 }
 0x9b9   :  { %v4038_v17 = vpop.permute.xlu1 %4037 }
 0x9ba   :  { %v4054_v13 = vsel %vm4053_vm7, %v9469_v36, %v4038_v17  ;;  %v4055_v7 = vsel %vm4053_vm7, %v4038_v17, %v11237_v45  ;;  %v11241_v45 = vld [vmem:[#allocation94_spill] sm:$0xff] }
 0x9bb   :  { %v4070_v40 = vadd.f32 %v4054_v13, %v3997_v9  ;;  %v4071_v49 = vadd.f32 %v4055_v7, %v3998_v58  ;;  %v11240_v9 = vld [vmem:[#allocation93_spill] sm:$0xff]  ;;  %v3771_v7 = vsel %vm597_vm1, %v11241_v45, %v9429_v23 }
 0x9bc   :  { %v9478_v25 = vpop.permute.xlu0 %4140  ;;  %v3699_v17 = vsel %vm424_vm0, %v11240_v9, %v9421_v62 }
 0x9bd   :  { %v4101_v59 = vadd.f32 %v4092_v50, %v4071_v49  ;;  %v4100_v63 = vadd.f32 %v4091_v52, %v4070_v40  ;;  %v4157_v53 = vsel %vm255_vm15, %v9478_v25, %v9241_v46  ;;  %v9483_v1 = vpop.permute.xlu1 %4212 }
 0x9be   :  { %v4229_v48 = vsel %vm424_vm0, %v9483_v1, %v9251_v44 }
 0x9bf   :  { %v4173_v55 = vadd.f32 %v9241_v46, %v4101_v59  ;;  %v4172_v57 = vadd.f32 %v4157_v53, %v4100_v63 }
 0x9c0   :  { %v9492_v34 = vpop.permute.xlu0 %4138 }
 0x9c1   :  { %v4245_v56 = vadd.f32 %v9251_v44, %v4173_v55  ;;  %v4244_v5 = vadd.f32 %v4229_v48, %v4172_v57  ;;  %v9494_v27 = vpop.permute.xlu1 %4210  ;;  %v3570_v44 = vmul.f32 0.0, %v9054_v11  ;;  %v11242_v11 = vld [vmem:[#allocation96_spill] sm:$0xff]  ;;  %v3575_v57 = vmul.f32 %v8908_v4, %v9321_v14 }
 0x9c2   :  { %v3843_v59 = vsel %vm11243_vm4, %v11242_v11, %v9439_v37  ;;  %v11246_v11 = vld [vmem:[#allocation98_spill] sm:$0xff]  ;;  %vm11247_vm4 = vmmov %vm11236_vm6 }
 0x9c3   :  { %v4268_v51 = vadd.f32 %v9234_v10, %v4244_v5  ;;  %v4269_v47 = vadd.f32 %v9234_v10, %v4245_v56  ;;  %v3642_v13 = vadd.f32 %v3627_v41, %v3570_v44 }
 0x9c5   :  { %v6176_v21 = vpack.i.bf16 %v4269_v47, %v4268_v51  ;;  %v3714_v50 = vadd.f32 %v3699_v17, %v3642_v13 }
 0x9c7   :  { %6177 = vrot.lane.b32.xlu0 %v6176_v21, %s6394_s9  ;;  %v3786_v63 = vadd.f32 %v3771_v7, %v3714_v50 }
 0x9c8   :  { %v3620_v46 = vpop.permute.xlu1 %3619  ;;  %v3618_v0 = vpop.permute.xlu0 %3617 }
 0x9c9   :  { %v3629_v40 = vsel %vm255_vm15, %v8936_v3, %v3618_v0  ;;  %v3630_v53 = vsel %vm255_vm15, %v3618_v0, %v3620_v46  ;;  %v3858_v23 = vadd.f32 %v3843_v59, %v3786_v63  ;;  %v3574_v3 = vmul.f32 %v8908_v4, %v9318_v38 }
 0x9ca   :  { %v3645_v55 = vadd.f32 %v3629_v40, %v3573_v16  ;;  %v3647_v47 = vadd.f32 %v3620_v46, %v3575_v57  ;;  %v4093_v57 = vmul.f32 %v8969_v22, %v9318_v38 }
 0x9cb   :  { %v3915_v41 = vadd.f32 %v9455_v54, %v3858_v23 }
 0x9cc   :  { %v3692_v60 = vpop.permute.xlu1 %3691  ;;  %v3690_v58 = vpop.permute.xlu0 %3689 }
 0x9cd   :  { %v3701_v62 = vsel %vm424_vm0, %v8946_v26, %v3690_v58  ;;  %v3702_v37 = vsel %vm424_vm0, %v3690_v58, %v3692_v60  ;;  %v3646_v26 = vadd.f32 %v3630_v53, %v3574_v3  ;;  %v3719_v44 = vadd.f32 %v3692_v60, %v3647_v47 }
 0x9ce   :  { %v3717_v51 = vadd.f32 %v3701_v62, %v3645_v55  ;;  %v3996_v58 = vadd.f32 %v9463_v6, %v3915_v41  ;;  %v4095_v6 = vmul.f32 0.0, %v8969_v22  ;;  %v4090_v53 = vmul.f32 %v11238_v31, %v9258_v19 }
 0x9cf   :  { %v3718_v4 = vadd.f32 %v3702_v37, %v3646_v26  ;;  %v4094_v31 = vmul.f32 %v8969_v22, %v9321_v14 }
 0x9d0   :  { %v3764_v49 = vpop.permute.xlu1 %3763  ;;  %v3762_v52 = vpop.permute.xlu0 %3761  ;;  %v4069_v59 = vadd.f32 %v9469_v36, %v3996_v58 }
 0x9d1   :  { %v3773_v48 = vsel %vm597_vm1, %v8960_v43, %v3762_v52  ;;  %v3774_v0 = vsel %vm597_vm1, %v3762_v52, %v3764_v49  ;;  %v3791_v45 = vadd.f32 %v3764_v49, %v3719_v44 }
 0x9d2   :  { %v3789_v8 = vadd.f32 %v3773_v48, %v3717_v51  ;;  %v3790_v46 = vadd.f32 %v3774_v0, %v3718_v4  ;;  %v4099_v51 = vadd.f32 %v4090_v53, %v4069_v59 }
 0x9d4   :  { %v3836_v56 = vpop.permute.xlu1 %3835  ;;  %v3834_v5 = vpop.permute.xlu0 %3833 }
 0x9d5   :  { %v3845_v21 = vsel %vm11244_vm14, %v8999_v2, %v3834_v5  ;;  %v3846_v43 = vsel %vm11245_vm5, %v3834_v5, %v3836_v56  ;;  %v3863_v50 = vadd.f32 %v3836_v56, %v3791_v45  ;;  %v4156_v56 = vsel %vm255_vm15, %v9492_v34, %v9478_v25  ;;  %vm11249_vm14 = vmmov %vm11245_vm5 }
 0x9d6   :  { %v3861_v13 = vadd.f32 %v3845_v21, %v3789_v8  ;;  %v3862_v2 = vadd.f32 %v3846_v43, %v3790_v46  ;;  %v4171_v26 = vadd.f32 %v4156_v56, %v4099_v51  ;;  %v4228_v25 = vsel %vm424_vm0, %v9494_v27, %v9483_v1 }
 0x9d8   :  { %v3898_v9 = vpop.permute.xlu1 %3897  ;;  %v3896_v17 = vpop.permute.xlu0 %3895  ;;  %v4243_v4 = vadd.f32 %v4228_v25, %v4171_v26 }
 0x9d9   :  { %v3904_v7 = vsel %vm930_vm13, %v3896_v17, %v3898_v9  ;;  %v3918_v16 = vadd.f32 %v3896_v17, %v3861_v13  ;;  %v3920_v63 = vadd.f32 %v3898_v9, %v3863_v50 }
 0x9da   :  { %v3919_v62 = vadd.f32 %v3904_v7, %v3862_v2  ;;  %v4267_v45 = vadd.f32 %v9234_v10, %v4243_v4 }
 0x9dc   :  { %v3972_v40 = vpop.permute.xlu1 %3971  ;;  %v3970_v52 = vpop.permute.xlu0 %3969 }
 0x9dd   :  { %v3984_v54 = vsel %vm11236_vm6, %v3972_v40, %v11246_v11  ;;  %v3983_v60 = vsel %vm11247_vm4, %v3970_v52, %v3972_v40  ;;  %v3999_v49 = vadd.f32 %v3970_v52, %v3918_v16  ;;  %vm11250_vm6 = vmmov %vm11247_vm4 }
 0x9de   :  { %v4001_v55 = vadd.f32 %v3984_v54, %v3920_v63  ;;  %v4000_v23 = vadd.f32 %v3983_v60, %v3919_v62  ;;  %v3577_v60 = vmul.f32 %v8922_v28, %v9378_v32 }
 0x9e0   :  { %v4042_v3 = vpop.permute.xlu1 %4041  ;;  %v4044_v48 = vpop.permute.xlu0 %4043 }
 0x9e1   :  { %v4072_v36 = vadd.f32 %v4042_v3, %v3999_v49  ;;  %v4056_v5 = vsel %vm4053_vm7, %v4042_v3, %v4044_v48  ;;  %v4057_v37 = vsel %vm4053_vm7, %v4044_v48, %v9043_v42  ;;  %v3576_v49 = vmul.f32 0.0, %v8922_v28 }
 0x9e2   :  { %v4073_v47 = vadd.f32 %v4056_v5, %v4000_v23  ;;  %v4074_v19 = vadd.f32 %v4057_v37, %v4001_v55  ;;  %v11248_v23 = vld [vmem:[#allocation97_spill] sm:$0xff] }
 0x9e3   :  { %v4102_v38 = vadd.f32 %v4093_v57, %v4072_v36 }
 0x9e4   :  { %v4104_v21 = vadd.f32 %v4095_v6, %v4074_v19  ;;  %v4145_v0 = vpop.permute.xlu1 %4144  ;;  %v4103_v8 = vadd.f32 %v4094_v31, %v4073_v47  ;;  %v4147_v41 = vpop.permute.xlu0 %4146 }
 0x9e5   :  { %v4158_v34 = vsel %vm255_vm15, %v4145_v0, %v4147_v41  ;;  %v4159_v42 = vsel %vm255_vm15, %v4147_v41, %v9247_v18 }
 0x9e6   :  { %v4176_v44 = vadd.f32 %v9247_v18, %v4104_v21  ;;  %v4174_v14 = vadd.f32 %v4158_v34, %v4102_v38  ;;  %v4175_v9 = vadd.f32 %v4159_v42, %v4103_v8 }
 0x9e8   :  { %v4248_v22 = vadd.f32 %v9255_v29, %v4176_v44  ;;  %v4219_v17 = vpop.permute.xlu1 %4218  ;;  %v4217_v43 = vpop.permute.xlu0 %4216 }
 0x9e9   :  { %v4231_v13 = vsel %vm424_vm0, %v4219_v17, %v9255_v29  ;;  %v4230_v58 = vsel %vm424_vm0, %v4217_v43, %v4219_v17 }
 0x9ea   :  { %v4247_v1 = vadd.f32 %v4231_v13, %v4175_v9  ;;  %v4246_v27 = vadd.f32 %v4230_v58, %v4174_v14  ;;  %v4272_v7 = vadd.f32 %v9224_v20, %v4248_v22  ;;  %v11251_v58 = vld [vmem:[#allocation100_spill] sm:$0xff] }
 0x9ec   :  { %v4271_v46 = vadd.f32 %v9224_v20, %v4247_v1  ;;  %v4270_v18 = vadd.f32 %v9224_v20, %v4246_v27  ;;  %v3578_v20 = vmul.f32 %v8922_v28, %v9381_v39  ;;  %v4097_v1 = vmul.f32 %v11251_v58, %v9381_v39 }
 0x9ee   :  { %v6186_v50 = vpack.i.bf16 %v4270_v18, %v4267_v45  ;;  %v6181_v2 = vpack.i.bf16 %v4272_v7, %v4271_v46 }
 0x9f0   :  { %6182 = vrot.lane.b32.xlu1 %v6181_v2, %s6394_s9  ;;  %6187 = vrot.lane.b32.xlu0 %v6186_v50, %s6394_s9 }
 0xa01   :  { %v3626_v40 = vpop.permute.xlu1 %3625  ;;  %v3624_v29 = vpop.permute.xlu0 %3623 }
 0xa02   :  { %v3632_v10 = vsel %vm255_vm15, %v3624_v29, %v3626_v40  ;;  %v3631_v62 = vsel %vm255_vm15, %v8985_v61, %v3624_v29  ;;  %v3650_v55 = vadd.f32 %v3626_v40, %v3578_v20  ;;  %v4096_v40 = vmul.f32 %v11251_v58, %v9378_v32 }
 0xa03   :  { %v3649_v53 = vadd.f32 %v3632_v10, %v3577_v60  ;;  %v3648_v48 = vadd.f32 %v3631_v62, %v3576_v49 }
 0xa05   :  { %v3698_v52 = vpop.permute.xlu1 %3697  ;;  %v3696_v16 = vpop.permute.xlu0 %3695 }
 0xa06   :  { %v3704_v6 = vsel %vm424_vm0, %v3696_v16, %v3698_v52  ;;  %v3703_v57 = vsel %vm424_vm0, %v11248_v23, %v3696_v16  ;;  %v3722_v37 = vadd.f32 %v3698_v52, %v3650_v55  ;;  %v4281_v55 = vld [vmem:[%s10783_s6 + $0x90] sm:$0xff]  ;;  %v4280_v23 = vld [vmem:[%s10783_s6 + $0x88] sm:$0xff] }
 0xa07   :  { %v3721_v56 = vadd.f32 %v3704_v6, %v3649_v53  ;;  %v3720_v47 = vadd.f32 %v3703_v57, %v3648_v48  ;;  %v9617_v57 = vld [vmem:[%s10778_s1 + $0x8] sm:$0xff]  ;;  %v11253_v48 = vmov 1  }
 0xa09   :  { %v3768_v11 = vpop.permute.xlu1 %3767  ;;  %v3770_v54 = vpop.permute.xlu0 %3769 }
 0xa0a   :  { %v3776_v3 = vsel %vm597_vm1, %v3768_v11, %v3770_v54  ;;  %v3775_v51 = vsel %vm597_vm1, %v9031_v15, %v3768_v11  ;;  %v3794_v28 = vadd.f32 %v3770_v54, %v3722_v37  ;;  %v11257_v37 = vmov 4  }
 0xa0b   :  { %v3793_v19 = vadd.f32 %v3776_v3, %v3721_v56  ;;  %v3792_v38 = vadd.f32 %v3775_v51, %v3720_v47  ;;  %v11252_v3 = vmov 2   ;;  %v11254_v56 = vmov 5  }
 0xa0c   :  { %v11258_v51 = vmov 6   ;;  %v11260_v47 = vmov 8  }
 0xa0d   :  { %v3842_v59 = vpop.permute.xlu1 %3841  ;;  %v3840_v63 = vpop.permute.xlu0 %3839 }
 0xa0e   :  { %v3848_v61 = vsel %vm11249_vm14, %v3840_v63, %v3842_v59  ;;  %v3847_v31 = vsel %vm11245_vm5, %v9059_v33, %v3840_v63  ;;  %v3866_v41 = vadd.f32 %v3842_v59, %v3794_v28  ;;  %vm11346_vm14 = vmmov %vm11245_vm5 }
 0xa0f   :  { %v3865_v21 = vadd.f32 %v3848_v61, %v3793_v19  ;;  %v3864_v34 = vadd.f32 %v3847_v31, %v3792_v38  ;;  %v11259_v61 = vmov 7   ;;  %v11261_v19 = vmov 9  }
 0xa10   :  { %v11262_v31 = vmov 10  }
 0xa11   :  { %v3902_v36 = vpop.permute.xlu1 %3901  ;;  %v3900_v5 = vpop.permute.xlu0 %3899 }
 0xa12   :  { %v3905_v26 = vsel %vm930_vm13, %v3900_v5, %v3902_v36  ;;  %v3923_v44 = vadd.f32 %v3902_v36, %v3866_v41  ;;  %v3921_v43 = vadd.f32 %v3900_v5, %v3864_v34  ;;  %v11255_v36 = vmov 3  }
 0xa13   :  { %v3922_v42 = vadd.f32 %v3905_v26, %v3865_v21  ;;  %v11256_v5 = vmov 25  }
 0xa15   :  { %v3976_v0 = vpop.permute.xlu1 %3975  ;;  %v3978_v8 = vpop.permute.xlu0 %3977 }
 0xa16   :  { %v3985_v25 = vsel %vm11250_vm6, %v3976_v0, %v3978_v8  ;;  %v3986_v15 = vsel %vm11247_vm4, %v3978_v8, %v9229_v35  ;;  %v4002_v45 = vadd.f32 %v3976_v0, %v3921_v43  ;;  %v4098_v35 = vmul.f32 0.0, %v11251_v58  ;;  %vm11352_vm6 = vmmov %vm11245_vm5 }
 0xa17   :  { %v4003_v4 = vadd.f32 %v3985_v25, %v3922_v42  ;;  %v4004_v9 = vadd.f32 %v3986_v15, %v3923_v44  ;;  %v11263_v42 = vmov 11   ;;  %v11266_v43 = vmov 14   ;;  %vm11353_vm4 = vmmov %vm11245_vm5 }
 0xa18   :  { %v11268_v58 = vmov 16  }
 0xa19   :  { %v4050_v22 = vpop.permute.xlu1 %4049  ;;  %v4048_v14 = vpop.permute.xlu0 %4047 }
 0xa1a   :  { %v4059_v33 = vsel %vm4053_vm7, %v4050_v22, %v9245_v24  ;;  %v4058_v17 = vsel %vm4053_vm7, %v4048_v14, %v4050_v22  ;;  %v4075_v7 = vadd.f32 %v4048_v14, %v4002_v45  ;;  %v11271_v45 = vmov 19   ;;  %vm11344_vm7 = vmmov %vm11245_vm5 }
 0xa1b   :  { %v4076_v13 = vadd.f32 %v4058_v17, %v4003_v4  ;;  %v4077_v27 = vadd.f32 %v4059_v33, %v4004_v9  ;;  %v11264_v33 = vmov 12   ;;  %v11265_v17 = vmov 13  }
 0xa1c   :  { %v4105_v16 = vadd.f32 %v4096_v40, %v4075_v7  ;;  %v11275_v40 = vmov 23  }
 0xa1d   :  { %v4106_v46 = vadd.f32 %v4097_v1, %v4076_v13  ;;  %v4153_v18 = vpop.permute.xlu0 %4152  ;;  %v4225_v50 = vpop.permute.xlu1 %4224  ;;  %v4107_v2 = vadd.f32 %v4098_v35, %v4077_v27  ;;  %v11267_v13 = vmov 15   ;;  %v11269_v1 = vmov 17  }
 0xa1e   :  { %v4161_v29 = vsel %vm255_vm15, %v4153_v18, %v9253_v30  ;;  %v11270_v27 = vmov 18   ;;  %v11274_v35 = vmov 22  }
 0xa1f   :  { %v4179_v39 = vadd.f32 %v9253_v30, %v4107_v2  ;;  %v4178_v11 = vadd.f32 %v4161_v29, %v4106_v46  ;;  %v4279_v30 = vld [vmem:[%s10783_s6 + $0x80] sm:$0xff]  ;;  %v11272_v46 = vmov 20   ;;  %v4276_v29 = vld [vmem:[%s10780_s3 + $0x18] sm:$0xff] }
 0xa21   :  { %v4151_v24 = vpop.permute.xlu0 %4150  ;;  %v4223_v54 = vpop.permute.xlu1 %4222 }
 0xa22   :  { %v4160_v52 = vsel %vm255_vm15, %v4151_v24, %v4153_v18  ;;  %v4232_v62 = vsel %vm424_vm0, %v4223_v54, %v4225_v50  ;;  %v11273_v18 = vmov 21   ;;  %v4278_v54 = vld [vmem:[%s10780_s3 + $0x28] sm:$0xff] }
 0xa23   :  { %v4177_v10 = vadd.f32 %v4160_v52, %v4105_v16  ;;  %v11276_v16 = vmov 24  }
 0xa25   :  { %v4227_v60 = vpop.permute.xlu0 %4226  ;;  %v4249_v6 = vadd.f32 %v4232_v62, %v4177_v10  ;;  %v11278_v10 = vmov 26   ;;  %v11281_v62 = vmov 43  }
 0xa26   :  { %v4233_v59 = vsel %vm424_vm0, %v4225_v50, %v4227_v60  ;;  %v4251_v63 = vadd.f32 %v4227_v60, %v4179_v39  ;;  %v11277_v39 = vmov 0.0   ;;  %v11279_v60 = vmov 30  }
 0xa27   :  { %v4250_v20 = vadd.f32 %v4233_v59, %v4178_v11  ;;  %v4273_v53 = vadd.f32 %v9249_v12, %v4249_v6  ;;  %v4277_v11 = vld [vmem:[%s10780_s3 + $0x20] sm:$0xff]  ;;  %v11282_v6 = vmov 31  }
 0xa28   :  { %v4275_v32 = vadd.f32 %v9249_v12, %v4251_v63  ;;  %v11280_v63 = vmov 36  }
 0xa29   :  { %v4274_v49 = vadd.f32 %v9249_v12, %v4250_v20  ;;  %v4513_v12 = vld [vmem:[%s10783_s6 + $0x98] sm:$0xff] }
 0xa2a   :  { %4322 = vrot.lane.b32.xlu0 %v4275_v32, %s6394_s9 }
 0xa2b   :  { %4320 = vrot.lane.b32.xlu1 %v4274_v49, %s6394_s9 }
 0xa2e   :  { %4284 = vperm.xlu0 %6174, %v4279_v30   ;;  %v11283_v30 = vmov 44  }
 0xa2f   :  { %4318 = vrot.lane.b32.xlu1 %v4273_v53, %s6394_s9 }
 0xa32   :  { %4294 = vperm.xlu0 %6174, %v4281_v55   ;;  %v11284_v55 = vmov 27  }
 0xa33   :  { %4289 = vperm.xlu1 %6175, %v4280_v23  }
 0xa36   :  { %4602 = vperm.xlu0 %6174, %v9617_v57  }
 0xa37   :  { %4516 = vperm.xlu1 %6175, %v4513_v12   ;;  %v11285_v12 = vmov 38  }
 0xa39   :  { %v6178_v28 = vpop.permute.xlu0 %6177 }
 0xa3a   :  { %6192 = vset.pattern.permute.xlu0 %v11252_v3  ;;  %v6180_v26 = vunpack.i.h.bf16 %v6178_v28  ;;  %v6179_v38 = vunpack.i.l.bf16 %v6178_v28 }
 0xa3b   :  { %6191 = vset.pattern.permute.xlu1 %v11253_v48  ;;  %4616 = vperm.xlu0 %6192, %v9617_v57  }
 0xa3c   :  { %4609 = vperm.xlu1 %6191, %v9617_v57   ;;  %v4325_v4 = vsel %vm597_vm1, %v6179_v38, %v6180_v26 }
 0xa3f   :  { %6195 = vset.pattern.permute.xlu0 %v11254_v56  ;;  %v11286_v56 = vmov 39  }
 0xa40   :  { %6193 = vset.pattern.permute.xlu1 %v11255_v36  ;;  %4637 = vperm.xlu0 %6195, %v9617_v57  }
 0xa41   :  { %4623 = vperm.xlu1 %6193, %v9617_v57  }
 0xa44   :  { %6215 = vset.pattern.permute.xlu0 %v11256_v5 }
 0xa45   :  { %6194 = vset.pattern.permute.xlu1 %v11257_v37  ;;  %v11287_v37 = vmov 40  }
 0xa46   :  { %4630 = vperm.xlu1 %6194, %v9617_v57  }
 0xa4a   :  { %6196 = vset.pattern.permute.xlu1 %v11258_v51 }
 0xa4b   :  { %4644 = vperm.xlu1 %6196, %v9617_v57  }
 0xa4f   :  { %6197 = vset.pattern.permute.xlu1 %v11259_v61 }
 0xa50   :  { %4651 = vperm.xlu1 %6197, %v9617_v57  }
 0xa54   :  { %6198 = vset.pattern.permute.xlu1 %v11260_v47  ;;  %v11288_v47 = vmov 45  }
 0xa55   :  { %4675 = vperm.xlu1 %6198, %v9617_v57  }
 0xa59   :  { %6199 = vset.pattern.permute.xlu1 %v11261_v19 }
 0xa5a   :  { %4699 = vperm.xlu1 %6199, %v9617_v57  }
 0xa5e   :  { %6200 = vset.pattern.permute.xlu1 %v11262_v31  ;;  %v11289_v31 = vmov 41  }
 0xa5f   :  { %4723 = vperm.xlu1 %6200, %v9617_v57  }
 0xa62   :  { %v6183_v21 = vpop.permute.xlu1 %6182  ;;  %v6188_v0 = vpop.permute.xlu0 %6187 }
 0xa63   :  { %v6185_v8 = vunpack.i.h.bf16 %v6183_v21  ;;  %v6184_v41 = vunpack.i.l.bf16 %v6183_v21  ;;  %v6190_v25 = vunpack.i.h.bf16 %v6188_v0  ;;  %v6189_v34 = vunpack.i.l.bf16 %v6188_v0  ;;  %6201 = vset.pattern.permute.xlu1 %v11263_v42 }
 0xa64   :  { %4747 = vperm.xlu1 %6201, %v9617_v57   ;;  %v11290_v21 = vmov 47   ;;  %v11292_v42 = vmov 35  }
 0xa65   :  { %v4326_v15 = vsel %vm597_vm1, %v6190_v25, %v6184_v41  ;;  %v4324_v44 = vsel %vm597_vm1, %v6189_v34, %v6179_v38  ;;  %v4327_v22 = vsel %vm597_vm1, %v6184_v41, %v6185_v8  ;;  %v11291_v41 = vmov 28  }
 0xa66   :  { %v5871_v14 = vpack.c.bf16 %v4327_v22, %v4325_v4  ;;  %v5873_v9 = vpack.c.bf16 %v4326_v15, %v4324_v44  ;;  %v11293_v4 = vmov 0  }
 0xa68   :  { %5872 = vmatprep.subr.bf16.mxu1 %v5871_v14  ;;  %6202 = vset.pattern.permute.xlu1 %v11264_v33 }
 0xa69   :  { %5874 = vmatpush1.bf16.msra.mxu1 %v5873_v9  ;;  %4771 = vperm.xlu1 %6202, %v9617_v57  }
 0xa6d   :  { %6203 = vset.pattern.permute.xlu1 %v11265_v17 }
 0xa6e   :  { %4795 = vperm.xlu1 %6203, %v9617_v57  }
 0xa72   :  { %6204 = vset.pattern.permute.xlu1 %v11266_v43 }
 0xa73   :  { %4819 = vperm.xlu1 %6204, %v9617_v57  }
 0xa77   :  { %6205 = vset.pattern.permute.xlu1 %v11267_v13 }
 0xa78   :  { %4843 = vperm.xlu1 %6205, %v9617_v57  }
 0xa7c   :  { %6206 = vset.pattern.permute.xlu1 %v11268_v58 }
 0xa7d   :  { %4867 = vperm.xlu1 %6206, %v9617_v57  }
 0xa81   :  { %6207 = vset.pattern.permute.xlu1 %v11269_v1 }
 0xa82   :  { %4891 = vperm.xlu1 %6207, %v9617_v57  }
 0xa86   :  { %6208 = vset.pattern.permute.xlu1 %v11270_v27 }
 0xa87   :  { %4915 = vperm.xlu1 %6208, %v9617_v57  }
 0xa8b   :  { %6209 = vset.pattern.permute.xlu1 %v11271_v45 }
 0xa8c   :  { %4939 = vperm.xlu1 %6209, %v9617_v57  }
 0xa90   :  { %6210 = vset.pattern.permute.xlu1 %v11272_v46 }
 0xa91   :  { %4963 = vperm.xlu1 %6210, %v9617_v57  }
 0xa95   :  { %6211 = vset.pattern.permute.xlu1 %v11273_v18 }
 0xa96   :  { %4991 = vperm.xlu1 %6211, %v9617_v57  }
 0xa9a   :  { %6212 = vset.pattern.permute.xlu1 %v11274_v35 }
 0xa9b   :  { %5015 = vperm.xlu1 %6212, %v9617_v57  }
 0xa9c   :  { %v4323_v7 = vpop.permute.xlu0 %4322 }
 0xa9d   :  { %v4321_v50 = vpop.permute.xlu1 %4320 }
 0xa9e   :  { %v4329_v2 = vsel %vm597_vm1, %v4321_v50, %v4323_v7 }
 0xa9f   :  { %4349 = vmatprep.subr.mxu1 %v4329_v2  ;;  %6213 = vset.pattern.permute.xlu1 %v11275_v40 }
 0xaa0   :  { %5039 = vperm.xlu1 %6213, %v9617_v57  }
 0xaa1   :  { %v4319_v24 = vpop.permute.xlu1 %4318 }
 0xaa2   :  { %v4328_v52 = vsel %vm597_vm1, %v4319_v24, %v4321_v50 }
 0xaa3   :  { %4350 = vmatpush1.msra.mxu1 %v4328_v52 }
 0xaa4   :  { %5851 = vmatmul.mubr.msk.f32.vlgmr.msra.gmra.mrb[6].mxu1 %vm2447_vm12, %v4276_v29  ;;  %6214 = vset.pattern.permute.xlu1 %v11276_v16  ;;  %v11294_v29 = vmov 29  }
 0xaa5   :  { %4415 = vmatprep.mubr.f32.mxu1 %v11277_v39  ;;  %5063 = vperm.xlu1 %6214, %v9617_v57  }
 0xaa8   :  { %5852 = vmatmul.mubr.msk.f32.gmra.mrb[8].mxu1 %vm2447_vm12, %v4277_v11 }
 0xaa9   :  { %4421 = vmatprep.mubr.f32.mxu1 %v11277_v39  ;;  %6216 = vset.pattern.permute.xlu1 %v11278_v10 }
 0xaaa   :  { %5106 = vperm.xlu1 %6216, %v9617_v57  }
 0xaac   :  { %5853 = vmatmul.mubr.msk.f32.gmra.mrb[10].mxu1 %vm2447_vm12, %v4278_v54 }
 0xaad   :  { %v4285_v24 = vpop.permute.xlu0 %4284 }
 0xaae   :  { %6218 = vset.pattern.permute.xlu1 %v11279_v60 }
 0xaaf   :  { %5202 = vperm.xlu1 %6218, %v9617_v57  }
 0xab1   :  { %v4295_v52 = vpop.permute.xlu0 %4294 }
 0xab2   :  { %v9696_v59 = vpop.permute.xlu1 %4289 }
 0xab3   :  { %6219 = vset.pattern.permute.xlu1 %v11280_v63 }
 0xab4   :  { %5346 = vperm.xlu1 %6219, %v9617_v57  }
 0xab5   :  { %v9805_v16 = vpop.permute.xlu0 %4602 }
 0xab6   :  { %v9700_v20 = vpop.permute.xlu1 %4516  ;;  %11295 = vst [vmem:[#allocation24_spill] sm:$0xff] %v9805_v16 }
 0xab8   :  { %6221 = vset.pattern.permute.xlu1 %v11281_v62 }
 0xab9   :  { %5514 = vperm.xlu1 %6221, %v9617_v57  }
 0xaba   :  { %v9807_v39 = vpop.permute.xlu0 %4616 }
 0xabb   :  { %v9704_v32 = vpop.permute.xlu1 %4609 }
 0xabd   :  { %6222 = vset.pattern.permute.xlu1 %v11282_v6 }
 0xabe   :  { %5226 = vperm.xlu1 %6222, %v9617_v57  }
 0xabf   :  { %v9809_v11 = vpop.permute.xlu0 %4637 }
 0xac0   :  { %v9708_v49 = vpop.permute.xlu1 %4623 }
 0xac2   :  { %6224 = vset.pattern.permute.xlu1 %v11283_v30 }
 0xac3   :  { %5538 = vperm.xlu1 %6224, %v9617_v57  }
 0xac5   :  { %v9712_v53 = vpop.permute.xlu1 %4630 }
 0xac7   :  { %6225 = vset.pattern.permute.xlu1 %v11284_v55 }
 0xac8   :  { %5130 = vperm.xlu1 %6225, %v9617_v57  }
 0xaca   :  { %v9716_v23 = vpop.permute.xlu1 %4644 }
 0xacc   :  { %6227 = vset.pattern.permute.xlu1 %v11285_v12 }
 0xacd   :  { %5394 = vperm.xlu1 %6227, %v9617_v57  }
 0xacf   :  { %v9720_v3 = vpop.permute.xlu1 %4651 }
 0xad0   :  { %v4654_v48 = vmul.f32 0.0, %v9720_v3 }
 0xad1   :  { %6228 = vset.pattern.permute.xlu1 %v11286_v56 }
 0xad2   :  { %4660 = vrot.lane.b32.xlu0 %v4654_v48, %s6389_s28  ;;  %5418 = vperm.xlu1 %6228, %v9617_v57  }
 0xad4   :  { %v9726_v36 = vpop.permute.xlu1 %4675 }
 0xad5   :  { %v4678_v5 = vmul.f32 0.0, %v9726_v36 }
 0xad6   :  { %6230 = vset.pattern.permute.xlu1 %v11287_v37 }
 0xad7   :  { %4684 = vrot.lane.b32.xlu0 %v4678_v5, %s6389_s28  ;;  %5442 = vperm.xlu1 %6230, %v9617_v57  }
 0xad9   :  { %v9732_v51 = vpop.permute.xlu1 %4699 }
 0xada   :  { %v4702_v61 = vmul.f32 0.0, %v9732_v51 }
 0xadb   :  { %6231 = vset.pattern.permute.xlu1 %v11288_v47 }
 0xadc   :  { %4708 = vrot.lane.b32.xlu0 %v4702_v61, %s6389_s28  ;;  %5562 = vperm.xlu1 %6231, %v9617_v57  }
 0xade   :  { %v9738_v19 = vpop.permute.xlu1 %4723 }
 0xadf   :  { %v4726_v28 = vmul.f32 0.0, %v9738_v19 }
 0xae0   :  { %6233 = vset.pattern.permute.xlu1 %v11289_v31 }
 0xae1   :  { %4732 = vrot.lane.b32.xlu0 %v4726_v28, %s6389_s28  ;;  %5466 = vperm.xlu1 %6233, %v9617_v57  }
 0xae3   :  { %v9744_v26 = vpop.permute.xlu1 %4747 }
 0xae4   :  { %v4750_v38 = vmul.f32 0.0, %v9744_v26 }
 0xae5   :  { %6234 = vset.pattern.permute.xlu1 %v11290_v21 }
 0xae6   :  { %4756 = vrot.lane.b32.xlu0 %v4750_v38, %s6389_s28  ;;  %5610 = vperm.xlu1 %6234, %v9617_v57  }
 0xae8   :  { %v9750_v0 = vpop.permute.xlu1 %4771 }
 0xae9   :  { %v4774_v8 = vmul.f32 0.0, %v9750_v0 }
 0xaea   :  { %6236 = vset.pattern.permute.xlu1 %v11291_v41 }
 0xaeb   :  { %4780 = vrot.lane.b32.xlu0 %v4774_v8, %s6389_s28  ;;  %5154 = vperm.xlu1 %6236, %v9617_v57  }
 0xaed   :  { %v9756_v25 = vpop.permute.xlu1 %4795 }
 0xaee   :  { %v4798_v34 = vmul.f32 0.0, %v9756_v25 }
 0xaef   :  { %6237 = vset.pattern.permute.xlu1 %v11292_v42 }
 0xaf0   :  { %4804 = vrot.lane.b32.xlu0 %v4798_v34, %s6389_s28  ;;  %5322 = vperm.xlu1 %6237, %v9617_v57  }
 0xaf2   :  { %v9762_v15 = vpop.permute.xlu1 %4819 }
 0xaf3   :  { %v4822_v44 = vmul.f32 0.0, %v9762_v15 }
 0xaf4   :  { %6239 = vset.pattern.permute.xlu1 %v11293_v4 }
 0xaf5   :  { %4828 = vrot.lane.b32.xlu0 %v4822_v44, %s6391_s29 }
 0xaf7   :  { %v9767_v22 = vpop.permute.xlu1 %4843 }
 0xaf8   :  { %v4846_v14 = vmul.f32 0.0, %v9767_v22 }
 0xafa   :  { %4852 = vrot.lane.b32.xlu0 %v4846_v14, %s6391_s29 }
 0xafc   :  { %v9771_v9 = vpop.permute.xlu1 %4867 }
 0xafd   :  { %v4870_v33 = vmul.f32 0.0, %v9771_v9 }
 0xaff   :  { %4876 = vrot.lane.b32.xlu0 %v4870_v33, %s6391_s29 }
 0xb01   :  { %v9775_v17 = vpop.permute.xlu1 %4891 }
 0xb02   :  { %v4894_v43 = vmul.f32 0.0, %v9775_v17 }
 0xb04   :  { %4900 = vrot.lane.b32.xlu0 %v4894_v43, %s6391_s29 }
 0xb06   :  { %v9779_v13 = vpop.permute.xlu1 %4915 }
 0xb07   :  { %v4918_v58 = vmul.f32 0.0, %v9779_v13 }
 0xb09   :  { %4924 = vrot.lane.b32.xlu0 %v4918_v58, %s6391_s29 }
 0xb0b   :  { %v9783_v1 = vpop.permute.xlu1 %4939 }
 0xb0c   :  { %v4942_v27 = vmul.f32 0.0, %v9783_v1 }
 0xb0e   :  { %4948 = vrot.lane.b32.xlu0 %v4942_v27, %s6391_s29 }
 0xb10   :  { %v9787_v45 = vpop.permute.xlu1 %4963 }
 0xb11   :  { %v4966_v46 = vmul.f32 0.0, %v9787_v45 }
 0xb13   :  { %4972 = vrot.lane.b32.xlu0 %v4966_v46, %s6391_s29 }
 0xb15   :  { %v9791_v18 = vpop.permute.xlu1 %4991 }
 0xb16   :  { %v4994_v35 = vmul.f32 0.0, %v9791_v18 }
 0xb18   :  { %5000 = vrot.lane.b32.xlu0 %v4994_v35, %s6394_s9 }
 0xb1a   :  { %v9795_v7 = vpop.permute.xlu1 %5015 }
 0xb1b   :  { %v5018_v50 = vmul.f32 0.0, %v9795_v7 }
 0xb1d   :  { %5024 = vrot.lane.b32.xlu0 %v5018_v50, %s6394_s9 }
 0xb1f   :  { %v9799_v2 = vpop.permute.xlu1 %5039 }
 0xb20   :  { %v5042_v40 = vmul.f32 0.0, %v9799_v2 }
 0xb22   :  { %5048 = vrot.lane.b32.xlu0 %v5042_v40, %s6394_s9 }
 0xb24   :  { %v9817_v63 = vpop.permute.xlu1 %5063 }
 0xb26   :  { %5082 = vperm.xlu0 %6215, %v9617_v57  }
 0xb29   :  { %v9821_v6 = vpop.permute.xlu1 %5106 }
 0xb2a   :  { %6217 = vset.pattern.permute.xlu0 %v11294_v29 }
 0xb2e   :  { %v9823_v30 = vpop.permute.xlu1 %5202 }
 0xb2f   :  { %v5207_v12 = vmul.f32 0.0, %v9823_v30 }
 0xb31   :  { %5215 = vrot.lane.b32.xlu1 %v5207_v12, %s11217_s25 }
 0xb44   :  { %v9811_v54 = vpop.permute.xlu0 %4660 }
 0xb45   :  { %11296 = vst [vmem:[#allocation31_spill] sm:$0xff] %v9811_v54 }
 0xb49   :  { %v9813_v10 = vpop.permute.xlu0 %4684 }
 0xb4e   :  { %v9815_v60 = vpop.permute.xlu0 %4708 }
 0xb53   :  { %v9819_v62 = vpop.permute.xlu0 %4732 }
 0xb58   :  { %v9825_v55 = vpop.permute.xlu0 %4756 }
 0xb5d   :  { %v9829_v48 = vpop.permute.xlu0 %4780 }
 0xb5e   :  { %11297 = vst [vmem:[#allocation30_spill] sm:$0xff] %v9829_v48 }
 0xb62   :  { %v9831_v56 = vpop.permute.xlu0 %4804 }
 0xb63   :  { %11298 = vst [vmem:[#allocation32_spill] sm:$0xff] %v9831_v56 }
 0xb67   :  { %v9833_v5 = vpop.permute.xlu0 %4828 }
 0xb68   :  { %11299 = vst [vmem:[#allocation25_spill] sm:$0xff] %v9833_v5 }
 0xb6c   :  { %v9835_v37 = vpop.permute.xlu0 %4852 }
 0xb71   :  { %v9837_v61 = vpop.permute.xlu0 %4876 }
 0xb76   :  { %v9839_v34 = vpop.permute.xlu0 %4900 }
 0xb77   :  { %v4411_v47 = vpop.f32.mrb[6].mxu1 }
 0xb78   :  { %v4412_v28 = vadd.f32 %v4411_v47, %v4285_v24  ;;  %v4413_v31 = vpop.f32.mrb[7].mxu1 }
 0xb79   :  { %v4414_v38 = vadd.f32 %v4413_v31, %v4285_v24 }
 0xb7a   :  { %v5854_v21 = vmul.f32 -1.442695, %v4412_v28 }
 0xb7b   :  { %v5855_v8 = vmul.f32 -1.442695, %v4414_v38  ;;  %v4417_v41 = vpop.f32.mrb[8].mxu1  ;;  %v9843_v50 = vpop.permute.xlu0 %4924 }
 0xb7c   :  { %6265 = vpow2.f32 %v5854_v21  ;;  %v4418_v42 = vadd.f32 %v4417_v41, %v9696_v59  ;;  %v4419_v44 = vpop.f32.mrb[9].mxu1 }
 0xb7d   :  { %6267 = vpow2.f32 %v5855_v8  ;;  %v4420_v14 = vadd.f32 %v4419_v44, %v9696_v59 }
 0xb7e   :  { %v5856_v33 = vmul.f32 -1.442695, %v4418_v42 }
 0xb7f   :  { %v5857_v43 = vmul.f32 -1.442695, %v4420_v14  ;;  %v4423_v58 = vpop.f32.mrb[10].mxu1 }
 0xb80   :  { %6269 = vpow2.f32 %v5856_v33  ;;  %v4424_v27 = vadd.f32 %v4423_v58, %v4295_v52  ;;  %v4425_v46 = vpop.f32.mrb[11].mxu1  ;;  %v9845_v31 = vpop.permute.xlu0 %4948 }
 0xb81   :  { %6271 = vpow2.f32 %v5857_v43  ;;  %v4426_v35 = vadd.f32 %v4425_v46, %v4295_v52  ;;  %11300 = vst [vmem:[#allocation21_spill] sm:$0xff] %v9845_v31 }
 0xb82   :  { %v5858_v40 = vmul.f32 -1.442695, %v4424_v27 }
 0xb83   :  { %v5859_v24 = vmul.f32 -1.442695, %v4426_v35 }
 0xb84   :  { %6273 = vpow2.f32 %v5858_v40 }
 0xb85   :  { %6275 = vpow2.f32 %v5859_v24  ;;  %v9847_v52 = vpop.permute.xlu0 %4972 }
 0xb86   :  { %v6266_v29 = vpop.eup %6265  ;;  %11301 = vst [vmem:[#allocation42_spill] sm:$0xff] %v9847_v52 }
 0xb87   :  { %v6268_v12 = vpop.eup %6267  ;;  %v4446_v47 = vadd.f32 1.0, %v6266_v29 }
 0xb88   :  { %v4447_v59 = vadd.f32 1.0, %v6268_v12 }
 0xb89   :  { %6277 = vrcp.f32 %v4446_v47 }
 0xb8a   :  { %v6270_v21 = vpop.eup %6269  ;;  %6279 = vrcp.f32 %v4447_v59  ;;  %v9849_v24 = vpop.permute.xlu0 %5000 }
 0xb8b   :  { %v6272_v8 = vpop.eup %6271  ;;  %v4448_v41 = vadd.f32 1.0, %v6270_v21  ;;  %11302 = vst [vmem:[#allocation35_spill] sm:$0xff] %v9849_v24 }
 0xb8c   :  { %v4449_v44 = vadd.f32 1.0, %v6272_v8 }
 0xb8d   :  { %6281 = vrcp.f32 %v4448_v41 }
 0xb8e   :  { %v6274_v33 = vpop.eup %6273  ;;  %6283 = vrcp.f32 %v4449_v44 }
 0xb8f   :  { %v6276_v43 = vpop.eup %6275  ;;  %v4450_v58 = vadd.f32 1.0, %v6274_v33  ;;  %v9851_v44 = vpop.permute.xlu0 %5024 }
 0xb90   :  { %v4451_v46 = vadd.f32 1.0, %v6276_v43 }
 0xb91   :  { %6285 = vrcp.f32 %v4450_v58 }
 0xb92   :  { %6287 = vrcp.f32 %v4451_v46 }
 0xb93   :  { %v6278_v40 = vpop.eup %6277 }
 0xb94   :  { %v6280_v29 = vpop.eup %6279  ;;  %v4464_v12 = vmul.f32 %v6278_v40, %v4412_v28  ;;  %v9853_v40 = vpop.permute.xlu0 %5048 }
 0xb95   :  { %v4465_v47 = vmul.f32 %v6280_v29, %v4414_v38 }
 0xb96   :  { %v5860_v59 = vmul.f32 -1.442695, %v4464_v12 }
 0xb97   :  { %v6282_v5 = vpop.eup %6281  ;;  %v5861_v21 = vmul.f32 -1.442695, %v4465_v47 }
 0xb98   :  { %v6284_v8 = vpop.eup %6283  ;;  %6289 = vpow2.f32 %v5860_v59  ;;  %v4466_v41 = vmul.f32 %v6282_v5, %v4418_v42 }
 0xb99   :  { %6291 = vpow2.f32 %v5861_v21  ;;  %v4467_v54 = vmul.f32 %v6284_v8, %v4420_v14 }
 0xb9a   :  { %v5862_v33 = vmul.f32 -1.442695, %v4466_v41  ;;  %v11303_v41 = vmov 37  }
 0xb9b   :  { %v6286_v43 = vpop.eup %6285  ;;  %v5863_v58 = vmul.f32 -1.442695, %v4467_v54 }
 0xb9c   :  { %v6288_v46 = vpop.eup %6287  ;;  %6293 = vpow2.f32 %v5862_v33  ;;  %v4468_v31 = vmul.f32 %v6286_v43, %v4424_v27 }
 0xb9d   :  { %6295 = vpow2.f32 %v5863_v58  ;;  %v4469_v24 = vmul.f32 %v6288_v46, %v4426_v35 }
 0xb9e   :  { %v5864_v28 = vmul.f32 -1.442695, %v4468_v31 }
 0xb9f   :  { %v5865_v38 = vmul.f32 -1.442695, %v4469_v24 }
 0xba0   :  { %6297 = vpow2.f32 %v5864_v28  ;;  %v11304_v28 = vld [vmem:[#allocation26_spill] sm:$0xff] }
 0xba1   :  { %6299 = vpow2.f32 %v5865_v38 }
 0xba2   :  { %v6290_v29 = vpop.eup %6289 }
 0xba3   :  { %v6292_v5 = vpop.eup %6291  ;;  %v4488_v42 = vadd.f32 1.0, %v6290_v29  ;;  %v11305_v29 = vld [vmem:[#allocation34_spill] sm:$0xff] }
 0xba4   :  { %v4489_v14 = vadd.f32 1.0, %v6292_v5 }
 0xba5   :  { %v9855_v12 = vpop.permute.xlu0 %5082  ;;  %6301 = vrcp.f32 %v4488_v42  ;;  %v11306_v42 = vld [vmem:[#allocation27_spill] sm:$0xff] }
 0xba6   :  { %v6294_v47 = vpop.eup %6293  ;;  %v5087_v54 = vmul.f32 0.0, %v9855_v12  ;;  %6303 = vrcp.f32 %v4489_v14 }
 0xba7   :  { %v6296_v59 = vpop.eup %6295  ;;  %v4490_v27 = vadd.f32 1.0, %v6294_v47  ;;  %v11307_v47 = vld [vmem:[#allocation29_spill] sm:$0xff] }
 0xba8   :  { %v4491_v35 = vadd.f32 1.0, %v6296_v59  ;;  %5095 = vrot.lane.b32.xlu0 %v5087_v54, %s6394_s9  ;;  %v11308_v59 = vmov 32  }
 0xba9   :  { %6305 = vrcp.f32 %v4490_v27 }
 0xbaa   :  { %v6298_v31 = vpop.eup %6297  ;;  %6307 = vrcp.f32 %v4491_v35 }
 0xbab   :  { %v6300_v24 = vpop.eup %6299  ;;  %v4492_v21 = vadd.f32 1.0, %v6298_v31 }
 0xbac   :  { %v4493_v8 = vadd.f32 1.0, %v6300_v24  ;;  %5178 = vperm.xlu0 %6217, %v9617_v57  }
 0xbae   :  { %6309 = vrcp.f32 %v4493_v8 }
 0xbaf   :  { %6311 = vrcp.f32 %v4492_v21  ;;  %v6302_v33 = vpop.eup %6301  ;;  %v11309_v21 = vld [vmem:[#allocation12_spill] sm:$0xff] }
 0xbb0   :  { %6220 = vset.pattern.permute.xlu0 %v11303_v41  ;;  %v6304_v43 = vpop.eup %6303  ;;  %v4506_v38 = vmul.f32 %v6302_v33, %v11304_v28  ;;  %v11310_v41 = vmov 33   ;;  %v11311_v33 = vld [vmem:[#allocation9_spill] sm:$0xff]  ;;  %v11313_v28 = vmov 46  }
 0xbb1   :  { %5370 = vperm.xlu0 %6220, %v9617_v57   ;;  %v4507_v14 = vmul.f32 %v6304_v43, %v11306_v42 }
 0xbb3   :  { %v6306_v58 = vpop.eup %6305 }
 0xbb4   :  { %v6308_v46 = vpop.eup %6307  ;;  %v4508_v5 = vmul.f32 %v6306_v58, %v11305_v29  ;;  %v4512_v58 = vld [vmem:[%s10782_s5] sm:$0xff]  ;;  %v11315_v29 = vmov 42  }
 0xbb5   :  { %v4509_v54 = vmul.f32 %v6308_v46, %v11307_v47  ;;  %6223 = vset.pattern.permute.xlu0 %v11308_v59  ;;  %v11312_v46 = vmov 34  }
 0xbb6   :  { %v5877_v27 = vpack.c.bf16 %v4508_v5, %v4506_v38  ;;  %5250 = vperm.xlu0 %6223, %v9617_v57   ;;  %v11314_v38 = vmov 48   ;;  %v9885_v5 = vpop.permute.xlu1 %5346 }
 0xbb7   :  { %v5875_v35 = vpack.c.bf16 %v4509_v54, %v4507_v14 }
 0xbb8   :  { %v6310_v31 = vpop.eup %6309 }
 0xbb9   :  { %v6312_v24 = vpop.eup %6311  ;;  %5876 = vmatprep.subr.bf16.mxu0 %v5875_v35  ;;  %v4511_v8 = vmul.f32 %v6310_v31, %v11309_v21 }
 0xbba   :  { %5878 = vmatpush1.bf16.msra.mxu0 %v5877_v27  ;;  %6226 = vset.pattern.permute.xlu0 %v11310_v41  ;;  %v4510_v43 = vmul.f32 %v6312_v24, %v11311_v33  ;;  %v9887_v42 = vpop.permute.xlu1 %5514 }
 0xbbb   :  { %4526 = vmatprep.subr.mxu0 %v4511_v8  ;;  %5274 = vperm.xlu0 %6226, %v9617_v57   ;;  %v5519_v21 = vmul.f32 0.0, %v9887_v42  ;;  %v5111_v8 = vmul.f32 0.0, %v9821_v6 }
 0xbbe   :  { %4527 = vmatpush1.msra.mxu0 %v4510_v43  ;;  %v9889_v14 = vpop.permute.xlu1 %5226 }
 0xbbf   :  { %5866 = vmatmul.mubr.msk.f32.vlgmr.msra.gmra.mrb[12].mxu0 %vm2447_vm12, %v4512_v58  ;;  %6229 = vset.pattern.permute.xlu0 %v11312_v46  ;;  %v5231_v43 = vmul.f32 0.0, %v9889_v14  ;;  %vm11342_vm12 = vmmov %vm11245_vm5 }
 0xbc0   :  { %5298 = vperm.xlu0 %6229, %v9617_v57  }
 0xbc2   :  { %v9891_v47 = vpop.permute.xlu1 %5538 }
 0xbc3   :  { %v5543_v46 = vmul.f32 0.0, %v9891_v47 }
 0xbc4   :  { %6232 = vset.pattern.permute.xlu0 %v11313_v28 }
 0xbc5   :  { %5586 = vperm.xlu0 %6232, %v9617_v57  }
 0xbc6   :  { %v9895_v59 = vpop.permute.xlu1 %5130 }
 0xbc7   :  { %v5135_v28 = vmul.f32 0.0, %v9895_v59 }
 0xbc9   :  { %6235 = vset.pattern.permute.xlu0 %v11314_v38 }
 0xbca   :  { %5634 = vperm.xlu0 %6235, %v9617_v57  }
 0xbce   :  { %6238 = vset.pattern.permute.xlu0 %v11315_v29 }
 0xbcf   :  { %5490 = vperm.xlu0 %6238, %v9617_v57   ;;  %v5351_v57 = vmul.f32 0.0, %v9885_v5 }
 0xbd3   :  { %6240 = vset.pattern.permute.xlu0 %v11293_v4  ;;  %v9902_v4 = vpop.permute.xlu1 %5394 }
 0xbd7   :  { %v9911_v41 = vpop.permute.xlu1 %5418 }
 0xbdb   :  { %v9923_v38 = vpop.permute.xlu1 %5442 }
 0xc1a   :  { %v9893_v54 = vpop.permute.xlu0 %5095 }
 0xc1b   :  { %11316 = vst [vmem:[#allocation28_spill] sm:$0xff] %v9893_v54 }
 0xc2b   :  { %v9897_v27 = vpop.permute.xlu0 %5178 }
 0xc2c   :  { %v5183_v35 = vmul.f32 0.0, %v9897_v27 }
 0xc2e   :  { %5191 = vrot.lane.b32.xlu0 %v5183_v35, %s11217_s25 }
 0xc30   :  { %v9904_v31 = vpop.permute.xlu0 %5370 }
 0xc31   :  { %v5375_v24 = vmul.f32 0.0, %v9904_v31 }
 0xc32   :  { %5359 = vrot.lane.b32.xlu0 %v5351_v57, %s11219_s26  ;;  %v5399_v57 = vmul.f32 0.0, %v9902_v4 }
 0xc33   :  { %5383 = vrot.lane.b32.xlu1 %v5375_v24, %s11219_s26 }
 0xc35   :  { %v9913_v33 = vpop.permute.xlu0 %5250 }
 0xc36   :  { %5527 = vrot.lane.b32.xlu0 %v5519_v21, %s6397_s12  ;;  %v5255_v58 = vmul.f32 0.0, %v9913_v33  ;;  %v9933_v21 = vpop.permute.xlu1 %5562 }
 0xc37   :  { %5119 = vrot.lane.b32.xlu1 %v5111_v8, %s6394_s9  ;;  %v5423_v8 = vmul.f32 0.0, %v9911_v41 }
 0xc3a   :  { %5239 = vrot.lane.b32.xlu0 %v5231_v43, %s11217_s25  ;;  %v9925_v29 = vpop.permute.xlu0 %5274  ;;  %v9942_v54 = vpop.permute.xlu1 %5466 }
 0xc3b   :  { %5263 = vrot.lane.b32.xlu1 %v5255_v58, %s11217_s25  ;;  %v5279_v35 = vmul.f32 0.0, %v9925_v29  ;;  %v5447_v58 = vmul.f32 0.0, %v9923_v38 }
 0xc3e   :  { %5551 = vrot.lane.b32.xlu0 %v5543_v46, %s6397_s12  ;;  %v5567_v46 = vmul.f32 0.0, %v9933_v21  ;;  %v9951_v52 = vpop.permute.xlu1 %5610 }
 0xc3f   :  { %5143 = vrot.lane.b32.xlu1 %v5135_v28, %s6394_s9  ;;  %v9931_v24 = vpop.permute.xlu0 %5298 }
 0xc40   :  { %v5303_v43 = vmul.f32 0.0, %v9931_v24 }
 0xc42   :  { %5287 = vrot.lane.b32.xlu0 %v5279_v35, %s11217_s25 }
 0xc43   :  { %5407 = vrot.lane.b32.xlu1 %v5399_v57, %s11219_s26  ;;  %v5471_v57 = vmul.f32 0.0, %v9942_v54 }
 0xc44   :  { %v9945_v28 = vpop.permute.xlu0 %5586 }
 0xc45   :  { %v5591_v35 = vmul.f32 0.0, %v9945_v28 }
 0xc46   :  { %5431 = vrot.lane.b32.xlu0 %v5423_v8, %s11219_s26  ;;  %v5615_v8 = vmul.f32 0.0, %v9951_v52 }
 0xc47   :  { %5311 = vrot.lane.b32.xlu1 %v5303_v43, %s11217_s25 }
 0xc4a   :  { %5455 = vrot.lane.b32.xlu0 %v5447_v58, %s11219_s26 }
 0xc4b   :  { %5575 = vrot.lane.b32.xlu1 %v5567_v46, %s6397_s12 }
 0xc4e   :  { %5599 = vrot.lane.b32.xlu0 %v5591_v35, %s6397_s12 }
 0xc4f   :  { %5479 = vrot.lane.b32.xlu1 %v5471_v57, %s11219_s26 }
 0xc52   :  { %5623 = vrot.lane.b32.xlu0 %v5615_v8, %s6397_s12 }
 0xc92   :  { %v4588_v43 = vpop.f32.mrb[12].mxu0 }
 0xc93   :  { %v9958_v48 = vadd.f32 %v4588_v43, %v9700_v20  ;;  %v4590_v58 = vpop.f32.mrb[13].mxu0 }
 0xc95   :  { %v4655_v56 = vmul.f32 %v9720_v3, %v9958_v48  ;;  %v5066_v46 = vmul.f32 %v9817_v63, %v9958_v48  ;;  %v4679_v35 = vmul.f32 %v9726_v36, %v9958_v48  ;;  %v5109_v57 = vmul.f32 %v9821_v6, %v9958_v48 }
 0xc96   :  { %v4703_v8 = vmul.f32 %v9732_v51, %v9958_v48  ;;  %v4727_v43 = vmul.f32 %v9738_v19, %v9958_v48 }
 0xc97   :  { %4662 = vrot.lane.b32.xlu1 %v4655_v56, %s6389_s28  ;;  %5070 = vrot.lane.b32.xlu0 %v5066_v46, %s6394_s9  ;;  %v5349_v56 = vmul.f32 %v9885_v5, %v9958_v48  ;;  %v5517_v46 = vmul.f32 %v9887_v42, %v9958_v48 }
 0xc9b   :  { %4686 = vrot.lane.b32.xlu1 %v4679_v35, %s6389_s28  ;;  %5115 = vrot.lane.b32.xlu0 %v5109_v57, %s6394_s9  ;;  %v4751_v35 = vmul.f32 %v9744_v26, %v9958_v48  ;;  %v5229_v57 = vmul.f32 %v9889_v14, %v9958_v48 }
 0xc9f   :  { %4710 = vrot.lane.b32.xlu1 %v4703_v8, %s6389_s28  ;;  %5355 = vrot.lane.b32.xlu0 %v5349_v56, %s11219_s26  ;;  %v4775_v8 = vmul.f32 %v9750_v0, %v9958_v48  ;;  %v5541_v56 = vmul.f32 %v9891_v47, %v9958_v48 }
 0xca3   :  { %4734 = vrot.lane.b32.xlu1 %v4727_v43, %s6389_s28  ;;  %5523 = vrot.lane.b32.xlu0 %v5517_v46, %s6397_s12  ;;  %v4799_v43 = vmul.f32 %v9756_v25, %v9958_v48  ;;  %v5277_v46 = vmul.f32 %v9925_v29, %v9958_v48 }
 0xca7   :  { %4758 = vrot.lane.b32.xlu1 %v4751_v35, %s6389_s28  ;;  %5235 = vrot.lane.b32.xlu0 %v5229_v57, %s11217_s25  ;;  %v4823_v35 = vmul.f32 %v9762_v15, %v9958_v48  ;;  %v5421_v57 = vmul.f32 %v9911_v41, %v9958_v48 }
 0xcab   :  { %4782 = vrot.lane.b32.xlu1 %v4775_v8, %s6389_s28  ;;  %5547 = vrot.lane.b32.xlu0 %v5541_v56, %s6397_s12  ;;  %v4847_v8 = vmul.f32 %v9767_v22, %v9958_v48  ;;  %v5445_v56 = vmul.f32 %v9923_v38, %v9958_v48 }
 0xcaf   :  { %4806 = vrot.lane.b32.xlu1 %v4799_v43, %s6389_s28  ;;  %5283 = vrot.lane.b32.xlu0 %v5277_v46, %s11217_s25  ;;  %v4871_v43 = vmul.f32 %v9771_v9, %v9958_v48  ;;  %v5589_v46 = vmul.f32 %v9945_v28, %v9958_v48 }
 0xcb3   :  { %4830 = vrot.lane.b32.xlu1 %v4823_v35, %s6391_s29  ;;  %5427 = vrot.lane.b32.xlu0 %v5421_v57, %s11219_s26  ;;  %v4895_v35 = vmul.f32 %v9775_v17, %v9958_v48  ;;  %v5613_v57 = vmul.f32 %v9951_v52, %v9958_v48 }
 0xcb7   :  { %4854 = vrot.lane.b32.xlu1 %v4847_v8, %s6391_s29  ;;  %5451 = vrot.lane.b32.xlu0 %v5445_v56, %s11219_s26  ;;  %v10026_v8 = vadd.f32 %v4590_v58, %v9700_v20  ;;  %v4919_v56 = vmul.f32 %v9779_v13, %v9958_v48  ;;  %v4967_v58 = vmul.f32 %v9787_v45, %v9958_v48 }
 0xcb9   :  { %v4680_v20 = vmul.f32 %v9726_v36, %v10026_v8  ;;  %v4728_v36 = vmul.f32 %v9738_v19, %v10026_v8 }
 0xcbb   :  { %4878 = vrot.lane.b32.xlu1 %v4871_v43, %s6391_s29  ;;  %5595 = vrot.lane.b32.xlu0 %v5589_v46, %s6397_s12  ;;  %v4656_v43 = vmul.f32 %v9720_v3, %v10026_v8  ;;  %v4943_v46 = vmul.f32 %v9783_v1, %v9958_v48  ;;  %v10046_v3 = vpop.permute.xlu1 %5154 }
 0xcbf   :  { %4902 = vrot.lane.b32.xlu1 %v4895_v35, %s6391_s29  ;;  %5619 = vrot.lane.b32.xlu0 %v5613_v57, %s6397_s12  ;;  %v10042_v35 = vpop.permute.xlu0 %5634  ;;  %v4704_v57 = vmul.f32 %v9732_v51, %v10026_v8  ;;  %v4752_v51 = vmul.f32 %v9744_v26, %v10026_v8 }
 0xcc3   :  { %4926 = vrot.lane.b32.xlu1 %v4919_v56, %s6391_s29  ;;  %4664 = vrot.lane.b32.xlu0 %v4656_v43, %s6389_s28  ;;  %v4995_v56 = vmul.f32 %v9791_v18, %v9958_v48  ;;  %v10056_v43 = vpop.permute.xlu0 %5490 }
 0xcc7   :  { %4950 = vrot.lane.b32.xlu1 %v4943_v46, %s6391_s29  ;;  %4688 = vrot.lane.b32.xlu0 %v4680_v20, %s6389_s28  ;;  %v5019_v46 = vmul.f32 %v9795_v7, %v9958_v48  ;;  %v10060_v20 = vpop.permute.xlu1 %5322 }
 0xccb   :  { %4974 = vrot.lane.b32.xlu1 %v4967_v58, %s6391_s29  ;;  %4712 = vrot.lane.b32.xlu0 %v4704_v57, %s6389_s28  ;;  %v10066_v58 = vpop.permute.xlu0 %5191  ;;  %v5043_v57 = vmul.f32 %v9799_v2, %v9958_v48  ;;  %v10071_v19 = vpop.permute.xlu1 %5215 }
 0xccf   :  { %5002 = vrot.lane.b32.xlu1 %v4995_v56, %s6394_s9  ;;  %4736 = vrot.lane.b32.xlu0 %v4728_v36, %s6389_s28  ;;  %v4776_v56 = vmul.f32 %v9750_v0, %v10026_v8  ;;  %v5085_v36 = vmul.f32 %v9855_v12, %v9958_v48  ;;  %v10079_v26 = vpop.permute.xlu0 %5359  ;;  %v4824_v0 = vmul.f32 %v9762_v15, %v10026_v8 }
 0xcd3   :  { %5026 = vrot.lane.b32.xlu1 %v5019_v46, %s6394_s9  ;;  %4760 = vrot.lane.b32.xlu0 %v4752_v51, %s6389_s28  ;;  %v4800_v46 = vmul.f32 %v9756_v25, %v10026_v8  ;;  %v10084_v51 = vpop.permute.xlu1 %5383 }
 0xcd4   :  { %11317 = vst [vmem:[#allocation22_spill] sm:$0xff] %v10084_v51  ;;  %v4848_v51 = vmul.f32 %v9767_v22, %v10026_v8  ;;  %v4896_v22 = vmul.f32 %v9775_v17, %v10026_v8 }
 0xcd7   :  { %5050 = vrot.lane.b32.xlu1 %v5043_v57, %s6394_s9  ;;  %4784 = vrot.lane.b32.xlu0 %v4776_v56, %s6389_s28  ;;  %v5181_v57 = vmul.f32 %v9897_v27, %v9958_v48  ;;  %v10092_v56 = vpop.permute.xlu0 %5527  ;;  %v10097_v25 = vpop.permute.xlu1 %5119 }
 0xcd8   :  { %11318 = vst [vmem:[#allocation33_spill] sm:$0xff] %v10097_v25 }
 0xcdb   :  { %5091 = vrot.lane.b32.xlu1 %v5085_v36, %s6394_s9  ;;  %4808 = vrot.lane.b32.xlu0 %v4800_v46, %s6389_s28  ;;  %v5205_v36 = vmul.f32 %v9823_v30, %v9958_v48  ;;  %v5373_v46 = vmul.f32 %v9904_v31, %v9958_v48  ;;  %v10105_v15 = vpop.permute.xlu0 %5239 }
 0xcdf   :  { %5187 = vrot.lane.b32.xlu1 %v5181_v57, %s11217_s25  ;;  %4832 = vrot.lane.b32.xlu0 %v4824_v0, %s6391_s29  ;;  %v10107_v57 = vpop.permute.xlu1 %5263  ;;  %v4872_v0 = vmul.f32 %v9771_v9, %v10026_v8  ;;  %v4920_v9 = vmul.f32 %v9779_v13, %v10026_v8 }
 0xce0   :  { %11319 = vst [vmem:[#allocation46_spill] sm:$0xff] %v10107_v57 }
 0xce3   :  { %5211 = vrot.lane.b32.xlu1 %v5205_v36, %s11217_s25  ;;  %4856 = vrot.lane.b32.xlu0 %v4848_v51, %s6391_s29  ;;  %v5253_v36 = vmul.f32 %v9913_v33, %v9958_v48  ;;  %v10118_v51 = vpop.permute.xlu0 %5551  ;;  %v10120_v25 = vpop.permute.xlu1 %5143 }
 0xce4   :  { %11320 = vst [vmem:[#allocation7_spill] sm:$0xff] %v10120_v25  ;;  %v4944_v25 = vmul.f32 %v9783_v1, %v10026_v8  ;;  %v4996_v1 = vmul.f32 %v9791_v18, %v10026_v8 }
 0xce7   :  { %5379 = vrot.lane.b32.xlu1 %v5373_v46, %s11219_s26  ;;  %4880 = vrot.lane.b32.xlu0 %v4872_v0, %s6391_s29  ;;  %v5133_v46 = vmul.f32 %v9895_v59, %v9958_v48  ;;  %v10128_v0 = vpop.permute.xlu0 %5287  ;;  %v10133_v17 = vpop.permute.xlu1 %5407 }
 0xce8   :  { %11321 = vst [vmem:[#allocation51_spill] sm:$0xff] %v10128_v0 }
 0xceb   :  { %5259 = vrot.lane.b32.xlu1 %v5253_v36, %s11217_s25  ;;  %4904 = vrot.lane.b32.xlu0 %v4896_v22, %s6391_s29  ;;  %v5397_v36 = vmul.f32 %v9902_v4, %v9958_v48  ;;  %v5301_v22 = vmul.f32 %v9931_v24, %v9958_v48  ;;  %v10141_v13 = vpop.permute.xlu0 %5431 }
 0xcec   :  { %11322 = vst [vmem:[#allocation52_spill] sm:$0xff] %v10141_v13 }
 0xcef   :  { %5139 = vrot.lane.b32.xlu1 %v5133_v46, %s6394_s9  ;;  %4928 = vrot.lane.b32.xlu0 %v4920_v9, %s6391_s29  ;;  %v10143_v46 = vpop.permute.xlu1 %5311  ;;  %v4968_v9 = vmul.f32 %v9787_v45, %v10026_v8  ;;  %v5020_v45 = vmul.f32 %v9795_v7, %v10026_v8 }
 0xcf0   :  { %11323 = vst [vmem:[#allocation91_spill] sm:$0xff] %v10143_v46  ;;  %v4606_v46 = vmul.f32 %v9805_v16, %v9958_v48 }
 0xcf3   :  { %5403 = vrot.lane.b32.xlu1 %v5397_v36, %s11219_s26  ;;  %4952 = vrot.lane.b32.xlu0 %v4944_v25, %s6391_s29  ;;  %v5565_v36 = vmul.f32 %v9933_v21, %v9958_v48  ;;  %v10154_v25 = vpop.permute.xlu0 %5455  ;;  %v10156_v0 = vpop.permute.xlu1 %5575 }
 0xcf4   :  { %11324 = vst [vmem:[#allocation90_spill] sm:$0xff] %v10154_v25  ;;  %v5044_v25 = vmul.f32 %v9799_v2, %v10026_v8  ;;  %v5374_v2 = vmul.f32 %v9904_v31, %v10026_v8 }
 0xcf7   :  { %5307 = vrot.lane.b32.xlu1 %v5301_v22, %s11217_s25  ;;  %4976 = vrot.lane.b32.xlu0 %v4968_v9, %s6391_s29  ;;  %v5469_v22 = vmul.f32 %v9942_v54, %v9958_v48  ;;  %v10164_v9 = vpop.permute.xlu0 %5599  ;;  %v10169_v18 = vpop.permute.xlu1 %5479 }
 0xcf8   :  { %11325 = vst [vmem:[#allocation101_spill] sm:$0xff] %v10164_v9  ;;  %11326 = vst [vmem:[#allocation53_spill] sm:$0xff] %v10169_v18 }
 0xcfb   :  { %5571 = vrot.lane.b32.xlu1 %v5565_v36, %s6397_s12  ;;  %5004 = vrot.lane.b32.xlu0 %v4996_v1, %s6394_s9  ;;  %v5637_v36 = vmul.f32 %v10042_v35, %v9958_v48  ;;  %v5067_v1 = vmul.f32 %v9817_v63, %v10026_v8  ;;  %v10177_v7 = vpop.permute.xlu0 %5623 }
 0xcfc   :  { %11327 = vst [vmem:[#allocation58_spill] sm:$0xff] %v10177_v7 }
 0xcff   :  { %5475 = vrot.lane.b32.xlu1 %v5469_v22, %s11219_s26  ;;  %5028 = vrot.lane.b32.xlu0 %v5020_v45, %s6394_s9  ;;  %v5206_v22 = vmul.f32 %v9823_v30, %v10026_v8  ;;  %v5254_v30 = vmul.f32 %v9913_v33, %v10026_v8 }
 0xd03   :  { %5643 = vrot.lane.b32.xlu1 %v5637_v36, %s6397_s12  ;;  %5052 = vrot.lane.b32.xlu0 %v5044_v25, %s6394_s9  ;;  %v5086_v36 = vmul.f32 %v9855_v12, %v10026_v8  ;;  %v5110_v25 = vmul.f32 %v9821_v6, %v10026_v8  ;;  %v5134_v6 = vmul.f32 %v9895_v59, %v10026_v8 }
 0xd07   :  { %5072 = vrot.lane.b32.xlu1 %v5067_v1, %s6394_s9  ;;  %5213 = vrot.lane.b32.xlu0 %v5206_v22, %s11217_s25  ;;  %v5182_v22 = vmul.f32 %v9897_v27, %v10026_v8  ;;  %v5398_v27 = vmul.f32 %v9902_v4, %v10026_v8 }
 0xd09   :  { %v10182_v45 = vpop.permute.xlu1 %4662  ;;  %v10190_v63 = vpop.permute.xlu0 %5070 }
 0xd0a   :  { %11328 = vst [vmem:[#allocation60_spill] sm:$0xff] %v10182_v45 }
 0xd0b   :  { %5093 = vrot.lane.b32.xlu1 %v5086_v36, %s6394_s9  ;;  %5381 = vrot.lane.b32.xlu0 %v5374_v2, %s11219_s26  ;;  %v5350_v2 = vmul.f32 %v9885_v5, %v10026_v8  ;;  %v5302_v5 = vmul.f32 %v9931_v24, %v10026_v8 }
 0xd0d   :  { %v10194_v1 = vpop.permute.xlu1 %4686  ;;  %v10200_v12 = vpop.permute.xlu0 %5115 }
 0xd0e   :  { %11329 = vst [vmem:[#allocation62_spill] sm:$0xff] %v10200_v12 }
 0xd0f   :  { %5117 = vrot.lane.b32.xlu1 %v5110_v25, %s6394_s9  ;;  %5261 = vrot.lane.b32.xlu0 %v5254_v30, %s11217_s25  ;;  %v5518_v30 = vmul.f32 %v9887_v42, %v10026_v8  ;;  %v5566_v42 = vmul.f32 %v9933_v21, %v10026_v8 }
 0xd11   :  { %v10204_v31 = vpop.permute.xlu1 %4710  ;;  %v10210_v36 = vpop.permute.xlu0 %5355 }
 0xd13   :  { %5189 = vrot.lane.b32.xlu1 %v5182_v22, %s11217_s25  ;;  %5141 = vrot.lane.b32.xlu0 %v5134_v6, %s6394_s9  ;;  %v5230_v6 = vmul.f32 %v9889_v14, %v10026_v8  ;;  %v5470_v14 = vmul.f32 %v9942_v54, %v10026_v8 }
 0xd15   :  { %v10214_v33 = vpop.permute.xlu1 %4734  ;;  %v10220_v25 = vpop.permute.xlu0 %5523 }
 0xd17   :  { %5357 = vrot.lane.b32.xlu1 %v5350_v2, %s11219_s26  ;;  %5405 = vrot.lane.b32.xlu0 %v5398_v27, %s11219_s26  ;;  %v5542_v27 = vmul.f32 %v9891_v47, %v10026_v8  ;;  %v5638_v47 = vmul.f32 %v10042_v35, %v10026_v8 }
 0xd19   :  { %v10224_v59 = vpop.permute.xlu1 %4758  ;;  %v10230_v22 = vpop.permute.xlu0 %5235 }
 0xd1b   :  { %5525 = vrot.lane.b32.xlu1 %v5518_v30, %s6397_s12  ;;  %5309 = vrot.lane.b32.xlu0 %v5302_v5, %s11217_s25  ;;  %v5278_v5 = vmul.f32 %v9925_v29, %v10026_v8  ;;  %v5157_v29 = vmul.f32 %v10046_v3, %v9958_v48 }
 0xd1d   :  { %v10234_v4 = vpop.permute.xlu1 %4782  ;;  %v10240_v2 = vpop.permute.xlu0 %5547 }
 0xd1f   :  { %5237 = vrot.lane.b32.xlu1 %v5230_v6, %s11217_s25  ;;  %5573 = vrot.lane.b32.xlu0 %v5566_v42, %s6397_s12  ;;  %v5422_v42 = vmul.f32 %v9911_v41, %v10026_v8  ;;  %v5159_v41 = vmul.f32 0.0, %v10046_v3 }
 0xd21   :  { %v10244_v24 = vpop.permute.xlu1 %4806  ;;  %v10250_v30 = vpop.permute.xlu0 %5283 }
 0xd22   :  { %11330 = vst [vmem:[#allocation66_spill] sm:$0xff] %v10250_v30  ;;  %v4690_v30 = vsel %vm255_vm15, %v9813_v10, %v10194_v1 }
 0xd23   :  { %5549 = vrot.lane.b32.xlu1 %v5542_v27, %s6397_s12  ;;  %5477 = vrot.lane.b32.xlu0 %v5470_v14, %s11219_s26  ;;  %v5446_v14 = vmul.f32 %v9923_v38, %v10026_v8  ;;  %v5493_v38 = vmul.f32 %v10056_v43, %v9958_v48 }
 0xd25   :  { %v10254_v21 = vpop.permute.xlu1 %4830  ;;  %v10260_v6 = vpop.permute.xlu0 %5427 }
 0xd26   :  { %11331 = vst [vmem:[#allocation6_spill] sm:$0xff] %v10254_v21 }
 0xd27   :  { %5285 = vrot.lane.b32.xlu1 %v5278_v5, %s11217_s25  ;;  %5645 = vrot.lane.b32.xlu0 %v5638_v47, %s6397_s12  ;;  %v5590_v47 = vmul.f32 %v9945_v28, %v10026_v8  ;;  %v4607_v28 = vmul.f32 %v9805_v16, %v10026_v8  ;;  %v5326_v16 = vmul.f32 %v10060_v20, %v10026_v8 }
 0xd29   :  { %v10264_v54 = vpop.permute.xlu1 %4854  ;;  %v10270_v27 = vpop.permute.xlu0 %5451 }
 0xd2a   :  { %11332 = vst [vmem:[#allocation49_spill] sm:$0xff] %v10270_v27 }
 0xd2b   :  { %5429 = vrot.lane.b32.xlu1 %v5422_v42, %s11219_s26  ;;  %5163 = vrot.lane.b32.xlu0 %v5157_v29, %s11217_s25  ;;  %v5614_v29 = vmul.f32 %v9951_v52, %v10026_v8 }
 0xd2d   :  { %v10274_v5 = vpop.permute.xlu1 %4878  ;;  %v10279_v7 = vpop.permute.xlu0 %5595 }
 0xd2e   :  { %11333 = vst [vmem:[#allocation48_spill] sm:$0xff] %v10279_v7  ;;  %v4628_v7 = vmul.f32 %v9708_v49, %v10026_v8 }
 0xd2f   :  { %5453 = vrot.lane.b32.xlu1 %v5446_v14, %s11219_s26  ;;  %5167 = vrot.lane.b32.xlu0 %v5159_v41, %s11217_s25  ;;  %v5495_v41 = vmul.f32 0.0, %v10056_v43 }
 0xd31   :  { %v10283_v42 = vpop.permute.xlu1 %4902  ;;  %v10289_v18 = vpop.permute.xlu0 %5619 }
 0xd32   :  { %11334 = vst [vmem:[#allocation50_spill] sm:$0xff] %v10289_v18  ;;  %v5639_v18 = vmul.f32 0.0, %v10042_v35 }
 0xd33   :  { %5597 = vrot.lane.b32.xlu1 %v5590_v47, %s6397_s12  ;;  %5499 = vrot.lane.b32.xlu0 %v5493_v38, %s6397_s12 }
 0xd35   :  { %v10293_v14 = vpop.permute.xlu1 %4926  ;;  %v4665_v47 = vpop.permute.xlu0 %4664 }
 0xd36   :  { %v4667_v52 = vsel %vm255_vm15, %v10182_v45, %v4665_v47  ;;  %v10305_v9 = vadd.f32 %v4665_v47, %v4607_v28  ;;  %v4613_v45 = vmul.f32 %v9704_v32, %v9958_v48  ;;  %v5325_v28 = vmul.f32 %v10060_v20, %v9958_v48 }
 0xd37   :  { %5621 = vrot.lane.b32.xlu1 %v5614_v29, %s6397_s12  ;;  %v10309_v38 = vadd.f32 %v4667_v52, %v4606_v46  ;;  %5503 = vrot.lane.b32.xlu0 %v5495_v41, %s6397_s12  ;;  %v4614_v29 = vmul.f32 %v9704_v32, %v10026_v8 }
 0xd39   :  { %v10307_v27 = vpop.permute.xlu1 %4950  ;;  %v4689_v35 = vpop.permute.xlu0 %4688 }
 0xd3a   :  { %v4691_v46 = vsel %vm255_vm15, %v10194_v1, %v4689_v35  ;;  %v10323_v47 = vadd.f32 %v4689_v35, %v4614_v29  ;;  %v4620_v29 = vmul.f32 %v9807_v39, %v9958_v48  ;;  %v4612_v35 = vmul.f32 0.0, %v9704_v32 }
 0xd3b   :  { %5647 = vrot.lane.b32.xlu1 %v5639_v18, %s6397_s12  ;;  %v10327_v52 = vadd.f32 %v4691_v46, %v4613_v45  ;;  %5333 = vrot.lane.b32.xlu0 %v5326_v16, %s11219_s26  ;;  %v4621_v18 = vmul.f32 %v9807_v39, %v10026_v8  ;;  %v5327_v45 = vmul.f32 0.0, %v10060_v20  ;;  %v4714_v32 = vsel %vm255_vm15, %v9815_v60, %v10204_v31 }
 0xd3c   :  { %v4695_v1 = vadd.f32 %v4690_v30, %v4612_v35  ;;  %v4882_v60 = vsel %vm424_vm0, %v9837_v61, %v10274_v5  ;;  %v5158_v61 = vmul.f32 %v10046_v3, %v10026_v8 }
 0xd3d   :  { %v10325_v41 = vpop.permute.xlu1 %4974  ;;  %v4713_v13 = vpop.permute.xlu0 %4712 }
 0xd3e   :  { %v4715_v16 = vsel %vm255_vm15, %v10204_v31, %v4713_v13  ;;  %v10342_v46 = vadd.f32 %v4713_v13, %v4621_v18  ;;  %v4627_v13 = vmul.f32 %v9708_v49, %v9958_v48  ;;  %v4619_v18 = vmul.f32 0.0, %v9807_v39 }
 0xd3f   :  { %5331 = vrot.lane.b32.xlu1 %v5325_v28, %s11219_s26  ;;  %v4858_v28 = vsel %vm424_vm0, %v9835_v37, %v10264_v54  ;;  %v10349_v10 = vadd.f32 %v4715_v16, %v4620_v29  ;;  %v4594_v37 = vld [vmem:[%s10783_s6 + $0xa0] sm:$0xff]  ;;  %v4762_v39 = vsel %vm255_vm15, %v9825_v55, %v10224_v59  ;;  %s11425_s6 = smov 51  }
 0xd40   :  { %v4863_v30 = vadd.f32 %v4858_v28, %v4695_v1  ;;  %v4719_v12 = vadd.f32 %v4714_v32, %v4619_v18  ;;  %v4633_v1 = vmul.f32 0.0, %v9712_v53  ;;  %v4930_v32 = vsel %vm424_vm0, %v9843_v50, %v10293_v14 }
 0xd41   :  { %v10344_v57 = vpop.permute.xlu1 %5002  ;;  %v4737_v20 = vpop.permute.xlu0 %4736 }
 0xd42   :  { %11335 = vst [vmem:[#allocation61_spill] sm:$0xff] %v10344_v57  ;;  %v4739_v29 = vsel %vm255_vm15, %v10214_v33, %v4737_v20  ;;  %v10365_v35 = vadd.f32 %v4737_v20, %v4628_v7  ;;  %v4635_v7 = vmul.f32 %v9712_v53, %v10026_v8 }
 0xd43   :  { %5335 = vrot.lane.b32.xlu1 %v5327_v45, %s11219_s26  ;;  %v10372_v31 = vadd.f32 %v4739_v29, %v4627_v13  ;;  %v4634_v13 = vmul.f32 %v9712_v53, %v9958_v48  ;;  %v4642_v53 = vmul.f32 %v9809_v11, %v10026_v8 }
 0xd45   :  { %v10367_v45 = vpop.permute.xlu1 %5026  ;;  %v4761_v20 = vpop.permute.xlu0 %4760 }
 0xd46   :  { %v5030_v16 = vsel %vm597_vm1, %v9851_v44, %v10367_v45  ;;  %v4887_v44 = vadd.f32 %v4882_v60, %v4719_v12  ;;  %v4763_v55 = vsel %vm255_vm15, %v10224_v59, %v4761_v20  ;;  %v10392_v18 = vadd.f32 %v4761_v20, %v4635_v7 }
 0xd47   :  { %v5035_v28 = vadd.f32 %v5030_v16, %v4863_v30  ;;  %5779 = vperm.xlu1 %6239, %v4594_v37   ;;  %v4767_v30 = vadd.f32 %v4762_v39, %v4633_v1  ;;  %v4768_v29 = vadd.f32 %v4763_v55, %v4634_v13  ;;  %v4641_v59 = vmul.f32 %v9809_v11, %v9958_v48 }
 0xd48   :  { %v5494_v16 = vmul.f32 %v10056_v43, %v10026_v8 }
 0xd49   :  { %v10394_v37 = vpop.permute.xlu1 %5050  ;;  %v4935_v50 = vadd.f32 %v4930_v32, %v4767_v30  ;;  %v4785_v60 = vpop.permute.xlu0 %4784 }
 0xd4a   :  { %v5054_v3 = vsel %vm597_vm1, %v9853_v40, %v10394_v37  ;;  %v4787_v39 = vsel %vm255_vm15, %v10234_v4, %v4785_v60  ;;  %v4793_v7 = vadd.f32 %v4785_v60, %v4642_v53 }
 0xd4b   :  { %v5059_v12 = vadd.f32 %v5054_v3, %v4887_v44  ;;  %5165 = vrot.lane.b32.xlu1 %v5158_v61, %s11217_s25  ;;  %v4792_v40 = vadd.f32 %v4787_v39, %v4641_v59  ;;  %v4649_v61 = vmul.f32 %v9716_v23, %v10026_v8  ;;  %v4648_v44 = vmul.f32 %v9716_v23, %v9958_v48 }
 0xd4d   :  { %v10408_v1 = vpop.permute.xlu1 %5091  ;;  %v4809_v13 = vpop.permute.xlu0 %4808 }
 0xd4e   :  { %v5102_v20 = vadd.f32 %v10408_v1, %v4935_v50  ;;  %v4811_v43 = vsel %vm255_vm15, %v10244_v24, %v4809_v13  ;;  %v10418_v32 = vadd.f32 %v4809_v13, %v4649_v61 }
 0xd4f   :  { %5501 = vrot.lane.b32.xlu1 %v5494_v16, %s6397_s12  ;;  %v4816_v30 = vadd.f32 %v4811_v43, %v4648_v44  ;;  %v4626_v44 = vmul.f32 0.0, %v9708_v49  ;;  %s6422_s12 = smov [#allocation3]  }
 0xd50   :  { %11336 = vst [vmem:[#allocation56_spill] sm:$0xff] %v10418_v32 }
 0xd51   :  { %v10420_v55 = vpop.permute.xlu1 %5187  ;;  %v4833_v53 = vpop.permute.xlu0 %4832 }
 0xd52   :  { %v10423_v3 = vadd.f32 %v10420_v55, %v5035_v28  ;;  %v4835_v8 = vsel %vm424_vm0, %v10254_v21, %v4833_v53  ;;  %v4841_v50 = vadd.f32 %v4833_v53, %v10305_v9  ;;  %v4738_v9 = vsel %vm255_vm15, %v9819_v62, %v10214_v33 }
 0xd53   :  { %v4840_v48 = vadd.f32 %v4835_v8, %v10309_v38  ;;  %v4743_v53 = vadd.f32 %v4738_v9, %v4626_v44 }
 0xd55   :  { %v5212_v60 = vpop.permute.xlu1 %5211  ;;  %v10431_v16 = vpop.permute.xlu0 %4856 }
 0xd56   :  { %v10429_v59 = vadd.f32 %v5212_v60, %v5059_v12  ;;  %v4859_v39 = vsel %vm424_vm0, %v10264_v54, %v10431_v16 }
 0xd57   :  { %v4864_v28 = vadd.f32 %v4859_v39, %v10327_v52  ;;  %v4906_v52 = vsel %vm424_vm0, %v9839_v34, %v10283_v42 }
 0xd59   :  { %v10436_v61 = vpop.permute.xlu1 %5379  ;;  %v10439_v13 = vpop.permute.xlu0 %4880 }
 0xd5a   :  { %v4883_v38 = vsel %vm424_vm0, %v10274_v5, %v10439_v13  ;;  %v4911_v5 = vadd.f32 %v4906_v52, %v4743_v53 }
 0xd5b   :  { %v4888_v43 = vadd.f32 %v4883_v38, %v10349_v10 }
 0xd5c   :  { %v5078_v39 = vadd.f32 %v10190_v63, %v4911_v5 }
 0xd5d   :  { %v5260_v12 = vpop.permute.xlu1 %5259  ;;  %v10454_v8 = vpop.permute.xlu0 %4904 }
 0xd5e   :  { %v10449_v54 = vadd.f32 %v5260_v12, %v5102_v20  ;;  %v4907_v62 = vsel %vm424_vm0, %v10283_v42, %v10454_v8  ;;  %v5246_v53 = vadd.f32 %v10230_v22, %v5078_v39 }
 0xd5f   :  { %v10462_v49 = vadd.f32 %v4907_v62, %v10372_v31 }
 0xd61   :  { %v10459_v33 = vpop.permute.xlu1 %5139  ;;  %v10464_v10 = vpop.permute.xlu0 %4928 }
 0xd62   :  { %v4931_v20 = vsel %vm424_vm0, %v10293_v14, %v10464_v10 }
 0xd63   :  { %v4936_v9 = vadd.f32 %v4931_v20, %v4768_v29 }
 0xd65   :  { %v10469_v34 = vpop.permute.xlu1 %5403  ;;  %v4953_v38 = vpop.permute.xlu0 %4952 }
 0xd66   :  { %v4955_v42 = vsel %vm424_vm0, %v10307_v27, %v4953_v38  ;;  %v10474_v44 = vadd.f32 %v4953_v38, %v4793_v7  ;;  %v5414_v62 = vadd.f32 %v10469_v34, %v5246_v53 }
 0xd67   :  { %v10478_v31 = vadd.f32 %v4955_v42, %v4792_v40 }
 0xd68   :  { %11337 = vst [vmem:[#allocation57_spill] sm:$0xff] %v10474_v44 }
 0xd69   :  { %v10476_v52 = vpop.permute.xlu1 %5307  ;;  %11338 = vst [vmem:[#allocation59_spill] sm:$0xff] %v10478_v31  ;;  %v10482_v14 = vpop.permute.xlu0 %4976 }
 0xd6a   :  { %11339 = vst [vmem:[#allocation64_spill] sm:$0xff] %v10482_v14  ;;  %v4979_v29 = vsel %vm424_vm0, %v10325_v41, %v10482_v14 }
 0xd6b   :  { %v4984_v20 = vadd.f32 %v4979_v29, %v4816_v30 }
 0xd6d   :  { %v10487_v5 = vpop.permute.xlu1 %5571  ;;  %v5005_v38 = vpop.permute.xlu0 %5004 }
 0xd6e   :  { %v5582_v7 = vadd.f32 %v10487_v5, %v5414_v62  ;;  %v5007_v40 = vsel %vm597_vm1, %v10344_v57, %v5005_v38  ;;  %v10493_v39 = vadd.f32 %v5005_v38, %v4841_v50 }
 0xd6f   :  { %v10497_v53 = vadd.f32 %v5007_v40, %v4840_v48 }
 0xd70   :  { %5703 = vrot.lane.b32.xlu1 %v5582_v7, %s6407_s27  ;;  %11340 = vst [vmem:[#allocation67_spill] sm:$0xff] %v10493_v39  ;;  %v11349_v39 = vld [vmem:[#allocation32_spill] sm:$0xff] }
 0xd71   :  { %v10495_v42 = vpop.permute.xlu1 %5475  ;;  %11341 = vst [vmem:[#allocation44_spill] sm:$0xff] %v10497_v53  ;;  %v5029_v21 = vpop.permute.xlu0 %5028 }
 0xd72   :  { %v5031_v44 = vsel %vm597_vm1, %v10367_v45, %v5029_v21 }
 0xd73   :  { %v5036_v30 = vadd.f32 %v5031_v44, %v4864_v28 }
 0xd75   :  { %v10501_v31 = vpop.permute.xlu1 %5643  ;;  %v5053_v62 = vpop.permute.xlu0 %5052 }
 0xd76   :  { %v5055_v29 = vsel %vm597_vm1, %v10394_v37, %v5053_v62 }
 0xd77   :  { %v5060_v14 = vadd.f32 %v5055_v29, %v4888_v43 }
 0xd79   :  { %v5073_v7 = vpop.permute.xlu1 %5072  ;;  %v5214_v57 = vpop.permute.xlu0 %5213 }
 0xd7a   :  { %v5217_v50 = vsel %vm11342_vm12, %v5212_v60, %v5214_v57  ;;  %vm11354_vm12 = vmmov %vm11353_vm4 }
 0xd7b   :  { %v5223_v48 = vadd.f32 %v5217_v50, %v5060_v14 }
 0xd7d   :  { %v10506_v38 = vpop.permute.xlu1 %5093  ;;  %v5382_v53 = vpop.permute.xlu0 %5381 }
 0xd7e   :  { %v5097_v40 = vsel %vm597_vm1, %v10408_v1, %v10506_v38  ;;  %v5385_v28 = vsel %vm930_vm13, %v10436_v61, %v5382_v53 }
 0xd7f   :  { %v5103_v45 = vadd.f32 %v5097_v40, %v4936_v9  ;;  %v10515_v37 = vadd.f32 %v5385_v28, %v5223_v48 }
 0xd81   :  { %v10513_v44 = vpop.permute.xlu1 %5117  ;;  %11343 = vst [vmem:[#allocation47_spill] sm:$0xff] %v10515_v37  ;;  %v10517_v43 = vpop.permute.xlu0 %5261 }
 0xd82   :  { %v5265_v60 = vsel %vm11344_vm7, %v5260_v12, %v10517_v43  ;;  %v4810_v12 = vsel %vm255_vm15, %v11349_v39, %v10244_v24  ;;  %v5074_v24 = vsel %vm597_vm1, %v10190_v63, %v5073_v7  ;;  %vm11355_vm7 = vmmov %vm11353_vm4 }
 0xd83   :  { %v10521_v14 = vadd.f32 %v5265_v60, %v5103_v45  ;;  %v4647_v60 = vmul.f32 0.0, %v9716_v23  ;;  %v4913_v23 = vadd.f32 %v10454_v8, %v10365_v35  ;;  %v4865_v8 = vadd.f32 %v10431_v16, %v10323_v47 }
 0xd84   :  { %v5218_v47 = vsel %vm11355_vm7, %v5214_v57, %v10071_v19  ;;  %v11359_v57 = vld [vmem:[#allocation21_spill] sm:$0xff] }
 0xd85   :  { %v5190_v29 = vpop.permute.xlu1 %5189  ;;  %11345 = vst [vmem:[#allocation45_spill] sm:$0xff] %v10521_v14  ;;  %v10527_v50 = vpop.permute.xlu0 %5141  ;;  %v4640_v14 = vmul.f32 0.0, %v9809_v11  ;;  %v4815_v39 = vadd.f32 %v4810_v12, %v4647_v60  ;;  %v5079_v11 = vadd.f32 %v5074_v24, %v10462_v49  ;;  %v5080_v32 = vadd.f32 %v5073_v7, %v4913_v23 }
 0xd86   :  { %v5193_v1 = vsel %vm11346_vm14, %v10420_v55, %v5190_v29  ;;  %11348 = vst [vmem:[#allocation55_spill] sm:$0xff] %v10527_v50  ;;  %v5145_v48 = vsel %vm597_vm1, %v10459_v33, %v10527_v50  ;;  %v11350_v55 = vld [vmem:[#allocation30_spill] sm:$0xff]  ;;  %v5390_v49 = vadd.f32 %v10436_v61, %v10429_v59  ;;  %v5037_v60 = vadd.f32 %v5029_v21, %v4865_v8 }
 0xd87   :  { %v10525_v9 = vadd.f32 %v5193_v1, %v5036_v30  ;;  %v5151_v28 = vadd.f32 %v5145_v48, %v4984_v20  ;;  %v4786_v30 = vsel %vm255_vm15, %v11350_v55, %v10234_v4  ;;  %v5366_v20 = vadd.f32 %v10210_v36, %v10423_v3 }
 0xd88   :  { %v4791_v48 = vadd.f32 %v4786_v30, %v4640_v14  ;;  %vm11356_vm14 = vcmask 261120  }
 0xd89   :  { %11347 = vst [vmem:[#allocation54_spill] sm:$0xff] %v10525_v9  ;;  %v10532_v40 = vpop.permute.xlu1 %5357  ;;  %v5406_v45 = vpop.permute.xlu0 %5405  ;;  %v11351_v9 = vld [vmem:[#allocation42_spill] sm:$0xff]  ;;  %v5534_v3 = vadd.f32 %v10220_v25, %v5366_v20 }
 0xd8a   :  { %v4978_v50 = vsel %vm424_vm0, %v11351_v9, %v10325_v41 }
 0xd8b   :  { %v4983_v55 = vadd.f32 %v4978_v50, %v4815_v39  ;;  %v4889_v50 = vadd.f32 %v10439_v13, %v10342_v46  ;;  %v5362_v46 = vsel %vm930_vm13, %v10532_v40, %v10079_v26 }
 0xd8d   :  { %v10541_v1 = vpop.permute.xlu1 %5525  ;;  %v10553_v4 = vpop.permute.xlu0 %5309  ;;  %v5061_v61 = vadd.f32 %v5053_v62, %v4889_v50  ;;  %v4954_v62 = vsel %vm424_vm0, %v11359_v57, %v10307_v27  ;;  %v11377_v57 = vld [vmem:[#allocation64_spill] sm:$0xff] }
 0xd8e   :  { %v5313_v41 = vsel %vm11245_vm5, %v10476_v52, %v10553_v4  ;;  %vm11357_vm5 = vmmov %vm11356_vm14 }
 0xd8f   :  { %v5319_v37 = vadd.f32 %v5313_v41, %v5151_v28  ;;  %v5194_v28 = vsel %vm11354_vm12, %v5190_v29, %v10066_v58  ;;  %v5224_v30 = vadd.f32 %v5218_v47, %v5061_v61 }
 0xd91   :  { %v5238_v9 = vpop.permute.xlu1 %5237  ;;  %v5574_v12 = vpop.permute.xlu0 %5573 }
 0xd92   :  { %v5241_v63 = vsel %vm11352_vm6, %v10230_v22, %v5238_v9  ;;  %v5242_v35 = vsel %vm11353_vm4, %v5238_v9, %v10105_v15  ;;  %v5409_v22 = vsel %vm930_vm13, %v10469_v34, %v5406_v45  ;;  %v5410_v15 = vsel %vm930_vm13, %v5406_v45, %v10133_v17  ;;  %v11358_v17 = vld [vmem:[#allocation22_spill] sm:$0xff]  ;;  %vm11360_vm6 = vmmov %vm11357_vm5  ;;  %v11363_v9 = vld [vmem:[#allocation40_spill] sm:$0xff] }
 0xd93   :  { %v5247_v7 = vadd.f32 %v5241_v63, %v5079_v11  ;;  %v5248_v14 = vadd.f32 %v5242_v35, %v5080_v32  ;;  %v5577_v58 = vsel %vm11356_vm14, %v10487_v5, %v5574_v12  ;;  %v5578_v13 = vsel %vm11357_vm5, %v5574_v12, %v10156_v0  ;;  %vm11361_vm4 = vmmov %vm11357_vm5 }
 0xd94   :  { %v5386_v21 = vsel %vm930_vm13, %v5382_v53, %v11358_v17  ;;  %v5200_v34 = vadd.f32 %v5194_v28, %v5037_v60  ;;  %v5558_v45 = vadd.f32 %v10240_v2, %v5390_v49  ;;  %v5530_v26 = vsel %vm11360_vm6, %v10541_v1, %v10092_v56  ;;  %vm11364_vm12 = vmmov %vm11361_vm4  ;;  %v11367_v28 = vld [vmem:[#allocation36_spill] sm:$0xff]  ;;  %v11369_v60 = vld [vmem:[#allocation46_spill] sm:$0xff] }
 0xd95   :  { %v5415_v59 = vadd.f32 %v5409_v22, %v5247_v7  ;;  %v5416_v16 = vadd.f32 %v5410_v15, %v5248_v14  ;;  %v5550_v32 = vpop.permute.xlu1 %5549  ;;  %v10594_v5 = vpop.permute.xlu0 %5477  ;;  %v5150_v0 = vadd.f32 %v10459_v33, %v4983_v55  ;;  %v5392_v39 = vadd.f32 %v5386_v21, %v5224_v30  ;;  %v11362_v55 = vld [vmem:[#allocation37_spill] sm:$0xff]  ;;  %v11368_v15 = vld [vmem:[#allocation48_spill] sm:$0xff]  ;;  %vm11370_vm14 = vmmov %vm11361_vm4 }
 0xd96   :  { %v5368_v20 = vadd.f32 %v5362_v46, %v5200_v34  ;;  %v5481_v53 = vsel %vm930_vm13, %v10495_v42, %v10594_v5  ;;  %v5554_v24 = vsel %vm11361_vm4, %v5550_v32, %v10118_v51  ;;  %v4959_v56 = vadd.f32 %v4954_v62, %v4791_v48  ;;  %v11365_v48 = vld [vmem:[#allocation28_spill] sm:$0xff]  ;;  %v11375_v34 = vld [vmem:[#allocation47_spill] sm:$0xff]  ;;  %vm11379_vm5 = vmmov %vm11355_vm7 }
 0xd97   :  { %v5583_v29 = vadd.f32 %v5577_v58, %v5415_v59  ;;  %v5584_v19 = vadd.f32 %v5578_v13, %v5416_v16  ;;  %v5487_v23 = vadd.f32 %v5481_v53, %v5319_v37  ;;  %v5318_v11 = vadd.f32 %v10476_v52, %v5150_v0  ;;  %v11371_v59 = vld [vmem:[#allocation39_spill] sm:$0xff]  ;;  %v11372_v46 = vld [vmem:[#allocation52_spill] sm:$0xff]  ;;  %v11374_v13 = vld [vmem:[#allocation10_spill] sm:$0xff] }
 0xd98   :  { %v5536_v33 = vadd.f32 %v5530_v26, %v5368_v20  ;;  %v5660_v41 = vmul.f32 %v11362_v55, %v5534_v3  ;;  %v5680_v63 = vmul.f32 %v11363_v9, %v5558_v45  ;;  %v5438_v35 = vadd.f32 %v10260_v6, %v10449_v54  ;;  %v11366_v54 = vld [vmem:[#allocation62_spill] sm:$0xff]  ;;  %v11378_v45 = vld [vmem:[#allocation59_spill] sm:$0xff]  ;;  %vm11385_vm6 = vmmov %vm11361_vm4 }
 0xd99   :  { %5707 = vrot.lane.b32.xlu1 %v5584_v19, %s6407_s27  ;;  %v10603_v27 = vpop.permute.xlu1 %5285  ;;  %5705 = vrot.lane.b32.xlu0 %v5583_v29, %s6407_s27  ;;  %v5560_v51 = vadd.f32 %v5554_v24, %v5392_v39  ;;  %v10611_v8 = vpop.permute.xlu0 %5645  ;;  %v5486_v49 = vadd.f32 %v10495_v42, %v5318_v11  ;;  %v5098_v3 = vsel %vm597_vm1, %v10506_v38, %v11365_v48  ;;  %v11376_v19 = vld [vmem:[#allocation56_spill] sm:$0xff]  ;;  %v11381_v26 = vld [vmem:[#allocation7_spill] sm:$0xff]  ;;  %v11383_v53 = vld [vmem:[#allocation54_spill] sm:$0xff] }
 0xd9a   :  { %v5649_v37 = vsel %vm11364_vm12, %v10501_v31, %v10611_v8  ;;  %v5126_v14 = vadd.f32 %v11366_v54, %v4959_v56  ;;  %v4937_v42 = vadd.f32 %v10464_v10, %v10392_v18  ;;  %v5662_v22 = vmul.f32 %v11367_v28, %v5536_v33  ;;  %v11382_v0 = vld [vmem:[#allocation55_spill] sm:$0xff]  ;;  %v11384_v39 = vld [vmem:[#allocation45_spill] sm:$0xff]  ;;  %vm11388_vm12 = vmmov %vm11361_vm4 }
 0xd9b   :  { %v10621_v7 = vadd.f32 %v5649_v37, %v5487_v23  ;;  %v5654_v50 = vadd.f32 %v10501_v31, %v5486_v49  ;;  %v5606_v12 = vadd.f32 %v11368_v15, %v5438_v35  ;;  %v5266_v47 = vsel %vm11355_vm7, %v10517_v43, %v11369_v60  ;;  %v11386_v55 = vld [vmem:[#allocation49_spill] sm:$0xff]  ;;  %vm11392_vm7 = vmmov %vm11379_vm5 }
 0xd9c   :  { %v5553_v38 = vsel %vm11370_vm14, %v10240_v2, %v5550_v32  ;;  %v5682_v16 = vmul.f32 %v11371_v59, %v5560_v51  ;;  %v5104_v61 = vadd.f32 %v5098_v3, %v4937_v42  ;;  %v5121_v18 = vsel %vm597_vm1, %v11366_v54, %v10513_v44  ;;  %v11373_v32 = vld [vmem:[#allocation66_spill] sm:$0xff]  ;;  %v11389_v51 = vld [vmem:[#allocation41_spill] sm:$0xff]  ;;  %vm11396_vm14 = vmmov %vm11379_vm5 }
 0xd9d   :  { %5666 = vrot.lane.b32.xlu1 %v5660_v41, %s6405_s21  ;;  %v5430_v52 = vpop.permute.xlu1 %5429  ;;  %5686 = vrot.lane.b32.xlu0 %v5680_v63, %s6406_s22  ;;  %v5361_v31 = vsel %vm930_vm13, %v10210_v36, %v10532_v40  ;;  %v5294_v58 = vadd.f32 %v11373_v32, %v5126_v14  ;;  %v5757_v17 = vmul.f32 %v11374_v13, %v5654_v50  ;;  %v11380_v40 = vld [vmem:[#allocation13_spill] sm:$0xff]  ;;  %v11397_v59 = vld [vmem:[#allocation50_spill] sm:$0xff] }
 0xd9e   :  { %v5433_v43 = vsel %vm930_vm13, %v10260_v6, %v5430_v52  ;;  %v5434_v2 = vsel %vm930_vm13, %v5430_v52, %v11372_v46  ;;  %v5272_v21 = vadd.f32 %v5266_v47, %v5104_v61  ;;  %v5559_v29 = vadd.f32 %v5553_v38, %v11375_v34  ;;  %v11387_v63 = vld [vmem:[#allocation101_spill] sm:$0xff]  ;;  %v11395_v38 = vld [vmem:[#allocation51_spill] sm:$0xff]  ;;  %v11403_v34 = vld [vmem:[#allocation58_spill] sm:$0xff] }
 0xd9f   :  { %v4985_v62 = vadd.f32 %v11377_v57, %v11376_v19  ;;  %v5127_v36 = vadd.f32 %v5121_v18, %v11378_v45  ;;  %v5289_v6 = vsel %vm11379_vm5, %v11373_v32, %v10603_v27  ;;  %v5717_v30 = vmul.f32 %v11380_v40, %v5606_v12  ;;  %v11390_v54 = vld [vmem:[#allocation33_spill] sm:$0xff]  ;;  %vm11398_vm5 = vmmov %vm11361_vm4 }
 0xda0   :  { %v5146_v20 = vsel %vm597_vm1, %v11382_v0, %v11381_v26  ;;  %v5367_v24 = vadd.f32 %v5361_v31, %v11383_v53  ;;  %v5439_v23 = vadd.f32 %v5433_v43, %v11384_v39  ;;  %v5440_v56 = vadd.f32 %v5434_v2, %v5272_v21  ;;  %v11394_v60 = vld [vmem:[#allocation53_spill] sm:$0xff]  ;;  %v11400_v31 = vld [vmem:[#allocation8_spill] sm:$0xff]  ;;  %v11401_v2 = vld [vmem:[#allocation90_spill] sm:$0xff]  ;;  %v5164_v39 = vpop.permute.xlu0 %5163 }
 0xda1   :  { %5670 = vrot.lane.b32.xlu1 %v5662_v22, %s6405_s21  ;;  %v5454_v10 = vpop.permute.xlu1 %5453  ;;  %5690 = vrot.lane.b32.xlu0 %v5682_v16, %s6406_s22  ;;  %v5529_v33 = vsel %vm11385_vm6, %v10220_v25, %v10541_v1  ;;  %v5681_v49 = vmul.f32 %v5559_v29, %v11389_v51  ;;  %v5295_v37 = vadd.f32 %v5289_v6, %v5127_v36  ;;  %v11391_v1 = vld [vmem:[#allocation91_spill] sm:$0xff]  ;;  %vm11404_vm6 = vmmov %vm11361_vm4  ;;  %v11406_v6 = vld [vmem:[#allocation17_spill] sm:$0xff] }
 0xda2   :  { %v5457_v41 = vsel %vm930_vm13, %v11386_v55, %v5454_v10  ;;  %v5462_v3 = vadd.f32 %v11386_v55, %v5294_v58  ;;  %v5122_v25 = vsel %vm597_vm1, %v10513_v44, %v11390_v54  ;;  %v5314_v14 = vsel %vm11392_vm7, %v10553_v4, %v11391_v1  ;;  %v11393_v22 = vld [vmem:[#allocation11_spill] sm:$0xff]  ;;  %v11399_v4 = vld [vmem:[#allocation57_spill] sm:$0xff]  ;;  %v11402_v58 = vld [vmem:[#allocation38_spill] sm:$0xff] }
 0xda3   :  { %v5152_v42 = vadd.f32 %v5146_v20, %v4985_v62  ;;  %v5535_v50 = vadd.f32 %v5529_v33, %v5367_v24  ;;  %v5463_v28 = vadd.f32 %v5457_v41, %v5295_v37  ;;  %v5482_v47 = vsel %vm930_vm13, %v10594_v5, %v11394_v60  ;;  %v11405_v62 = vld [vmem:[#allocation15_spill] sm:$0xff]  ;;  %v11408_v0 = vld [vmem:[#allocation14_spill] sm:$0xff]  ;;  %v11410_v37 = vld [vmem:[#allocation60_spill] sm:$0xff] }
 0xda4   :  { %v5290_v44 = vsel %vm11396_vm14, %v10603_v27, %v11395_v38  ;;  %v5128_v61 = vadd.f32 %v5122_v25, %v11399_v4  ;;  %v5458_v32 = vsel %vm930_vm13, %v5454_v10, %v11401_v2  ;;  %v5630_v27 = vadd.f32 %v11397_v59, %v5462_v3  ;;  %v11413_v25 = vld [vmem:[#allocation6_spill] sm:$0xff]  ;;  %v11414_v1 = vld [vmem:[#allocation25_spill] sm:$0xff]  ;;  %v11418_v38 = vld [vmem:[#allocation67_spill] sm:$0xff] }
 0xda5   :  { %5763 = vrot.lane.b32.xlu1 %v5757_v17, %s6410_s15  ;;  %v5598_v11 = vpop.permute.xlu1 %5597  ;;  %5723 = vrot.lane.b32.xlu0 %v5717_v30, %s6408_s30  ;;  %v5320_v18 = vadd.f32 %v5314_v14, %v5152_v42  ;;  %v5661_v5 = vmul.f32 %v5535_v50, %v11402_v58  ;;  %v11407_v30 = vld [vmem:[#allocation16_spill] sm:$0xff]  ;;  %v4834_v14 = vsel %vm424_vm0, %v11414_v1, %v11413_v25  ;;  %vm11421_vm0 = vmmov %vm11361_vm4 }
 0xda6   :  { %v5601_v9 = vsel %vm11361_vm4, %v11368_v15, %v5598_v11  ;;  %v5602_v35 = vsel %vm11388_vm12, %v5598_v11, %v11387_v63  ;;  %v5296_v17 = vadd.f32 %v5290_v44, %v5128_v61  ;;  %v5737_v40 = vmul.f32 %v11406_v6, %v5630_v27  ;;  %vm11415_vm12 = vmmov %vm11392_vm7  ;;  %v11419_v61 = vld [vmem:[#allocation44_spill] sm:$0xff]  ;;  %v11423_v6 = vld [vmem:[#allocation23_spill] sm:$0xff] }
 0xda7   :  { %v5607_v52 = vadd.f32 %v5601_v9, %v5439_v23  ;;  %v5608_v48 = vadd.f32 %v5602_v35, %v5440_v56  ;;  %v5488_v13 = vadd.f32 %v5482_v47, %v5320_v18  ;;  %v5168_v56 = vpop.permute.xlu0 %5167 }
 0xda8   :  { %v5464_v57 = vadd.f32 %v5458_v32, %v5296_v17 }
 0xda9   :  { %v5719_v15 = vmul.f32 %v11393_v22, %v5608_v48  ;;  %v5622_v12 = vpop.permute.xlu1 %5621  ;;  %5688 = vrot.lane.b32.xlu1 %v5681_v49, %s6406_s22  ;;  %v5718_v43 = vmul.f32 %v5607_v52, %v11400_v31  ;;  %v11411_v52 = vld [vmem:[#allocation31_spill] sm:$0xff]  ;;  %v11412_v48 = vld [vmem:[#allocation24_spill] sm:$0xff]  ;;  %v11416_v22 = vld [vmem:[#allocation61_spill] sm:$0xff] }
 0xdaa   :  { %v5625_v16 = vsel %vm11398_vm5, %v11397_v59, %v5622_v12  ;;  %v5626_v29 = vsel %vm11404_vm6, %v5622_v12, %v11403_v34  ;;  %v4605_v3 = vmul.f32 0.0, %v11412_v48 }
 0xdab   :  { %v5631_v46 = vadd.f32 %v5625_v16, %v5463_v28  ;;  %5727 = vrot.lane.b32.xlu0 %v5719_v15, %s6408_s30  ;;  %v5632_v10 = vadd.f32 %v5626_v29, %v5464_v57  ;;  %v5500_v33 = vpop.permute.xlu0 %5499  ;;  %v11417_v15 = vld [vmem:[#allocation35_spill] sm:$0xff] }
 0xdac   :  { %v5006_v12 = vsel %vm597_vm1, %v11417_v15, %v11416_v22 }
 0xdad   :  { %v5648_v21 = vpop.permute.xlu1 %5647  ;;  %5725 = vrot.lane.b32.xlu1 %v5718_v43, %s6408_s30  ;;  %v5738_v45 = vmul.f32 %v5631_v46, %v11405_v62  ;;  %v5739_v20 = vmul.f32 %v11408_v0, %v5632_v10  ;;  %v11422_v62 = vld [vmem:[#allocation19_spill] sm:$0xff] }
 0xdae   :  { %v5650_v19 = vsel %vm11361_vm4, %v10611_v8, %v5648_v21  ;;  %v11409_v8 = vld [vmem:[#allocation18_spill] sm:$0xff] }
 0xdaf   :  { %v5656_v36 = vadd.f32 %v5650_v19, %v5488_v13  ;;  %5668 = vrot.lane.b32.xlu0 %v5661_v5, %s6405_s21  ;;  %v5758_v53 = vmul.f32 %v10621_v7, %v11409_v8  ;;  %v5504_v41 = vpop.permute.xlu0 %5503  ;;  %v4666_v7 = vsel %vm255_vm15, %v11411_v52, %v11410_v37  ;;  %vm11420_vm15 = vmmov %vm11361_vm4  ;;  %s5808_s21 = sshll.u32 %s6422_s12, 4  ;;  %s5809_s21 = int_to_ptr.vmem [resolvable:$true] %s5808_s21 }
 0xdb0   :  { %v4671_v28 = vadd.f32 %v4666_v7, %v4605_v3  ;;  %s6319_s30 = scalar_lea.vmem %s5809_s21, 256  ;;  %p6324_p1 = scmp.lt.s32.totalorder %s5809_s21, %s5809_s21 }
 0xdb1   :  { %5745 = vrot.lane.b32.xlu1 %v5738_v45, %s6409_s14  ;;  %v5759_v26 = vmul.f32 %v11407_v30, %v5656_v36  ;;  %v5332_v24 = vpop.permute.xlu1 %5331  ;;  %p6320_p0 = scmp.ne.s32.totalorder %s5809_s21, %s6319_s30  ;;  %p6325_p2 = scmp.lt.s32.totalorder %s6319_s30, %s6319_s30 }
 0xdb2   :  { %v4839_v47 = vadd.f32 %v4834_v14, %v4671_v28 }
 0xdb3   :  { %5743 = vrot.lane.b32.xlu0 %v5737_v40, %s6409_s14  ;;  %v5334_v35 = vpop.permute.xlu0 %5333  ;;  %p6326_p3 = por %p6325_p2, %p6324_p1 }
 0xdb4   :  { %v5011_v4 = vadd.f32 %v5006_v12, %v4839_v47  ;;  %v5337_v32 = vsel %vm930_vm13, %v5332_v24, %v5334_v35 }
 0xdb5   :  { %5767 = vrot.lane.b32.xlu1 %v5759_v26, %s6410_s15  ;;  %v5336_v23 = vpop.permute.xlu1 %5335  ;;  %v11424_v26 = vld [vmem:[#allocation20_spill] sm:$0xff]  ;;  %p6327_p4 = pnand %p6326_p3, %p6320_p0 }
 0xdb6   :  { %v5338_v31 = vsel %vm930_vm13, %v5334_v35, %v5336_v23  ;;  %v5174_v43 = vadd.f32 %v5164_v39, %v5011_v4  ;;  %vm11426_vm13 = vcmask 416768  }
 0xdb7   :  { %5747 = vrot.lane.b32.xlu0 %v5739_v20, %s6409_s14  ;;  %vm11427_vm1 = vmmov %vm11426_vm13 }
 0xdb8   :  { %v5342_v5 = vadd.f32 %v5332_v24, %v5174_v43  ;;  %v6317_v43 = vld [vmem:[%s10777_s0] sm:$0xff] }
 0xdba   :  { %v5510_v29 = vadd.f32 %v5500_v33, %v5342_v5 }
 0xdbb   :  { %5765 = vrot.lane.b32.xlu0 %v5758_v53, %s6410_s15 }
 0xdbc   :  { %v5657_v40 = vmul.f32 %v11423_v6, %v5510_v29 }
 0xdc6   :  { %v10716_v11 = vpop.permute.xlu1 %5779 }
 0xdca   :  { %v5166_v55 = vpop.permute.xlu1 %5165 }
 0xdcb   :  { %v5170_v42 = vsel %vm11415_vm12, %v5166_v55, %v5168_v56  ;;  %v5169_v60 = vsel %vm11392_vm7, %v5164_v39, %v5166_v55 }
 0xdcc   :  { %v5176_v44 = vadd.f32 %v5170_v42, %v11418_v38  ;;  %v5175_v18 = vadd.f32 %v5169_v60, %v11419_v61 }
 0xdce   :  { %v5502_v9 = vpop.permute.xlu1 %5501  ;;  %v5344_v46 = vadd.f32 %v5338_v31, %v5176_v44  ;;  %v5343_v13 = vadd.f32 %v5337_v32, %v5175_v18 }
 0xdcf   :  { %v5506_v58 = vsel %vm11420_vm15, %v5502_v9, %v5504_v41  ;;  %v5505_v21 = vsel %vm11421_vm0, %v5500_v33, %v5502_v9 }
 0xdd0   :  { %v5512_v27 = vadd.f32 %v5506_v58, %v5344_v46  ;;  %v5511_v19 = vadd.f32 %v5505_v21, %v5343_v13 }
 0xdd2   :  { %v5659_v45 = vmul.f32 %v11422_v62, %v5512_v27  ;;  %v5658_v0 = vmul.f32 %v5511_v19, %v11424_v26 }
 0xde2   :  { %v5704_v63 = vpop.permute.xlu1 %5703 }
 0xe0b   :  { %v5708_v51 = vpop.permute.xlu1 %5707  ;;  %v5706_v49 = vpop.permute.xlu0 %5705 }
 0xe0c   :  { %v5709_v9 = vsel %vm1339_vm10, %v5704_v63, %v5706_v49  ;;  %v5710_v35 = vsel %vm1339_vm10, %v5706_v49, %v5708_v51 }
 0xe0f   :  { %v5667_v54 = vpop.permute.xlu1 %5666  ;;  %v5687_v50 = vpop.permute.xlu0 %5686 }
 0xe13   :  { %v5671_v59 = vpop.permute.xlu1 %5670  ;;  %v5691_v16 = vpop.permute.xlu0 %5690 }
 0xe14   :  { %v5679_v36 = vadd.f32 %v5671_v59, %v5659_v45 }
 0xe16   :  { %v5699_v56 = vadd.f32 %v5691_v16, %v5679_v36 }
 0xe17   :  { %v5764_v2 = vpop.permute.xlu1 %5763  ;;  %v5724_v17 = vpop.permute.xlu0 %5723 }
 0xe1b   :  { %v5689_v34 = vpop.permute.xlu1 %5688 }
 0xe1c   :  { %v5692_v39 = vsel %vm1321_vm9, %v5687_v50, %v5689_v34  ;;  %v5693_v23 = vsel %vm1321_vm9, %v5689_v34, %v5691_v16 }
 0xe1d   :  { %v5728_v57 = vpop.permute.xlu0 %5727 }
 0xe1f   :  { %v5726_v10 = vpop.permute.xlu1 %5725 }
 0xe20   :  { %v5729_v48 = vsel %vm1371_vm11, %v5724_v17, %v5726_v10  ;;  %v5730_v3 = vsel %vm1371_vm11, %v5726_v10, %v5728_v57 }
 0xe21   :  { %v5669_v30 = vpop.permute.xlu0 %5668 }
 0xe22   :  { %v5672_v20 = vsel %vm1289_vm8, %v5667_v54, %v5669_v30  ;;  %v5673_v8 = vsel %vm1289_vm8, %v5669_v30, %v5671_v59  ;;  %v5716_v54 = vadd.f32 %v5708_v51, %v5699_v56 }
 0xe23   :  { %v5677_v53 = vadd.f32 %v5672_v20, %v5657_v40  ;;  %v5678_v24 = vadd.f32 %v5673_v8, %v5658_v0  ;;  %v5746_v37 = vpop.permute.xlu1 %5745 }
 0xe24   :  { %v5736_v50 = vadd.f32 %v5728_v57, %v5716_v54 }
 0xe25   :  { %v5697_v33 = vadd.f32 %v5692_v39, %v5677_v53  ;;  %v5698_v55 = vadd.f32 %v5693_v23, %v5678_v24  ;;  %v5744_v41 = vpop.permute.xlu0 %5743 }
 0xe26   :  { %v5749_v28 = vsel %vm1403_vm2, %v5744_v41, %v5746_v37 }
 0xe27   :  { %v5714_v52 = vadd.f32 %v5709_v9, %v5697_v33  ;;  %v5715_v7 = vadd.f32 %v5710_v35, %v5698_v55  ;;  %v5768_v63 = vpop.permute.xlu1 %5767 }
 0xe29   :  { %v5734_v25 = vadd.f32 %v5729_v48, %v5714_v52  ;;  %v5748_v1 = vpop.permute.xlu0 %5747  ;;  %v5735_v14 = vadd.f32 %v5730_v3, %v5715_v7 }
 0xe2a   :  { %v5750_v42 = vsel %vm1403_vm2, %v5746_v37, %v5748_v1  ;;  %v5756_v49 = vadd.f32 %v5748_v1, %v5736_v50 }
 0xe2b   :  { %v5754_v22 = vadd.f32 %v5749_v28, %v5734_v25  ;;  %v5755_v15 = vadd.f32 %v5750_v42, %v5735_v14 }
 0xe2c   :  { %v5776_v51 = vadd.f32 %v5768_v63, %v5756_v49 }
 0xe2d   :  { %v5766_v12 = vpop.permute.xlu0 %5765 }
 0xe2e   :  { %v5769_v60 = vsel %vm1435_vm3, %v5764_v2, %v5766_v12  ;;  %v5770_v47 = vsel %vm1435_vm3, %v5766_v12, %v5768_v63  ;;  %v5784_v4 = vadd.f32 %v10716_v11, %v5776_v51 }
 0xe2f   :  { %v5774_v38 = vadd.f32 %v5769_v60, %v5754_v22  ;;  %v5775_v44 = vadd.f32 %v5770_v47, %v5755_v15 }
 0xe31   :  { %v5782_v59 = vadd.f32 %v10716_v11, %v5774_v38  ;;  %v5783_v16 = vadd.f32 %v10716_v11, %v5775_v44  ;;  %v6318_v11 = vld [vmem:[%s10777_s0 + $0x8] sm:$0xff] }
 0xe33   :  { %5788 = vrot.lane.b32.xlu0 %v5782_v59, %s11425_s6  ;;  %5790 = vrot.lane.b32.xlu1 %v5783_v16, %s11425_s6 }
 0xe37   :  { %5792 = vrot.lane.b32.xlu0 %v5784_v4, %s11425_s6 }
 0xea5   :  { %v5789_v61 = vpop.permute.xlu0 %5788  ;;  %v5791_v18 = vpop.permute.xlu1 %5790 }
 0xea6   :  { %v5794_v31 = vsel %vm11426_vm13, %v5789_v61, %v5791_v18 }
 0xea7   :  { %v5798_v46 = vadd.f32 %v6317_v43, %v5794_v31 }
 0xea9   :  { %5800 = vst [vmem:[#allocation3] sm:$0xff] %v5798_v46  ;;  %v5793_v2 = vpop.permute.xlu0 %5792 }
 0xeaa   :  { %v5795_v32 = vsel %vm11427_vm1, %v5791_v18, %v5793_v2 }
 0xeab   :  { %v5799_v58 = vadd.f32 %v6318_v11, %v5795_v32 }
 0xead   :  { %5801 = vst [vmem:[#allocation3 + $0x8] sm:$0xff] %v5799_v58 }
 0xeae   :  { %6330 = shalt.err (!%p6327_p4)
}
 0xeaf   :  { %s6331_s25 = scalar_lea.hbm %s10784_s7, 256 }
 0xeb0   :  { %p6332_p5 = scmp.ne.s32.totalorder %s10784_s7, %s6331_s25  ;;  %p6335_p6 = scmp.lt.u32.totalorder %s6331_s25, %s10784_s7 }
 0xeb2   :  { %p6337_p7 = pnand %p6335_p6, %p6332_p5 }
 0xeb4   :  { %6340 = shalt.err (!%p6337_p7)
}
 0xeb5   :  { %5811 = dma.vmem_to_hbm [thread:$0]  %s5809_s21, 256, %s10784_s7, [#allocation4]  }
 0xeb6   :  { %6341 = dma.done.wait [#allocation4], 256  }
 0xeb7   :  { %6342 = vsyncadd [#allocation4], 4294967040 }
 0xeb8   :  { %5815 = vsyncpa [#allocation4], 1 }

</bundles_post_ra>
